<compile_context>
chip_gen: v7x
topology: tpu7x:2x2x1
jax: 0.10.0
libtpu: 0.0.40
codegen_flags: <defaults>
</compile_context>

<pallas_src>
import functools

import numpy as np

import jax
import jax.numpy as jnp
from jax.experimental import pallas as pl
from jax.experimental.pallas import tpu as pltpu


# ----------------------------- Pallas kernels ------------------------------

def gemm_bias_act_kernel(a_ref, w_ref, b_ref, o_ref, *, act):
    """o = act(A @ W + b); bf16 MXU inputs, f32 accumulate + epilogue."""
    y = jnp.dot(a_ref[...], w_ref[...], preferred_element_type=jnp.float32)
    y = y + b_ref[...]
    if act == "leaky":
        y = jnp.where(y > 0, y, 0.2 * y)
    elif act == "sigmoid":
        # numerically stable sigmoid (EUP exp + exact divide)
        z = jnp.exp(-jnp.abs(y))
        y = jnp.where(y >= 0, 1.0 / (1.0 + z), z / (1.0 + z))
    o_ref[...] = y.astype(o_ref.dtype)


def gemm_bias_stats_kernel(a_ref, w_ref, b_ref, y_ref, sum_ref, sq_ref):
    """BN pass 1: y = A @ W + b per M-tile; accumulate per-channel sum and
    sum-of-squares across the (arbitrary) M grid axis."""
    @pl.when(pl.program_id(0) == 0)
    def _init():
        sum_ref[...] = jnp.zeros_like(sum_ref)
        sq_ref[...] = jnp.zeros_like(sq_ref)

    y = jnp.dot(a_ref[...], w_ref[...], preferred_element_type=jnp.float32)
    y = y + b_ref[...]
    y_ref[...] = y
    sum_ref[...] += jnp.sum(y, axis=0, keepdims=True)
    sq_ref[...] += jnp.sum(y * y, axis=0, keepdims=True)


def bn_lrelu_kernel(y_ref, scale_ref, shift_ref, o_ref):
    """BN pass 2: o = LeakyReLU_0.2(y * scale + shift)."""
    y = y_ref[...] * scale_ref[...] + shift_ref[...]
    o_ref[...] = jnp.where(y > 0, y, 0.2 * y).astype(o_ref.dtype)


# ------------------------------ call wrappers -------------------------------

def _itemsize(dt):
    return np.dtype(dt).itemsize


def _pick_tm(m, tm_max):
    """Largest row tile <= tm_max that divides M exactly (falls back to M)."""
    if m <= tm_max:
        return m
    for tm in (1024, 512, 256, 128, 64, 32, 16, 8):
        if tm <= tm_max and m % tm == 0:
            return tm
    return m


def conv_gemm(a, w, b, *, act, out_dtype=jnp.float32, tm_max=512):
    m, k = a.shape
    oc = w.shape[1]
    tm = _pick_tm(m, tm_max)
    grid = (m // tm,)
    bytes_acc = (a.size * _itemsize(a.dtype) + w.size * _itemsize(w.dtype)
                 + b.size * _itemsize(b.dtype) + m * oc * _itemsize(out_dtype))
    return pl.pallas_call(
        functools.partial(gemm_bias_act_kernel, act=act),
        out_shape=jax.ShapeDtypeStruct((m, oc), out_dtype),
        grid=grid,
        in_specs=[pl.BlockSpec((tm, k), lambda i: (i, 0)),
                  pl.BlockSpec((k, oc), lambda i: (0, 0)),
                  pl.BlockSpec((1, oc), lambda i: (0, 0))],
        out_specs=pl.BlockSpec((tm, oc), lambda i: (i, 0)),
        compiler_params=pltpu.CompilerParams(
            dimension_semantics=("parallel",)),
        cost_estimate=pl.CostEstimate(
            flops=2 * m * k * oc,
            transcendentals=m * oc if act == "sigmoid" else 0,
            bytes_accessed=int(bytes_acc)),
    )(a, w, b)


def conv_gemm_bn(a, w, b, gamma, beta, *, eps=1e-5,
                 out_dtype=jnp.bfloat16, tm_max=512):
    m, k = a.shape
    oc = w.shape[1]
    tm = _pick_tm(m, tm_max)
    grid = (m // tm,)

    # Pass 1: tiled GEMM + bias, per-channel sum / sum-of-squares accumulated
    # across the M grid axis (the stats blocks revisit -> "arbitrary").
    y, s1, s2 = pl.pallas_call(
        gemm_bias_stats_kernel,
        out_shape=(jax.ShapeDtypeStruct((m, oc), jnp.float32),
                   jax.ShapeDtypeStruct((1, oc), jnp.float32),
                   jax.ShapeDtypeStruct((1, oc), jnp.float32)),
        grid=grid,
        in_specs=[pl.BlockSpec((tm, k), lambda i: (i, 0)),
                  pl.BlockSpec((k, oc), lambda i: (0, 0)),
                  pl.BlockSpec((1, oc), lambda i: (0, 0))],
        out_specs=(pl.BlockSpec((tm, oc), lambda i: (i, 0)),
                   pl.BlockSpec((1, oc), lambda i: (0, 0)),
                   pl.BlockSpec((1, oc), lambda i: (0, 0))),
        compiler_params=pltpu.CompilerParams(
            dimension_semantics=("arbitrary",)),
        cost_estimate=pl.CostEstimate(
            flops=2 * m * k * oc, transcendentals=0,
            bytes_accessed=int(a.size * _itemsize(a.dtype)
                               + w.size * _itemsize(w.dtype)
                               + (m + 2) * oc * 4)),
    )(a, w, b)

    # Batch statistics (training-mode BN) -> fused scale / shift (tiny, XLA).
    mean = s1 / m
    var = jnp.maximum(s2 / m - mean * mean, 0.0)   # biased variance
    scale = gamma * jax.lax.rsqrt(var + eps)
    shift = beta - mean * scale

    # Pass 2: tiled normalize + affine + LeakyReLU (fully parallel over M).
    return pl.pallas_call(
        bn_lrelu_kernel,
        out_shape=jax.ShapeDtypeStruct((m, oc), out_dtype),
        grid=grid,
        in_specs=[pl.BlockSpec((tm, oc), lambda i: (i, 0)),
                  pl.BlockSpec((1, oc), lambda i: (0, 0)),
                  pl.BlockSpec((1, oc), lambda i: (0, 0))],
        out_specs=pl.BlockSpec((tm, oc), lambda i: (i, 0)),
        compiler_params=pltpu.CompilerParams(
            dimension_semantics=("parallel",)),
        cost_estimate=pl.CostEstimate(
            flops=3 * m * oc, transcendentals=0,
            bytes_accessed=int(m * oc * (4 + _itemsize(out_dtype)))),
    )(y, scale, shift)


# --------------------------------- glue ------------------------------------

def im2col_nhwc(x, kh, kw, stride, pad):
    """x: (N, H, W, C) -> (N*OH*OW, kh*kw*C); feature order i*kw*C + j*C + c."""
    n, h, w, c = x.shape
    xp = jnp.pad(x, ((0, 0), (pad, pad), (pad, pad), (0, 0)))
    oh = (h + 2 * pad - kh) // stride + 1
    ow = (w + 2 * pad - kw) // stride + 1
    cols = []
    for i in range(kh):
        for j in range(kw):
            cols.append(xp[:, i:i + stride * oh:stride,
                              j:j + stride * ow:stride, :])   # (N, OH, OW, C)
    patches = jnp.stack(cols, axis=3)                         # (N, OH, OW, kh*kw, C)
    return patches.reshape(n * oh * ow, kh * kw * c), oh, ow


def _wmat(w):
    """PyTorch (OC, IC, KH, KW) -> NHWC-im2col GEMM weight (KH*KW*IC, OC)."""
    oc = w.shape[0]
    return jnp.transpose(w, (2, 3, 1, 0)).reshape(-1, oc)


def init_params(key):
    ks = jax.random.split(key, 12)

    def cw(k, oc, ic, kh, kw):
        return (0.02 * jax.random.normal(k, (oc, ic, kh, kw))).astype(jnp.float32)

    def vec(k, n, scale=0.01):
        return (scale * jax.random.normal(k, (n,))).astype(jnp.float32)

    return {
        "w1": cw(ks[0], 64, 3, 4, 4),    "b1": vec(ks[1], 64),
        "w2": cw(ks[2], 128, 64, 4, 4),  "b2": vec(ks[3], 128),
        "g2": 1.0 + vec(ks[4], 128, 0.1), "be2": vec(ks[5], 128, 0.1),
        "w3": cw(ks[6], 256, 128, 4, 4), "b3": vec(ks[7], 256),
        "g3": 1.0 + vec(ks[8], 256, 0.1), "be3": vec(ks[9], 256, 0.1),
        "w4": cw(ks[10], 1, 256, 8, 8),  "b4": vec(ks[11], 1),
    }


def prepare_gemm_params(params):
    """One-time re-layout of PyTorch-style parameters into GEMM form."""
    w1 = jnp.pad(params["w1"], ((0, 0), (0, 1), (0, 0), (0, 0)))   # IC 3 -> 4 (K=64)
    w4 = jnp.pad(_wmat(params["w4"]), ((0, 0), (0, 127)))          # OC 1 -> 128
    b4 = jnp.pad(params["b4"].reshape(1, -1), ((0, 0), (0, 127)))
    return {
        "w1": _wmat(w1).astype(jnp.bfloat16),
        "b1": params["b1"].reshape(1, -1),
        "w2": _wmat(params["w2"]).astype(jnp.bfloat16),
        "b2": params["b2"].reshape(1, -1),
        "g2": params["g2"].reshape(1, -1), "be2": params["be2"].reshape(1, -1),
        "w3": _wmat(params["w3"]).astype(jnp.bfloat16),
        "b3": params["b3"].reshape(1, -1),
        "g3": params["g3"].reshape(1, -1), "be3": params["be3"].reshape(1, -1),
        "w4": w4.astype(jnp.bfloat16),
        "b4": b4,
    }


@jax.jit
def discriminator_forward(gp, x):
    """x: (N, 3, 64, 64) NCHW -> (N, 1) sigmoid scores."""
    n = x.shape[0]
    # Single layout change at the input; activations stay NHWC (bf16) after.
    h = jnp.transpose(x, (0, 2, 3, 1))
    h = jnp.pad(h, ((0, 0), (0, 0), (0, 0), (0, 1)))    # C: 3 -> 4
    h = h.astype(jnp.bfloat16)

    # Conv(3->64, k4, s2, p1) + LeakyReLU(0.2)
    a, oh, ow = im2col_nhwc(h, 4, 4, 2, 1)
    y = conv_gemm(a, gp["w1"], gp["b1"], act="leaky", out_dtype=jnp.bfloat16)
    h = y.reshape(n, oh, ow, 64)

    # Conv(64->128, k4, s2, p1) + BatchNorm(128) + LeakyReLU(0.2)
    a, oh, ow = im2col_nhwc(h, 4, 4, 2, 1)
    y = conv_gemm_bn(a, gp["w2"], gp["b2"], gp["g2"], gp["be2"])
    h = y.reshape(n, oh, ow, 128)

    # Conv(128->256, k4, s2, p1) + BatchNorm(256) + LeakyReLU(0.2)
    a, oh, ow = im2col_nhwc(h, 4, 4, 2, 1)
    y = conv_gemm_bn(a, gp["w3"], gp["b3"], gp["g3"], gp["be3"])
    h = y.reshape(n, oh, ow, 256)

    # Conv(256->1, k8, s1, p0) + sigmoid, then view(-1, 1).
    a, _, _ = im2col_nhwc(h, 8, 8, 1, 0)
    y = conv_gemm(a, gp["w4"], gp["b4"], act="sigmoid",
                  out_dtype=jnp.float32, tm_max=128)
    return y[:, :1]    # lanes 1..127 are the zero-padded OC columns


if __name__ == "__main__":
    key = jax.random.PRNGKey(0)
    pkey, xkey = jax.random.split(key)
    params = init_params(pkey)
    gemm_params = prepare_gemm_params(params)
    # Architecture implies 64x64 inputs (64 -> 32 -> 16 -> 8 -> k8 conv -> 1x1).
    x = jax.random.normal(xkey, (2, 3, 64, 64), dtype=jnp.float32)

    out = discriminator_forward(gemm_params, x)
    out = jax.block_until_ready(out)

    assert out.shape == (2, 1), out.shape
    assert bool(jnp.all(jnp.isfinite(out)))
    assert bool(jnp.all((out > 0.0) & (out < 1.0)))
    print("KERNEL_OK")
</pallas_src>

<mosaic_0001>
module attributes {stable_mosaic.version = 11 : i64} {
  func.func @gemm_bias_act_kernel(%arg0: i32, %arg1: memref<512x64xbf16, #tpu.memory_space<vmem>>, %arg2: memref<64x64xbf16, #tpu.memory_space<vmem>>, %arg3: memref<1x64xf32, #tpu.memory_space<vmem>>, %arg4: memref<512x64xbf16, #tpu.memory_space<vmem>>) attributes {dimension_semantics = [#tpu.dimension_semantics<parallel>], iteration_bounds = array<i64: 4>, scalar_prefetch = 0 : i64, scratch_operands = 0 : i64, tpu.core_type = #tpu.core_type<tc>, window_params = [{transform_indices = @transform_0, window_bounds = array<i64: 512, 64>}, {pipeline_mode = #tpu.pipeline_mode<synchronous>, transform_indices = @transform_1, window_bounds = array<i64: 64, 64>}, {pipeline_mode = #tpu.pipeline_mode<synchronous>, transform_indices = @transform_2, window_bounds = array<i64: 1, 64>}, {transform_indices = @transform_3, window_bounds = array<i64: 512, 64>}]} {
    %c0 = arith.constant 0 : index
    %c0_0 = arith.constant 0 : index
    %0 = vector.load %arg1[%c0, %c0_0] : memref<512x64xbf16, #tpu.memory_space<vmem>>, vector<512x64xbf16>
    %c0_1 = arith.constant 0 : index
    %c0_2 = arith.constant 0 : index
    %1 = vector.load %arg2[%c0_1, %c0_2] : memref<64x64xbf16, #tpu.memory_space<vmem>>, vector<64x64xbf16>
    %cst = arith.constant dense<0.000000e+00> : vector<512x64xf32>
    %2 = tpu.matmul %0, %1, %cst {dimension_numbers = #tpu.dot_dimension_numbers<[1], [0], [0], [1], [0, 0, 1, 1], [], []>} : vector<512x64xbf16>, vector<64x64xbf16>, vector<512x64xf32> -> vector<512x64xf32>
    %c0_3 = arith.constant 0 : index
    %c0_4 = arith.constant 0 : index
    %3 = vector.load %arg3[%c0_3, %c0_4] : memref<1x64xf32, #tpu.memory_space<vmem>>, vector<1x64xf32>
    %4 = vector.broadcast %3 : vector<1x64xf32> to vector<512x64xf32>
    %5 = arith.addf %2, %4 : vector<512x64xf32>
    %cst_5 = arith.constant 0.000000e+00 : f32
    %6 = vector.broadcast %cst_5 : f32 to vector<512x64xf32>
    %7 = arith.cmpf ogt, %5, %6 : vector<512x64xf32>
    %cst_6 = arith.constant 2.000000e-01 : f32
    %8 = vector.broadcast %cst_6 : f32 to vector<512x64xf32>
    %9 = arith.mulf %8, %5 : vector<512x64xf32>
    %10 = arith.select %7, %5, %9 : vector<512x64xi1>, vector<512x64xf32>
    %11 = arith.truncf %10 : vector<512x64xf32> to vector<512x64xbf16>
    %c0_7 = arith.constant 0 : index
    %c0_8 = arith.constant 0 : index
    %12 = vector.load %arg4[%c0_7, %c0_8] : memref<512x64xbf16, #tpu.memory_space<vmem>>, vector<512x64xbf16>
    tpu.vector_store %arg4[%c0_7, %c0_8], %11 {strides = array<i32>} : memref<512x64xbf16, #tpu.memory_space<vmem>>, vector<512x64xbf16>,
    return
  }
  func.func @transform_0(%arg0: i32) -> (i32, i32) {
    %c0_i32 = arith.constant 0 : i32
    %c0_i32_0 = arith.constant 0 : i32
    return %arg0, %c0_i32 : i32, i32
  }
  func.func @transform_1(%arg0: i32) -> (i32, i32) {
    %c0_i32 = arith.constant 0 : i32
    %c0_i32_0 = arith.constant 0 : i32
    %c0_i32_1 = arith.constant 0 : i32
    return %c0_i32, %c0_i32_0 : i32, i32
  }
  func.func @transform_2(%arg0: i32) -> (i32, i32) {
    %c0_i32 = arith.constant 0 : i32
    %c0_i32_0 = arith.constant 0 : i32
    %c0_i32_1 = arith.constant 0 : i32
    return %c0_i32, %c0_i32_0 : i32, i32
  }
  func.func @transform_3(%arg0: i32) -> (i32, i32) {
    %c0_i32 = arith.constant 0 : i32
    %c0_i32_0 = arith.constant 0 : i32
    return %arg0, %c0_i32 : i32, i32
  }
}

module attributes {stable_mosaic.version = 11 : i64} {
  func.func @gemm_bias_stats_kernel(%arg0: i32, %arg1: memref<512x1024xbf16, #tpu.memory_space<vmem>>, %arg2: memref<1024x128xbf16, #tpu.memory_space<vmem>>, %arg3: memref<1x128xf32, #tpu.memory_space<vmem>>, %arg4: memref<512x128xf32, #tpu.memory_space<vmem>>, %arg5: memref<1x128xf32, #tpu.memory_space<vmem>>, %arg6: memref<1x128xf32, #tpu.memory_space<vmem>>) attributes {dimension_semantics = [#tpu.dimension_semantics<arbitrary>], iteration_bounds = array<i64: 1>, scalar_prefetch = 0 : i64, scratch_operands = 0 : i64, tpu.core_type = #tpu.core_type<tc>, window_params = [{transform_indices = @transform_0, window_bounds = array<i64: 512, 1024>}, {pipeline_mode = #tpu.pipeline_mode<synchronous>, transform_indices = @transform_1, window_bounds = array<i64: 1024, 128>}, {pipeline_mode = #tpu.pipeline_mode<synchronous>, transform_indices = @transform_2, window_bounds = array<i64: 1, 128>}, {transform_indices = @transform_3, window_bounds = array<i64: 512, 128>}, {pipeline_mode = #tpu.pipeline_mode<synchronous>, transform_indices = @transform_4, window_bounds = array<i64: 1, 128>}, {pipeline_mode = #tpu.pipeline_mode<synchronous>, transform_indices = @transform_5, window_bounds = array<i64: 1, 128>}]} {
    %c0_i32 = arith.constant 0 : i32
    %0 = arith.cmpi eq, %arg0, %c0_i32 : i32
    %1 = arith.extui %0 : i1 to i32
    %c0_i32_0 = arith.constant 0 : i32
    %2 = arith.cmpi ne, %1, %c0_i32_0 : i32
    scf.if %2 {
      %cst_18 = arith.constant 0.000000e+00 : f32
      %21 = vector.broadcast %cst_18 : f32 to vector<1x128xf32>
      %c0_19 = arith.constant 0 : index
      %c0_20 = arith.constant 0 : index
      %22 = vector.load %arg5[%c0_19, %c0_20] : memref<1x128xf32, #tpu.memory_space<vmem>>, vector<1x128xf32>
      tpu.vector_store %arg5[%c0_19, %c0_20], %21 {strides = array<i32>} : memref<1x128xf32, #tpu.memory_space<vmem>>, vector<1x128xf32>,
      %cst_21 = arith.constant 0.000000e+00 : f32
      %23 = vector.broadcast %cst_21 : f32 to vector<1x128xf32>
      %c0_22 = arith.constant 0 : index
      %c0_23 = arith.constant 0 : index
      %24 = vector.load %arg6[%c0_22, %c0_23] : memref<1x128xf32, #tpu.memory_space<vmem>>, vector<1x128xf32>
      tpu.vector_store %arg6[%c0_22, %c0_23], %23 {strides = array<i32>} : memref<1x128xf32, #tpu.memory_space<vmem>>, vector<1x128xf32>,
    } else {
    }
    %c0 = arith.constant 0 : index
    %c0_1 = arith.constant 0 : index
    %3 = vector.load %arg1[%c0, %c0_1] : memref<512x1024xbf16, #tpu.memory_space<vmem>>, vector<512x1024xbf16>
    %c0_2 = arith.constant 0 : index
    %c0_3 = arith.constant 0 : index
    %4 = vector.load %arg2[%c0_2, %c0_3] : memref<1024x128xbf16, #tpu.memory_space<vmem>>, vector<1024x128xbf16>
    %cst = arith.constant dense<0.000000e+00> : vector<512x128xf32>
    %5 = tpu.matmul %3, %4, %cst {dimension_numbers = #tpu.dot_dimension_numbers<[1], [0], [0], [1], [0, 0, 1, 1], [], []>} : vector<512x1024xbf16>, vector<1024x128xbf16>, vector<512x128xf32> -> vector<512x128xf32>
    %c0_4 = arith.constant 0 : index
    %c0_5 = arith.constant 0 : index
    %6 = vector.load %arg3[%c0_4, %c0_5] : memref<1x128xf32, #tpu.memory_space<vmem>>, vector<1x128xf32>
    %7 = vector.broadcast %6 : vector<1x128xf32> to vector<512x128xf32>
    %8 = arith.addf %5, %7 : vector<512x128xf32>
    %c0_6 = arith.constant 0 : index
    %c0_7 = arith.constant 0 : index
    %9 = vector.load %arg4[%c0_6, %c0_7] : memref<512x128xf32, #tpu.memory_space<vmem>>, vector<512x128xf32>
    tpu.vector_store %arg4[%c0_6, %c0_7], %8 {strides = array<i32>} : memref<512x128xf32, #tpu.memory_space<vmem>>, vector<512x128xf32>,
    %c0_8 = arith.constant 0 : index
    %c0_9 = arith.constant 0 : index
    %10 = vector.load %arg5[%c0_8, %c0_9] : memref<1x128xf32, #tpu.memory_space<vmem>>, vector<1x128xf32>
    %cst_10 = arith.constant dense<0.000000e+00> : vector<128xf32>
    %11 = vector.multi_reduction <add>, %8, %cst_10 [0] : vector<512x128xf32> to vector<128xf32>
    %12 = vector.shape_cast %11 : vector<128xf32> to vector<1x128xf32>
    %13 = arith.addf %10, %12 : vector<1x128xf32>
    %c0_11 = arith.constant 0 : index
    %c0_12 = arith.constant 0 : index
    %14 = vector.load %arg5[%c0_11, %c0_12] : memref<1x128xf32, #tpu.memory_space<vmem>>, vector<1x128xf32>
    tpu.vector_store %arg5[%c0_11, %c0_12], %13 {strides = array<i32>} : memref<1x128xf32, #tpu.memory_space<vmem>>, vector<1x128xf32>,
    %c0_13 = arith.constant 0 : index
    %c0_14 = arith.constant 0 : index
    %15 = vector.load %arg6[%c0_13, %c0_14] : memref<1x128xf32, #tpu.memory_space<vmem>>, vector<1x128xf32>
    %16 = arith.mulf %8, %8 : vector<512x128xf32>
    %cst_15 = arith.constant dense<0.000000e+00> : vector<128xf32>
    %17 = vector.multi_reduction <add>, %16, %cst_15 [0] : vector<512x128xf32> to vector<128xf32>
    %18 = vector.shape_cast %17 : vector<128xf32> to vector<1x128xf32>
    %19 = arith.addf %15, %18 : vector<1x128xf32>
    %c0_16 = arith.constant 0 : index
    %c0_17 = arith.constant 0 : index
    %20 = vector.load %arg6[%c0_16, %c0_17] : memref<1x128xf32, #tpu.memory_space<vmem>>, vector<1x128xf32>
    tpu.vector_store %arg6[%c0_16, %c0_17], %19 {strides = array<i32>} : memref<1x128xf32, #tpu.memory_space<vmem>>, vector<1x128xf32>,
    return
  }
  func.func @transform_0(%arg0: i32) -> (i32, i32) {
    %c0_i32 = arith.constant 0 : i32
    %c0_i32_0 = arith.constant 0 : i32
    return %arg0, %c0_i32 : i32, i32
  }
  func.func @transform_1(%arg0: i32) -> (i32, i32) {
    %c0_i32 = arith.constant 0 : i32
    %c0_i32_0 = arith.constant 0 : i32
    %c0_i32_1 = arith.constant 0 : i32
    return %c0_i32, %c0_i32_0 : i32, i32
  }
  func.func @transform_2(%arg0: i32) -> (i32, i32) {
    %c0_i32 = arith.constant 0 : i32
    %c0_i32_0 = arith.constant 0 : i32
    %c0_i32_1 = arith.constant 0 : i32
    return %c0_i32, %c0_i32_0 : i32, i32
  }
  func.func @transform_3(%arg0: i32) -> (i32, i32) {
    %c0_i32 = arith.constant 0 : i32
    %c0_i32_0 = arith.constant 0 : i32
    return %arg0, %c0_i32 : i32, i32
  }
  func.func @transform_4(%arg0: i32) -> (i32, i32) {
    %c0_i32 = arith.constant 0 : i32
    %c0_i32_0 = arith.constant 0 : i32
    %c0_i32_1 = arith.constant 0 : i32
    return %c0_i32, %c0_i32_0 : i32, i32
  }
  func.func @transform_5(%arg0: i32) -> (i32, i32) {
    %c0_i32 = arith.constant 0 : i32
    %c0_i32_0 = arith.constant 0 : i32
    %c0_i32_1 = arith.constant 0 : i32
    return %c0_i32, %c0_i32_0 : i32, i32
  }
}

module attributes {stable_mosaic.version = 11 : i64} {
  func.func @bn_lrelu_kernel(%arg0: i32, %arg1: memref<512x128xf32, #tpu.memory_space<vmem>>, %arg2: memref<1x128xf32, #tpu.memory_space<vmem>>, %arg3: memref<1x128xf32, #tpu.memory_space<vmem>>, %arg4: memref<512x128xbf16, #tpu.memory_space<vmem>>) attributes {dimension_semantics = [#tpu.dimension_semantics<parallel>], iteration_bounds = array<i64: 1>, scalar_prefetch = 0 : i64, scratch_operands = 0 : i64, tpu.core_type = #tpu.core_type<tc>, window_params = [{transform_indices = @transform_0, window_bounds = array<i64: 512, 128>}, {pipeline_mode = #tpu.pipeline_mode<synchronous>, transform_indices = @transform_1, window_bounds = array<i64: 1, 128>}, {pipeline_mode = #tpu.pipeline_mode<synchronous>, transform_indices = @transform_2, window_bounds = array<i64: 1, 128>}, {transform_indices = @transform_3, window_bounds = array<i64: 512, 128>}]} {
    %c0 = arith.constant 0 : index
    %c0_0 = arith.constant 0 : index
    %0 = vector.load %arg1[%c0, %c0_0] : memref<512x128xf32, #tpu.memory_space<vmem>>, vector<512x128xf32>
    %c0_1 = arith.constant 0 : index
    %c0_2 = arith.constant 0 : index
    %1 = vector.load %arg2[%c0_1, %c0_2] : memref<1x128xf32, #tpu.memory_space<vmem>>, vector<1x128xf32>
    %2 = vector.broadcast %1 : vector<1x128xf32> to vector<512x128xf32>
    %3 = arith.mulf %0, %2 : vector<512x128xf32>
    %c0_3 = arith.constant 0 : index
    %c0_4 = arith.constant 0 : index
    %4 = vector.load %arg3[%c0_3, %c0_4] : memref<1x128xf32, #tpu.memory_space<vmem>>, vector<1x128xf32>
    %5 = vector.broadcast %4 : vector<1x128xf32> to vector<512x128xf32>
    %6 = arith.addf %3, %5 : vector<512x128xf32>
    %cst = arith.constant 0.000000e+00 : f32
    %7 = vector.broadcast %cst : f32 to vector<512x128xf32>
    %8 = arith.cmpf ogt, %6, %7 : vector<512x128xf32>
    %cst_5 = arith.constant 2.000000e-01 : f32
    %9 = vector.broadcast %cst_5 : f32 to vector<512x128xf32>
    %10 = arith.mulf %9, %6 : vector<512x128xf32>
    %11 = arith.select %8, %6, %10 : vector<512x128xi1>, vector<512x128xf32>
    %12 = arith.truncf %11 : vector<512x128xf32> to vector<512x128xbf16>
    %c0_6 = arith.constant 0 : index
    %c0_7 = arith.constant 0 : index
    %13 = vector.load %arg4[%c0_6, %c0_7] : memref<512x128xbf16, #tpu.memory_space<vmem>>, vector<512x128xbf16>
    tpu.vector_store %arg4[%c0_6, %c0_7], %12 {strides = array<i32>} : memref<512x128xbf16, #tpu.memory_space<vmem>>, vector<512x128xbf16>,
    return
  }
  func.func @transform_0(%arg0: i32) -> (i32, i32) {
    %c0_i32 = arith.constant 0 : i32
    %c0_i32_0 = arith.constant 0 : i32
    return %arg0, %c0_i32 : i32, i32
  }
  func.func @transform_1(%arg0: i32) -> (i32, i32) {
    %c0_i32 = arith.constant 0 : i32
    %c0_i32_0 = arith.constant 0 : i32
    %c0_i32_1 = arith.constant 0 : i32
    return %c0_i32, %c0_i32_0 : i32, i32
  }
  func.func @transform_2(%arg0: i32) -> (i32, i32) {
    %c0_i32 = arith.constant 0 : i32
    %c0_i32_0 = arith.constant 0 : i32
    %c0_i32_1 = arith.constant 0 : i32
    return %c0_i32, %c0_i32_0 : i32, i32
  }
  func.func @transform_3(%arg0: i32) -> (i32, i32) {
    %c0_i32 = arith.constant 0 : i32
    %c0_i32_0 = arith.constant 0 : i32
    return %arg0, %c0_i32 : i32, i32
  }
}

module attributes {stable_mosaic.version = 11 : i64} {
  func.func @gemm_bias_stats_kernel(%arg0: i32, %arg1: memref<128x2048xbf16, #tpu.memory_space<vmem>>, %arg2: memref<2048x256xbf16, #tpu.memory_space<vmem>>, %arg3: memref<1x256xf32, #tpu.memory_space<vmem>>, %arg4: memref<128x256xf32, #tpu.memory_space<vmem>>, %arg5: memref<1x256xf32, #tpu.memory_space<vmem>>, %arg6: memref<1x256xf32, #tpu.memory_space<vmem>>) attributes {dimension_semantics = [#tpu.dimension_semantics<arbitrary>], iteration_bounds = array<i64: 1>, scalar_prefetch = 0 : i64, scratch_operands = 0 : i64, tpu.core_type = #tpu.core_type<tc>, window_params = [{transform_indices = @transform_0, window_bounds = array<i64: 128, 2048>}, {pipeline_mode = #tpu.pipeline_mode<synchronous>, transform_indices = @transform_1, window_bounds = array<i64: 2048, 256>}, {pipeline_mode = #tpu.pipeline_mode<synchronous>, transform_indices = @transform_2, window_bounds = array<i64: 1, 256>}, {transform_indices = @transform_3, window_bounds = array<i64: 128, 256>}, {pipeline_mode = #tpu.pipeline_mode<synchronous>, transform_indices = @transform_4, window_bounds = array<i64: 1, 256>}, {pipeline_mode = #tpu.pipeline_mode<synchronous>, transform_indices = @transform_5, window_bounds = array<i64: 1, 256>}]} {
    %c0_i32 = arith.constant 0 : i32
    %0 = arith.cmpi eq, %arg0, %c0_i32 : i32
    %1 = arith.extui %0 : i1 to i32
    %c0_i32_0 = arith.constant 0 : i32
    %2 = arith.cmpi ne, %1, %c0_i32_0 : i32
    scf.if %2 {
      %cst_18 = arith.constant 0.000000e+00 : f32
      %21 = vector.broadcast %cst_18 : f32 to vector<1x256xf32>
      %c0_19 = arith.constant 0 : index
      %c0_20 = arith.constant 0 : index
      %22 = vector.load %arg5[%c0_19, %c0_20] : memref<1x256xf32, #tpu.memory_space<vmem>>, vector<1x256xf32>
      tpu.vector_store %arg5[%c0_19, %c0_20], %21 {strides = array<i32>} : memref<1x256xf32, #tpu.memory_space<vmem>>, vector<1x256xf32>,
      %cst_21 = arith.constant 0.000000e+00 : f32
      %23 = vector.broadcast %cst_21 : f32 to vector<1x256xf32>
      %c0_22 = arith.constant 0 : index
      %c0_23 = arith.constant 0 : index
      %24 = vector.load %arg6[%c0_22, %c0_23] : memref<1x256xf32, #tpu.memory_space<vmem>>, vector<1x256xf32>
      tpu.vector_store %arg6[%c0_22, %c0_23], %23 {strides = array<i32>} : memref<1x256xf32, #tpu.memory_space<vmem>>, vector<1x256xf32>,
    } else {
    }
    %c0 = arith.constant 0 : index
    %c0_1 = arith.constant 0 : index
    %3 = vector.load %arg1[%c0, %c0_1] : memref<128x2048xbf16, #tpu.memory_space<vmem>>, vector<128x2048xbf16>
    %c0_2 = arith.constant 0 : index
    %c0_3 = arith.constant 0 : index
    %4 = vector.load %arg2[%c0_2, %c0_3] : memref<2048x256xbf16, #tpu.memory_space<vmem>>, vector<2048x256xbf16>
    %cst = arith.constant dense<0.000000e+00> : vector<128x256xf32>
    %5 = tpu.matmul %3, %4, %cst {dimension_numbers = #tpu.dot_dimension_numbers<[1], [0], [0], [1], [0, 0, 1, 1], [], []>} : vector<128x2048xbf16>, vector<2048x256xbf16>, vector<128x256xf32> -> vector<128x256xf32>
    %c0_4 = arith.constant 0 : index
    %c0_5 = arith.constant 0 : index
    %6 = vector.load %arg3[%c0_4, %c0_5] : memref<1x256xf32, #tpu.memory_space<vmem>>, vector<1x256xf32>
    %7 = vector.broadcast %6 : vector<1x256xf32> to vector<128x256xf32>
    %8 = arith.addf %5, %7 : vector<128x256xf32>
    %c0_6 = arith.constant 0 : index
    %c0_7 = arith.constant 0 : index
    %9 = vector.load %arg4[%c0_6, %c0_7] : memref<128x256xf32, #tpu.memory_space<vmem>>, vector<128x256xf32>
    tpu.vector_store %arg4[%c0_6, %c0_7], %8 {strides = array<i32>} : memref<128x256xf32, #tpu.memory_space<vmem>>, vector<128x256xf32>,
    %c0_8 = arith.constant 0 : index
    %c0_9 = arith.constant 0 : index
    %10 = vector.load %arg5[%c0_8, %c0_9] : memref<1x256xf32, #tpu.memory_space<vmem>>, vector<1x256xf32>
    %cst_10 = arith.constant dense<0.000000e+00> : vector<256xf32>
    %11 = vector.multi_reduction <add>, %8, %cst_10 [0] : vector<128x256xf32> to vector<256xf32>
    %12 = vector.shape_cast %11 : vector<256xf32> to vector<1x256xf32>
    %13 = arith.addf %10, %12 : vector<1x256xf32>
    %c0_11 = arith.constant 0 : index
    %c0_12 = arith.constant 0 : index
    %14 = vector.load %arg5[%c0_11, %c0_12] : memref<1x256xf32, #tpu.memory_space<vmem>>, vector<1x256xf32>
    tpu.vector_store %arg5[%c0_11, %c0_12], %13 {strides = array<i32>} : memref<1x256xf32, #tpu.memory_space<vmem>>, vector<1x256xf32>,
    %c0_13 = arith.constant 0 : index
    %c0_14 = arith.constant 0 : index
    %15 = vector.load %arg6[%c0_13, %c0_14] : memref<1x256xf32, #tpu.memory_space<vmem>>, vector<1x256xf32>
    %16 = arith.mulf %8, %8 : vector<128x256xf32>
    %cst_15 = arith.constant dense<0.000000e+00> : vector<256xf32>
    %17 = vector.multi_reduction <add>, %16, %cst_15 [0] : vector<128x256xf32> to vector<256xf32>
    %18 = vector.shape_cast %17 : vector<256xf32> to vector<1x256xf32>
    %19 = arith.addf %15, %18 : vector<1x256xf32>
    %c0_16 = arith.constant 0 : index
    %c0_17 = arith.constant 0 : index
    %20 = vector.load %arg6[%c0_16, %c0_17] : memref<1x256xf32, #tpu.memory_space<vmem>>, vector<1x256xf32>
    tpu.vector_store %arg6[%c0_16, %c0_17], %19 {strides = array<i32>} : memref<1x256xf32, #tpu.memory_space<vmem>>, vector<1x256xf32>,
    return
  }
  func.func @transform_0(%arg0: i32) -> (i32, i32) {
    %c0_i32 = arith.constant 0 : i32
    %c0_i32_0 = arith.constant 0 : i32
    return %arg0, %c0_i32 : i32, i32
  }
  func.func @transform_1(%arg0: i32) -> (i32, i32) {
    %c0_i32 = arith.constant 0 : i32
    %c0_i32_0 = arith.constant 0 : i32
    %c0_i32_1 = arith.constant 0 : i32
    return %c0_i32, %c0_i32_0 : i32, i32
  }
  func.func @transform_2(%arg0: i32) -> (i32, i32) {
    %c0_i32 = arith.constant 0 : i32
    %c0_i32_0 = arith.constant 0 : i32
    %c0_i32_1 = arith.constant 0 : i32
    return %c0_i32, %c0_i32_0 : i32, i32
  }
  func.func @transform_3(%arg0: i32) -> (i32, i32) {
    %c0_i32 = arith.constant 0 : i32
    %c0_i32_0 = arith.constant 0 : i32
    return %arg0, %c0_i32 : i32, i32
  }
  func.func @transform_4(%arg0: i32) -> (i32, i32) {
    %c0_i32 = arith.constant 0 : i32
    %c0_i32_0 = arith.constant 0 : i32
    %c0_i32_1 = arith.constant 0 : i32
    return %c0_i32, %c0_i32_0 : i32, i32
  }
  func.func @transform_5(%arg0: i32) -> (i32, i32) {
    %c0_i32 = arith.constant 0 : i32
    %c0_i32_0 = arith.constant 0 : i32
    %c0_i32_1 = arith.constant 0 : i32
    return %c0_i32, %c0_i32_0 : i32, i32
  }
}

module attributes {stable_mosaic.version = 11 : i64} {
  func.func @bn_lrelu_kernel(%arg0: i32, %arg1: memref<128x256xf32, #tpu.memory_space<vmem>>, %arg2: memref<1x256xf32, #tpu.memory_space<vmem>>, %arg3: memref<1x256xf32, #tpu.memory_space<vmem>>, %arg4: memref<128x256xbf16, #tpu.memory_space<vmem>>) attributes {dimension_semantics = [#tpu.dimension_semantics<parallel>], iteration_bounds = array<i64: 1>, scalar_prefetch = 0 : i64, scratch_operands = 0 : i64, tpu.core_type = #tpu.core_type<tc>, window_params = [{transform_indices = @transform_0, window_bounds = array<i64: 128, 256>}, {pipeline_mode = #tpu.pipeline_mode<synchronous>, transform_indices = @transform_1, window_bounds = array<i64: 1, 256>}, {pipeline_mode = #tpu.pipeline_mode<synchronous>, transform_indices = @transform_2, window_bounds = array<i64: 1, 256>}, {transform_indices = @transform_3, window_bounds = array<i64: 128, 256>}]} {
    %c0 = arith.constant 0 : index
    %c0_0 = arith.constant 0 : index
    %0 = vector.load %arg1[%c0, %c0_0] : memref<128x256xf32, #tpu.memory_space<vmem>>, vector<128x256xf32>
    %c0_1 = arith.constant 0 : index
    %c0_2 = arith.constant 0 : index
    %1 = vector.load %arg2[%c0_1, %c0_2] : memref<1x256xf32, #tpu.memory_space<vmem>>, vector<1x256xf32>
    %2 = vector.broadcast %1 : vector<1x256xf32> to vector<128x256xf32>
    %3 = arith.mulf %0, %2 : vector<128x256xf32>
    %c0_3 = arith.constant 0 : index
    %c0_4 = arith.constant 0 : index
    %4 = vector.load %arg3[%c0_3, %c0_4] : memref<1x256xf32, #tpu.memory_space<vmem>>, vector<1x256xf32>
    %5 = vector.broadcast %4 : vector<1x256xf32> to vector<128x256xf32>
    %6 = arith.addf %3, %5 : vector<128x256xf32>
    %cst = arith.constant 0.000000e+00 : f32
    %7 = vector.broadcast %cst : f32 to vector<128x256xf32>
    %8 = arith.cmpf ogt, %6, %7 : vector<128x256xf32>
    %cst_5 = arith.constant 2.000000e-01 : f32
    %9 = vector.broadcast %cst_5 : f32 to vector<128x256xf32>
    %10 = arith.mulf %9, %6 : vector<128x256xf32>
    %11 = arith.select %8, %6, %10 : vector<128x256xi1>, vector<128x256xf32>
    %12 = arith.truncf %11 : vector<128x256xf32> to vector<128x256xbf16>
    %c0_6 = arith.constant 0 : index
    %c0_7 = arith.constant 0 : index
    %13 = vector.load %arg4[%c0_6, %c0_7] : memref<128x256xbf16, #tpu.memory_space<vmem>>, vector<128x256xbf16>
    tpu.vector_store %arg4[%c0_6, %c0_7], %12 {strides = array<i32>} : memref<128x256xbf16, #tpu.memory_space<vmem>>, vector<128x256xbf16>,
    return
  }
  func.func @transform_0(%arg0: i32) -> (i32, i32) {
    %c0_i32 = arith.constant 0 : i32
    %c0_i32_0 = arith.constant 0 : i32
    return %arg0, %c0_i32 : i32, i32
  }
  func.func @transform_1(%arg0: i32) -> (i32, i32) {
    %c0_i32 = arith.constant 0 : i32
    %c0_i32_0 = arith.constant 0 : i32
    %c0_i32_1 = arith.constant 0 : i32
    return %c0_i32, %c0_i32_0 : i32, i32
  }
  func.func @transform_2(%arg0: i32) -> (i32, i32) {
    %c0_i32 = arith.constant 0 : i32
    %c0_i32_0 = arith.constant 0 : i32
    %c0_i32_1 = arith.constant 0 : i32
    return %c0_i32, %c0_i32_0 : i32, i32
  }
  func.func @transform_3(%arg0: i32) -> (i32, i32) {
    %c0_i32 = arith.constant 0 : i32
    %c0_i32_0 = arith.constant 0 : i32
    return %arg0, %c0_i32 : i32, i32
  }
}

module attributes {stable_mosaic.version = 11 : i64} {
  func.func @gemm_bias_act_kernel(%arg0: i32, %arg1: memref<2x16384xbf16, #tpu.memory_space<vmem>>, %arg2: memref<16384x128xbf16, #tpu.memory_space<vmem>>, %arg3: memref<1x128xf32, #tpu.memory_space<vmem>>, %arg4: memref<2x128xf32, #tpu.memory_space<vmem>>) attributes {dimension_semantics = [#tpu.dimension_semantics<parallel>], iteration_bounds = array<i64: 1>, scalar_prefetch = 0 : i64, scratch_operands = 0 : i64, tpu.core_type = #tpu.core_type<tc>, window_params = [{transform_indices = @transform_0, window_bounds = array<i64: 2, 16384>}, {pipeline_mode = #tpu.pipeline_mode<synchronous>, transform_indices = @transform_1, window_bounds = array<i64: 16384, 128>}, {pipeline_mode = #tpu.pipeline_mode<synchronous>, transform_indices = @transform_2, window_bounds = array<i64: 1, 128>}, {transform_indices = @transform_3, window_bounds = array<i64: 2, 128>}]} {
    %c0 = arith.constant 0 : index
    %c0_0 = arith.constant 0 : index
    %0 = vector.load %arg1[%c0, %c0_0] : memref<2x16384xbf16, #tpu.memory_space<vmem>>, vector<2x16384xbf16>
    %c0_1 = arith.constant 0 : index
    %c0_2 = arith.constant 0 : index
    %1 = vector.load %arg2[%c0_1, %c0_2] : memref<16384x128xbf16, #tpu.memory_space<vmem>>, vector<16384x128xbf16>
    %cst = arith.constant dense<0.000000e+00> : vector<2x128xf32>
    %2 = tpu.matmul %0, %1, %cst {dimension_numbers = #tpu.dot_dimension_numbers<[1], [0], [0], [1], [0, 0, 1, 1], [], []>} : vector<2x16384xbf16>, vector<16384x128xbf16>, vector<2x128xf32> -> vector<2x128xf32>
    %c0_3 = arith.constant 0 : index
    %c0_4 = arith.constant 0 : index
    %3 = vector.load %arg3[%c0_3, %c0_4] : memref<1x128xf32, #tpu.memory_space<vmem>>, vector<1x128xf32>
    %4 = vector.broadcast %3 : vector<1x128xf32> to vector<2x128xf32>
    %5 = arith.addf %2, %4 : vector<2x128xf32>
    %6 = math.absf %5 : vector<2x128xf32>
    %cst_5 = arith.constant 0.000000e+00 : f32
    %7 = vector.broadcast %cst_5 : f32 to vector<2x128xf32>
    %8 = arith.subf %7, %6 : vector<2x128xf32>
    %9 = math.exp %8 : vector<2x128xf32>
    %cst_6 = arith.constant 0.000000e+00 : f32
    %10 = vector.broadcast %cst_6 : f32 to vector<2x128xf32>
    %11 = arith.cmpf oge, %5, %10 : vector<2x128xf32>
    %cst_7 = arith.constant 1.000000e+00 : f32
    %12 = vector.broadcast %cst_7 : f32 to vector<2x128xf32>
    %13 = arith.addf %12, %9 : vector<2x128xf32>
    %cst_8 = arith.constant 1.000000e+00 : f32
    %14 = vector.broadcast %cst_8 : f32 to vector<2x128xf32>
    %15 = arith.divf %14, %13 : vector<2x128xf32>
    %cst_9 = arith.constant 1.000000e+00 : f32
    %16 = vector.broadcast %cst_9 : f32 to vector<2x128xf32>
    %17 = arith.addf %16, %9 : vector<2x128xf32>
    %18 = arith.divf %9, %17 : vector<2x128xf32>
    %19 = arith.select %11, %15, %18 : vector<2x128xi1>, vector<2x128xf32>
    %c0_10 = arith.constant 0 : index
    %c0_11 = arith.constant 0 : index
    %20 = vector.load %arg4[%c0_10, %c0_11] : memref<2x128xf32, #tpu.memory_space<vmem>>, vector<2x128xf32>
    tpu.vector_store %arg4[%c0_10, %c0_11], %19 {strides = array<i32>} : memref<2x128xf32, #tpu.memory_space<vmem>>, vector<2x128xf32>,
    return
  }
  func.func @transform_0(%arg0: i32) -> (i32, i32) {
    %c0_i32 = arith.constant 0 : i32
    %c0_i32_0 = arith.constant 0 : i32
    return %arg0, %c0_i32 : i32, i32
  }
  func.func @transform_1(%arg0: i32) -> (i32, i32) {
    %c0_i32 = arith.constant 0 : i32
    %c0_i32_0 = arith.constant 0 : i32
    %c0_i32_1 = arith.constant 0 : i32
    return %c0_i32, %c0_i32_0 : i32, i32
  }
  func.func @transform_2(%arg0: i32) -> (i32, i32) {
    %c0_i32 = arith.constant 0 : i32
    %c0_i32_0 = arith.constant 0 : i32
    %c0_i32_1 = arith.constant 0 : i32
    return %c0_i32, %c0_i32_0 : i32, i32
  }
  func.func @transform_3(%arg0: i32) -> (i32, i32) {
    %c0_i32 = arith.constant 0 : i32
    %c0_i32_0 = arith.constant 0 : i32
    return %arg0, %c0_i32 : i32, i32
  }
}

</mosaic_0001>

<bundles_post_ra>
// kernel: discriminator_forward.6
= control target key start
LH: loop header
LB: loop body
LE: loop exit
PB: predicated region body
PF: predicated region fallthrough
CT: control target
= control target key end

     0   :  { %s1789_s12 = smov 0   ;;  %s2169_s0 = inlined_call_operand.vmem [shape: bf16[2048,64], index: 0, kind: input, shape index: {}]   ;;  %s2170_s1 = inlined_call_operand.vmem [shape: bf16[64,64], index: 1, kind: input, shape index: {}]   ;;  %s2171_s2 = inlined_call_operand.vmem [shape: f32[1,64], index: 2, kind: input, shape index: {}]   ;;  %s2172_s3 = inlined_call_operand.vmem [shape: bf16[2048,64], index: 3, kind: output, shape index: {}]  }
   0x1 LB: > { %s1393_s13 = sadd.s32 4294967295, %s1767_s12   ;;  %p1397_p0 = scmp.ge.s32.totalorder %s1767_s12, 1  ;;  %s1767_s12 = sphi %s1789_s12, %s13_s12  }
   0x2   : > { %p138_p1 = scmp.lt.s32.totalorder %s1767_s12, 5 }
   0x4   : > { %p139_p2 = pnand %p1397_p0, %p138_p1 }
   0x5   : > { %v1725_v0 = vld [vmem:[%s2170_s1] sm:$0xff] (!%p139_p2)   ;;  %s1398_s16 = sshll.u32 (!%p139_p2), %s1393_s13, 6  ;;  %v1726_v1 = vld [vmem:[%s2170_s1 + $0x8] sm:$0xff] (!%p139_p2)   ;;  %v1727_v2 = vld [vmem:[%s2170_s1 + $0x10] sm:$0xff] (!%p139_p2)   ;;  %vm438_vm0 = vcmask (!%p139_p2), 523264   ;;  %vm1272_vm1 = vcmask (!%p139_p2), 519168  }
   0x6   : > { %142 = sbr.rel (%p139_p2) target bundleno = 319 (0x13f), region = 32  ;;  %p163_p3 = scmp.lt.s32.totalorder (!%p139_p2), %s1398_s16, 255  ;;  %1637 = vmatprep.subr.bf16.mxu0 (!%p139_p2), %v1725_v0  ;;  %1709 = vmatprep.subr.bf16.mxu1 (!%p139_p2), %v1725_v0  ;;  %v1728_v3 = vld [vmem:[%s2170_s1 + $0x18] sm:$0xff] (!%p139_p2)   ;;  %v1886_v36 = vld [vmem:[%s2171_s2] ss:$0 sm:$0xff] (!%p139_p2) }
   0x7   : > { %1638 = vmatpush3.bf16.msra.mxu0 (!%p139_p2), %v1725_v0  ;;  %1713 = vmatpush3.bf16.msra.mxu1 (!%p139_p2), %v1725_v0 }
   0x8   : > { %1639 = vmatprep.subr.bf16.mxu0 (!%p139_p2), %v1726_v1  ;;  %1710 = vmatprep.subr.bf16.mxu1 (!%p139_p2), %v1726_v1 }
   0xb   : > { %1640 = vmatpush3.bf16.msra.mxu0 (!%p139_p2), %v1726_v1  ;;  %1714 = vmatpush3.bf16.msra.mxu1 (!%p139_p2), %v1726_v1 }
   0xc   : > { %1641 = vmatprep.subr.bf16.mxu0 (!%p139_p2), %v1727_v2  ;;  %1711 = vmatprep.subr.bf16.mxu1 (!%p139_p2), %v1727_v2 }
   0xd   : > { %s2174_s16 = smov (!%p163_p3, %s1398_s16), 255 }
   0xe   : > { %s1399_s21 = sshll.u32 %s2174_s16, 2 }
   0xf   : > { %s1817_s26 = scalar_lea.vmem %s2169_s0, %s1399_s21  ;;  %1642 = vmatpush3.bf16.msra.mxu0 %v1727_v2  ;;  %1715 = vmatpush3.bf16.msra.mxu1 %v1727_v2  ;;  %s1897_s4 = scalar_lea.vmem %s2172_s3, %s1399_s21 }
  0x10   : > { %v1729_v4 = vld [vmem:[%s1817_s26] sm:$0xff]   ;;  %1643 = vmatprep.subr.bf16.mxu0 %v1728_v3  ;;  %1712 = vmatprep.subr.bf16.mxu1 %v1728_v3  ;;  %v1731_v6 = vld [vmem:[%s1817_s26 + $0x8] sm:$0xff]   ;;  %v1733_v8 = vld [vmem:[%s1817_s26 + $0x10] sm:$0xff]  }
  0x11   : > { %v1730_v5 = vld [vmem:[%s1817_s26 + $0x80] sm:$0xff]   ;;  %1645 = vmatprep.mubr.msk.bf16.mxu0 %vm438_vm0, %v1729_v4  ;;  %v1732_v7 = vld [vmem:[%s1817_s26 + $0x88] sm:$0xff]   ;;  %v1734_v9 = vld [vmem:[%s1817_s26 + $0x90] sm:$0xff]  }
  0x12   : > { %1677 = vmatprep.mubr.msk.bf16.mxu1 %vm438_vm0, %v1730_v5  ;;  %v1735_v10 = vld [vmem:[%s1817_s26 + $0x18] sm:$0xff]   ;;  %v1737_v12 = vld [vmem:[%s1817_s26 + $0x20] sm:$0xff]   ;;  %v1739_v14 = vld [vmem:[%s1817_s26 + $0x28] sm:$0xff]  }
  0x13   : > { %1644 = vmatpush3.bf16.msra.mxu0 %v1728_v3  ;;  %1716 = vmatpush3.bf16.msra.mxu1 %v1728_v3  ;;  %v1736_v11 = vld [vmem:[%s1817_s26 + $0x98] sm:$0xff]   ;;  %v1738_v13 = vld [vmem:[%s1817_s26 + $0xa0] sm:$0xff]   ;;  %v1740_v15 = vld [vmem:[%s1817_s26 + $0xa8] sm:$0xff]  }
  0x14   : > { %v1741_v16 = vld [vmem:[%s1817_s26 + $0x30] sm:$0xff]   ;;  %v1743_v18 = vld [vmem:[%s1817_s26 + $0x38] sm:$0xff]   ;;  %v1745_v20 = vld [vmem:[%s1817_s26 + $0x40] sm:$0xff]  }
  0x15   : > { %v1742_v17 = vld [vmem:[%s1817_s26 + $0xb0] sm:$0xff]   ;;  %v1744_v19 = vld [vmem:[%s1817_s26 + $0xb8] sm:$0xff]   ;;  %v1746_v21 = vld [vmem:[%s1817_s26 + $0xc0] sm:$0xff]  }
  0x16   : > { %1646 = vmatmul.mubr.msk.bf16.vlgmr.msra.gmra.mrb[0].mxu0 %vm438_vm0, %v1731_v6  ;;  %1678 = vmatmul.mubr.msk.bf16.vlgmr.msra.gmra.mrb[0].mxu1 %vm438_vm0, %v1732_v7  ;;  %v1747_v22 = vld [vmem:[%s1817_s26 + $0x48] sm:$0xff]   ;;  %v1749_v24 = vld [vmem:[%s1817_s26 + $0x50] sm:$0xff]   ;;  %v1751_v26 = vld [vmem:[%s1817_s26 + $0x58] sm:$0xff]  }
  0x17   : > { %1649 = vmatprep.mubr.msk.bf16.mxu0 %vm438_vm0, %v1733_v8  ;;  %1681 = vmatprep.mubr.msk.bf16.mxu1 %vm438_vm0, %v1734_v9  ;;  %v1748_v23 = vld [vmem:[%s1817_s26 + $0xc8] sm:$0xff]   ;;  %v1750_v25 = vld [vmem:[%s1817_s26 + $0xd0] sm:$0xff]   ;;  %v1752_v27 = vld [vmem:[%s1817_s26 + $0xd8] sm:$0xff]  }
  0x18   : > { %v1753_v28 = vld [vmem:[%s1817_s26 + $0x60] sm:$0xff]   ;;  %v1755_v30 = vld [vmem:[%s1817_s26 + $0x68] sm:$0xff]   ;;  %v1757_v32 = vld [vmem:[%s1817_s26 + $0x70] sm:$0xff]  }
  0x19   : > { %v1754_v29 = vld [vmem:[%s1817_s26 + $0xe0] sm:$0xff]   ;;  %v1756_v31 = vld [vmem:[%s1817_s26 + $0xe8] sm:$0xff]   ;;  %v1758_v33 = vld [vmem:[%s1817_s26 + $0xf0] sm:$0xff]  }
  0x1a   : > { %v1759_v34 = vld [vmem:[%s1817_s26 + $0x78] sm:$0xff]  }
  0x1b   : > { %v1760_v35 = vld [vmem:[%s1817_s26 + $0xf8] sm:$0xff]  }
  0x1e   : > { %1650 = vmatmul.mubr.msk.bf16.gmra.mrb[4].mxu0 %vm438_vm0, %v1735_v10  ;;  %1682 = vmatmul.mubr.msk.bf16.gmra.mrb[4].mxu1 %vm438_vm0, %v1736_v11 }
  0x1f   : > { %1653 = vmatprep.mubr.msk.bf16.mxu0 %vm438_vm0, %v1737_v12  ;;  %1685 = vmatprep.mubr.msk.bf16.mxu1 %vm438_vm0, %v1738_v13 }
  0x26   : > { %1654 = vmatmul.mubr.msk.bf16.gmra.mrb[8].mxu0 %vm438_vm0, %v1739_v14  ;;  %1686 = vmatmul.mubr.msk.bf16.gmra.mrb[8].mxu1 %vm438_vm0, %v1740_v15 }
  0x27   : > { %1657 = vmatprep.mubr.msk.bf16.mxu0 %vm438_vm0, %v1741_v16  ;;  %1689 = vmatprep.mubr.msk.bf16.mxu1 %vm438_vm0, %v1742_v17 }
  0x2e   : > { %1658 = vmatmul.mubr.msk.bf16.gmra.mrb[12].mxu0 %vm438_vm0, %v1743_v18  ;;  %1690 = vmatmul.mubr.msk.bf16.gmra.mrb[12].mxu1 %vm438_vm0, %v1744_v19 }
  0x2f   : > { %1661 = vmatprep.mubr.msk.bf16.mxu0 %vm438_vm0, %v1745_v20  ;;  %1693 = vmatprep.mubr.msk.bf16.mxu1 %vm438_vm0, %v1746_v21 }
  0x36   : > { %1662 = vmatmul.mubr.msk.bf16.gmra.mrb[16].mxu0 %vm438_vm0, %v1747_v22  ;;  %1694 = vmatmul.mubr.msk.bf16.gmra.mrb[16].mxu1 %vm438_vm0, %v1748_v23 }
  0x37   : > { %1665 = vmatprep.mubr.msk.bf16.mxu0 %vm438_vm0, %v1749_v24  ;;  %1697 = vmatprep.mubr.msk.bf16.mxu1 %vm438_vm0, %v1750_v25 }
  0x3e   : > { %1666 = vmatmul.mubr.msk.bf16.gmra.mrb[20].mxu0 %vm438_vm0, %v1751_v26  ;;  %1698 = vmatmul.mubr.msk.bf16.gmra.mrb[20].mxu1 %vm438_vm0, %v1752_v27 }
  0x3f   : > { %1669 = vmatprep.mubr.msk.bf16.mxu0 %vm438_vm0, %v1753_v28  ;;  %1701 = vmatprep.mubr.msk.bf16.mxu1 %vm438_vm0, %v1754_v29 }
  0x46   : > { %1670 = vmatmul.mubr.msk.bf16.gmra.mrb[24].mxu0 %vm438_vm0, %v1755_v30  ;;  %1702 = vmatmul.mubr.msk.bf16.gmra.mrb[24].mxu1 %vm438_vm0, %v1756_v31 }
  0x47   : > { %1673 = vmatprep.mubr.msk.bf16.mxu0 %vm438_vm0, %v1757_v32  ;;  %1705 = vmatprep.mubr.msk.bf16.mxu1 %vm438_vm0, %v1758_v33 }
  0x4e   : > { %1674 = vmatmul.mubr.msk.bf16.gmra.mrb[28].mxu0 %vm438_vm0, %v1759_v34  ;;  %1706 = vmatmul.mubr.msk.bf16.gmra.mrb[28].mxu1 %vm438_vm0, %v1760_v35 }
  0xe9   : > { %v1647_v37 = vpop.f32.mrb[0].mxu0  ;;  %v1679_v38 = vpop.f32.mrb[0].mxu1 }
  0xea   : > { %v578_v39 = vadd.f32 %v1647_v37, %v1886_v36  ;;  %v706_v40 = vadd.f32 %v1679_v38, %v1886_v36  ;;  %v569_v41 = vpop.f32.mrb[1].mxu0  ;;  %v697_v42 = vpop.f32.mrb[1].mxu1 }
  0xeb   : > { %v570_v43 = vadd.f32 %v1886_v36, %v569_v41  ;;  %v698_v44 = vadd.f32 %v1886_v36, %v697_v42  ;;  %v1648_v45 = vpop.f32.mrb[2].mxu0  ;;  %v1680_v46 = vpop.f32.mrb[2].mxu1 }
  0xec   : > { %vm826_vm2 = vcmp.gt.f32.partialorder %v578_v39, 0.0  ;;  %v890_v47 = vmul.f32 0.2, %v578_v39  ;;  %vm858_vm3 = vcmp.gt.f32.partialorder %v706_v40, 0.0  ;;  %v922_v48 = vmul.f32 0.2, %v706_v40 }
  0xed   : > { %vm824_vm4 = vcmp.gt.f32.partialorder %v570_v43, 0.0  ;;  %v888_v49 = vmul.f32 0.2, %v570_v43  ;;  %vm856_vm5 = vcmp.gt.f32.partialorder %v698_v44, 0.0  ;;  %v920_v50 = vmul.f32 0.2, %v698_v44 }
  0xee   : > { %v954_v51 = vsel %vm826_vm2, %v578_v39, %v890_v47  ;;  %v986_v52 = vsel %vm858_vm3, %v706_v40, %v922_v48  ;;  %v581_v53 = vadd.f32 %v1648_v45, %v1886_v36  ;;  %v709_v54 = vadd.f32 %v1680_v46, %v1886_v36  ;;  %v572_v55 = vpop.f32.mrb[3].mxu0  ;;  %v700_v56 = vpop.f32.mrb[3].mxu1 }
  0xef   : > { %v1539_v57 = vpack.c.bf16 %v954_v51, %v954_v51  ;;  %v1571_v58 = vpack.c.bf16 %v986_v52, %v986_v52  ;;  %v952_v59 = vsel %vm824_vm4, %v570_v43, %v888_v49  ;;  %v984_v60 = vsel %vm856_vm5, %v698_v44, %v920_v50 }
  0xf0   : > { %v1537_v61 = vpack.c.bf16 %v952_v59, %v952_v59  ;;  %v1569_v62 = vpack.c.bf16 %v984_v60, %v984_v60  ;;  %vm827_vm6 = vcmp.gt.f32.partialorder %v581_v53, 0.0  ;;  %v891_v63 = vmul.f32 0.2, %v581_v53 }
  0xf1   : > { %1275 = vst.msk [vmem:[%s1897_s4 + $0x8] sm:$0xf] %vm1272_vm1, %v1539_v57  ;;  %1307 = vst.msk [vmem:[%s1897_s4 + $0x88] sm:$0xf] %vm1272_vm1, %v1571_v58  ;;  %vm859_vm7 = vcmp.gt.f32.partialorder %v709_v54, 0.0  ;;  %v573_v1 = vadd.f32 %v1886_v36, %v572_v55  ;;  %v701_v2 = vadd.f32 %v1886_v36, %v700_v56  ;;  %v1651_v3 = vpop.f32.mrb[4].mxu0 }
  0xf2   : > { %v923_v0 = vmul.f32 0.2, %v709_v54  ;;  %v1683_v4 = vpop.f32.mrb[4].mxu1  ;;  %1273 = vst.msk [vmem:[%s1897_s4] sm:$0xf] %vm1272_vm1, %v1537_v61  ;;  %v955_v5 = vsel %vm827_vm6, %v581_v53, %v891_v63  ;;  %v594_v6 = vadd.f32 %v1651_v3, %v1886_v36  ;;  %v585_v8 = vpop.f32.mrb[5].mxu0 }
  0xf3   : > { %1305 = vst.msk [vmem:[%s1897_s4 + $0x80] sm:$0xf] %vm1272_vm1, %v1569_v62  ;;  %v722_v7 = vadd.f32 %v1683_v4, %v1886_v36  ;;  %v713_v9 = vpop.f32.mrb[5].mxu1  ;;  %v1540_v10 = vpack.c.bf16 %v955_v5, %v955_v5  ;;  %vm825_vm8 = vcmp.gt.f32.partialorder %v573_v1, 0.0  ;;  %v889_v12 = vmul.f32 0.2, %v573_v1 }
  0xf4   : > { %v987_v11 = vsel %vm859_vm7, %v709_v54, %v923_v0  ;;  %v1652_v13 = vpop.f32.mrb[6].mxu0  ;;  %v1684_v14 = vpop.f32.mrb[6].mxu1  ;;  %vm857_vm9 = vcmp.gt.f32.partialorder %v701_v2, 0.0  ;;  %v921_v16 = vmul.f32 0.2, %v701_v2  ;;  %vm830_vm10 = vcmp.gt.f32.partialorder %v594_v6, 0.0 }
  0xf5   : > { %v1572_v15 = vpack.c.bf16 %v987_v11, %v987_v11  ;;  %v588_v17 = vpop.f32.mrb[7].mxu0  ;;  %v716_v18 = vpop.f32.mrb[7].mxu1  ;;  %1276 = vst.msk [vmem:[%s1897_s4 + $0xc] sm:$0xf] %vm1272_vm1, %v1540_v10  ;;  %v953_v19 = vsel %vm825_vm8, %v573_v1, %v889_v12  ;;  %v894_v20 = vmul.f32 0.2, %v594_v6  ;;  %v586_v24 = vadd.f32 %v1886_v36, %v585_v8 }
  0xf6   : > { %vm862_vm11 = vcmp.gt.f32.partialorder %v722_v7, 0.0  ;;  %v926_v21 = vmul.f32 0.2, %v722_v7  ;;  %v1538_v22 = vpack.c.bf16 %v953_v19, %v953_v19  ;;  %v985_v23 = vsel %vm857_vm9, %v701_v2, %v921_v16 }
  0xf7   : > { %1308 = vst.msk [vmem:[%s1897_s4 + $0x8c] sm:$0xf] %vm1272_vm1, %v1572_v15  ;;  %v714_v25 = vadd.f32 %v1886_v36, %v713_v9  ;;  %v1570_v26 = vpack.c.bf16 %v985_v23, %v985_v23  ;;  %v958_v27 = vsel %vm830_vm10, %v594_v6, %v894_v20  ;;  %v597_v29 = vadd.f32 %v1652_v13, %v1886_v36 }
  0xf8   : > { %v990_v28 = vsel %vm862_vm11, %v722_v7, %v926_v21  ;;  %1274 = vst.msk [vmem:[%s1897_s4 + $0x4] sm:$0xf] %vm1272_vm1, %v1538_v22  ;;  %v1543_v30 = vpack.c.bf16 %v958_v27, %v958_v27  ;;  %vm828_vm12 = vcmp.gt.f32.partialorder %v586_v24, 0.0  ;;  %v892_v32 = vmul.f32 0.2, %v586_v24 }
  0xf9   : > { %v1575_v31 = vpack.c.bf16 %v990_v28, %v990_v28  ;;  %1306 = vst.msk [vmem:[%s1897_s4 + $0x84] sm:$0xf] %vm1272_vm1, %v1570_v26  ;;  %vm860_vm13 = vcmp.gt.f32.partialorder %v714_v25, 0.0  ;;  %v924_v33 = vmul.f32 0.2, %v714_v25  ;;  %vm831_vm14 = vcmp.gt.f32.partialorder %v597_v29, 0.0 }
  0xfa   : > { %v895_v34 = vmul.f32 0.2, %v597_v29  ;;  %1279 = vst.msk [vmem:[%s1897_s4 + $0x18] sm:$0xf] %vm1272_vm1, %v1543_v30  ;;  %v956_v35 = vsel %vm828_vm12, %v586_v24, %v892_v32  ;;  %v725_v37 = vadd.f32 %v1684_v14, %v1886_v36  ;;  %v589_v38 = vadd.f32 %v1886_v36, %v588_v17  ;;  %v1655_v40 = vpop.f32.mrb[8].mxu0  ;;  %v1687_v41 = vpop.f32.mrb[8].mxu1 }
  0xfb   : > { %1311 = vst.msk [vmem:[%s1897_s4 + $0x98] sm:$0xf] %vm1272_vm1, %v1575_v31  ;;  %v717_v39 = vadd.f32 %v1886_v36, %v716_v18  ;;  %v1541_v42 = vpack.c.bf16 %v956_v35, %v956_v35  ;;  %v988_v43 = vsel %vm860_vm13, %v714_v25, %v924_v33  ;;  %v610_v45 = vadd.f32 %v1655_v40, %v1886_v36  ;;  %v601_v46 = vpop.f32.mrb[9].mxu0  ;;  %v729_v47 = vpop.f32.mrb[9].mxu1 }
  0xfc   : > { %v959_v44 = vsel %vm831_vm14, %v597_v29, %v895_v34  ;;  %v1573_v48 = vpack.c.bf16 %v988_v43, %v988_v43  ;;  %vm863_vm15 = vcmp.gt.f32.partialorder %v725_v37, 0.0  ;;  %v927_v50 = vmul.f32 0.2, %v725_v37  ;;  %v1656_v51 = vpop.f32.mrb[10].mxu0  ;;  %v1688_v52 = vpop.f32.mrb[10].mxu1 }
  0xfd   : > { %v1544_v49 = vpack.c.bf16 %v959_v44, %v959_v44  ;;  %1277 = vst.msk [vmem:[%s1897_s4 + $0x10] sm:$0xf] %vm1272_vm1, %v1541_v42  ;;  %vm829_vm0 = vcmp.gt.f32.partialorder %v589_v38, 0.0  ;;  %v893_v53 = vmul.f32 0.2, %v589_v38  ;;  %vm861_vm2 = vcmp.gt.f32.partialorder %v717_v39, 0.0 }
  0xfe   : > { %v925_v54 = vmul.f32 0.2, %v717_v39  ;;  %1309 = vst.msk [vmem:[%s1897_s4 + $0x90] sm:$0xf] %vm1272_vm1, %v1573_v48  ;;  %v991_v55 = vsel %vm863_vm15, %v725_v37, %v927_v50  ;;  %vm834_vm3 = vcmp.gt.f32.partialorder %v610_v45, 0.0  ;;  %v738_v57 = vadd.f32 %v1687_v41, %v1886_v36  ;;  %v604_v58 = vpop.f32.mrb[11].mxu0 }
  0xff   : > { %1280 = vst.msk [vmem:[%s1897_s4 + $0x1c] sm:$0xf] %vm1272_vm1, %v1544_v49  ;;  %v898_v56 = vmul.f32 0.2, %v610_v45  ;;  %v732_v59 = vpop.f32.mrb[11].mxu1  ;;  %v1576_v60 = vpack.c.bf16 %v991_v55, %v991_v55  ;;  %v957_v61 = vsel %vm829_vm0, %v589_v38, %v893_v53  ;;  %v602_v63 = vadd.f32 %v1886_v36, %v601_v46 }
 0x100   : > { %v989_v62 = vsel %vm861_vm2, %v717_v39, %v925_v54  ;;  %v1542_v0 = vpack.c.bf16 %v957_v61, %v957_v61  ;;  %vm866_vm4 = vcmp.gt.f32.partialorder %v738_v57, 0.0  ;;  %v930_v4 = vmul.f32 0.2, %v738_v57 }
 0x101   : > { %v1574_v1 = vpack.c.bf16 %v989_v62, %v989_v62  ;;  %v962_v2 = vsel %vm834_vm3, %v610_v45, %v898_v56  ;;  %1312 = vst.msk [vmem:[%s1897_s4 + $0x9c] sm:$0xf] %vm1272_vm1, %v1576_v60  ;;  %vm832_vm5 = vcmp.gt.f32.partialorder %v602_v63, 0.0  ;;  %v896_v5 = vmul.f32 0.2, %v602_v63  ;;  %v1659_v6 = vpop.f32.mrb[12].mxu0 }
 0x102   : > { %v1547_v3 = vpack.c.bf16 %v962_v2, %v962_v2  ;;  %1278 = vst.msk [vmem:[%s1897_s4 + $0x14] sm:$0xf] %vm1272_vm1, %v1542_v0  ;;  %v730_v7 = vadd.f32 %v1886_v36, %v729_v47  ;;  %v613_v8 = vadd.f32 %v1656_v51, %v1886_v36  ;;  %v741_v9 = vadd.f32 %v1688_v52, %v1886_v36  ;;  %v1691_v11 = vpop.f32.mrb[12].mxu1  ;;  %v617_v12 = vpop.f32.mrb[13].mxu0 }
 0x103   : > { %1310 = vst.msk [vmem:[%s1897_s4 + $0x94] sm:$0xf] %vm1272_vm1, %v1574_v1  ;;  %v605_v10 = vadd.f32 %v1886_v36, %v604_v58  ;;  %v994_v13 = vsel %vm866_vm4, %v738_v57, %v930_v4  ;;  %v960_v14 = vsel %vm832_vm5, %v602_v63, %v896_v5  ;;  %v733_v15 = vadd.f32 %v1886_v36, %v732_v59  ;;  %v745_v17 = vpop.f32.mrb[13].mxu1  ;;  %v1660_v18 = vpop.f32.mrb[14].mxu0 }
 0x104   : > { %1283 = vst.msk [vmem:[%s1897_s4 + $0x28] sm:$0xf] %vm1272_vm1, %v1547_v3  ;;  %v626_v16 = vadd.f32 %v1659_v6, %v1886_v36  ;;  %v1579_v19 = vpack.c.bf16 %v994_v13, %v994_v13  ;;  %v1545_v20 = vpack.c.bf16 %v960_v14, %v960_v14  ;;  %vm864_vm6 = vcmp.gt.f32.partialorder %v730_v7, 0.0  ;;  %v1692_v22 = vpop.f32.mrb[14].mxu1  ;;  %v620_v23 = vpop.f32.mrb[15].mxu0 }
 0x105   : > { %v928_v21 = vmul.f32 0.2, %v730_v7  ;;  %vm835_vm7 = vcmp.gt.f32.partialorder %v613_v8, 0.0  ;;  %v899_v24 = vmul.f32 0.2, %v613_v8  ;;  %vm867_vm8 = vcmp.gt.f32.partialorder %v741_v9, 0.0 }
 0x106   : > { %v931_v25 = vmul.f32 0.2, %v741_v9  ;;  %1315 = vst.msk [vmem:[%s1897_s4 + $0xa8] sm:$0xf] %vm1272_vm1, %v1579_v19  ;;  %1281 = vst.msk [vmem:[%s1897_s4 + $0x20] sm:$0xf] %vm1272_vm1, %v1545_v20  ;;  %v754_v40 = vadd.f32 %v1691_v11, %v1886_v36  ;;  %v618_v44 = vadd.f32 %v1886_v36, %v617_v12  ;;  %v746_v45 = vadd.f32 %v1886_v36, %v745_v17 }
 0x107   : > { %v992_v26 = vsel %vm864_vm6, %v730_v7, %v928_v21  ;;  %vm833_vm9 = vcmp.gt.f32.partialorder %v605_v10, 0.0  ;;  %v897_v27 = vmul.f32 0.2, %v605_v10  ;;  %vm865_vm10 = vcmp.gt.f32.partialorder %v733_v15, 0.0  ;;  %v748_v28 = vpop.f32.mrb[15].mxu1 }
 0x108   : > { %v1577_v29 = vpack.c.bf16 %v992_v26, %v992_v26  ;;  %v963_v30 = vsel %vm835_vm7, %v613_v8, %v899_v24  ;;  %v995_v31 = vsel %vm867_vm8, %v741_v9, %v931_v25  ;;  %v929_v32 = vmul.f32 0.2, %v733_v15 }
 0x109   : > { %v1548_v33 = vpack.c.bf16 %v963_v30, %v963_v30  ;;  %v1580_v34 = vpack.c.bf16 %v995_v31, %v995_v31  ;;  %v961_v35 = vsel %vm833_vm9, %v605_v10, %v897_v27  ;;  %vm838_vm11 = vcmp.gt.f32.partialorder %v626_v16, 0.0  ;;  %v1663_v41 = vpop.f32.mrb[16].mxu0  ;;  %v1695_v42 = vpop.f32.mrb[16].mxu1 }
 0x10a   : > { %1313 = vst.msk [vmem:[%s1897_s4 + $0xa0] sm:$0xf] %vm1272_vm1, %v1577_v29  ;;  %v1546_v37 = vpack.c.bf16 %v961_v35, %v961_v35  ;;  %v993_v38 = vsel %vm865_vm10, %v733_v15, %v929_v32  ;;  %v902_v39 = vmul.f32 0.2, %v626_v16  ;;  %v629_v46 = vadd.f32 %v1660_v18, %v1886_v36  ;;  %v633_v47 = vpop.f32.mrb[17].mxu0  ;;  %v761_v48 = vpop.f32.mrb[17].mxu1 }
 0x10b   : > { %1284 = vst.msk [vmem:[%s1897_s4 + $0x2c] sm:$0xf] %vm1272_vm1, %v1548_v33  ;;  %1316 = vst.msk [vmem:[%s1897_s4 + $0xac] sm:$0xf] %vm1272_vm1, %v1580_v34  ;;  %v1578_v43 = vpack.c.bf16 %v993_v38, %v993_v38  ;;  %vm870_vm12 = vcmp.gt.f32.partialorder %v754_v40, 0.0  ;;  %v757_v51 = vadd.f32 %v1692_v22, %v1886_v36  ;;  %v1973_v52 = vpop.f32.mrb[18].mxu0  ;;  %v621_v3 = vadd.f32 %v1886_v36, %v620_v23 }
 0x10c   : > { %1282 = vst.msk [vmem:[%s1897_s4 + $0x24] sm:$0xf] %vm1272_vm1, %v1546_v37  ;;  %v966_v49 = vsel %vm838_vm11, %v626_v16, %v902_v39  ;;  %v934_v50 = vmul.f32 0.2, %v754_v40  ;;  %v1975_v53 = vpop.f32.mrb[18].mxu1  ;;  %vm836_vm13 = vcmp.gt.f32.partialorder %v618_v44, 0.0  ;;  %v749_v7 = vadd.f32 %v1886_v36, %v748_v28 }
 0x10d   : > { %1314 = vst.msk [vmem:[%s1897_s4 + $0xa4] sm:$0xf] %vm1272_vm1, %v1578_v43  ;;  %v1551_v54 = vpack.c.bf16 %v966_v49, %v966_v49  ;;  %v900_v55 = vmul.f32 0.2, %v618_v44  ;;  %vm868_vm14 = vcmp.gt.f32.partialorder %v746_v45, 0.0  ;;  %v1979_v56 = vpop.f32.mrb[19].mxu0  ;;  %v642_v10 = vadd.f32 %v1663_v41, %v1886_v36 }
 0x10e   : > { %v1981_v57 = vpop.f32.mrb[19].mxu1  ;;  %v998_v58 = vsel %vm870_vm12, %v754_v40, %v934_v50  ;;  %v932_v59 = vmul.f32 0.2, %v746_v45  ;;  %vm839_vm15 = vcmp.gt.f32.partialorder %v629_v46, 0.0  ;;  %v903_v60 = vmul.f32 0.2, %v629_v46 }
 0x10f   : > { %1287 = vst.msk [vmem:[%s1897_s4 + $0x38] sm:$0xf] %vm1272_vm1, %v1551_v54  ;;  %v1583_v61 = vpack.c.bf16 %v998_v58, %v998_v58  ;;  %v964_v62 = vsel %vm836_vm13, %v618_v44, %v900_v55  ;;  %vm871_vm0 = vcmp.gt.f32.partialorder %v757_v51, 0.0  ;;  %v935_v63 = vmul.f32 0.2, %v757_v51 }
 0x110   : > { %v1549_v0 = vpack.c.bf16 %v964_v62, %v964_v62  ;;  %v996_v1 = vsel %vm868_vm14, %v746_v45, %v932_v59  ;;  %v967_v2 = vsel %vm839_vm15, %v629_v46, %v903_v60  ;;  %vm837_vm2 = vcmp.gt.f32.partialorder %v621_v3, 0.0 }
 0x111   : > { %1319 = vst.msk [vmem:[%s1897_s4 + $0xb8] sm:$0xf] %vm1272_vm1, %v1583_v61  ;;  %v1581_v4 = vpack.c.bf16 %v996_v1, %v996_v1  ;;  %v1552_v5 = vpack.c.bf16 %v967_v2, %v967_v2  ;;  %v999_v6 = vsel %vm871_vm0, %v757_v51, %v935_v63  ;;  %v901_v9 = vmul.f32 0.2, %v621_v3  ;;  %v1667_v11 = vpop.f32.mrb[20].mxu0  ;;  %v1699_v12 = vpop.f32.mrb[20].mxu1 }
 0x112   : > { %1285 = vst.msk [vmem:[%s1897_s4 + $0x30] sm:$0xf] %vm1272_vm1, %v1549_v0  ;;  %v1584_v8 = vpack.c.bf16 %v999_v6, %v999_v6  ;;  %vm869_vm3 = vcmp.gt.f32.partialorder %v749_v7, 0.0  ;;  %v933_v13 = vmul.f32 0.2, %v749_v7  ;;  %v770_v14 = vadd.f32 %v1695_v42, %v1886_v36  ;;  %v649_v16 = vpop.f32.mrb[21].mxu0 }
 0x113   : > { %1317 = vst.msk [vmem:[%s1897_s4 + $0xb0] sm:$0xf] %vm1272_vm1, %v1581_v4  ;;  %1288 = vst.msk [vmem:[%s1897_s4 + $0x3c] sm:$0xf] %vm1272_vm1, %v1552_v5  ;;  %v634_v15 = vadd.f32 %v1886_v36, %v633_v47  ;;  %v1998_v17 = vpop.f32.mrb[21].mxu1  ;;  %v965_v18 = vsel %vm837_vm2, %v621_v3, %v901_v9  ;;  %vm842_vm4 = vcmp.gt.f32.partialorder %v642_v10, 0.0  ;;  %v762_v20 = vadd.f32 %v1886_v36, %v761_v48 }
 0x114   : > { %1320 = vst.msk [vmem:[%s1897_s4 + $0xbc] sm:$0xf] %vm1272_vm1, %v1584_v8  ;;  %v906_v19 = vmul.f32 0.2, %v642_v10  ;;  %v2003_v21 = vpop.f32.mrb[22].mxu0  ;;  %v2005_v22 = vpop.f32.mrb[22].mxu1  ;;  %v1550_v23 = vpack.c.bf16 %v965_v18, %v965_v18  ;;  %v997_v24 = vsel %vm869_vm3, %v749_v7, %v933_v13  ;;  %v645_v37 = vadd.f32 %v1973_v52, %v1886_v36 }
 0x115   : > { %vm874_vm5 = vcmp.gt.f32.partialorder %v770_v14, 0.0  ;;  %v938_v25 = vmul.f32 0.2, %v770_v14  ;;  %v2007_v26 = vpop.f32.mrb[23].mxu0  ;;  %v2009_v27 = vpop.f32.mrb[23].mxu1  ;;  %v1582_v28 = vpack.c.bf16 %v997_v24, %v997_v24  ;;  %vm840_vm6 = vcmp.gt.f32.partialorder %v634_v15, 0.0 }
 0x116   : > { %v970_v29 = vsel %vm842_vm4, %v642_v10, %v906_v19  ;;  %v904_v30 = vmul.f32 0.2, %v634_v15  ;;  %1286 = vst.msk [vmem:[%s1897_s4 + $0x34] sm:$0xf] %vm1272_vm1, %v1550_v23  ;;  %vm872_vm7 = vcmp.gt.f32.partialorder %v762_v20, 0.0  ;;  %v773_v38 = vadd.f32 %v1975_v53, %v1886_v36 }
 0x117   : > { %v1555_v31 = vpack.c.bf16 %v970_v29, %v970_v29  ;;  %v1002_v32 = vsel %vm874_vm5, %v770_v14, %v938_v25  ;;  %v936_v33 = vmul.f32 0.2, %v762_v20  ;;  %1318 = vst.msk [vmem:[%s1897_s4 + $0xb4] sm:$0xf] %vm1272_vm1, %v1582_v28  ;;  %v637_v41 = vadd.f32 %v1886_v36, %v1979_v56 }
 0x118   : > { %v1587_v34 = vpack.c.bf16 %v1002_v32, %v1002_v32  ;;  %v968_v35 = vsel %vm840_vm6, %v634_v15, %v904_v30  ;;  %v765_v42 = vadd.f32 %v1886_v36, %v1981_v57  ;;  %vm843_vm8 = vcmp.gt.f32.partialorder %v645_v37, 0.0 }
 0x119   : > { %1291 = vst.msk [vmem:[%s1897_s4 + $0x48] sm:$0xf] %vm1272_vm1, %v1555_v31  ;;  %v1553_v39 = vpack.c.bf16 %v968_v35, %v968_v35  ;;  %v1000_v40 = vsel %vm872_vm7, %v762_v20, %v936_v33  ;;  %v907_v44 = vmul.f32 0.2, %v645_v37  ;;  %vm875_vm9 = vcmp.gt.f32.partialorder %v773_v38, 0.0  ;;  %v2027_v45 = vpop.f32.mrb[24].mxu0 }
 0x11a   : > { %1323 = vst.msk [vmem:[%s1897_s4 + $0xc8] sm:$0xf] %vm1272_vm1, %v1587_v34  ;;  %v1585_v43 = vpack.c.bf16 %v1000_v40, %v1000_v40  ;;  %v2029_v46 = vpop.f32.mrb[24].mxu1  ;;  %v939_v47 = vmul.f32 0.2, %v773_v38  ;;  %vm841_vm10 = vcmp.gt.f32.partialorder %v637_v41, 0.0  ;;  %v658_v51 = vadd.f32 %v1667_v11, %v1886_v36 }
 0x11b   : > { %1289 = vst.msk [vmem:[%s1897_s4 + $0x40] sm:$0xf] %vm1272_vm1, %v1553_v39  ;;  %v905_v48 = vmul.f32 0.2, %v637_v41  ;;  %vm873_vm11 = vcmp.gt.f32.partialorder %v765_v42, 0.0  ;;  %v971_v49 = vsel %vm843_vm8, %v645_v37, %v907_v44  ;;  %v786_v52 = vadd.f32 %v1699_v12, %v1886_v36  ;;  %v2037_v53 = vpop.f32.mrb[25].mxu0 }
 0x11c   : > { %1321 = vst.msk [vmem:[%s1897_s4 + $0xc0] sm:$0xf] %vm1272_vm1, %v1585_v43  ;;  %v937_v50 = vmul.f32 0.2, %v765_v42  ;;  %v2039_v54 = vpop.f32.mrb[25].mxu1  ;;  %v1556_v55 = vpack.c.bf16 %v971_v49, %v971_v49  ;;  %v1003_v56 = vsel %vm875_vm9, %v773_v38, %v939_v47  ;;  %v650_v58 = vadd.f32 %v1886_v36, %v649_v16  ;;  %v2043_v59 = vpop.f32.mrb[26].mxu0 }
 0x11d   : > { %v969_v57 = vsel %vm841_vm10, %v637_v41, %v905_v48  ;;  %v2045_v60 = vpop.f32.mrb[26].mxu1  ;;  %v1588_v61 = vpack.c.bf16 %v1003_v56, %v1003_v56  ;;  %vm846_vm12 = vcmp.gt.f32.partialorder %v658_v51, 0.0  ;;  %v2048_v0 = vpop.f32.mrb[27].mxu0  ;;  %v910_v3 = vmul.f32 0.2, %v658_v51 }
 0x11e   : > { %v1554_v62 = vpack.c.bf16 %v969_v57, %v969_v57  ;;  %v1001_v63 = vsel %vm873_vm11, %v765_v42, %v937_v50  ;;  %v2050_v1 = vpop.f32.mrb[27].mxu1  ;;  %1292 = vst.msk [vmem:[%s1897_s4 + $0x4c] sm:$0xf] %vm1272_vm1, %v1556_v55  ;;  %vm878_vm13 = vcmp.gt.f32.partialorder %v786_v52, 0.0  ;;  %v942_v4 = vmul.f32 0.2, %v786_v52 }
 0x11f   : > { %v1586_v2 = vpack.c.bf16 %v1001_v63, %v1001_v63  ;;  %1324 = vst.msk [vmem:[%s1897_s4 + $0xcc] sm:$0xf] %vm1272_vm1, %v1588_v61  ;;  %vm844_vm14 = vcmp.gt.f32.partialorder %v650_v58, 0.0  ;;  %v908_v5 = vmul.f32 0.2, %v650_v58  ;;  %v778_v6 = vadd.f32 %v1886_v36, %v1998_v17 }
 0x120   : > { %1290 = vst.msk [vmem:[%s1897_s4 + $0x44] sm:$0xf] %vm1272_vm1, %v1554_v62  ;;  %v661_v7 = vadd.f32 %v2003_v21, %v1886_v36  ;;  %v974_v8 = vsel %vm846_vm12, %v658_v51, %v910_v3  ;;  %v1006_v9 = vsel %vm878_vm13, %v786_v52, %v942_v4  ;;  %v789_v10 = vadd.f32 %v2005_v22, %v1886_v36 }
 0x121   : > { %1322 = vst.msk [vmem:[%s1897_s4 + $0xc4] sm:$0xf] %vm1272_vm1, %v1586_v2  ;;  %v653_v11 = vadd.f32 %v1886_v36, %v2007_v26  ;;  %v1559_v12 = vpack.c.bf16 %v974_v8, %v974_v8  ;;  %v1591_v13 = vpack.c.bf16 %v1006_v9, %v1006_v9  ;;  %v972_v14 = vsel %vm844_vm14, %v650_v58, %v908_v5  ;;  %v2068_v15 = vpop.f32.mrb[28].mxu0  ;;  %v2070_v16 = vpop.f32.mrb[28].mxu1 }
 0x122   : > { %vm876_vm15 = vcmp.gt.f32.partialorder %v778_v6, 0.0  ;;  %v1557_v17 = vpack.c.bf16 %v972_v14, %v972_v14  ;;  %v940_v18 = vmul.f32 0.2, %v778_v6  ;;  %vm847_vm0 = vcmp.gt.f32.partialorder %v661_v7, 0.0  ;;  %v2072_v20 = vpop.f32.mrb[29].mxu0  ;;  %v2084_v28 = vpop.f32.mrb[29].mxu1 }
 0x123   : > { %v911_v19 = vmul.f32 0.2, %v661_v7  ;;  %1295 = vst.msk [vmem:[%s1897_s4 + $0x58] sm:$0xf] %vm1272_vm1, %v1559_v12  ;;  %1327 = vst.msk [vmem:[%s1897_s4 + $0xd8] sm:$0xf] %vm1272_vm1, %v1591_v13  ;;  %v781_v25 = vadd.f32 %v1886_v36, %v2009_v27  ;;  %v674_v26 = vadd.f32 %v2027_v45, %v1886_v36  ;;  %v802_v41 = vadd.f32 %v2029_v46, %v1886_v36 }
 0x124   : > { %vm879_vm2 = vcmp.gt.f32.partialorder %v789_v10, 0.0  ;;  %v943_v21 = vmul.f32 0.2, %v789_v10  ;;  %vm845_vm3 = vcmp.gt.f32.partialorder %v653_v11, 0.0  ;;  %v909_v22 = vmul.f32 0.2, %v653_v11 }
 0x125   : > { %1293 = vst.msk [vmem:[%s1897_s4 + $0x50] sm:$0xf] %vm1272_vm1, %v1557_v17  ;;  %v1004_v23 = vsel %vm876_vm15, %v778_v6, %v940_v18  ;;  %v975_v24 = vsel %vm847_vm0, %v661_v7, %v911_v19  ;;  %v2086_v29 = vpop.f32.mrb[30].mxu0  ;;  %v2088_v34 = vpop.f32.mrb[30].mxu1  ;;  %vm877_vm4 = vcmp.gt.f32.partialorder %v781_v25, 0.0  ;;  %vm850_vm5 = vcmp.gt.f32.partialorder %v674_v26, 0.0 }
 0x126   : > { %v1589_v30 = vpack.c.bf16 %v1004_v23, %v1004_v23  ;;  %v1560_v31 = vpack.c.bf16 %v975_v24, %v975_v24  ;;  %v1007_v32 = vsel %vm879_vm2, %v789_v10, %v943_v21  ;;  %v973_v33 = vsel %vm845_vm3, %v653_v11, %v909_v22  ;;  %v2090_v35 = vpop.f32.mrb[31].mxu0  ;;  %v2092_v39 = vpop.f32.mrb[31].mxu1 }
 0x127   : > { %v1592_v37 = vpack.c.bf16 %v1007_v32, %v1007_v32  ;;  %v1558_v27 = vpack.c.bf16 %v973_v33, %v973_v33  ;;  %v941_v38 = vmul.f32 0.2, %v781_v25  ;;  %v914_v40 = vmul.f32 0.2, %v674_v26 }
 0x128   : > { %1325 = vst.msk [vmem:[%s1897_s4 + $0xd0] sm:$0xf] %vm1272_vm1, %v1589_v30  ;;  %1296 = vst.msk [vmem:[%s1897_s4 + $0x5c] sm:$0xf] %vm1272_vm1, %v1560_v31  ;;  %v666_v42 = vadd.f32 %v1886_v36, %v2037_v53  ;;  %v794_v44 = vadd.f32 %v1886_v36, %v2039_v54  ;;  %v677_v45 = vadd.f32 %v2043_v59, %v1886_v36  ;;  %vm882_vm6 = vcmp.gt.f32.partialorder %v802_v41, 0.0 }
 0x129   : > { %1328 = vst.msk [vmem:[%s1897_s4 + $0xdc] sm:$0xf] %vm1272_vm1, %v1592_v37  ;;  %1294 = vst.msk [vmem:[%s1897_s4 + $0x54] sm:$0xf] %vm1272_vm1, %v1558_v27  ;;  %v1005_v43 = vsel %vm877_vm4, %v781_v25, %v941_v38  ;;  %v805_v47 = vadd.f32 %v2045_v60, %v1886_v36  ;;  %v978_v48 = vsel %vm850_vm5, %v674_v26, %v914_v40  ;;  %v946_v49 = vmul.f32 0.2, %v802_v41 }
 0x12a   : > { %v1590_v46 = vpack.c.bf16 %v1005_v43, %v1005_v43  ;;  %v1563_v50 = vpack.c.bf16 %v978_v48, %v978_v48  ;;  %vm848_vm7 = vcmp.gt.f32.partialorder %v666_v42, 0.0  ;;  %v912_v51 = vmul.f32 0.2, %v666_v42 }
 0x12b   : > { %vm880_vm8 = vcmp.gt.f32.partialorder %v794_v44, 0.0  ;;  %v1010_v52 = vsel %vm882_vm6, %v802_v41, %v946_v49  ;;  %v944_v53 = vmul.f32 0.2, %v794_v44  ;;  %vm851_vm9 = vcmp.gt.f32.partialorder %v677_v45, 0.0 }
 0x12c   : > { %1326 = vst.msk [vmem:[%s1897_s4 + $0xd4] sm:$0xf] %vm1272_vm1, %v1590_v46  ;;  %v915_v54 = vmul.f32 0.2, %v677_v45  ;;  %1299 = vst.msk [vmem:[%s1897_s4 + $0x68] sm:$0xf] %vm1272_vm1, %v1563_v50  ;;  %v1595_v55 = vpack.c.bf16 %v1010_v52, %v1010_v52  ;;  %v976_v56 = vsel %vm848_vm7, %v666_v42, %v912_v51  ;;  %v669_v61 = vadd.f32 %v1886_v36, %v2048_v0 }
 0x12d   : > { %vm883_vm10 = vcmp.gt.f32.partialorder %v805_v47, 0.0  ;;  %v947_v57 = vmul.f32 0.2, %v805_v47  ;;  %v1561_v58 = vpack.c.bf16 %v976_v56, %v976_v56  ;;  %v1008_v59 = vsel %vm880_vm8, %v794_v44, %v944_v53 }
 0x12e   : > { %v979_v60 = vsel %vm851_vm9, %v677_v45, %v915_v54  ;;  %1331 = vst.msk [vmem:[%s1897_s4 + $0xe8] sm:$0xf] %vm1272_vm1, %v1595_v55  ;;  %v1593_v62 = vpack.c.bf16 %v1008_v59, %v1008_v59  ;;  %v797_v3 = vadd.f32 %v1886_v36, %v2050_v1  ;;  %vm849_vm11 = vcmp.gt.f32.partialorder %v669_v61, 0.0 }
 0x12f   : > { %v1564_v63 = vpack.c.bf16 %v979_v60, %v979_v60  ;;  %v1011_v2 = vsel %vm883_vm10, %v805_v47, %v947_v57  ;;  %1297 = vst.msk [vmem:[%s1897_s4 + $0x60] sm:$0xf] %vm1272_vm1, %v1561_v58  ;;  %v913_v5 = vmul.f32 0.2, %v669_v61  ;;  %v690_v6 = vadd.f32 %v2068_v15, %v1886_v36 }
 0x130   : > { %v1596_v4 = vpack.c.bf16 %v1011_v2, %v1011_v2  ;;  %1329 = vst.msk [vmem:[%s1897_s4 + $0xe0] sm:$0xf] %vm1272_vm1, %v1593_v62  ;;  %vm881_vm12 = vcmp.gt.f32.partialorder %v797_v3, 0.0  ;;  %v945_v0 = vmul.f32 0.2, %v797_v3  ;;  %v818_v7 = vadd.f32 %v2070_v16, %v1886_v36 }
 0x131   : > { %1300 = vst.msk [vmem:[%s1897_s4 + $0x6c] sm:$0xf] %vm1272_vm1, %v1564_v63  ;;  %v682_v1 = vadd.f32 %v1886_v36, %v2072_v20  ;;  %v977_v8 = vsel %vm849_vm11, %v669_v61, %v913_v5  ;;  %vm854_vm13 = vcmp.gt.f32.partialorder %v690_v6, 0.0  ;;  %v918_v9 = vmul.f32 0.2, %v690_v6 }
 0x132   : > { %1332 = vst.msk [vmem:[%s1897_s4 + $0xec] sm:$0xf] %vm1272_vm1, %v1596_v4  ;;  %v810_v10 = vadd.f32 %v1886_v36, %v2084_v28  ;;  %v1562_v11 = vpack.c.bf16 %v977_v8, %v977_v8  ;;  %v1009_v12 = vsel %vm881_vm12, %v797_v3, %v945_v0  ;;  %vm886_vm14 = vcmp.gt.f32.partialorder %v818_v7, 0.0 }
 0x133   : > { %v950_v13 = vmul.f32 0.2, %v818_v7  ;;  %v1594_v14 = vpack.c.bf16 %v1009_v12, %v1009_v12  ;;  %v982_v15 = vsel %vm854_vm13, %v690_v6, %v918_v9  ;;  %vm852_vm15 = vcmp.gt.f32.partialorder %v682_v1, 0.0 }
 0x134   : > { %v916_v16 = vmul.f32 0.2, %v682_v1  ;;  %1298 = vst.msk [vmem:[%s1897_s4 + $0x64] sm:$0xf] %vm1272_vm1, %v1562_v11  ;;  %v1567_v17 = vpack.c.bf16 %v982_v15, %v982_v15  ;;  %vm884_vm0 = vcmp.gt.f32.partialorder %v810_v10, 0.0  ;;  %v693_v22 = vadd.f32 %v2086_v29, %v1886_v36 }
 0x135   : > { %v1014_v18 = vsel %vm886_vm14, %v818_v7, %v950_v13  ;;  %v948_v19 = vmul.f32 0.2, %v810_v10  ;;  %1330 = vst.msk [vmem:[%s1897_s4 + $0xe4] sm:$0xf] %vm1272_vm1, %v1594_v14  ;;  %v821_v23 = vadd.f32 %v2088_v34, %v1886_v36  ;;  %v685_v26 = vadd.f32 %v1886_v36, %v2090_v35 }
 0x136   : > { %v1599_v20 = vpack.c.bf16 %v1014_v18, %v1014_v18  ;;  %v980_v21 = vsel %vm852_vm15, %v682_v1, %v916_v16  ;;  %1303 = vst.msk [vmem:[%s1897_s4 + $0x78] sm:$0xf] %vm1272_vm1, %v1567_v17  ;;  %v813_v28 = vadd.f32 %v1886_v36, %v2092_v39  ;;  %vm855_vm2 = vcmp.gt.f32.partialorder %v693_v22, 0.0 }
 0x137   : > { %v1565_v24 = vpack.c.bf16 %v980_v21, %v980_v21  ;;  %v1012_v25 = vsel %vm884_vm0, %v810_v10, %v948_v19  ;;  %v919_v31 = vmul.f32 0.2, %v693_v22  ;;  %vm887_vm3 = vcmp.gt.f32.partialorder %v821_v23, 0.0 }
 0x138   : > { %1335 = vst.msk [vmem:[%s1897_s4 + $0xf8] sm:$0xf] %vm1272_vm1, %v1599_v20  ;;  %v1597_v30 = vpack.c.bf16 %v1012_v25, %v1012_v25  ;;  %v951_v29 = vmul.f32 0.2, %v821_v23  ;;  %vm853_vm4 = vcmp.gt.f32.partialorder %v685_v26, 0.0  ;;  %vm885_vm5 = vcmp.gt.f32.partialorder %v813_v28, 0.0 }
 0x139   : > { %1301 = vst.msk [vmem:[%s1897_s4 + $0x70] sm:$0xf] %vm1272_vm1, %v1565_v24  ;;  %v917_v32 = vmul.f32 0.2, %v685_v26  ;;  %v983_v33 = vsel %vm855_vm2, %v693_v22, %v919_v31  ;;  %v949_v36 = vmul.f32 0.2, %v813_v28 }
 0x13a   : > { %1333 = vst.msk [vmem:[%s1897_s4 + $0xf0] sm:$0xf] %vm1272_vm1, %v1597_v30  ;;  %v1568_v34 = vpack.c.bf16 %v983_v33, %v983_v33  ;;  %v1015_v35 = vsel %vm887_vm3, %v821_v23, %v951_v29 }
 0x13b   : > { %v981_v37 = vsel %vm853_vm4, %v685_v26, %v917_v32  ;;  %v1600_v27 = vpack.c.bf16 %v1015_v35, %v1015_v35  ;;  %v1013_v39 = vsel %vm885_vm5, %v813_v28, %v949_v36 }
 0x13c   : > { %v1566_v38 = vpack.c.bf16 %v981_v37, %v981_v37  ;;  %1304 = vst.msk [vmem:[%s1897_s4 + $0x7c] sm:$0xf] %vm1272_vm1, %v1568_v34  ;;  %v1598_v40 = vpack.c.bf16 %v1013_v39, %v1013_v39 }
 0x13d   : > { %1336 = vst.msk [vmem:[%s1897_s4 + $0xfc] sm:$0xf] %vm1272_vm1, %v1600_v27 }
 0x13e   : > { %1302 = vst.msk [vmem:[%s1897_s4 + $0x74] sm:$0xf] %vm1272_vm1, %v1566_v38  ;;  %1334 = vst.msk [vmem:[%s1897_s4 + $0xf4] sm:$0xf] %vm1272_vm1, %v1598_v40 }
 0x13f PF: > { %s13_s12 = sadd.s32 1, %s1767_s12  }
 0x140   : > { %p10_p4 = scmp.ge.s32.totalorder %s13_s12, 6  }
 0x142   :  { %12 = sbr.rel (!%p10_p4) target bundleno = 1 (0x1), region = 62 }

// kernel: discriminator_forward.7
= control target key start
LH: loop header
LB: loop body
LE: loop exit
PB: predicated region body
PF: predicated region fallthrough
CT: control target
= control target key end

     0   :  { %v4291_v0 = vmov 0   ;;  %s5647_s1 = inlined_call_operand.vmem [shape: bf16[1024,128], index: 1, kind: input, shape index: {}]   ;;  %s5648_s0 = inlined_call_operand.vmem [shape: bf16[512,1024], index: 0, kind: input, shape index: {}]   ;;  %s5649_s2 = inlined_call_operand.vmem [shape: f32[1,128], index: 2, kind: input, shape index: {}]   ;;  %s5650_s3 = inlined_call_operand.vmem [shape: f32[512,128], index: 3, kind: output, shape index: {0}]   ;;  %s5651_s4 = inlined_call_operand.vmem [shape: f32[1,128], index: 4, kind: output, shape index: {1}]   ;;  %s5652_s5 = inlined_call_operand.vmem [shape: f32[1,128], index: 5, kind: output, shape index: {2}]  }
   0x1   :  { %2079 = vmatprep.subr.bf16.mxu1 %v4291_v0  ;;  %2657 = vmatprep.subr.bf16.mxu0 %v4291_v0  ;;  %v4226_v1 = vld [vmem:[%s5647_s1] sm:$0xff]   ;;  %v4228_v3 = vld [vmem:[%s5647_s1 + $0x8] sm:$0xff]   ;;  %v4230_v5 = vld [vmem:[%s5647_s1 + $0x10] sm:$0xff]  }
   0x2   :  { %v4227_v2 = vld [vmem:[%s5647_s1 + $0x100] sm:$0xff]   ;;  %2080 = vmatpush1.bf16.msra.mxu1 %v4226_v1  ;;  %v4229_v4 = vld [vmem:[%s5647_s1 + $0x108] sm:$0xff]   ;;  %v4231_v6 = vld [vmem:[%s5647_s1 + $0x110] sm:$0xff]  }
   0x3   :  { %2658 = vmatpush1.bf16.msra.mxu0 %v4227_v2  ;;  %2081 = vmatprep.subr.bf16.mxu1 %v4291_v0  ;;  %v4232_v7 = vld [vmem:[%s5647_s1 + $0x18] sm:$0xff]   ;;  %v4234_v9 = vld [vmem:[%s5647_s1 + $0x20] sm:$0xff]   ;;  %v4236_v11 = vld [vmem:[%s5647_s1 + $0x28] sm:$0xff]  }
   0x4   :  { %2659 = vmatprep.subr.bf16.mxu0 %v4291_v0  ;;  %v4233_v8 = vld [vmem:[%s5647_s1 + $0x118] sm:$0xff]   ;;  %v4235_v10 = vld [vmem:[%s5647_s1 + $0x120] sm:$0xff]   ;;  %v4237_v12 = vld [vmem:[%s5647_s1 + $0x128] sm:$0xff]  }
   0x5   :  { %v4238_v13 = vld [vmem:[%s5647_s1 + $0x30] sm:$0xff]   ;;  %v4240_v15 = vld [vmem:[%s5647_s1 + $0x38] sm:$0xff]   ;;  %v4242_v17 = vld [vmem:[%s5647_s1 + $0x40] sm:$0xff]  }
   0x6   :  { %2082 = vmatpush1.bf16.msra.mxu1 %v4228_v3  ;;  %v4239_v14 = vld [vmem:[%s5647_s1 + $0x130] sm:$0xff]   ;;  %v4241_v16 = vld [vmem:[%s5647_s1 + $0x138] sm:$0xff]   ;;  %v4243_v18 = vld [vmem:[%s5647_s1 + $0x140] sm:$0xff]  }
   0x7   :  { %2660 = vmatpush1.bf16.msra.mxu0 %v4229_v4  ;;  %2083 = vmatprep.subr.bf16.mxu1 %v4291_v0  ;;  %v4398_v19 = vld [vmem:[%s5648_s0] sm:$0xff]  ;;  %v4408_v21 = vld [vmem:[%s5648_s0 + $0x10] sm:$0xff]  ;;  %v4244_v24 = vld [vmem:[%s5647_s1 + $0x48] sm:$0xff]  }
   0x8   :  { %2661 = vmatprep.subr.bf16.mxu0 %v4291_v0  ;;  %v4403_v20 = vld [vmem:[%s5648_s0 + $0x20] sm:$0xff]  ;;  %v4415_v23 = vld [vmem:[%s5648_s0 + $0x30] sm:$0xff]  ;;  %v4245_v26 = vld [vmem:[%s5647_s1 + $0x148] sm:$0xff]  }
   0x9   :  { %v3521_v22 = vcombine.high %v4398_v19, %v4403_v20  ;;  %v3525_v25 = vcombine.high %v4408_v21, %v4415_v23  ;;  %v4246_v27 = vld [vmem:[%s5647_s1 + $0x50] sm:$0xff]   ;;  %v4248_v29 = vld [vmem:[%s5647_s1 + $0x58] sm:$0xff]   ;;  %v4250_v31 = vld [vmem:[%s5647_s1 + $0x60] sm:$0xff]   ;;  %v3520_v42 = vcombine.low %v4398_v19, %v4403_v20  ;;  %v3524_v44 = vcombine.low %v4408_v21, %v4415_v23 }
   0xa   :  { %2084 = vmatpush1.bf16.msra.mxu1 %v4230_v5  ;;  %v4247_v28 = vld [vmem:[%s5647_s1 + $0x150] sm:$0xff]   ;;  %v4249_v30 = vld [vmem:[%s5647_s1 + $0x158] sm:$0xff]   ;;  %v4251_v32 = vld [vmem:[%s5647_s1 + $0x160] sm:$0xff]  }
   0xb   :  { %2662 = vmatpush1.bf16.msra.mxu0 %v4231_v6  ;;  %2085 = vmatprep.subr.bf16.mxu1 %v4291_v0  ;;  %v4252_v33 = vld [vmem:[%s5647_s1 + $0x68] sm:$0xff]   ;;  %v4254_v35 = vld [vmem:[%s5647_s1 + $0x70] sm:$0xff]   ;;  %v4256_v37 = vld [vmem:[%s5647_s1 + $0x78] sm:$0xff]  }
   0xc   :  { %2663 = vmatprep.subr.bf16.mxu0 %v4291_v0  ;;  %2111 = vmatprep.mubr.bf16.mxu1 %v3521_v22  ;;  %v4253_v34 = vld [vmem:[%s5647_s1 + $0x168] sm:$0xff]   ;;  %v4255_v36 = vld [vmem:[%s5647_s1 + $0x170] sm:$0xff]   ;;  %v4257_v38 = vld [vmem:[%s5647_s1 + $0x178] sm:$0xff]  }
   0xd   :  { %2689 = vmatprep.mubr.bf16.mxu0 %v3525_v25  ;;  %v32_v39 = vld [vmem:[%s5648_s0 + $0x40] sm:$0xff]  ;;  %v34_v41 = vld [vmem:[%s5648_s0 + $0x50] sm:$0xff]  ;;  %v4260_v51 = vld [vmem:[%s5647_s1 + $0x88] sm:$0xff]  }
   0xe   :  { %2086 = vmatpush1.bf16.msra.mxu1 %v4232_v7  ;;  %v36_v40 = vld [vmem:[%s5648_s0 + $0x60] sm:$0xff]  ;;  %v38_v43 = vld [vmem:[%s5648_s0 + $0x70] sm:$0xff]  ;;  %v4261_v52 = vld [vmem:[%s5647_s1 + $0x188] sm:$0xff]  }
   0xf   :  { %2664 = vmatpush1.bf16.msra.mxu0 %v4233_v8  ;;  %2087 = vmatprep.subr.bf16.mxu1 %v4291_v0  ;;  %v4258_v45 = vld [vmem:[%s5647_s1 + $0x80] sm:$0xff]   ;;  %v3529_v47 = vcombine.high %v32_v39, %v36_v40  ;;  %v3533_v48 = vcombine.high %v34_v41, %v38_v43  ;;  %v42_v53 = vld [vmem:[%s5648_s0 + $0x90] sm:$0xff]  ;;  %v3528_v55 = vcombine.low %v32_v39, %v36_v40  ;;  %v4264_v2 = vld [vmem:[%s5647_s1 + $0x98] sm:$0xff]  }
  0x10   :  { %2665 = vmatprep.subr.bf16.mxu0 %v4291_v0  ;;  %v4259_v46 = vld [vmem:[%s5647_s1 + $0x180] sm:$0xff]   ;;  %v46_v54 = vld [vmem:[%s5648_s0 + $0xb0] sm:$0xff]  ;;  %v3532_v56 = vcombine.low %v34_v41, %v38_v43  ;;  %v4265_v3 = vld [vmem:[%s5647_s1 + $0x198] sm:$0xff]  }
  0x11   :  { %v40_v49 = vld [vmem:[%s5648_s0 + $0x80] sm:$0xff]  ;;  %v3541_v58 = vcombine.high %v42_v53, %v46_v54  ;;  %v4262_v59 = vld [vmem:[%s5647_s1 + $0x90] sm:$0xff]   ;;  %v3540_v6 = vcombine.low %v42_v53, %v46_v54  ;;  %v4277_v39 = vld [vmem:[%s5647_s1 + $0x1c8] sm:$0xff]  }
  0x12   :  { %2088 = vmatpush1.bf16.msra.mxu1 %v4234_v9  ;;  %v44_v50 = vld [vmem:[%s5648_s0 + $0xa0] sm:$0xff]  ;;  %v4263_v60 = vld [vmem:[%s5647_s1 + $0x190] sm:$0xff]   ;;  %v4280_v54 = vld [vmem:[%s5647_s1 + $0xd8] sm:$0xff]  }
  0x13   :  { %2666 = vmatpush1.bf16.msra.mxu0 %v4235_v10  ;;  %2089 = vmatprep.subr.bf16.mxu1 %v4291_v0  ;;  %v3537_v57 = vcombine.high %v40_v49, %v44_v50  ;;  %v48_v61 = vld [vmem:[%s5648_s0 + $0xc0] sm:$0xff]  ;;  %v50_v63 = vld [vmem:[%s5648_s0 + $0xd0] sm:$0xff]  ;;  %v3536_v4 = vcombine.low %v40_v49, %v44_v50 }
  0x14   :  { %2667 = vmatprep.subr.bf16.mxu0 %v4291_v0  ;;  %v52_v62 = vld [vmem:[%s5648_s0 + $0xe0] sm:$0xff]  ;;  %v54_v1 = vld [vmem:[%s5648_s0 + $0xf0] sm:$0xff] }
  0x15   :  { %v4266_v5 = vld [vmem:[%s5647_s1 + $0xa0] sm:$0xff]   ;;  %v3545_v7 = vcombine.high %v48_v61, %v52_v62  ;;  %v3549_v9 = vcombine.high %v50_v63, %v54_v1  ;;  %v4270_v20 = vld [vmem:[%s5647_s1 + $0xb0] sm:$0xff]  }
  0x16   :  { %2090 = vmatpush1.bf16.msra.mxu1 %v4236_v11  ;;  %v4267_v8 = vld [vmem:[%s5647_s1 + $0x1a0] sm:$0xff]   ;;  %v4271_v21 = vld [vmem:[%s5647_s1 + $0x1b0] sm:$0xff]  }
  0x17   :  { %2668 = vmatpush1.bf16.msra.mxu0 %v4237_v12  ;;  %2091 = vmatprep.subr.bf16.mxu1 %v4291_v0  ;;  %v56_v10 = vld [vmem:[%s5648_s0 + $0x100] sm:$0xff]  ;;  %v58_v12 = vld [vmem:[%s5648_s0 + $0x110] sm:$0xff] }
  0x18   :  { %2669 = vmatprep.subr.bf16.mxu0 %v4291_v0  ;;  %v60_v11 = vld [vmem:[%s5648_s0 + $0x120] sm:$0xff]  ;;  %v66_v25 = vld [vmem:[%s5648_s0 + $0x150] sm:$0xff] }
  0x19   :  { %v64_v22 = vld [vmem:[%s5648_s0 + $0x140] sm:$0xff]  ;;  %v86_v49 = vld [vmem:[%s5648_s0 + $0x1f0] sm:$0xff] }
  0x1a   :  { %2092 = vmatpush1.bf16.msra.mxu1 %v4238_v13  ;;  %v62_v13 = vld [vmem:[%s5648_s0 + $0x130] sm:$0xff]  ;;  %v68_v23 = vld [vmem:[%s5648_s0 + $0x160] sm:$0xff] }
  0x1b   :  { %2670 = vmatpush1.bf16.msra.mxu0 %v4239_v14  ;;  %2093 = vmatprep.subr.bf16.mxu1 %v4291_v0  ;;  %v4268_v14 = vld [vmem:[%s5647_s1 + $0xa8] sm:$0xff]   ;;  %v3557_v19 = vcombine.high %v58_v12, %v62_v13  ;;  %v3560_v40 = vcombine.low %v64_v22, %v68_v23 }
  0x1c   :  { %2671 = vmatprep.subr.bf16.mxu0 %v4291_v0 }
  0x1e   :  { %2094 = vmatpush1.bf16.msra.mxu1 %v4240_v15  ;;  %v4269_v15 = vld [vmem:[%s5647_s1 + $0x1a8] sm:$0xff]  }
  0x1f   :  { %2672 = vmatpush1.bf16.msra.mxu0 %v4241_v16  ;;  %2095 = vmatprep.subr.bf16.mxu1 %v4291_v0  ;;  %v3544_v16 = vcombine.low %v48_v61, %v52_v62 }
  0x20   :  { %2673 = vmatprep.subr.bf16.mxu0 %v4291_v0 }
  0x22   :  { %2096 = vmatpush1.bf16.msra.mxu1 %v4242_v17  ;;  %v3548_v17 = vcombine.low %v50_v63, %v54_v1  ;;  %v96_v1 = vld [vmem:[%s5648_s0 + $0x240] sm:$0xff] }
  0x23   :  { %2674 = vmatpush1.bf16.msra.mxu0 %v4243_v18  ;;  %2097 = vmatprep.subr.bf16.mxu1 %v4291_v0  ;;  %v3553_v18 = vcombine.high %v56_v10, %v60_v11 }
  0x24   :  { %2675 = vmatprep.subr.bf16.mxu0 %v4291_v0 }
  0x26   :  { %2098 = vmatpush1.bf16.msra.mxu1 %v4244_v24  ;;  %v4272_v24 = vld [vmem:[%s5647_s1 + $0xb8] sm:$0xff]  }
  0x27   :  { %2676 = vmatpush1.bf16.msra.mxu0 %v4245_v26  ;;  %2099 = vmatprep.subr.bf16.mxu1 %v4291_v0  ;;  %v70_v26 = vld [vmem:[%s5648_s0 + $0x170] sm:$0xff] }
  0x28   :  { %2677 = vmatprep.subr.bf16.mxu0 %v4291_v0  ;;  %v3564_v41 = vcombine.low %v66_v25, %v70_v26 }
  0x2a   :  { %2100 = vmatpush1.bf16.msra.mxu1 %v4246_v27  ;;  %v4273_v27 = vld [vmem:[%s5647_s1 + $0x1b8] sm:$0xff]  }
  0x2b   :  { %2678 = vmatpush1.bf16.msra.mxu0 %v4247_v28  ;;  %2101 = vmatprep.subr.bf16.mxu1 %v4291_v0  ;;  %v3552_v28 = vcombine.low %v56_v10, %v60_v11  ;;  %v4283_v10 = vld [vmem:[%s5647_s1 + $0x1e0] sm:$0xff]  }
  0x2c   :  { %2679 = vmatprep.subr.bf16.mxu0 %v4291_v0  ;;  %v104_v11 = vld [vmem:[%s5648_s0 + $0x280] sm:$0xff] }
  0x2e   :  { %2102 = vmatpush1.bf16.msra.mxu1 %v4248_v29  ;;  %v3556_v29 = vcombine.low %v58_v12, %v62_v13  ;;  %v108_v12 = vld [vmem:[%s5648_s0 + $0x2a0] sm:$0xff]  ;;  %v106_v13 = vld [vmem:[%s5648_s0 + $0x290] sm:$0xff] }
  0x2f   :  { %2680 = vmatpush1.bf16.msra.mxu0 %v4249_v30  ;;  %2103 = vmatprep.subr.bf16.mxu1 %v4291_v0  ;;  %v3561_v30 = vcombine.high %v64_v22, %v68_v23  ;;  %v118_v22 = vld [vmem:[%s5648_s0 + $0x2f0] sm:$0xff]  ;;  %v3600_v23 = vcombine.low %v104_v11, %v108_v12 }
  0x30   :  { %2681 = vmatprep.subr.bf16.mxu0 %v4291_v0 }
  0x32   :  { %2104 = vmatpush1.bf16.msra.mxu1 %v4250_v31  ;;  %v3565_v31 = vcombine.high %v66_v25, %v70_v26 }
  0x33   :  { %2682 = vmatpush1.bf16.msra.mxu0 %v4251_v32  ;;  %2105 = vmatprep.subr.bf16.mxu1 %v4291_v0  ;;  %v4274_v32 = vld [vmem:[%s5647_s1 + $0xc0] sm:$0xff]  }
  0x34   :  { %2683 = vmatprep.subr.bf16.mxu0 %v4291_v0 }
  0x36   :  { %2106 = vmatpush1.bf16.msra.mxu1 %v4252_v33  ;;  %v4275_v33 = vld [vmem:[%s5647_s1 + $0x1c0] sm:$0xff]  }
  0x37   :  { %2684 = vmatpush1.bf16.msra.mxu0 %v4253_v34  ;;  %2107 = vmatprep.subr.bf16.mxu1 %v4291_v0  ;;  %v72_v34 = vld [vmem:[%s5648_s0 + $0x180] sm:$0xff] }
  0x38   :  { %2685 = vmatprep.subr.bf16.mxu0 %v4291_v0 }
  0x3a   :  { %2108 = vmatpush1.bf16.msra.mxu1 %v4254_v35  ;;  %v76_v35 = vld [vmem:[%s5648_s0 + $0x1a0] sm:$0xff] }
  0x3b   :  { %2686 = vmatpush1.bf16.msra.mxu0 %v4255_v36  ;;  %2109 = vmatprep.subr.bf16.mxu1 %v4291_v0  ;;  %v4276_v36 = vld [vmem:[%s5647_s1 + $0xc8] sm:$0xff]   ;;  %v3568_v50 = vcombine.low %v72_v34, %v76_v35 }
  0x3c   :  { %2687 = vmatprep.subr.bf16.mxu0 %v4291_v0 }
  0x3e   :  { %2110 = vmatpush1.bf16.msra.mxu1 %v4256_v37  ;;  %v74_v37 = vld [vmem:[%s5648_s0 + $0x190] sm:$0xff] }
  0x3f   :  { %2688 = vmatpush1.bf16.msra.mxu0 %v4257_v38  ;;  %2368 = vmatprep.subr.bf16.mxu1 %v4291_v0  ;;  %v78_v38 = vld [vmem:[%s5648_s0 + $0x1b0] sm:$0xff] }
  0x40   :  { %2946 = vmatprep.subr.bf16.mxu0 %v4291_v0  ;;  %v3573_v43 = vcombine.high %v74_v37, %v78_v38 }
  0x41   :  { %2112 = vmatmul.mubr.bf16.vlgmr.msra.gmra.mrb[0].mxu1 %v3520_v42  ;;  %v3569_v42 = vcombine.high %v72_v34, %v76_v35 }
  0x42   :  { %2690 = vmatmul.mubr.bf16.vlgmr.msra.gmra.mrb[0].mxu0 %v3524_v44  ;;  %2369 = vmatpush1.bf16.msra.mxu1 %v4258_v45  ;;  %v4278_v44 = vld [vmem:[%s5647_s1 + $0xd0] sm:$0xff]  }
  0x43   :  { %2947 = vmatpush1.bf16.msra.mxu0 %v4259_v46  ;;  %2119 = vmatprep.mubr.bf16.mxu1 %v3529_v47  ;;  %v4279_v45 = vld [vmem:[%s5647_s1 + $0x1d0] sm:$0xff]   ;;  %v80_v46 = vld [vmem:[%s5648_s0 + $0x1c0] sm:$0xff] }
  0x44   :  { %2697 = vmatprep.mubr.bf16.mxu0 %v3533_v48  ;;  %2370 = vmatprep.subr.bf16.mxu1 %v4291_v0  ;;  %v84_v47 = vld [vmem:[%s5648_s0 + $0x1e0] sm:$0xff]  ;;  %v82_v48 = vld [vmem:[%s5648_s0 + $0x1d0] sm:$0xff] }
  0x45   :  { %2948 = vmatprep.subr.bf16.mxu0 %v4291_v0  ;;  %v3581_v53 = vcombine.high %v82_v48, %v86_v49  ;;  %v3580_v61 = vcombine.low %v82_v48, %v86_v49  ;;  %v140_v48 = vld [vmem:[%s5648_s0 + $0x3a0] sm:$0xff]  ;;  %v138_v49 = vld [vmem:[%s5648_s0 + $0x390] sm:$0xff] }
  0x46   :  { %2371 = vmatpush1.bf16.msra.mxu1 %v4260_v51  ;;  %v3572_v51 = vcombine.low %v74_v37, %v78_v38  ;;  %v128_v37 = vld [vmem:[%s5648_s0 + $0x340] sm:$0xff] }
  0x47   :  { %2949 = vmatpush1.bf16.msra.mxu0 %v4261_v52  ;;  %2372 = vmatprep.subr.bf16.mxu1 %v4291_v0  ;;  %v3577_v52 = vcombine.high %v80_v46, %v84_v47  ;;  %v132_v38 = vld [vmem:[%s5648_s0 + $0x360] sm:$0xff] }
  0x48   :  { %2950 = vmatprep.subr.bf16.mxu0 %v4291_v0 }
  0x49   :  { %2120 = vmatmul.mubr.bf16.gmra.mrb[4].mxu1 %v3528_v55  ;;  %v4281_v55 = vld [vmem:[%s5647_s1 + $0x1d8] sm:$0xff]  }
  0x4a   :  { %2698 = vmatmul.mubr.bf16.gmra.mrb[4].mxu0 %v3532_v56  ;;  %2127 = vmatprep.mubr.bf16.mxu1 %v3537_v57  ;;  %v88_v56 = vld [vmem:[%s5648_s0 + $0x200] sm:$0xff] }
  0x4b   :  { %2705 = vmatprep.mubr.bf16.mxu0 %v3541_v58  ;;  %2373 = vmatpush1.bf16.msra.mxu1 %v4262_v59  ;;  %v92_v57 = vld [vmem:[%s5648_s0 + $0x220] sm:$0xff]  ;;  %v90_v58 = vld [vmem:[%s5648_s0 + $0x210] sm:$0xff] }
  0x4c   :  { %2951 = vmatpush1.bf16.msra.mxu0 %v4263_v60  ;;  %2374 = vmatprep.subr.bf16.mxu1 %v4291_v0  ;;  %v94_v59 = vld [vmem:[%s5648_s0 + $0x230] sm:$0xff]  ;;  %v3576_v60 = vcombine.low %v80_v46, %v84_v47  ;;  %v3585_v62 = vcombine.high %v88_v56, %v92_v57  ;;  %v136_v47 = vld [vmem:[%s5648_s0 + $0x380] sm:$0xff] }
  0x4d   :  { %2952 = vmatprep.subr.bf16.mxu0 %v4291_v0  ;;  %v3589_v63 = vcombine.high %v90_v58, %v94_v59  ;;  %v4287_v46 = vld [vmem:[%s5647_s1 + $0x1f0] sm:$0xff]  }
  0x4f   :  { %2375 = vmatpush1.bf16.msra.mxu1 %v4264_v2  ;;  %v100_v2 = vld [vmem:[%s5648_s0 + $0x260] sm:$0xff] }
  0x50   :  { %2953 = vmatpush1.bf16.msra.mxu0 %v4265_v3  ;;  %2376 = vmatprep.subr.bf16.mxu1 %v4291_v0  ;;  %v98_v3 = vld [vmem:[%s5648_s0 + $0x250] sm:$0xff] }
  0x51   :  { %2128 = vmatmul.mubr.bf16.gmra.mrb[8].mxu1 %v3536_v4  ;;  %2954 = vmatprep.subr.bf16.mxu0 %v4291_v0  ;;  %v102_v4 = vld [vmem:[%s5648_s0 + $0x270] sm:$0xff] }
  0x52   :  { %2706 = vmatmul.mubr.bf16.gmra.mrb[8].mxu0 %v3540_v6  ;;  %2135 = vmatprep.mubr.bf16.mxu1 %v3545_v7  ;;  %v3588_v6 = vcombine.low %v90_v58, %v94_v59  ;;  %v3593_v7 = vcombine.high %v96_v1, %v100_v2  ;;  %v3632_v58 = vcombine.low %v136_v47, %v140_v48 }
  0x53   :  { %2713 = vmatprep.mubr.bf16.mxu0 %v3549_v9  ;;  %2377 = vmatpush1.bf16.msra.mxu1 %v4266_v5  ;;  %v3584_v5 = vcombine.low %v88_v56, %v92_v57  ;;  %v4282_v9 = vld [vmem:[%s5647_s1 + $0xe0] sm:$0xff]   ;;  %v146_v57 = vld [vmem:[%s5648_s0 + $0x3d0] sm:$0xff] }
  0x54   :  { %2955 = vmatpush1.bf16.msra.mxu0 %v4267_v8  ;;  %2378 = vmatprep.subr.bf16.mxu1 %v4291_v0  ;;  %v3597_v8 = vcombine.high %v98_v3, %v102_v4  ;;  %v148_v56 = vld [vmem:[%s5648_s0 + $0x3e0] sm:$0xff] }
  0x55   :  { %2956 = vmatprep.subr.bf16.mxu0 %v4291_v0 }
  0x57   :  { %2379 = vmatpush1.bf16.msra.mxu1 %v4268_v14  ;;  %v110_v14 = vld [vmem:[%s5648_s0 + $0x2b0] sm:$0xff] }
  0x58   :  { %2957 = vmatpush1.bf16.msra.mxu0 %v4269_v15  ;;  %2380 = vmatprep.subr.bf16.mxu1 %v4291_v0  ;;  %v3592_v15 = vcombine.low %v96_v1, %v100_v2  ;;  %v152_v1 = vld [vmem:[%s5648_s0 + $0x400] sm:$0xff] }
  0x59   :  { %2136 = vmatmul.mubr.bf16.gmra.mrb[12].mxu1 %v3544_v16  ;;  %2958 = vmatprep.subr.bf16.mxu0 %v4291_v0  ;;  %v3596_v16 = vcombine.low %v98_v3, %v102_v4  ;;  %v156_v2 = vld [vmem:[%s5648_s0 + $0x420] sm:$0xff]  ;;  %v154_v3 = vld [vmem:[%s5648_s0 + $0x410] sm:$0xff] }
  0x5a   :  { %2714 = vmatmul.mubr.bf16.gmra.mrb[12].mxu0 %v3548_v17  ;;  %2143 = vmatprep.mubr.bf16.mxu1 %v3553_v18  ;;  %v3601_v17 = vcombine.high %v104_v11, %v108_v12  ;;  %v3605_v18 = vcombine.high %v106_v13, %v110_v14  ;;  %v158_v4 = vld [vmem:[%s5648_s0 + $0x430] sm:$0xff] }
  0x5b   :  { %2721 = vmatprep.mubr.bf16.mxu0 %v3557_v19  ;;  %2381 = vmatpush1.bf16.msra.mxu1 %v4270_v20  ;;  %v112_v19 = vld [vmem:[%s5648_s0 + $0x2c0] sm:$0xff]  ;;  %v162_v11 = vld [vmem:[%s5648_s0 + $0x450] sm:$0xff] }
  0x5c   :  { %2959 = vmatpush1.bf16.msra.mxu0 %v4271_v21  ;;  %2382 = vmatprep.subr.bf16.mxu1 %v4291_v0  ;;  %v116_v20 = vld [vmem:[%s5648_s0 + $0x2e0] sm:$0xff]  ;;  %v114_v21 = vld [vmem:[%s5648_s0 + $0x2d0] sm:$0xff] }
  0x5d   :  { %2960 = vmatprep.subr.bf16.mxu0 %v4291_v0  ;;  %v3609_v25 = vcombine.high %v112_v19, %v116_v20  ;;  %v3613_v26 = vcombine.high %v114_v21, %v118_v22  ;;  %v3612_v34 = vcombine.low %v114_v21, %v118_v22  ;;  %v166_v12 = vld [vmem:[%s5648_s0 + $0x470] sm:$0xff] }
  0x5e   :  { %v3660_v22 = vcombine.low %v162_v11, %v166_v12 }
  0x5f   :  { %2383 = vmatpush1.bf16.msra.mxu1 %v4272_v24  ;;  %v3604_v24 = vcombine.low %v106_v13, %v110_v14  ;;  %v3648_v13 = vcombine.low %v152_v1, %v156_v2  ;;  %v3652_v14 = vcombine.low %v154_v3, %v158_v4 }
  0x60   :  { %2961 = vmatpush1.bf16.msra.mxu0 %v4273_v27  ;;  %2384 = vmatprep.subr.bf16.mxu1 %v4291_v0  ;;  %v4284_v27 = vld [vmem:[%s5647_s1 + $0xe8] sm:$0xff]  }
  0x61   :  { %2144 = vmatmul.mubr.bf16.gmra.mrb[16].mxu1 %v3552_v28  ;;  %2962 = vmatprep.subr.bf16.mxu0 %v4291_v0  ;;  %v4285_v28 = vld [vmem:[%s5647_s1 + $0x1e8] sm:$0xff]  }
  0x62   :  { %2722 = vmatmul.mubr.bf16.gmra.mrb[16].mxu0 %v3556_v29  ;;  %2151 = vmatprep.mubr.bf16.mxu1 %v3561_v30  ;;  %v120_v29 = vld [vmem:[%s5648_s0 + $0x300] sm:$0xff] }
  0x63   :  { %2729 = vmatprep.mubr.bf16.mxu0 %v3565_v31  ;;  %2385 = vmatpush1.bf16.msra.mxu1 %v4274_v32  ;;  %v124_v30 = vld [vmem:[%s5648_s0 + $0x320] sm:$0xff]  ;;  %v122_v31 = vld [vmem:[%s5648_s0 + $0x310] sm:$0xff] }
  0x64   :  { %2963 = vmatpush1.bf16.msra.mxu0 %v4275_v33  ;;  %2386 = vmatprep.subr.bf16.mxu1 %v4291_v0  ;;  %v126_v32 = vld [vmem:[%s5648_s0 + $0x330] sm:$0xff]  ;;  %v3608_v33 = vcombine.low %v112_v19, %v116_v20  ;;  %v3617_v35 = vcombine.high %v120_v29, %v124_v30 }
  0x65   :  { %2964 = vmatprep.subr.bf16.mxu0 %v4291_v0  ;;  %v170_v19 = vld [vmem:[%s5648_s0 + $0x490] sm:$0xff] }
  0x66   :  { %v174_v20 = vld [vmem:[%s5648_s0 + $0x4b0] sm:$0xff] }
  0x67   :  { %2387 = vmatpush1.bf16.msra.mxu1 %v4276_v36  ;;  %v3621_v36 = vcombine.high %v122_v31, %v126_v32 }
  0x68   :  { %2965 = vmatpush1.bf16.msra.mxu0 %v4277_v39  ;;  %2388 = vmatprep.subr.bf16.mxu1 %v4291_v0  ;;  %v130_v39 = vld [vmem:[%s5648_s0 + $0x350] sm:$0xff] }
  0x69   :  { %2152 = vmatmul.mubr.bf16.gmra.mrb[20].mxu1 %v3560_v40  ;;  %2966 = vmatprep.subr.bf16.mxu0 %v4291_v0  ;;  %v134_v40 = vld [vmem:[%s5648_s0 + $0x370] sm:$0xff] }
  0x6a   :  { %2730 = vmatmul.mubr.bf16.gmra.mrb[20].mxu0 %v3564_v41  ;;  %2159 = vmatprep.mubr.bf16.mxu1 %v3569_v42  ;;  %v3616_v41 = vcombine.low %v120_v29, %v124_v30  ;;  %v3620_v42 = vcombine.low %v122_v31, %v126_v32  ;;  %v3668_v30 = vcombine.low %v170_v19, %v174_v20 }
  0x6b   :  { %2737 = vmatprep.mubr.bf16.mxu0 %v3573_v43  ;;  %2389 = vmatpush1.bf16.msra.mxu1 %v4278_v44  ;;  %v3625_v43 = vcombine.high %v128_v37, %v132_v38  ;;  %v3629_v44 = vcombine.high %v130_v39, %v134_v40 }
  0x6c   :  { %2967 = vmatpush1.bf16.msra.mxu0 %v4279_v45  ;;  %2390 = vmatprep.subr.bf16.mxu1 %v4291_v0  ;;  %v4286_v45 = vld [vmem:[%s5647_s1 + $0xf0] sm:$0xff]  }
  0x6d   :  { %2968 = vmatprep.subr.bf16.mxu0 %v4291_v0 }
  0x6f   :  { %2391 = vmatpush1.bf16.msra.mxu1 %v4280_v54 }
  0x70   :  { %2969 = vmatpush1.bf16.msra.mxu0 %v4281_v55  ;;  %2392 = vmatprep.subr.bf16.mxu1 %v4291_v0  ;;  %v144_v55 = vld [vmem:[%s5648_s0 + $0x3c0] sm:$0xff] }
  0x71   :  { %2160 = vmatmul.mubr.bf16.gmra.mrb[24].mxu1 %v3568_v50  ;;  %2970 = vmatprep.subr.bf16.mxu0 %v4291_v0  ;;  %v142_v50 = vld [vmem:[%s5648_s0 + $0x3b0] sm:$0xff] }
  0x72   :  { %2738 = vmatmul.mubr.bf16.gmra.mrb[24].mxu0 %v3572_v51  ;;  %2167 = vmatprep.mubr.bf16.mxu1 %v3577_v52  ;;  %v3624_v51 = vcombine.low %v128_v37, %v132_v38  ;;  %v3628_v52 = vcombine.low %v130_v39, %v134_v40  ;;  %v3637_v54 = vcombine.high %v138_v49, %v142_v50 }
  0x73   :  { %2745 = vmatprep.mubr.bf16.mxu0 %v3581_v53  ;;  %2393 = vmatpush1.bf16.msra.mxu1 %v4282_v9  ;;  %v3633_v53 = vcombine.high %v136_v47, %v140_v48  ;;  %v3636_v59 = vcombine.low %v138_v49, %v142_v50  ;;  %v160_v9 = vld [vmem:[%s5648_s0 + $0x440] sm:$0xff] }
  0x74   :  { %2971 = vmatpush1.bf16.msra.mxu0 %v4283_v10  ;;  %2394 = vmatprep.subr.bf16.mxu1 %v4291_v0  ;;  %v164_v10 = vld [vmem:[%s5648_s0 + $0x460] sm:$0xff] }
  0x75   :  { %2972 = vmatprep.subr.bf16.mxu0 %v4291_v0  ;;  %v3656_v21 = vcombine.low %v160_v9, %v164_v10  ;;  %v200_v49 = vld [vmem:[%s5648_s0 + $0x580] sm:$0xff] }
  0x76   :  { %v204_v50 = vld [vmem:[%s5648_s0 + $0x5a0] sm:$0xff] }
  0x77   :  { %2395 = vmatpush1.bf16.msra.mxu1 %v4284_v27  ;;  %v178_v27 = vld [vmem:[%s5648_s0 + $0x4d0] sm:$0xff] }
  0x78   :  { %2973 = vmatpush1.bf16.msra.mxu0 %v4285_v28  ;;  %2396 = vmatprep.subr.bf16.mxu1 %v4291_v0  ;;  %v182_v28 = vld [vmem:[%s5648_s0 + $0x4f0] sm:$0xff] }
  0x79   :  { %2168 = vmatmul.mubr.bf16.gmra.mrb[28].mxu1 %v3576_v60  ;;  %2974 = vmatprep.subr.bf16.mxu0 %v4291_v0  ;;  %v3641_v60 = vcombine.high %v144_v55, %v148_v56  ;;  %v3677_v32 = vcombine.high %v178_v27, %v182_v28  ;;  %v3676_v38 = vcombine.low %v178_v27, %v182_v28  ;;  %v242_v27 = vld [vmem:[%s5648_s0 + $0x6d0] sm:$0xff] }
  0x7a   :  { %2746 = vmatmul.mubr.bf16.gmra.mrb[28].mxu0 %v3580_v61  ;;  %2175 = vmatprep.mubr.bf16.mxu1 %v3585_v62  ;;  %v4288_v62 = vld [vmem:[%s5647_s1 + $0xf8] sm:$0xff]   ;;  %v246_v28 = vld [vmem:[%s5648_s0 + $0x6f0] sm:$0xff] }
  0x7b   :  { %2753 = vmatprep.mubr.bf16.mxu0 %v3589_v63  ;;  %2397 = vmatpush1.bf16.msra.mxu1 %v4286_v45  ;;  %v4289_v63 = vld [vmem:[%s5647_s1 + $0x1f8] sm:$0xff]  }
  0x7c   :  { %2975 = vmatpush1.bf16.msra.mxu0 %v4287_v46  ;;  %2398 = vmatprep.subr.bf16.mxu1 %v4291_v0 }
  0x7d   :  { %2976 = vmatprep.subr.bf16.mxu0 %v4291_v0  ;;  %v150_v0 = vld [vmem:[%s5648_s0 + $0x3f0] sm:$0xff] }
  0x7e   :  { %v3645_v61 = vcombine.high %v146_v57, %v150_v0 }
  0x7f   :  { %2399 = vmatpush1.bf16.msra.mxu1 %v4288_v62 }
  0x80   :  { %2977 = vmatpush1.bf16.msra.mxu0 %v4289_v63 }
  0x81   :  { %2176 = vmatmul.mubr.bf16.gmra.mrb[32].mxu1 %v3584_v5  ;;  %v3640_v5 = vcombine.low %v144_v55, %v148_v56  ;;  %v3697_v55 = vcombine.high %v200_v49, %v204_v50 }
  0x82   :  { %2754 = vmatmul.mubr.bf16.gmra.mrb[32].mxu0 %v3588_v6  ;;  %2183 = vmatprep.mubr.bf16.mxu1 %v3593_v7  ;;  %v3644_v6 = vcombine.low %v146_v57, %v150_v0  ;;  %v3649_v7 = vcombine.high %v152_v1, %v156_v2  ;;  %v208_v57 = vld [vmem:[%s5648_s0 + $0x5c0] sm:$0xff] }
  0x83   :  { %2761 = vmatprep.mubr.bf16.mxu0 %v3597_v8  ;;  %v3653_v8 = vcombine.high %v154_v3, %v158_v4  ;;  %v212_v0 = vld [vmem:[%s5648_s0 + $0x5e0] sm:$0xff]  ;;  %v218_v3 = vld [vmem:[%s5648_s0 + $0x610] sm:$0xff] }
  0x84   :  { %v3705_v62 = vcombine.high %v208_v57, %v212_v0  ;;  %v216_v1 = vld [vmem:[%s5648_s0 + $0x600] sm:$0xff]  ;;  %v222_v4 = vld [vmem:[%s5648_s0 + $0x630] sm:$0xff] }
  0x85   :  { %v220_v2 = vld [vmem:[%s5648_s0 + $0x620] sm:$0xff] }
  0x89   :  { %2184 = vmatmul.mubr.bf16.gmra.mrb[36].mxu1 %v3592_v15  ;;  %v3657_v15 = vcombine.high %v160_v9, %v164_v10  ;;  %v224_v9 = vld [vmem:[%s5648_s0 + $0x640] sm:$0xff] }
  0x8a   :  { %2762 = vmatmul.mubr.bf16.gmra.mrb[36].mxu0 %v3596_v16  ;;  %2191 = vmatprep.mubr.bf16.mxu1 %v3601_v17  ;;  %v3661_v16 = vcombine.high %v162_v11, %v166_v12  ;;  %v168_v17 = vld [vmem:[%s5648_s0 + $0x480] sm:$0xff]  ;;  %v226_v11 = vld [vmem:[%s5648_s0 + $0x650] sm:$0xff] }
  0x8b   :  { %2769 = vmatprep.mubr.bf16.mxu0 %v3605_v18  ;;  %v172_v18 = vld [vmem:[%s5648_s0 + $0x4a0] sm:$0xff]  ;;  %v230_v12 = vld [vmem:[%s5648_s0 + $0x670] sm:$0xff] }
  0x8c   :  { %v3664_v29 = vcombine.low %v168_v17, %v172_v18  ;;  %v228_v10 = vld [vmem:[%s5648_s0 + $0x660] sm:$0xff] }
  0x91   :  { %2192 = vmatmul.mubr.bf16.gmra.mrb[40].mxu1 %v3600_v23  ;;  %v3665_v23 = vcombine.high %v168_v17, %v172_v18  ;;  %v232_v17 = vld [vmem:[%s5648_s0 + $0x680] sm:$0xff] }
  0x92   :  { %2770 = vmatmul.mubr.bf16.gmra.mrb[40].mxu0 %v3604_v24  ;;  %2199 = vmatprep.mubr.bf16.mxu1 %v3609_v25  ;;  %v3669_v24 = vcombine.high %v170_v19, %v174_v20  ;;  %v176_v25 = vld [vmem:[%s5648_s0 + $0x4c0] sm:$0xff]  ;;  %v234_v19 = vld [vmem:[%s5648_s0 + $0x690] sm:$0xff] }
  0x93   :  { %2777 = vmatprep.mubr.bf16.mxu0 %v3613_v26  ;;  %v180_v26 = vld [vmem:[%s5648_s0 + $0x4e0] sm:$0xff]  ;;  %v238_v20 = vld [vmem:[%s5648_s0 + $0x6b0] sm:$0xff] }
  0x94   :  { %v3673_v31 = vcombine.high %v176_v25, %v180_v26  ;;  %v3672_v37 = vcombine.low %v176_v25, %v180_v26  ;;  %v236_v18 = vld [vmem:[%s5648_s0 + $0x6a0] sm:$0xff] }
  0x95   :  { %v240_v25 = vld [vmem:[%s5648_s0 + $0x6c0] sm:$0xff] }
  0x96   :  { %v244_v26 = vld [vmem:[%s5648_s0 + $0x6e0] sm:$0xff] }
  0x99   :  { %2200 = vmatmul.mubr.bf16.gmra.mrb[44].mxu1 %v3608_v33  ;;  %v184_v33 = vld [vmem:[%s5648_s0 + $0x500] sm:$0xff] }
  0x9a   :  { %2778 = vmatmul.mubr.bf16.gmra.mrb[44].mxu0 %v3612_v34  ;;  %2207 = vmatprep.mubr.bf16.mxu1 %v3617_v35  ;;  %v188_v34 = vld [vmem:[%s5648_s0 + $0x520] sm:$0xff]  ;;  %v186_v35 = vld [vmem:[%s5648_s0 + $0x510] sm:$0xff] }
  0x9b   :  { %2785 = vmatprep.mubr.bf16.mxu0 %v3621_v36  ;;  %v190_v36 = vld [vmem:[%s5648_s0 + $0x530] sm:$0xff]  ;;  %v3681_v39 = vcombine.high %v184_v33, %v188_v34  ;;  %v3680_v45 = vcombine.low %v184_v33, %v188_v34  ;;  %v248_v33 = vld [vmem:[%s5648_s0 + $0x700] sm:$0xff] }
  0x9c   :  { %v3685_v40 = vcombine.high %v186_v35, %v190_v36  ;;  %v3684_v46 = vcombine.low %v186_v35, %v190_v36  ;;  %v252_v34 = vld [vmem:[%s5648_s0 + $0x720] sm:$0xff]  ;;  %v250_v35 = vld [vmem:[%s5648_s0 + $0x710] sm:$0xff] }
  0x9d   :  { %v254_v36 = vld [vmem:[%s5648_s0 + $0x730] sm:$0xff] }
  0xa1   :  { %2208 = vmatmul.mubr.bf16.gmra.mrb[48].mxu1 %v3616_v41  ;;  %v192_v41 = vld [vmem:[%s5648_s0 + $0x540] sm:$0xff] }
  0xa2   :  { %2786 = vmatmul.mubr.bf16.gmra.mrb[48].mxu0 %v3620_v42  ;;  %2215 = vmatprep.mubr.bf16.mxu1 %v3625_v43  ;;  %v196_v42 = vld [vmem:[%s5648_s0 + $0x560] sm:$0xff]  ;;  %v194_v43 = vld [vmem:[%s5648_s0 + $0x550] sm:$0xff] }
  0xa3   :  { %2793 = vmatprep.mubr.bf16.mxu0 %v3629_v44  ;;  %v198_v44 = vld [vmem:[%s5648_s0 + $0x570] sm:$0xff]  ;;  %v3689_v47 = vcombine.high %v192_v41, %v196_v42 }
  0xa4   :  { %v3693_v48 = vcombine.high %v194_v43, %v198_v44 }
  0xa9   :  { %2216 = vmatmul.mubr.bf16.gmra.mrb[52].mxu1 %v3624_v51  ;;  %v202_v51 = vld [vmem:[%s5648_s0 + $0x590] sm:$0xff] }
  0xaa   :  { %2794 = vmatmul.mubr.bf16.gmra.mrb[52].mxu0 %v3628_v52  ;;  %2223 = vmatprep.mubr.bf16.mxu1 %v3633_v53  ;;  %v206_v52 = vld [vmem:[%s5648_s0 + $0x5b0] sm:$0xff]  ;;  %v3688_v53 = vcombine.low %v192_v41, %v196_v42  ;;  %v256_v41 = vld [vmem:[%s5648_s0 + $0x740] sm:$0xff] }
  0xab   :  { %2801 = vmatprep.mubr.bf16.mxu0 %v3637_v54  ;;  %v3692_v54 = vcombine.low %v194_v43, %v198_v44  ;;  %v3701_v56 = vcombine.high %v202_v51, %v206_v52  ;;  %v260_v42 = vld [vmem:[%s5648_s0 + $0x760] sm:$0xff]  ;;  %v258_v43 = vld [vmem:[%s5648_s0 + $0x750] sm:$0xff] }
  0xac   :  { %v262_v44 = vld [vmem:[%s5648_s0 + $0x770] sm:$0xff] }
  0xb1   :  { %2224 = vmatmul.mubr.bf16.gmra.mrb[56].mxu1 %v3632_v58  ;;  %v210_v58 = vld [vmem:[%s5648_s0 + $0x5d0] sm:$0xff] }
  0xb2   :  { %2802 = vmatmul.mubr.bf16.gmra.mrb[56].mxu0 %v3636_v59  ;;  %2231 = vmatprep.mubr.bf16.mxu1 %v3641_v60  ;;  %v214_v59 = vld [vmem:[%s5648_s0 + $0x5f0] sm:$0xff]  ;;  %v3696_v60 = vcombine.low %v200_v49, %v204_v50  ;;  %v264_v49 = vld [vmem:[%s5648_s0 + $0x780] sm:$0xff] }
  0xb3   :  { %2809 = vmatprep.mubr.bf16.mxu0 %v3645_v61  ;;  %v3700_v61 = vcombine.low %v202_v51, %v206_v52  ;;  %v3709_v63 = vcombine.high %v210_v58, %v214_v59  ;;  %v268_v50 = vld [vmem:[%s5648_s0 + $0x7a0] sm:$0xff]  ;;  %v266_v51 = vld [vmem:[%s5648_s0 + $0x790] sm:$0xff] }
  0xb4   :  { %v270_v52 = vld [vmem:[%s5648_s0 + $0x7b0] sm:$0xff] }
  0xb9   :  { %2232 = vmatmul.mubr.bf16.gmra.mrb[60].mxu1 %v3640_v5  ;;  %v3704_v5 = vcombine.low %v208_v57, %v212_v0  ;;  %v272_v57 = vld [vmem:[%s5648_s0 + $0x7c0] sm:$0xff] }
  0xba   :  { %2810 = vmatmul.mubr.bf16.gmra.mrb[60].mxu0 %v3644_v6  ;;  %2239 = vmatprep.mubr.bf16.mxu1 %v3649_v7  ;;  %v3708_v6 = vcombine.low %v210_v58, %v214_v59  ;;  %v3713_v7 = vcombine.high %v216_v1, %v220_v2  ;;  %v276_v0 = vld [vmem:[%s5648_s0 + $0x7e0] sm:$0xff]  ;;  %v274_v58 = vld [vmem:[%s5648_s0 + $0x7d0] sm:$0xff] }
  0xbb   :  { %2817 = vmatprep.mubr.bf16.mxu0 %v3653_v8  ;;  %v3717_v8 = vcombine.high %v218_v3, %v222_v4  ;;  %v278_v59 = vld [vmem:[%s5648_s0 + $0x7f0] sm:$0xff] }
  0xc1   :  { %2240 = vmatmul.mubr.bf16.gmra.mrb[64].mxu1 %v3648_v13  ;;  %v3712_v13 = vcombine.low %v216_v1, %v220_v2  ;;  %v25_v1 = vld [vmem:[%s5648_s0 + $0x8] sm:$0xff] }
  0xc2   :  { %2818 = vmatmul.mubr.bf16.gmra.mrb[64].mxu0 %v3652_v14  ;;  %2247 = vmatprep.mubr.bf16.mxu1 %v3657_v15  ;;  %v3716_v14 = vcombine.low %v218_v3, %v222_v4  ;;  %v3721_v15 = vcombine.high %v224_v9, %v228_v10  ;;  %v29_v2 = vld [vmem:[%s5648_s0 + $0x28] sm:$0xff]  ;;  %v27_v3 = vld [vmem:[%s5648_s0 + $0x18] sm:$0xff] }
  0xc3   :  { %2825 = vmatprep.mubr.bf16.mxu0 %v3661_v16  ;;  %v3725_v16 = vcombine.high %v226_v11, %v230_v12  ;;  %v31_v4 = vld [vmem:[%s5648_s0 + $0x38] sm:$0xff] }
  0xc9   :  { %2248 = vmatmul.mubr.bf16.gmra.mrb[68].mxu1 %v3656_v21  ;;  %v3720_v21 = vcombine.low %v224_v9, %v228_v10  ;;  %v33_v9 = vld [vmem:[%s5648_s0 + $0x48] sm:$0xff] }
  0xca   :  { %2826 = vmatmul.mubr.bf16.gmra.mrb[68].mxu0 %v3660_v22  ;;  %2255 = vmatprep.mubr.bf16.mxu1 %v3665_v23  ;;  %v3724_v22 = vcombine.low %v226_v11, %v230_v12  ;;  %v3729_v23 = vcombine.high %v232_v17, %v236_v18  ;;  %v37_v10 = vld [vmem:[%s5648_s0 + $0x68] sm:$0xff]  ;;  %v35_v11 = vld [vmem:[%s5648_s0 + $0x58] sm:$0xff] }
  0xcb   :  { %2833 = vmatprep.mubr.bf16.mxu0 %v3669_v24  ;;  %v3733_v24 = vcombine.high %v234_v19, %v238_v20  ;;  %v39_v12 = vld [vmem:[%s5648_s0 + $0x78] sm:$0xff] }
  0xd1   :  { %2256 = vmatmul.mubr.bf16.gmra.mrb[72].mxu1 %v3664_v29  ;;  %v3728_v29 = vcombine.low %v232_v17, %v236_v18  ;;  %v41_v17 = vld [vmem:[%s5648_s0 + $0x88] sm:$0xff] }
  0xd2   :  { %2834 = vmatmul.mubr.bf16.gmra.mrb[72].mxu0 %v3668_v30  ;;  %2263 = vmatprep.mubr.bf16.mxu1 %v3673_v31  ;;  %v3732_v30 = vcombine.low %v234_v19, %v238_v20  ;;  %v3737_v31 = vcombine.high %v240_v25, %v244_v26  ;;  %v45_v18 = vld [vmem:[%s5648_s0 + $0xa8] sm:$0xff]  ;;  %v43_v19 = vld [vmem:[%s5648_s0 + $0x98] sm:$0xff] }
  0xd3   :  { %2841 = vmatprep.mubr.bf16.mxu0 %v3677_v32  ;;  %v3741_v32 = vcombine.high %v242_v27, %v246_v28  ;;  %v47_v20 = vld [vmem:[%s5648_s0 + $0xb8] sm:$0xff] }
  0xd9   :  { %2264 = vmatmul.mubr.bf16.gmra.mrb[76].mxu1 %v3672_v37  ;;  %v3736_v37 = vcombine.low %v240_v25, %v244_v26  ;;  %v49_v25 = vld [vmem:[%s5648_s0 + $0xc8] sm:$0xff] }
  0xda   :  { %2842 = vmatmul.mubr.bf16.gmra.mrb[76].mxu0 %v3676_v38  ;;  %2271 = vmatprep.mubr.bf16.mxu1 %v3681_v39  ;;  %v3740_v38 = vcombine.low %v242_v27, %v246_v28  ;;  %v3745_v39 = vcombine.high %v248_v33, %v252_v34  ;;  %v53_v26 = vld [vmem:[%s5648_s0 + $0xe8] sm:$0xff]  ;;  %v51_v27 = vld [vmem:[%s5648_s0 + $0xd8] sm:$0xff] }
  0xdb   :  { %2849 = vmatprep.mubr.bf16.mxu0 %v3685_v40  ;;  %v3749_v40 = vcombine.high %v250_v35, %v254_v36  ;;  %v55_v28 = vld [vmem:[%s5648_s0 + $0xf8] sm:$0xff] }
  0xe1   :  { %2272 = vmatmul.mubr.bf16.gmra.mrb[80].mxu1 %v3680_v45  ;;  %v3744_v45 = vcombine.low %v248_v33, %v252_v34  ;;  %v57_v33 = vld [vmem:[%s5648_s0 + $0x108] sm:$0xff] }
  0xe2   :  { %2850 = vmatmul.mubr.bf16.gmra.mrb[80].mxu0 %v3684_v46  ;;  %2279 = vmatprep.mubr.bf16.mxu1 %v3689_v47  ;;  %v3748_v46 = vcombine.low %v250_v35, %v254_v36  ;;  %v3753_v47 = vcombine.high %v256_v41, %v260_v42  ;;  %v61_v34 = vld [vmem:[%s5648_s0 + $0x128] sm:$0xff]  ;;  %v59_v35 = vld [vmem:[%s5648_s0 + $0x118] sm:$0xff] }
  0xe3   :  { %2857 = vmatprep.mubr.bf16.mxu0 %v3693_v48  ;;  %v3757_v48 = vcombine.high %v258_v43, %v262_v44  ;;  %v63_v36 = vld [vmem:[%s5648_s0 + $0x138] sm:$0xff] }
  0xe9   :  { %2280 = vmatmul.mubr.bf16.gmra.mrb[84].mxu1 %v3688_v53  ;;  %v3752_v53 = vcombine.low %v256_v41, %v260_v42  ;;  %v65_v41 = vld [vmem:[%s5648_s0 + $0x148] sm:$0xff] }
  0xea   :  { %2858 = vmatmul.mubr.bf16.gmra.mrb[84].mxu0 %v3692_v54  ;;  %2287 = vmatprep.mubr.bf16.mxu1 %v3697_v55  ;;  %v3756_v54 = vcombine.low %v258_v43, %v262_v44  ;;  %v3761_v55 = vcombine.high %v264_v49, %v268_v50  ;;  %v69_v42 = vld [vmem:[%s5648_s0 + $0x168] sm:$0xff]  ;;  %v67_v43 = vld [vmem:[%s5648_s0 + $0x158] sm:$0xff] }
  0xeb   :  { %2865 = vmatprep.mubr.bf16.mxu0 %v3701_v56  ;;  %v3765_v56 = vcombine.high %v266_v51, %v270_v52  ;;  %v71_v44 = vld [vmem:[%s5648_s0 + $0x178] sm:$0xff] }
  0xf1   :  { %2288 = vmatmul.mubr.bf16.gmra.mrb[88].mxu1 %v3696_v60  ;;  %v3760_v60 = vcombine.low %v264_v49, %v268_v50  ;;  %v73_v49 = vld [vmem:[%s5648_s0 + $0x188] sm:$0xff] }
  0xf2   :  { %2866 = vmatmul.mubr.bf16.gmra.mrb[88].mxu0 %v3700_v61  ;;  %2295 = vmatprep.mubr.bf16.mxu1 %v3705_v62  ;;  %v3764_v61 = vcombine.low %v266_v51, %v270_v52  ;;  %v3769_v62 = vcombine.high %v272_v57, %v276_v0  ;;  %v77_v50 = vld [vmem:[%s5648_s0 + $0x1a8] sm:$0xff]  ;;  %v75_v51 = vld [vmem:[%s5648_s0 + $0x198] sm:$0xff] }
  0xf3   :  { %2873 = vmatprep.mubr.bf16.mxu0 %v3709_v63  ;;  %v3773_v63 = vcombine.high %v274_v58, %v278_v59  ;;  %v79_v52 = vld [vmem:[%s5648_s0 + $0x1b8] sm:$0xff] }
  0xf9   :  { %2296 = vmatmul.mubr.bf16.gmra.mrb[92].mxu1 %v3704_v5  ;;  %v3768_v5 = vcombine.low %v272_v57, %v276_v0  ;;  %v81_v57 = vld [vmem:[%s5648_s0 + $0x1c8] sm:$0xff] }
  0xfa   :  { %2874 = vmatmul.mubr.bf16.gmra.mrb[92].mxu0 %v3708_v6  ;;  %2303 = vmatprep.mubr.bf16.mxu1 %v3713_v7  ;;  %v3772_v6 = vcombine.low %v274_v58, %v278_v59  ;;  %v3523_v7 = vcombine.high %v25_v1, %v29_v2  ;;  %v85_v0 = vld [vmem:[%s5648_s0 + $0x1e8] sm:$0xff]  ;;  %v83_v58 = vld [vmem:[%s5648_s0 + $0x1d8] sm:$0xff] }
  0xfb   :  { %2881 = vmatprep.mubr.bf16.mxu0 %v3717_v8  ;;  %v3527_v8 = vcombine.high %v27_v3, %v31_v4  ;;  %v87_v59 = vld [vmem:[%s5648_s0 + $0x1f8] sm:$0xff] }
 0x101   :  { %2304 = vmatmul.mubr.bf16.gmra.mrb[96].mxu1 %v3712_v13  ;;  %v3522_v13 = vcombine.low %v25_v1, %v29_v2  ;;  %v89_v1 = vld [vmem:[%s5648_s0 + $0x208] sm:$0xff] }
 0x102   :  { %2882 = vmatmul.mubr.bf16.gmra.mrb[96].mxu0 %v3716_v14  ;;  %2311 = vmatprep.mubr.bf16.mxu1 %v3721_v15  ;;  %v3526_v14 = vcombine.low %v27_v3, %v31_v4  ;;  %v3531_v15 = vcombine.high %v33_v9, %v37_v10  ;;  %v93_v2 = vld [vmem:[%s5648_s0 + $0x228] sm:$0xff]  ;;  %v91_v3 = vld [vmem:[%s5648_s0 + $0x218] sm:$0xff] }
 0x103   :  { %2889 = vmatprep.mubr.bf16.mxu0 %v3725_v16  ;;  %v3535_v16 = vcombine.high %v35_v11, %v39_v12  ;;  %v95_v4 = vld [vmem:[%s5648_s0 + $0x238] sm:$0xff] }
 0x109   :  { %2312 = vmatmul.mubr.bf16.gmra.mrb[100].mxu1 %v3720_v21  ;;  %v3530_v21 = vcombine.low %v33_v9, %v37_v10  ;;  %v97_v9 = vld [vmem:[%s5648_s0 + $0x248] sm:$0xff] }
 0x10a   :  { %2890 = vmatmul.mubr.bf16.gmra.mrb[100].mxu0 %v3724_v22  ;;  %2319 = vmatprep.mubr.bf16.mxu1 %v3729_v23  ;;  %v3534_v22 = vcombine.low %v35_v11, %v39_v12  ;;  %v3539_v23 = vcombine.high %v41_v17, %v45_v18  ;;  %v101_v10 = vld [vmem:[%s5648_s0 + $0x268] sm:$0xff]  ;;  %v99_v11 = vld [vmem:[%s5648_s0 + $0x258] sm:$0xff] }
 0x10b   :  { %2897 = vmatprep.mubr.bf16.mxu0 %v3733_v24  ;;  %v3543_v24 = vcombine.high %v43_v19, %v47_v20  ;;  %v103_v12 = vld [vmem:[%s5648_s0 + $0x278] sm:$0xff] }
 0x111   :  { %2320 = vmatmul.mubr.bf16.gmra.mrb[104].mxu1 %v3728_v29  ;;  %v3538_v29 = vcombine.low %v41_v17, %v45_v18  ;;  %v105_v17 = vld [vmem:[%s5648_s0 + $0x288] sm:$0xff] }
 0x112   :  { %2898 = vmatmul.mubr.bf16.gmra.mrb[104].mxu0 %v3732_v30  ;;  %2327 = vmatprep.mubr.bf16.mxu1 %v3737_v31  ;;  %v3542_v30 = vcombine.low %v43_v19, %v47_v20  ;;  %v3547_v31 = vcombine.high %v49_v25, %v53_v26  ;;  %v109_v18 = vld [vmem:[%s5648_s0 + $0x2a8] sm:$0xff]  ;;  %v107_v19 = vld [vmem:[%s5648_s0 + $0x298] sm:$0xff] }
 0x113   :  { %2905 = vmatprep.mubr.bf16.mxu0 %v3741_v32  ;;  %v3551_v32 = vcombine.high %v51_v27, %v55_v28  ;;  %v111_v20 = vld [vmem:[%s5648_s0 + $0x2b8] sm:$0xff] }
 0x119   :  { %2328 = vmatmul.mubr.bf16.gmra.mrb[108].mxu1 %v3736_v37  ;;  %v3546_v37 = vcombine.low %v49_v25, %v53_v26  ;;  %v113_v25 = vld [vmem:[%s5648_s0 + $0x2c8] sm:$0xff] }
 0x11a   :  { %2906 = vmatmul.mubr.bf16.gmra.mrb[108].mxu0 %v3740_v38  ;;  %2335 = vmatprep.mubr.bf16.mxu1 %v3745_v39  ;;  %v3550_v38 = vcombine.low %v51_v27, %v55_v28  ;;  %v3555_v39 = vcombine.high %v57_v33, %v61_v34  ;;  %v117_v26 = vld [vmem:[%s5648_s0 + $0x2e8] sm:$0xff]  ;;  %v115_v27 = vld [vmem:[%s5648_s0 + $0x2d8] sm:$0xff] }
 0x11b   :  { %2913 = vmatprep.mubr.bf16.mxu0 %v3749_v40  ;;  %v3559_v40 = vcombine.high %v59_v35, %v63_v36  ;;  %v119_v28 = vld [vmem:[%s5648_s0 + $0x2f8] sm:$0xff] }
 0x121   :  { %2336 = vmatmul.mubr.bf16.gmra.mrb[112].mxu1 %v3744_v45  ;;  %v3554_v45 = vcombine.low %v57_v33, %v61_v34  ;;  %v121_v33 = vld [vmem:[%s5648_s0 + $0x308] sm:$0xff] }
 0x122   :  { %2914 = vmatmul.mubr.bf16.gmra.mrb[112].mxu0 %v3748_v46  ;;  %2343 = vmatprep.mubr.bf16.mxu1 %v3753_v47  ;;  %v3558_v46 = vcombine.low %v59_v35, %v63_v36  ;;  %v3563_v47 = vcombine.high %v65_v41, %v69_v42  ;;  %v125_v34 = vld [vmem:[%s5648_s0 + $0x328] sm:$0xff]  ;;  %v123_v35 = vld [vmem:[%s5648_s0 + $0x318] sm:$0xff] }
 0x123   :  { %2921 = vmatprep.mubr.bf16.mxu0 %v3757_v48  ;;  %v3567_v48 = vcombine.high %v67_v43, %v71_v44  ;;  %v127_v36 = vld [vmem:[%s5648_s0 + $0x338] sm:$0xff] }
 0x129   :  { %2344 = vmatmul.mubr.bf16.gmra.mrb[116].mxu1 %v3752_v53  ;;  %v3562_v53 = vcombine.low %v65_v41, %v69_v42  ;;  %v129_v41 = vld [vmem:[%s5648_s0 + $0x348] sm:$0xff] }
 0x12a   :  { %2922 = vmatmul.mubr.bf16.gmra.mrb[116].mxu0 %v3756_v54  ;;  %2351 = vmatprep.mubr.bf16.mxu1 %v3761_v55  ;;  %v3566_v54 = vcombine.low %v67_v43, %v71_v44  ;;  %v3571_v55 = vcombine.high %v73_v49, %v77_v50  ;;  %v133_v42 = vld [vmem:[%s5648_s0 + $0x368] sm:$0xff]  ;;  %v131_v43 = vld [vmem:[%s5648_s0 + $0x358] sm:$0xff] }
 0x12b   :  { %2929 = vmatprep.mubr.bf16.mxu0 %v3765_v56  ;;  %v3575_v56 = vcombine.high %v75_v51, %v79_v52  ;;  %v135_v44 = vld [vmem:[%s5648_s0 + $0x378] sm:$0xff] }
 0x131   :  { %2352 = vmatmul.mubr.bf16.gmra.mrb[120].mxu1 %v3760_v60  ;;  %v3570_v60 = vcombine.low %v73_v49, %v77_v50  ;;  %v137_v49 = vld [vmem:[%s5648_s0 + $0x388] sm:$0xff] }
 0x132   :  { %2930 = vmatmul.mubr.bf16.gmra.mrb[120].mxu0 %v3764_v61  ;;  %2359 = vmatprep.mubr.bf16.mxu1 %v3769_v62  ;;  %v3574_v61 = vcombine.low %v75_v51, %v79_v52  ;;  %v3579_v62 = vcombine.high %v81_v57, %v85_v0  ;;  %v141_v50 = vld [vmem:[%s5648_s0 + $0x3a8] sm:$0xff]  ;;  %v139_v51 = vld [vmem:[%s5648_s0 + $0x398] sm:$0xff] }
 0x133   :  { %2937 = vmatprep.mubr.bf16.mxu0 %v3773_v63  ;;  %v3583_v63 = vcombine.high %v83_v58, %v87_v59  ;;  %v143_v52 = vld [vmem:[%s5648_s0 + $0x3b8] sm:$0xff] }
 0x139   :  { %2360 = vmatmul.mubr.bf16.gmra.mrb[124].mxu1 %v3768_v5  ;;  %v3578_v5 = vcombine.low %v81_v57, %v85_v0  ;;  %v145_v57 = vld [vmem:[%s5648_s0 + $0x3c8] sm:$0xff] }
 0x13a   :  { %2938 = vmatmul.mubr.bf16.gmra.mrb[124].mxu0 %v3772_v6  ;;  %2400 = vmatprep.mubr.bf16.mxu1 %v3523_v7  ;;  %v3582_v6 = vcombine.low %v83_v58, %v87_v59  ;;  %v3587_v7 = vcombine.high %v89_v1, %v93_v2  ;;  %v149_v0 = vld [vmem:[%s5648_s0 + $0x3e8] sm:$0xff]  ;;  %v147_v58 = vld [vmem:[%s5648_s0 + $0x3d8] sm:$0xff] }
 0x13b   :  { %2978 = vmatprep.mubr.bf16.mxu0 %v3527_v8  ;;  %v3591_v8 = vcombine.high %v91_v3, %v95_v4  ;;  %v151_v59 = vld [vmem:[%s5648_s0 + $0x3f8] sm:$0xff] }
 0x141   :  { %2401 = vmatmul.mubr.bf16.vlgmr.msra.gmra.mrb[0].mxu1 %v3522_v13  ;;  %v3586_v13 = vcombine.low %v89_v1, %v93_v2  ;;  %v153_v1 = vld [vmem:[%s5648_s0 + $0x408] sm:$0xff] }
 0x142   :  { %2979 = vmatmul.mubr.bf16.vlgmr.msra.gmra.mrb[0].mxu0 %v3526_v14  ;;  %2408 = vmatprep.mubr.bf16.mxu1 %v3531_v15  ;;  %v3590_v14 = vcombine.low %v91_v3, %v95_v4  ;;  %v3595_v15 = vcombine.high %v97_v9, %v101_v10  ;;  %v157_v2 = vld [vmem:[%s5648_s0 + $0x428] sm:$0xff]  ;;  %v155_v3 = vld [vmem:[%s5648_s0 + $0x418] sm:$0xff] }
 0x143   :  { %2986 = vmatprep.mubr.bf16.mxu0 %v3535_v16  ;;  %v3599_v16 = vcombine.high %v99_v11, %v103_v12  ;;  %v159_v4 = vld [vmem:[%s5648_s0 + $0x438] sm:$0xff] }
 0x149   :  { %2409 = vmatmul.mubr.bf16.gmra.mrb[4].mxu1 %v3530_v21  ;;  %v3594_v21 = vcombine.low %v97_v9, %v101_v10  ;;  %v161_v9 = vld [vmem:[%s5648_s0 + $0x448] sm:$0xff] }
 0x14a   :  { %2987 = vmatmul.mubr.bf16.gmra.mrb[4].mxu0 %v3534_v22  ;;  %2416 = vmatprep.mubr.bf16.mxu1 %v3539_v23  ;;  %v3598_v22 = vcombine.low %v99_v11, %v103_v12  ;;  %v3603_v23 = vcombine.high %v105_v17, %v109_v18  ;;  %v165_v10 = vld [vmem:[%s5648_s0 + $0x468] sm:$0xff]  ;;  %v163_v11 = vld [vmem:[%s5648_s0 + $0x458] sm:$0xff] }
 0x14b   :  { %2994 = vmatprep.mubr.bf16.mxu0 %v3543_v24  ;;  %v3607_v24 = vcombine.high %v107_v19, %v111_v20  ;;  %v167_v12 = vld [vmem:[%s5648_s0 + $0x478] sm:$0xff] }
 0x151   :  { %2417 = vmatmul.mubr.bf16.gmra.mrb[8].mxu1 %v3538_v29  ;;  %v3602_v29 = vcombine.low %v105_v17, %v109_v18  ;;  %v169_v17 = vld [vmem:[%s5648_s0 + $0x488] sm:$0xff] }
 0x152   :  { %2995 = vmatmul.mubr.bf16.gmra.mrb[8].mxu0 %v3542_v30  ;;  %2424 = vmatprep.mubr.bf16.mxu1 %v3547_v31  ;;  %v3606_v30 = vcombine.low %v107_v19, %v111_v20  ;;  %v3611_v31 = vcombine.high %v113_v25, %v117_v26  ;;  %v173_v18 = vld [vmem:[%s5648_s0 + $0x4a8] sm:$0xff]  ;;  %v171_v19 = vld [vmem:[%s5648_s0 + $0x498] sm:$0xff] }
 0x153   :  { %3002 = vmatprep.mubr.bf16.mxu0 %v3551_v32  ;;  %v3615_v32 = vcombine.high %v115_v27, %v119_v28  ;;  %v175_v20 = vld [vmem:[%s5648_s0 + $0x4b8] sm:$0xff] }
 0x159   :  { %2425 = vmatmul.mubr.bf16.gmra.mrb[12].mxu1 %v3546_v37  ;;  %v3610_v37 = vcombine.low %v113_v25, %v117_v26  ;;  %v177_v25 = vld [vmem:[%s5648_s0 + $0x4c8] sm:$0xff] }
 0x15a   :  { %3003 = vmatmul.mubr.bf16.gmra.mrb[12].mxu0 %v3550_v38  ;;  %2432 = vmatprep.mubr.bf16.mxu1 %v3555_v39  ;;  %v3614_v38 = vcombine.low %v115_v27, %v119_v28  ;;  %v3619_v39 = vcombine.high %v121_v33, %v125_v34  ;;  %v181_v26 = vld [vmem:[%s5648_s0 + $0x4e8] sm:$0xff]  ;;  %v179_v27 = vld [vmem:[%s5648_s0 + $0x4d8] sm:$0xff] }
 0x15b   :  { %3010 = vmatprep.mubr.bf16.mxu0 %v3559_v40  ;;  %v3623_v40 = vcombine.high %v123_v35, %v127_v36  ;;  %v183_v28 = vld [vmem:[%s5648_s0 + $0x4f8] sm:$0xff] }
 0x161   :  { %2433 = vmatmul.mubr.bf16.gmra.mrb[16].mxu1 %v3554_v45  ;;  %v3618_v45 = vcombine.low %v121_v33, %v125_v34  ;;  %v185_v33 = vld [vmem:[%s5648_s0 + $0x508] sm:$0xff] }
 0x162   :  { %3011 = vmatmul.mubr.bf16.gmra.mrb[16].mxu0 %v3558_v46  ;;  %2440 = vmatprep.mubr.bf16.mxu1 %v3563_v47  ;;  %v3622_v46 = vcombine.low %v123_v35, %v127_v36  ;;  %v3627_v47 = vcombine.high %v129_v41, %v133_v42  ;;  %v189_v34 = vld [vmem:[%s5648_s0 + $0x528] sm:$0xff]  ;;  %v187_v35 = vld [vmem:[%s5648_s0 + $0x518] sm:$0xff] }
 0x163   :  { %3018 = vmatprep.mubr.bf16.mxu0 %v3567_v48  ;;  %v3631_v48 = vcombine.high %v131_v43, %v135_v44  ;;  %v191_v36 = vld [vmem:[%s5648_s0 + $0x538] sm:$0xff] }
 0x169   :  { %2441 = vmatmul.mubr.bf16.gmra.mrb[20].mxu1 %v3562_v53  ;;  %v3626_v53 = vcombine.low %v129_v41, %v133_v42  ;;  %v193_v41 = vld [vmem:[%s5648_s0 + $0x548] sm:$0xff] }
 0x16a   :  { %3019 = vmatmul.mubr.bf16.gmra.mrb[20].mxu0 %v3566_v54  ;;  %2448 = vmatprep.mubr.bf16.mxu1 %v3571_v55  ;;  %v3630_v54 = vcombine.low %v131_v43, %v135_v44  ;;  %v3635_v55 = vcombine.high %v137_v49, %v141_v50  ;;  %v197_v42 = vld [vmem:[%s5648_s0 + $0x568] sm:$0xff]  ;;  %v195_v43 = vld [vmem:[%s5648_s0 + $0x558] sm:$0xff] }
 0x16b   :  { %3026 = vmatprep.mubr.bf16.mxu0 %v3575_v56  ;;  %v3639_v56 = vcombine.high %v139_v51, %v143_v52  ;;  %v199_v44 = vld [vmem:[%s5648_s0 + $0x578] sm:$0xff] }
 0x171   :  { %2449 = vmatmul.mubr.bf16.gmra.mrb[24].mxu1 %v3570_v60  ;;  %v3634_v60 = vcombine.low %v137_v49, %v141_v50  ;;  %v201_v49 = vld [vmem:[%s5648_s0 + $0x588] sm:$0xff] }
 0x172   :  { %3027 = vmatmul.mubr.bf16.gmra.mrb[24].mxu0 %v3574_v61  ;;  %2456 = vmatprep.mubr.bf16.mxu1 %v3579_v62  ;;  %v3638_v61 = vcombine.low %v139_v51, %v143_v52  ;;  %v3643_v62 = vcombine.high %v145_v57, %v149_v0  ;;  %v205_v50 = vld [vmem:[%s5648_s0 + $0x5a8] sm:$0xff]  ;;  %v203_v51 = vld [vmem:[%s5648_s0 + $0x598] sm:$0xff] }
 0x173   :  { %3034 = vmatprep.mubr.bf16.mxu0 %v3583_v63  ;;  %v3647_v63 = vcombine.high %v147_v58, %v151_v59  ;;  %v207_v52 = vld [vmem:[%s5648_s0 + $0x5b8] sm:$0xff] }
 0x179   :  { %2457 = vmatmul.mubr.bf16.gmra.mrb[28].mxu1 %v3578_v5  ;;  %v3642_v5 = vcombine.low %v145_v57, %v149_v0  ;;  %v209_v57 = vld [vmem:[%s5648_s0 + $0x5c8] sm:$0xff] }
 0x17a   :  { %3035 = vmatmul.mubr.bf16.gmra.mrb[28].mxu0 %v3582_v6  ;;  %2464 = vmatprep.mubr.bf16.mxu1 %v3587_v7  ;;  %v3646_v6 = vcombine.low %v147_v58, %v151_v59  ;;  %v3651_v7 = vcombine.high %v153_v1, %v157_v2  ;;  %v213_v0 = vld [vmem:[%s5648_s0 + $0x5e8] sm:$0xff]  ;;  %v211_v58 = vld [vmem:[%s5648_s0 + $0x5d8] sm:$0xff] }
 0x17b   :  { %3042 = vmatprep.mubr.bf16.mxu0 %v3591_v8  ;;  %v3655_v8 = vcombine.high %v155_v3, %v159_v4  ;;  %v215_v59 = vld [vmem:[%s5648_s0 + $0x5f8] sm:$0xff] }
 0x181   :  { %2465 = vmatmul.mubr.bf16.gmra.mrb[32].mxu1 %v3586_v13  ;;  %v3650_v13 = vcombine.low %v153_v1, %v157_v2  ;;  %v217_v1 = vld [vmem:[%s5648_s0 + $0x608] sm:$0xff] }
 0x182   :  { %3043 = vmatmul.mubr.bf16.gmra.mrb[32].mxu0 %v3590_v14  ;;  %2472 = vmatprep.mubr.bf16.mxu1 %v3595_v15  ;;  %v3654_v14 = vcombine.low %v155_v3, %v159_v4  ;;  %v3659_v15 = vcombine.high %v161_v9, %v165_v10  ;;  %v221_v2 = vld [vmem:[%s5648_s0 + $0x628] sm:$0xff]  ;;  %v219_v3 = vld [vmem:[%s5648_s0 + $0x618] sm:$0xff] }
 0x183   :  { %3050 = vmatprep.mubr.bf16.mxu0 %v3599_v16  ;;  %v3663_v16 = vcombine.high %v163_v11, %v167_v12  ;;  %v223_v4 = vld [vmem:[%s5648_s0 + $0x638] sm:$0xff] }
 0x189   :  { %2473 = vmatmul.mubr.bf16.gmra.mrb[36].mxu1 %v3594_v21  ;;  %v3658_v21 = vcombine.low %v161_v9, %v165_v10  ;;  %v225_v9 = vld [vmem:[%s5648_s0 + $0x648] sm:$0xff] }
 0x18a   :  { %3051 = vmatmul.mubr.bf16.gmra.mrb[36].mxu0 %v3598_v22  ;;  %2480 = vmatprep.mubr.bf16.mxu1 %v3603_v23  ;;  %v3662_v22 = vcombine.low %v163_v11, %v167_v12  ;;  %v3667_v23 = vcombine.high %v169_v17, %v173_v18  ;;  %v229_v10 = vld [vmem:[%s5648_s0 + $0x668] sm:$0xff]  ;;  %v227_v11 = vld [vmem:[%s5648_s0 + $0x658] sm:$0xff] }
 0x18b   :  { %3058 = vmatprep.mubr.bf16.mxu0 %v3607_v24  ;;  %v3671_v24 = vcombine.high %v171_v19, %v175_v20  ;;  %v231_v12 = vld [vmem:[%s5648_s0 + $0x678] sm:$0xff] }
 0x191   :  { %2481 = vmatmul.mubr.bf16.gmra.mrb[40].mxu1 %v3602_v29  ;;  %v3666_v29 = vcombine.low %v169_v17, %v173_v18  ;;  %v233_v17 = vld [vmem:[%s5648_s0 + $0x688] sm:$0xff] }
 0x192   :  { %3059 = vmatmul.mubr.bf16.gmra.mrb[40].mxu0 %v3606_v30  ;;  %2488 = vmatprep.mubr.bf16.mxu1 %v3611_v31  ;;  %v3670_v30 = vcombine.low %v171_v19, %v175_v20  ;;  %v3675_v31 = vcombine.high %v177_v25, %v181_v26  ;;  %v237_v18 = vld [vmem:[%s5648_s0 + $0x6a8] sm:$0xff]  ;;  %v235_v19 = vld [vmem:[%s5648_s0 + $0x698] sm:$0xff] }
 0x193   :  { %3066 = vmatprep.mubr.bf16.mxu0 %v3615_v32  ;;  %v3679_v32 = vcombine.high %v179_v27, %v183_v28  ;;  %v239_v20 = vld [vmem:[%s5648_s0 + $0x6b8] sm:$0xff] }
 0x199   :  { %2489 = vmatmul.mubr.bf16.gmra.mrb[44].mxu1 %v3610_v37  ;;  %v3674_v37 = vcombine.low %v177_v25, %v181_v26  ;;  %v241_v25 = vld [vmem:[%s5648_s0 + $0x6c8] sm:$0xff] }
 0x19a   :  { %3067 = vmatmul.mubr.bf16.gmra.mrb[44].mxu0 %v3614_v38  ;;  %2496 = vmatprep.mubr.bf16.mxu1 %v3619_v39  ;;  %v3678_v38 = vcombine.low %v179_v27, %v183_v28  ;;  %v3683_v39 = vcombine.high %v185_v33, %v189_v34  ;;  %v245_v26 = vld [vmem:[%s5648_s0 + $0x6e8] sm:$0xff]  ;;  %v243_v27 = vld [vmem:[%s5648_s0 + $0x6d8] sm:$0xff] }
 0x19b   :  { %3074 = vmatprep.mubr.bf16.mxu0 %v3623_v40  ;;  %v3687_v40 = vcombine.high %v187_v35, %v191_v36  ;;  %v247_v28 = vld [vmem:[%s5648_s0 + $0x6f8] sm:$0xff] }
 0x1a1   :  { %2497 = vmatmul.mubr.bf16.gmra.mrb[48].mxu1 %v3618_v45  ;;  %v3682_v45 = vcombine.low %v185_v33, %v189_v34  ;;  %v5318_v33 = vld [vmem:[%s5649_s2] ss:$0 sm:$0xff]  ;;  %v249_v34 = vld [vmem:[%s5648_s0 + $0x708] sm:$0xff] }
 0x1a2   :  { %3075 = vmatmul.mubr.bf16.gmra.mrb[48].mxu0 %v3622_v46  ;;  %2504 = vmatprep.mubr.bf16.mxu1 %v3627_v47  ;;  %v3686_v46 = vcombine.low %v187_v35, %v191_v36  ;;  %v3691_v47 = vcombine.high %v193_v41, %v197_v42  ;;  %v253_v35 = vld [vmem:[%s5648_s0 + $0x728] sm:$0xff] }
 0x1a3   :  { %3082 = vmatprep.mubr.bf16.mxu0 %v3631_v48  ;;  %v3695_v48 = vcombine.high %v195_v43, %v199_v44 }
 0x1a9   :  { %2505 = vmatmul.mubr.bf16.gmra.mrb[52].mxu1 %v3626_v53  ;;  %v3690_v53 = vcombine.low %v193_v41, %v197_v42  ;;  %v3738_v42 = vcombine.low %v241_v25, %v245_v26 }
 0x1aa   :  { %3083 = vmatmul.mubr.bf16.gmra.mrb[52].mxu0 %v3630_v54  ;;  %2512 = vmatprep.mubr.bf16.mxu1 %v3635_v55  ;;  %v3694_v54 = vcombine.low %v195_v43, %v199_v44  ;;  %v3699_v55 = vcombine.high %v201_v49, %v205_v50 }
 0x1ab   :  { %3090 = vmatprep.mubr.bf16.mxu0 %v3639_v56  ;;  %v3703_v56 = vcombine.high %v203_v51, %v207_v52 }
 0x1b1   :  { %2513 = vmatmul.mubr.bf16.gmra.mrb[56].mxu1 %v3634_v60  ;;  %v3698_v60 = vcombine.low %v201_v49, %v205_v50 }
 0x1b2   :  { %3091 = vmatmul.mubr.bf16.gmra.mrb[56].mxu0 %v3638_v61  ;;  %2520 = vmatprep.mubr.bf16.mxu1 %v3643_v62  ;;  %v3702_v61 = vcombine.low %v203_v51, %v207_v52  ;;  %v3707_v62 = vcombine.high %v209_v57, %v213_v0 }
 0x1b3   :  { %3098 = vmatprep.mubr.bf16.mxu0 %v3647_v63  ;;  %v3711_v63 = vcombine.high %v211_v58, %v215_v59 }
 0x1b9   :  { %2521 = vmatmul.mubr.bf16.gmra.mrb[60].mxu1 %v3642_v5  ;;  %v3706_v5 = vcombine.low %v209_v57, %v213_v0  ;;  %v257_v57 = vld [vmem:[%s5648_s0 + $0x748] sm:$0xff] }
 0x1ba   :  { %3099 = vmatmul.mubr.bf16.gmra.mrb[60].mxu0 %v3646_v6  ;;  %2528 = vmatprep.mubr.bf16.mxu1 %v3651_v7  ;;  %v3710_v6 = vcombine.low %v211_v58, %v215_v59  ;;  %v3715_v7 = vcombine.high %v217_v1, %v221_v2  ;;  %v261_v0 = vld [vmem:[%s5648_s0 + $0x768] sm:$0xff]  ;;  %v259_v59 = vld [vmem:[%s5648_s0 + $0x758] sm:$0xff] }
 0x1bb   :  { %3106 = vmatprep.mubr.bf16.mxu0 %v3655_v8  ;;  %v3719_v8 = vcombine.high %v219_v3, %v223_v4 }
 0x1c1   :  { %2529 = vmatmul.mubr.bf16.gmra.mrb[64].mxu1 %v3650_v13  ;;  %v3714_v13 = vcombine.low %v217_v1, %v221_v2  ;;  %v3746_v2 = vcombine.low %v249_v34, %v253_v35 }
 0x1c2   :  { %3107 = vmatmul.mubr.bf16.gmra.mrb[64].mxu0 %v3654_v14  ;;  %2536 = vmatprep.mubr.bf16.mxu1 %v3659_v15  ;;  %v3718_v14 = vcombine.low %v219_v3, %v223_v4  ;;  %v3723_v15 = vcombine.high %v225_v9, %v229_v10 }
 0x1c3   :  { %3114 = vmatprep.mubr.bf16.mxu0 %v3663_v16  ;;  %v3727_v16 = vcombine.high %v227_v11, %v231_v12 }
 0x1c9   :  { %2537 = vmatmul.mubr.bf16.gmra.mrb[68].mxu1 %v3658_v21  ;;  %v3722_v21 = vcombine.low %v225_v9, %v229_v10 }
 0x1ca   :  { %3115 = vmatmul.mubr.bf16.gmra.mrb[68].mxu0 %v3662_v22  ;;  %2544 = vmatprep.mubr.bf16.mxu1 %v3667_v23  ;;  %v3726_v22 = vcombine.low %v227_v11, %v231_v12  ;;  %v3731_v23 = vcombine.high %v233_v17, %v237_v18 }
 0x1cb   :  { %3122 = vmatprep.mubr.bf16.mxu0 %v3671_v24  ;;  %v3735_v24 = vcombine.high %v235_v19, %v239_v20 }
 0x1d1   :  { %2545 = vmatmul.mubr.bf16.gmra.mrb[72].mxu1 %v3666_v29  ;;  %v3730_v29 = vcombine.low %v233_v17, %v237_v18 }
 0x1d2   :  { %3123 = vmatmul.mubr.bf16.gmra.mrb[72].mxu0 %v3670_v30  ;;  %2552 = vmatprep.mubr.bf16.mxu1 %v3675_v31  ;;  %v3734_v30 = vcombine.low %v235_v19, %v239_v20  ;;  %v3739_v31 = vcombine.high %v241_v25, %v245_v26  ;;  %v265_v19 = vld [vmem:[%s5648_s0 + $0x788] sm:$0xff] }
 0x1d3   :  { %3130 = vmatprep.mubr.bf16.mxu0 %v3679_v32  ;;  %v3743_v32 = vcombine.high %v243_v27, %v247_v28  ;;  %v269_v20 = vld [vmem:[%s5648_s0 + $0x7a8] sm:$0xff] }
 0x1d9   :  { %2553 = vmatmul.mubr.bf16.gmra.mrb[76].mxu1 %v3674_v37  ;;  %v251_v37 = vld [vmem:[%s5648_s0 + $0x718] sm:$0xff] }
 0x1da   :  { %3131 = vmatmul.mubr.bf16.gmra.mrb[76].mxu0 %v3678_v38  ;;  %2560 = vmatprep.mubr.bf16.mxu1 %v3683_v39  ;;  %v255_v38 = vld [vmem:[%s5648_s0 + $0x738] sm:$0xff] }
 0x1db   :  { %3138 = vmatprep.mubr.bf16.mxu0 %v3687_v40  ;;  %v3751_v51 = vcombine.high %v251_v37, %v255_v38 }
 0x1e1   :  { %2561 = vmatmul.mubr.bf16.gmra.mrb[80].mxu1 %v3682_v45  ;;  %v3742_v45 = vcombine.low %v243_v27, %v247_v28  ;;  %v3754_v28 = vcombine.low %v257_v57, %v261_v0 }
 0x1e2   :  { %3139 = vmatmul.mubr.bf16.gmra.mrb[80].mxu0 %v3686_v46  ;;  %2568 = vmatprep.mubr.bf16.mxu1 %v3691_v47  ;;  %v3747_v46 = vcombine.high %v249_v34, %v253_v35 }
 0x1e3   :  { %3146 = vmatprep.mubr.bf16.mxu0 %v3695_v48 }
 0x1e9   :  { %2569 = vmatmul.mubr.bf16.gmra.mrb[84].mxu1 %v3690_v53 }
 0x1ea   :  { %3147 = vmatmul.mubr.bf16.gmra.mrb[84].mxu0 %v3694_v54  ;;  %2576 = vmatprep.mubr.bf16.mxu1 %v3699_v55 }
 0x1eb   :  { %3154 = vmatprep.mubr.bf16.mxu0 %v3703_v56 }
 0x1f1   :  { %2577 = vmatmul.mubr.bf16.gmra.mrb[88].mxu1 %v3698_v60  ;;  %v263_v60 = vld [vmem:[%s5648_s0 + $0x778] sm:$0xff] }
 0x1f2   :  { %3155 = vmatmul.mubr.bf16.gmra.mrb[88].mxu0 %v3702_v61  ;;  %2584 = vmatprep.mubr.bf16.mxu1 %v3707_v62  ;;  %v3759_v11 = vcombine.high %v259_v59, %v263_v60 }
 0x1f3   :  { %3162 = vmatprep.mubr.bf16.mxu0 %v3711_v63 }
 0x1f9   :  { %2585 = vmatmul.mubr.bf16.gmra.mrb[92].mxu1 %v3706_v5  ;;  %v3750_v5 = vcombine.low %v251_v37, %v255_v38 }
 0x1fa   :  { %3163 = vmatmul.mubr.bf16.gmra.mrb[92].mxu0 %v3710_v6  ;;  %2592 = vmatprep.mubr.bf16.mxu1 %v3715_v7  ;;  %v3755_v6 = vcombine.high %v257_v57, %v261_v0 }
 0x1fb   :  { %3170 = vmatprep.mubr.bf16.mxu0 %v3719_v8 }
 0x201   :  { %2593 = vmatmul.mubr.bf16.gmra.mrb[96].mxu1 %v3714_v13 }
 0x202   :  { %3171 = vmatmul.mubr.bf16.gmra.mrb[96].mxu0 %v3718_v14  ;;  %2600 = vmatprep.mubr.bf16.mxu1 %v3723_v15 }
 0x203   :  { %3178 = vmatprep.mubr.bf16.mxu0 %v3727_v16 }
 0x209   :  { %2601 = vmatmul.mubr.bf16.gmra.mrb[100].mxu1 %v3722_v21 }
 0x20a   :  { %3179 = vmatmul.mubr.bf16.gmra.mrb[100].mxu0 %v3726_v22  ;;  %2608 = vmatprep.mubr.bf16.mxu1 %v3731_v23  ;;  %v267_v22 = vld [vmem:[%s5648_s0 + $0x798] sm:$0xff] }
 0x20b   :  { %3186 = vmatprep.mubr.bf16.mxu0 %v3735_v24  ;;  %v271_v23 = vld [vmem:[%s5648_s0 + $0x7b8] sm:$0xff] }
 0x20c   :  { %v3767_v38 = vcombine.high %v267_v22, %v271_v23  ;;  %v3766_v0 = vcombine.low %v267_v22, %v271_v23 }
 0x211   :  { %2609 = vmatmul.mubr.bf16.gmra.mrb[104].mxu1 %v3730_v29 }
 0x212   :  { %3187 = vmatmul.mubr.bf16.gmra.mrb[104].mxu0 %v3734_v30  ;;  %2616 = vmatprep.mubr.bf16.mxu1 %v3739_v31  ;;  %v3758_v31 = vcombine.low %v259_v59, %v263_v60 }
 0x213   :  { %3194 = vmatprep.mubr.bf16.mxu0 %v3743_v32  ;;  %v3763_v32 = vcombine.high %v265_v19, %v269_v20 }
 0x214   :  { %v2402_v36 = vpop.f32.mrb[0].mxu1 }
 0x215   :  { %v3840_v39 = vadd.f32 %v5318_v33, %v2402_v36  ;;  %v2980_v40 = vpop.f32.mrb[0].mxu0  ;;  %v2404_v41 = vpop.f32.mrb[1].mxu1 }
 0x216   :  { %v2982_v43 = vpop.f32.mrb[1].mxu0  ;;  %v2405_v44 = vpop.f32.mrb[2].mxu1 }
 0x217   :  { %v3841_v47 = vadd.f32 %v3840_v39, %v2980_v40  ;;  %v3842_v48 = vadd.f32 %v5318_v33, %v2405_v44  ;;  %v2983_v49 = vpop.f32.mrb[2].mxu0  ;;  %v2407_v50 = vpop.f32.mrb[3].mxu1 }
 0x218   :  { %v2985_v52 = vpop.f32.mrb[3].mxu0  ;;  %v279_v50 = vld [vmem:[%s5648_s0 + $0x7f8] sm:$0xff] }
 0x219   :  { %3235 = vst [vmem:[%s5650_s3] sm:$0xff] %v3841_v47  ;;  %v3843_v53 = vadd.f32 %v3842_v48, %v2983_v49  ;;  %2617 = vmatmul.mubr.bf16.gmra.mrb[108].mxu1 %v3738_v42  ;;  %v3372_v54 = vmul.f32 %v3841_v47, %v3841_v47  ;;  %v275_v49 = vld [vmem:[%s5648_s0 + $0x7d8] sm:$0xff] }
 0x21a   :  { %3195 = vmatmul.mubr.bf16.gmra.mrb[108].mxu0 %v3742_v45  ;;  %2624 = vmatprep.mubr.bf16.mxu1 %v3747_v46  ;;  %v273_v46 = vld [vmem:[%s5648_s0 + $0x7c8] sm:$0xff] }
 0x21b   :  { %3236 = vst [vmem:[%s5650_s3 + $0x8] sm:$0xff] %v3843_v53  ;;  %v3300_v55 = vadd.f32 %v3843_v53, %v3841_v47  ;;  %v3373_v56 = vmul.f32 %v3843_v53, %v3843_v53  ;;  %3202 = vmatprep.mubr.bf16.mxu0 %v3751_v51  ;;  %v277_v47 = vld [vmem:[%s5648_s0 + $0x7e8] sm:$0xff] }
 0x21c   :  { %v2410_v58 = vpop.f32.mrb[4].mxu1 }
 0x21d   :  { %v3436_v61 = vadd.f32 %v3373_v56, %v3372_v54  ;;  %v3844_v62 = vadd.f32 %v5318_v33, %v2410_v58  ;;  %v2988_v63 = vpop.f32.mrb[4].mxu0  ;;  %v2412_v1 = vpop.f32.mrb[5].mxu1  ;;  %v3771_v58 = vcombine.high %v273_v46, %v277_v47 }
 0x21e   :  { %v2990_v3 = vpop.f32.mrb[5].mxu0  ;;  %v2413_v4 = vpop.f32.mrb[6].mxu1 }
 0x21f   :  { %v3845_v7 = vadd.f32 %v3844_v62, %v2988_v63  ;;  %v3846_v8 = vadd.f32 %v5318_v33, %v2413_v4  ;;  %v2991_v9 = vpop.f32.mrb[6].mxu0  ;;  %v2415_v10 = vpop.f32.mrb[7].mxu1  ;;  %v3775_v63 = vcombine.high %v275_v49, %v279_v50 }
 0x220   :  { %v2993_v12 = vpop.f32.mrb[7].mxu0 }
 0x221   :  { %3237 = vst [vmem:[%s5650_s3 + $0x10] sm:$0xff] %v3845_v7  ;;  %v3301_v13 = vadd.f32 %v3845_v7, %v3300_v55  ;;  %v3374_v14 = vmul.f32 %v3845_v7, %v3845_v7  ;;  %v3847_v15 = vadd.f32 %v3846_v8, %v2991_v9  ;;  %2625 = vmatmul.mubr.bf16.gmra.mrb[112].mxu1 %v3746_v2 }
 0x222   :  { %3203 = vmatmul.mubr.bf16.gmra.mrb[112].mxu0 %v3750_v5  ;;  %2632 = vmatprep.mubr.bf16.mxu1 %v3755_v6  ;;  %v3762_v55 = vcombine.low %v265_v19, %v269_v20 }
 0x223   :  { %v3437_v16 = vadd.f32 %v3436_v61, %v3374_v14  ;;  %3238 = vst [vmem:[%s5650_s3 + $0x18] sm:$0xff] %v3847_v15  ;;  %v3302_v17 = vadd.f32 %v3847_v15, %v3301_v13  ;;  %v3375_v18 = vmul.f32 %v3847_v15, %v3847_v15  ;;  %3210 = vmatprep.mubr.bf16.mxu0 %v3759_v11 }
 0x224   :  { %v2418_v21 = vpop.f32.mrb[8].mxu1  ;;  %v3770_v13 = vcombine.low %v273_v46, %v277_v47 }
 0x225   :  { %v3438_v24 = vadd.f32 %v3437_v16, %v3375_v18  ;;  %v3848_v25 = vadd.f32 %v5318_v33, %v2418_v21  ;;  %v2996_v26 = vpop.f32.mrb[8].mxu0  ;;  %v2420_v27 = vpop.f32.mrb[9].mxu1  ;;  %v3774_v16 = vcombine.low %v275_v49, %v279_v50 }
 0x226   :  { %v2998_v29 = vpop.f32.mrb[9].mxu0  ;;  %v2421_v30 = vpop.f32.mrb[10].mxu1 }
 0x227   :  { %v3849_v34 = vadd.f32 %v3848_v25, %v2996_v26  ;;  %v3850_v35 = vadd.f32 %v5318_v33, %v2421_v30  ;;  %v2999_v36 = vpop.f32.mrb[10].mxu0  ;;  %v2423_v37 = vpop.f32.mrb[11].mxu1 }
 0x228   :  { %v3001_v39 = vpop.f32.mrb[11].mxu0 }
 0x229   :  { %3239 = vst [vmem:[%s5650_s3 + $0x20] sm:$0xff] %v3849_v34  ;;  %v3303_v40 = vadd.f32 %v3849_v34, %v3302_v17  ;;  %v3376_v41 = vmul.f32 %v3849_v34, %v3849_v34  ;;  %v3851_v42 = vadd.f32 %v3850_v35, %v2999_v36  ;;  %2633 = vmatmul.mubr.bf16.gmra.mrb[116].mxu1 %v3754_v28 }
 0x22a   :  { %3211 = vmatmul.mubr.bf16.gmra.mrb[116].mxu0 %v3758_v31  ;;  %2640 = vmatprep.mubr.bf16.mxu1 %v3763_v32 }
 0x22b   :  { %v3439_v43 = vadd.f32 %v3438_v24, %v3376_v41  ;;  %3240 = vst [vmem:[%s5650_s3 + $0x28] sm:$0xff] %v3851_v42  ;;  %v3304_v44 = vadd.f32 %v3851_v42, %v3303_v40  ;;  %v3377_v45 = vmul.f32 %v3851_v42, %v3851_v42  ;;  %3218 = vmatprep.mubr.bf16.mxu0 %v3767_v38 }
 0x22c   :  { %v2426_v48 = vpop.f32.mrb[12].mxu1 }
 0x22d   :  { %v3440_v51 = vadd.f32 %v3439_v43, %v3377_v45  ;;  %v3852_v52 = vadd.f32 %v5318_v33, %v2426_v48  ;;  %v3004_v53 = vpop.f32.mrb[12].mxu0  ;;  %v2428_v54 = vpop.f32.mrb[13].mxu1 }
 0x22e   :  { %v3006_v56 = vpop.f32.mrb[13].mxu0  ;;  %v2429_v57 = vpop.f32.mrb[14].mxu1 }
 0x22f   :  { %v3853_v59 = vadd.f32 %v3852_v52, %v3004_v53  ;;  %v3854_v60 = vadd.f32 %v5318_v33, %v2429_v57  ;;  %v3007_v61 = vpop.f32.mrb[14].mxu0  ;;  %v2431_v62 = vpop.f32.mrb[15].mxu1 }
 0x230   :  { %v3009_v1 = vpop.f32.mrb[15].mxu0 }
 0x231   :  { %3241 = vst [vmem:[%s5650_s3 + $0x30] sm:$0xff] %v3853_v59  ;;  %v3305_v2 = vadd.f32 %v3853_v59, %v3304_v44  ;;  %v3378_v3 = vmul.f32 %v3853_v59, %v3853_v59  ;;  %v3855_v4 = vadd.f32 %v3854_v60, %v3007_v61  ;;  %2641 = vmatmul.mubr.bf16.gmra.mrb[120].mxu1 %v3762_v55 }
 0x232   :  { %3219 = vmatmul.mubr.bf16.gmra.mrb[120].mxu0 %v3766_v0  ;;  %2648 = vmatprep.mubr.bf16.mxu1 %v3771_v58 }
 0x233   :  { %v3441_v5 = vadd.f32 %v3440_v51, %v3378_v3  ;;  %3242 = vst [vmem:[%s5650_s3 + $0x38] sm:$0xff] %v3855_v4  ;;  %v3306_v6 = vadd.f32 %v3855_v4, %v3305_v2  ;;  %v3379_v7 = vmul.f32 %v3855_v4, %v3855_v4  ;;  %3226 = vmatprep.mubr.bf16.mxu0 %v3775_v63 }
 0x234   :  { %v2434_v8 = vpop.f32.mrb[16].mxu1 }
 0x235   :  { %v3442_v9 = vadd.f32 %v3441_v5, %v3379_v7  ;;  %v3856_v10 = vadd.f32 %v5318_v33, %v2434_v8  ;;  %v3012_v11 = vpop.f32.mrb[16].mxu0  ;;  %v2436_v12 = vpop.f32.mrb[17].mxu1 }
 0x236   :  { %v3014_v14 = vpop.f32.mrb[17].mxu0  ;;  %v2437_v15 = vpop.f32.mrb[18].mxu1 }
 0x237   :  { %v3857_v17 = vadd.f32 %v3856_v10, %v3012_v11  ;;  %v3858_v18 = vadd.f32 %v5318_v33, %v2437_v15  ;;  %v3015_v19 = vpop.f32.mrb[18].mxu0  ;;  %v2439_v20 = vpop.f32.mrb[19].mxu1 }
 0x238   :  { %v3017_v21 = vpop.f32.mrb[19].mxu0 }
 0x239   :  { %3243 = vst [vmem:[%s5650_s3 + $0x40] sm:$0xff] %v3857_v17  ;;  %v3307_v22 = vadd.f32 %v3857_v17, %v3306_v6  ;;  %v3380_v23 = vmul.f32 %v3857_v17, %v3857_v17  ;;  %v3859_v24 = vadd.f32 %v3858_v18, %v3015_v19  ;;  %2649 = vmatmul.mubr.bf16.gmra.mrb[124].mxu1 %v3770_v13 }
 0x23a   :  { %3227 = vmatmul.mubr.bf16.gmra.mrb[124].mxu0 %v3774_v16 }
 0x23b   :  { %v3443_v25 = vadd.f32 %v3442_v9, %v3380_v23  ;;  %3244 = vst [vmem:[%s5650_s3 + $0x48] sm:$0xff] %v3859_v24  ;;  %v3308_v26 = vadd.f32 %v3859_v24, %v3307_v22  ;;  %v3381_v27 = vmul.f32 %v3859_v24, %v3859_v24 }
 0x23c   :  { %v2442_v28 = vpop.f32.mrb[20].mxu1 }
 0x23d   :  { %v3444_v29 = vadd.f32 %v3443_v25, %v3381_v27  ;;  %v3860_v30 = vadd.f32 %v5318_v33, %v2442_v28  ;;  %v3020_v31 = vpop.f32.mrb[20].mxu0  ;;  %v2444_v32 = vpop.f32.mrb[21].mxu1 }
 0x23e   :  { %v3022_v34 = vpop.f32.mrb[21].mxu0  ;;  %v2445_v35 = vpop.f32.mrb[22].mxu1 }
 0x23f   :  { %v3861_v36 = vadd.f32 %v3860_v30, %v3020_v31  ;;  %v3862_v37 = vadd.f32 %v5318_v33, %v2445_v35  ;;  %v3023_v38 = vpop.f32.mrb[22].mxu0  ;;  %v2447_v39 = vpop.f32.mrb[23].mxu1 }
 0x240   :  { %v3025_v40 = vpop.f32.mrb[23].mxu0 }
 0x241   :  { %3245 = vst [vmem:[%s5650_s3 + $0x50] sm:$0xff] %v3861_v36  ;;  %v3309_v41 = vadd.f32 %v3861_v36, %v3308_v26  ;;  %v3382_v42 = vmul.f32 %v3861_v36, %v3861_v36  ;;  %v3863_v43 = vadd.f32 %v3862_v37, %v3023_v38 }
 0x243   :  { %v3445_v44 = vadd.f32 %v3444_v29, %v3382_v42  ;;  %3246 = vst [vmem:[%s5650_s3 + $0x58] sm:$0xff] %v3863_v43  ;;  %v3310_v45 = vadd.f32 %v3863_v43, %v3309_v41  ;;  %v3383_v46 = vmul.f32 %v3863_v43, %v3863_v43 }
 0x244   :  { %v2450_v47 = vpop.f32.mrb[24].mxu1 }
 0x245   :  { %v3446_v48 = vadd.f32 %v3445_v44, %v3383_v46  ;;  %v3864_v49 = vadd.f32 %v5318_v33, %v2450_v47  ;;  %v3028_v50 = vpop.f32.mrb[24].mxu0  ;;  %v2452_v51 = vpop.f32.mrb[25].mxu1 }
 0x246   :  { %v3030_v52 = vpop.f32.mrb[25].mxu0  ;;  %v2453_v53 = vpop.f32.mrb[26].mxu1 }
 0x247   :  { %v3865_v54 = vadd.f32 %v3864_v49, %v3028_v50  ;;  %v3866_v55 = vadd.f32 %v5318_v33, %v2453_v53  ;;  %v3031_v56 = vpop.f32.mrb[26].mxu0  ;;  %v2455_v57 = vpop.f32.mrb[27].mxu1 }
 0x248   :  { %v3033_v0 = vpop.f32.mrb[27].mxu0 }
 0x249   :  { %3247 = vst [vmem:[%s5650_s3 + $0x60] sm:$0xff] %v3865_v54  ;;  %v3311_v58 = vadd.f32 %v3865_v54, %v3310_v45  ;;  %v3384_v59 = vmul.f32 %v3865_v54, %v3865_v54  ;;  %v3867_v60 = vadd.f32 %v3866_v55, %v3031_v56 }
 0x24b   :  { %v3447_v61 = vadd.f32 %v3446_v48, %v3384_v59  ;;  %3248 = vst [vmem:[%s5650_s3 + $0x68] sm:$0xff] %v3867_v60  ;;  %v3312_v62 = vadd.f32 %v3867_v60, %v3311_v58  ;;  %v3385_v63 = vmul.f32 %v3867_v60, %v3867_v60 }
 0x24c   :  { %v2458_v1 = vpop.f32.mrb[28].mxu1 }
 0x24d   :  { %v3448_v2 = vadd.f32 %v3447_v61, %v3385_v63  ;;  %v3868_v3 = vadd.f32 %v5318_v33, %v2458_v1  ;;  %v3036_v4 = vpop.f32.mrb[28].mxu0  ;;  %v2460_v5 = vpop.f32.mrb[29].mxu1 }
 0x24e   :  { %v3038_v6 = vpop.f32.mrb[29].mxu0  ;;  %v2461_v7 = vpop.f32.mrb[30].mxu1 }
 0x24f   :  { %v3869_v8 = vadd.f32 %v3868_v3, %v3036_v4  ;;  %v3870_v9 = vadd.f32 %v5318_v33, %v2461_v7  ;;  %v3039_v10 = vpop.f32.mrb[30].mxu0  ;;  %v2463_v11 = vpop.f32.mrb[31].mxu1 }
 0x250   :  { %v3041_v12 = vpop.f32.mrb[31].mxu0 }
 0x251   :  { %3249 = vst [vmem:[%s5650_s3 + $0x70] sm:$0xff] %v3869_v8  ;;  %v3313_v13 = vadd.f32 %v3869_v8, %v3312_v62  ;;  %v3386_v14 = vmul.f32 %v3869_v8, %v3869_v8  ;;  %v3871_v15 = vadd.f32 %v3870_v9, %v3039_v10 }
 0x253   :  { %v3449_v16 = vadd.f32 %v3448_v2, %v3386_v14  ;;  %3250 = vst [vmem:[%s5650_s3 + $0x78] sm:$0xff] %v3871_v15  ;;  %v3314_v17 = vadd.f32 %v3871_v15, %v3313_v13  ;;  %v3387_v18 = vmul.f32 %v3871_v15, %v3871_v15 }
 0x254   :  { %v2466_v19 = vpop.f32.mrb[32].mxu1 }
 0x255   :  { %v3450_v20 = vadd.f32 %v3449_v16, %v3387_v18  ;;  %v3872_v21 = vadd.f32 %v5318_v33, %v2466_v19  ;;  %v3044_v22 = vpop.f32.mrb[32].mxu0  ;;  %v2468_v23 = vpop.f32.mrb[33].mxu1 }
 0x256   :  { %v3046_v24 = vpop.f32.mrb[33].mxu0  ;;  %v2469_v25 = vpop.f32.mrb[34].mxu1 }
 0x257   :  { %v3873_v26 = vadd.f32 %v3872_v21, %v3044_v22  ;;  %v3874_v27 = vadd.f32 %v5318_v33, %v2469_v25  ;;  %v3047_v28 = vpop.f32.mrb[34].mxu0  ;;  %v2471_v29 = vpop.f32.mrb[35].mxu1 }
 0x258   :  { %v3049_v30 = vpop.f32.mrb[35].mxu0 }
 0x259   :  { %3251 = vst [vmem:[%s5650_s3 + $0x80] sm:$0xff] %v3873_v26  ;;  %v3315_v31 = vadd.f32 %v3873_v26, %v3314_v17  ;;  %v3388_v32 = vmul.f32 %v3873_v26, %v3873_v26  ;;  %v3875_v34 = vadd.f32 %v3874_v27, %v3047_v28 }
 0x25b   :  { %v3451_v35 = vadd.f32 %v3450_v20, %v3388_v32  ;;  %3252 = vst [vmem:[%s5650_s3 + $0x88] sm:$0xff] %v3875_v34  ;;  %v3316_v36 = vadd.f32 %v3875_v34, %v3315_v31  ;;  %v3389_v37 = vmul.f32 %v3875_v34, %v3875_v34 }
 0x25c   :  { %v2474_v38 = vpop.f32.mrb[36].mxu1 }
 0x25d   :  { %v3452_v39 = vadd.f32 %v3451_v35, %v3389_v37  ;;  %v3876_v40 = vadd.f32 %v5318_v33, %v2474_v38  ;;  %v3052_v41 = vpop.f32.mrb[36].mxu0  ;;  %v2476_v42 = vpop.f32.mrb[37].mxu1 }
 0x25e   :  { %v3054_v43 = vpop.f32.mrb[37].mxu0  ;;  %v2477_v44 = vpop.f32.mrb[38].mxu1 }
 0x25f   :  { %v3877_v45 = vadd.f32 %v3876_v40, %v3052_v41  ;;  %v3878_v46 = vadd.f32 %v5318_v33, %v2477_v44  ;;  %v3055_v47 = vpop.f32.mrb[38].mxu0  ;;  %v2479_v48 = vpop.f32.mrb[39].mxu1 }
 0x260   :  { %v3057_v49 = vpop.f32.mrb[39].mxu0 }
 0x261   :  { %3253 = vst [vmem:[%s5650_s3 + $0x90] sm:$0xff] %v3877_v45  ;;  %v3317_v50 = vadd.f32 %v3877_v45, %v3316_v36  ;;  %v3390_v51 = vmul.f32 %v3877_v45, %v3877_v45  ;;  %v3879_v52 = vadd.f32 %v3878_v46, %v3055_v47 }
 0x263   :  { %v3453_v53 = vadd.f32 %v3452_v39, %v3390_v51  ;;  %3254 = vst [vmem:[%s5650_s3 + $0x98] sm:$0xff] %v3879_v52  ;;  %v3318_v54 = vadd.f32 %v3879_v52, %v3317_v50  ;;  %v3391_v55 = vmul.f32 %v3879_v52, %v3879_v52 }
 0x264   :  { %v2482_v56 = vpop.f32.mrb[40].mxu1 }
 0x265   :  { %v3454_v57 = vadd.f32 %v3453_v53, %v3391_v55  ;;  %v3880_v0 = vadd.f32 %v5318_v33, %v2482_v56  ;;  %v3060_v58 = vpop.f32.mrb[40].mxu0  ;;  %v2484_v59 = vpop.f32.mrb[41].mxu1 }
 0x266   :  { %v3062_v60 = vpop.f32.mrb[41].mxu0  ;;  %v2485_v61 = vpop.f32.mrb[42].mxu1 }
 0x267   :  { %v3881_v62 = vadd.f32 %v3880_v0, %v3060_v58  ;;  %v3882_v63 = vadd.f32 %v5318_v33, %v2485_v61  ;;  %v3063_v1 = vpop.f32.mrb[42].mxu0  ;;  %v2487_v2 = vpop.f32.mrb[43].mxu1 }
 0x268   :  { %v3065_v3 = vpop.f32.mrb[43].mxu0 }
 0x269   :  { %3255 = vst [vmem:[%s5650_s3 + $0xa0] sm:$0xff] %v3881_v62  ;;  %v3319_v4 = vadd.f32 %v3881_v62, %v3318_v54  ;;  %v3392_v5 = vmul.f32 %v3881_v62, %v3881_v62  ;;  %v3883_v6 = vadd.f32 %v3882_v63, %v3063_v1 }
 0x26b   :  { %v3455_v7 = vadd.f32 %v3454_v57, %v3392_v5  ;;  %3256 = vst [vmem:[%s5650_s3 + $0xa8] sm:$0xff] %v3883_v6  ;;  %v3320_v8 = vadd.f32 %v3883_v6, %v3319_v4  ;;  %v3393_v9 = vmul.f32 %v3883_v6, %v3883_v6 }
 0x26c   :  { %v2490_v10 = vpop.f32.mrb[44].mxu1 }
 0x26d   :  { %v3456_v11 = vadd.f32 %v3455_v7, %v3393_v9  ;;  %v3884_v12 = vadd.f32 %v5318_v33, %v2490_v10  ;;  %v3068_v13 = vpop.f32.mrb[44].mxu0  ;;  %v2492_v14 = vpop.f32.mrb[45].mxu1 }
 0x26e   :  { %v3070_v15 = vpop.f32.mrb[45].mxu0  ;;  %v2493_v16 = vpop.f32.mrb[46].mxu1 }
 0x26f   :  { %v3885_v17 = vadd.f32 %v3884_v12, %v3068_v13  ;;  %v3886_v18 = vadd.f32 %v5318_v33, %v2493_v16  ;;  %v3071_v19 = vpop.f32.mrb[46].mxu0  ;;  %v2495_v20 = vpop.f32.mrb[47].mxu1 }
 0x270   :  { %v3073_v21 = vpop.f32.mrb[47].mxu0 }
 0x271   :  { %3257 = vst [vmem:[%s5650_s3 + $0xb0] sm:$0xff] %v3885_v17  ;;  %v3321_v22 = vadd.f32 %v3885_v17, %v3320_v8  ;;  %v3394_v23 = vmul.f32 %v3885_v17, %v3885_v17  ;;  %v3887_v24 = vadd.f32 %v3886_v18, %v3071_v19 }
 0x273   :  { %v3457_v25 = vadd.f32 %v3456_v11, %v3394_v23  ;;  %3258 = vst [vmem:[%s5650_s3 + $0xb8] sm:$0xff] %v3887_v24  ;;  %v3322_v26 = vadd.f32 %v3887_v24, %v3321_v22  ;;  %v3395_v27 = vmul.f32 %v3887_v24, %v3887_v24 }
 0x274   :  { %v2498_v28 = vpop.f32.mrb[48].mxu1 }
 0x275   :  { %v3458_v29 = vadd.f32 %v3457_v25, %v3395_v27  ;;  %v3888_v30 = vadd.f32 %v5318_v33, %v2498_v28  ;;  %v3076_v31 = vpop.f32.mrb[48].mxu0  ;;  %v2500_v32 = vpop.f32.mrb[49].mxu1 }
 0x276   :  { %v3078_v34 = vpop.f32.mrb[49].mxu0  ;;  %v2501_v35 = vpop.f32.mrb[50].mxu1 }
 0x277   :  { %v3889_v36 = vadd.f32 %v3888_v30, %v3076_v31  ;;  %v3890_v37 = vadd.f32 %v5318_v33, %v2501_v35  ;;  %v3079_v38 = vpop.f32.mrb[50].mxu0  ;;  %v2503_v39 = vpop.f32.mrb[51].mxu1 }
 0x278   :  { %v3081_v40 = vpop.f32.mrb[51].mxu0  ;;  %v4292_v39 = vmov 0.0  }
 0x279   :  { %3259 = vst [vmem:[%s5650_s3 + $0xc0] sm:$0xff] %v3889_v36  ;;  %v3323_v41 = vadd.f32 %v3889_v36, %v3322_v26  ;;  %v3396_v42 = vmul.f32 %v3889_v36, %v3889_v36  ;;  %v3891_v43 = vadd.f32 %v3890_v37, %v3079_v38  ;;  %22 = vst [vmem:[%s5651_s4] sm:$0x1] %v4292_v39 }
 0x27a   :  { %23 = vst [vmem:[%s5652_s5] sm:$0x1] %v4292_v39 }
 0x27b   :  { %v3459_v44 = vadd.f32 %v3458_v29, %v3396_v42  ;;  %3260 = vst [vmem:[%s5650_s3 + $0xc8] sm:$0xff] %v3891_v43  ;;  %v3324_v45 = vadd.f32 %v3891_v43, %v3323_v41  ;;  %v3397_v46 = vmul.f32 %v3891_v43, %v3891_v43 }
 0x27c   :  { %v2506_v47 = vpop.f32.mrb[52].mxu1 }
 0x27d   :  { %v3460_v48 = vadd.f32 %v3459_v44, %v3397_v46  ;;  %v3892_v49 = vadd.f32 %v5318_v33, %v2506_v47  ;;  %v3084_v50 = vpop.f32.mrb[52].mxu0  ;;  %v2508_v51 = vpop.f32.mrb[53].mxu1 }
 0x27e   :  { %v3086_v52 = vpop.f32.mrb[53].mxu0  ;;  %v2509_v53 = vpop.f32.mrb[54].mxu1 }
 0x27f   :  { %v3893_v54 = vadd.f32 %v3892_v49, %v3084_v50  ;;  %v3894_v55 = vadd.f32 %v5318_v33, %v2509_v53  ;;  %v3087_v56 = vpop.f32.mrb[54].mxu0  ;;  %v2511_v57 = vpop.f32.mrb[55].mxu1 }
 0x280   :  { %v3089_v0 = vpop.f32.mrb[55].mxu0 }
 0x281   :  { %3261 = vst [vmem:[%s5650_s3 + $0xd0] sm:$0xff] %v3893_v54  ;;  %v3325_v58 = vadd.f32 %v3893_v54, %v3324_v45  ;;  %v3398_v59 = vmul.f32 %v3893_v54, %v3893_v54  ;;  %v3895_v60 = vadd.f32 %v3894_v55, %v3087_v56 }
 0x283   :  { %v3461_v61 = vadd.f32 %v3460_v48, %v3398_v59  ;;  %3262 = vst [vmem:[%s5650_s3 + $0xd8] sm:$0xff] %v3895_v60  ;;  %v3326_v62 = vadd.f32 %v3895_v60, %v3325_v58  ;;  %v3399_v63 = vmul.f32 %v3895_v60, %v3895_v60 }
 0x284   :  { %v2514_v1 = vpop.f32.mrb[56].mxu1 }
 0x285   :  { %v3462_v2 = vadd.f32 %v3461_v61, %v3399_v63  ;;  %v3896_v3 = vadd.f32 %v5318_v33, %v2514_v1  ;;  %v3092_v4 = vpop.f32.mrb[56].mxu0  ;;  %v2516_v5 = vpop.f32.mrb[57].mxu1 }
 0x286   :  { %v3094_v6 = vpop.f32.mrb[57].mxu0  ;;  %v2517_v7 = vpop.f32.mrb[58].mxu1 }
 0x287   :  { %v3897_v8 = vadd.f32 %v3896_v3, %v3092_v4  ;;  %v3898_v9 = vadd.f32 %v5318_v33, %v2517_v7  ;;  %v3095_v10 = vpop.f32.mrb[58].mxu0  ;;  %v2519_v11 = vpop.f32.mrb[59].mxu1 }
 0x288   :  { %v3097_v12 = vpop.f32.mrb[59].mxu0 }
 0x289   :  { %3263 = vst [vmem:[%s5650_s3 + $0xe0] sm:$0xff] %v3897_v8  ;;  %v3327_v13 = vadd.f32 %v3897_v8, %v3326_v62  ;;  %v3400_v14 = vmul.f32 %v3897_v8, %v3897_v8  ;;  %v3899_v15 = vadd.f32 %v3898_v9, %v3095_v10 }
 0x28b   :  { %v3463_v16 = vadd.f32 %v3462_v2, %v3400_v14  ;;  %3264 = vst [vmem:[%s5650_s3 + $0xe8] sm:$0xff] %v3899_v15  ;;  %v3328_v17 = vadd.f32 %v3899_v15, %v3327_v13  ;;  %v3401_v18 = vmul.f32 %v3899_v15, %v3899_v15 }
 0x28c   :  { %v2522_v19 = vpop.f32.mrb[60].mxu1 }
 0x28d   :  { %v3464_v20 = vadd.f32 %v3463_v16, %v3401_v18  ;;  %v3900_v21 = vadd.f32 %v5318_v33, %v2522_v19  ;;  %v3100_v22 = vpop.f32.mrb[60].mxu0  ;;  %v2524_v23 = vpop.f32.mrb[61].mxu1 }
 0x28e   :  { %v3102_v24 = vpop.f32.mrb[61].mxu0  ;;  %v2525_v25 = vpop.f32.mrb[62].mxu1 }
 0x28f   :  { %v3901_v26 = vadd.f32 %v3900_v21, %v3100_v22  ;;  %v3902_v27 = vadd.f32 %v5318_v33, %v2525_v25  ;;  %v3103_v28 = vpop.f32.mrb[62].mxu0  ;;  %v2527_v29 = vpop.f32.mrb[63].mxu1 }
 0x290   :  { %v3105_v30 = vpop.f32.mrb[63].mxu0 }
 0x291   :  { %3265 = vst [vmem:[%s5650_s3 + $0xf0] sm:$0xff] %v3901_v26  ;;  %v3329_v31 = vadd.f32 %v3901_v26, %v3328_v17  ;;  %v3402_v32 = vmul.f32 %v3901_v26, %v3901_v26  ;;  %v3903_v34 = vadd.f32 %v3902_v27, %v3103_v28 }
 0x293   :  { %v3465_v35 = vadd.f32 %v3464_v20, %v3402_v32  ;;  %3266 = vst [vmem:[%s5650_s3 + $0xf8] sm:$0xff] %v3903_v34  ;;  %v3330_v36 = vadd.f32 %v3903_v34, %v3329_v31  ;;  %v3403_v37 = vmul.f32 %v3903_v34, %v3903_v34 }
 0x294   :  { %v2530_v38 = vpop.f32.mrb[64].mxu1 }
 0x295   :  { %v3466_v40 = vadd.f32 %v3465_v35, %v3403_v37  ;;  %v3904_v41 = vadd.f32 %v5318_v33, %v2530_v38  ;;  %v3108_v42 = vpop.f32.mrb[64].mxu0  ;;  %v2532_v43 = vpop.f32.mrb[65].mxu1 }
 0x296   :  { %v3110_v44 = vpop.f32.mrb[65].mxu0  ;;  %v2533_v45 = vpop.f32.mrb[66].mxu1 }
 0x297   :  { %v3905_v46 = vadd.f32 %v3904_v41, %v3108_v42  ;;  %v3906_v47 = vadd.f32 %v5318_v33, %v2533_v45  ;;  %v3111_v48 = vpop.f32.mrb[66].mxu0  ;;  %v2535_v49 = vpop.f32.mrb[67].mxu1 }
 0x298   :  { %v3113_v50 = vpop.f32.mrb[67].mxu0 }
 0x299   :  { %3267 = vst [vmem:[%s5650_s3 + $0x100] sm:$0xff] %v3905_v46  ;;  %v3331_v51 = vadd.f32 %v3905_v46, %v3330_v36  ;;  %v3404_v52 = vmul.f32 %v3905_v46, %v3905_v46  ;;  %v3907_v53 = vadd.f32 %v3906_v47, %v3111_v48 }
 0x29b   :  { %v3467_v54 = vadd.f32 %v3466_v40, %v3404_v52  ;;  %3268 = vst [vmem:[%s5650_s3 + $0x108] sm:$0xff] %v3907_v53  ;;  %v3332_v55 = vadd.f32 %v3907_v53, %v3331_v51  ;;  %v3405_v56 = vmul.f32 %v3907_v53, %v3907_v53 }
 0x29c   :  { %v2538_v57 = vpop.f32.mrb[68].mxu1 }
 0x29d   :  { %v3468_v0 = vadd.f32 %v3467_v54, %v3405_v56  ;;  %v3908_v58 = vadd.f32 %v5318_v33, %v2538_v57  ;;  %v3116_v59 = vpop.f32.mrb[68].mxu0  ;;  %v2540_v60 = vpop.f32.mrb[69].mxu1 }
 0x29e   :  { %v3118_v61 = vpop.f32.mrb[69].mxu0  ;;  %v2541_v62 = vpop.f32.mrb[70].mxu1 }
 0x29f   :  { %v3909_v63 = vadd.f32 %v3908_v58, %v3116_v59  ;;  %v3910_v1 = vadd.f32 %v5318_v33, %v2541_v62  ;;  %v3119_v2 = vpop.f32.mrb[70].mxu0  ;;  %v2543_v3 = vpop.f32.mrb[71].mxu1 }
 0x2a0   :  { %v3121_v4 = vpop.f32.mrb[71].mxu0 }
 0x2a1   :  { %3269 = vst [vmem:[%s5650_s3 + $0x110] sm:$0xff] %v3909_v63  ;;  %v3333_v5 = vadd.f32 %v3909_v63, %v3332_v55  ;;  %v3406_v6 = vmul.f32 %v3909_v63, %v3909_v63  ;;  %v3911_v7 = vadd.f32 %v3910_v1, %v3119_v2 }
 0x2a3   :  { %v3469_v8 = vadd.f32 %v3468_v0, %v3406_v6  ;;  %3270 = vst [vmem:[%s5650_s3 + $0x118] sm:$0xff] %v3911_v7  ;;  %v3334_v9 = vadd.f32 %v3911_v7, %v3333_v5  ;;  %v3407_v10 = vmul.f32 %v3911_v7, %v3911_v7 }
 0x2a4   :  { %v2546_v11 = vpop.f32.mrb[72].mxu1 }
 0x2a5   :  { %v3470_v12 = vadd.f32 %v3469_v8, %v3407_v10  ;;  %v3912_v13 = vadd.f32 %v5318_v33, %v2546_v11  ;;  %v3124_v14 = vpop.f32.mrb[72].mxu0  ;;  %v2548_v15 = vpop.f32.mrb[73].mxu1 }
 0x2a6   :  { %v3126_v16 = vpop.f32.mrb[73].mxu0  ;;  %v2549_v17 = vpop.f32.mrb[74].mxu1 }
 0x2a7   :  { %v3913_v18 = vadd.f32 %v3912_v13, %v3124_v14  ;;  %v3914_v19 = vadd.f32 %v5318_v33, %v2549_v17  ;;  %v3127_v20 = vpop.f32.mrb[74].mxu0  ;;  %v2551_v21 = vpop.f32.mrb[75].mxu1 }
 0x2a8   :  { %v3129_v22 = vpop.f32.mrb[75].mxu0 }
 0x2a9   :  { %3271 = vst [vmem:[%s5650_s3 + $0x120] sm:$0xff] %v3913_v18  ;;  %v3335_v23 = vadd.f32 %v3913_v18, %v3334_v9  ;;  %v3408_v24 = vmul.f32 %v3913_v18, %v3913_v18  ;;  %v3915_v25 = vadd.f32 %v3914_v19, %v3127_v20 }
 0x2ab   :  { %v3471_v26 = vadd.f32 %v3470_v12, %v3408_v24  ;;  %3272 = vst [vmem:[%s5650_s3 + $0x128] sm:$0xff] %v3915_v25  ;;  %v3336_v27 = vadd.f32 %v3915_v25, %v3335_v23  ;;  %v3409_v28 = vmul.f32 %v3915_v25, %v3915_v25 }
 0x2ac   :  { %v2554_v29 = vpop.f32.mrb[76].mxu1 }
 0x2ad   :  { %v3472_v30 = vadd.f32 %v3471_v26, %v3409_v28  ;;  %v3916_v31 = vadd.f32 %v5318_v33, %v2554_v29  ;;  %v3132_v32 = vpop.f32.mrb[76].mxu0  ;;  %v2556_v34 = vpop.f32.mrb[77].mxu1 }
 0x2ae   :  { %v3134_v35 = vpop.f32.mrb[77].mxu0  ;;  %v2557_v36 = vpop.f32.mrb[78].mxu1 }
 0x2af   :  { %v3917_v37 = vadd.f32 %v3916_v31, %v3132_v32  ;;  %v3918_v38 = vadd.f32 %v5318_v33, %v2557_v36  ;;  %v3135_v39 = vpop.f32.mrb[78].mxu0  ;;  %v2559_v40 = vpop.f32.mrb[79].mxu1 }
 0x2b0   :  { %v3137_v41 = vpop.f32.mrb[79].mxu0 }
 0x2b1   :  { %3273 = vst [vmem:[%s5650_s3 + $0x130] sm:$0xff] %v3917_v37  ;;  %v3337_v42 = vadd.f32 %v3917_v37, %v3336_v27  ;;  %v3410_v43 = vmul.f32 %v3917_v37, %v3917_v37  ;;  %v3919_v44 = vadd.f32 %v3918_v38, %v3135_v39 }
 0x2b3   :  { %v3473_v45 = vadd.f32 %v3472_v30, %v3410_v43  ;;  %3274 = vst [vmem:[%s5650_s3 + $0x138] sm:$0xff] %v3919_v44  ;;  %v3338_v46 = vadd.f32 %v3919_v44, %v3337_v42  ;;  %v3411_v47 = vmul.f32 %v3919_v44, %v3919_v44 }
 0x2b4   :  { %v2562_v48 = vpop.f32.mrb[80].mxu1 }
 0x2b5   :  { %v3474_v49 = vadd.f32 %v3473_v45, %v3411_v47  ;;  %v3920_v50 = vadd.f32 %v5318_v33, %v2562_v48  ;;  %v3140_v51 = vpop.f32.mrb[80].mxu0  ;;  %v2564_v52 = vpop.f32.mrb[81].mxu1 }
 0x2b6   :  { %v3142_v53 = vpop.f32.mrb[81].mxu0  ;;  %v2565_v54 = vpop.f32.mrb[82].mxu1 }
 0x2b7   :  { %v3921_v55 = vadd.f32 %v3920_v50, %v3140_v51  ;;  %v3922_v56 = vadd.f32 %v5318_v33, %v2565_v54  ;;  %v3143_v57 = vpop.f32.mrb[82].mxu0  ;;  %v2567_v0 = vpop.f32.mrb[83].mxu1 }
 0x2b8   :  { %v3145_v58 = vpop.f32.mrb[83].mxu0 }
 0x2b9   :  { %3275 = vst [vmem:[%s5650_s3 + $0x140] sm:$0xff] %v3921_v55  ;;  %v3339_v59 = vadd.f32 %v3921_v55, %v3338_v46  ;;  %v3412_v60 = vmul.f32 %v3921_v55, %v3921_v55  ;;  %v3923_v61 = vadd.f32 %v3922_v56, %v3143_v57 }
 0x2bb   :  { %v3475_v62 = vadd.f32 %v3474_v49, %v3412_v60  ;;  %3276 = vst [vmem:[%s5650_s3 + $0x148] sm:$0xff] %v3923_v61  ;;  %v3340_v63 = vadd.f32 %v3923_v61, %v3339_v59  ;;  %v3413_v1 = vmul.f32 %v3923_v61, %v3923_v61 }
 0x2bc   :  { %v2570_v2 = vpop.f32.mrb[84].mxu1 }
 0x2bd   :  { %v3476_v3 = vadd.f32 %v3475_v62, %v3413_v1  ;;  %v3924_v4 = vadd.f32 %v5318_v33, %v2570_v2  ;;  %v3148_v5 = vpop.f32.mrb[84].mxu0  ;;  %v2572_v6 = vpop.f32.mrb[85].mxu1 }
 0x2be   :  { %v3150_v7 = vpop.f32.mrb[85].mxu0  ;;  %v2573_v8 = vpop.f32.mrb[86].mxu1 }
 0x2bf   :  { %v3925_v9 = vadd.f32 %v3924_v4, %v3148_v5  ;;  %v3926_v10 = vadd.f32 %v5318_v33, %v2573_v8  ;;  %v3151_v11 = vpop.f32.mrb[86].mxu0  ;;  %v2575_v12 = vpop.f32.mrb[87].mxu1 }
 0x2c0   :  { %v3153_v13 = vpop.f32.mrb[87].mxu0 }
 0x2c1   :  { %3277 = vst [vmem:[%s5650_s3 + $0x150] sm:$0xff] %v3925_v9  ;;  %v3341_v14 = vadd.f32 %v3925_v9, %v3340_v63  ;;  %v3414_v15 = vmul.f32 %v3925_v9, %v3925_v9  ;;  %v3927_v16 = vadd.f32 %v3926_v10, %v3151_v11 }
 0x2c3   :  { %v3477_v17 = vadd.f32 %v3476_v3, %v3414_v15  ;;  %3278 = vst [vmem:[%s5650_s3 + $0x158] sm:$0xff] %v3927_v16  ;;  %v3342_v18 = vadd.f32 %v3927_v16, %v3341_v14  ;;  %v3415_v19 = vmul.f32 %v3927_v16, %v3927_v16 }
 0x2c4   :  { %v2578_v20 = vpop.f32.mrb[88].mxu1 }
 0x2c5   :  { %v3478_v21 = vadd.f32 %v3477_v17, %v3415_v19  ;;  %v3928_v22 = vadd.f32 %v5318_v33, %v2578_v20  ;;  %v3156_v23 = vpop.f32.mrb[88].mxu0  ;;  %v2580_v24 = vpop.f32.mrb[89].mxu1 }
 0x2c6   :  { %v3158_v25 = vpop.f32.mrb[89].mxu0  ;;  %v2581_v26 = vpop.f32.mrb[90].mxu1 }
 0x2c7   :  { %v3929_v27 = vadd.f32 %v3928_v22, %v3156_v23  ;;  %v3930_v28 = vadd.f32 %v5318_v33, %v2581_v26  ;;  %v3159_v29 = vpop.f32.mrb[90].mxu0  ;;  %v2583_v30 = vpop.f32.mrb[91].mxu1  ;;  %v5561_v33 = vld [vmem:[%s5649_s2] ss:$0 sm:$0xff] }
 0x2c8   :  { %v3161_v31 = vpop.f32.mrb[91].mxu0 }
 0x2c9   :  { %3279 = vst [vmem:[%s5650_s3 + $0x160] sm:$0xff] %v3929_v27  ;;  %v3343_v32 = vadd.f32 %v3929_v27, %v3342_v18  ;;  %v3416_v34 = vmul.f32 %v3929_v27, %v3929_v27  ;;  %v3931_v35 = vadd.f32 %v3930_v28, %v3159_v29 }
 0x2cb   :  { %v3479_v36 = vadd.f32 %v3478_v21, %v3416_v34  ;;  %3280 = vst [vmem:[%s5650_s3 + $0x168] sm:$0xff] %v3931_v35  ;;  %v3344_v37 = vadd.f32 %v3931_v35, %v3343_v32  ;;  %v3417_v38 = vmul.f32 %v3931_v35, %v3931_v35 }
 0x2cc   :  { %v2586_v39 = vpop.f32.mrb[92].mxu1 }
 0x2cd   :  { %v3480_v40 = vadd.f32 %v3479_v36, %v3417_v38  ;;  %v3932_v41 = vadd.f32 %v5561_v33, %v2586_v39  ;;  %v3164_v42 = vpop.f32.mrb[92].mxu0  ;;  %v2588_v43 = vpop.f32.mrb[93].mxu1 }
 0x2ce   :  { %v3166_v44 = vpop.f32.mrb[93].mxu0  ;;  %v2589_v45 = vpop.f32.mrb[94].mxu1 }
 0x2cf   :  { %v3933_v46 = vadd.f32 %v3932_v41, %v3164_v42  ;;  %v3934_v47 = vadd.f32 %v5561_v33, %v2589_v45  ;;  %v3167_v48 = vpop.f32.mrb[94].mxu0  ;;  %v2591_v49 = vpop.f32.mrb[95].mxu1 }
 0x2d0   :  { %v3169_v50 = vpop.f32.mrb[95].mxu0 }
 0x2d1   :  { %3281 = vst [vmem:[%s5650_s3 + $0x170] sm:$0xff] %v3933_v46  ;;  %v3345_v51 = vadd.f32 %v3933_v46, %v3344_v37  ;;  %v3418_v52 = vmul.f32 %v3933_v46, %v3933_v46  ;;  %v3935_v53 = vadd.f32 %v3934_v47, %v3167_v48 }
 0x2d3   :  { %v3481_v54 = vadd.f32 %v3480_v40, %v3418_v52  ;;  %3282 = vst [vmem:[%s5650_s3 + $0x178] sm:$0xff] %v3935_v53  ;;  %v3346_v55 = vadd.f32 %v3935_v53, %v3345_v51  ;;  %v3419_v56 = vmul.f32 %v3935_v53, %v3935_v53 }
 0x2d4   :  { %v2594_v57 = vpop.f32.mrb[96].mxu1 }
 0x2d5   :  { %v3482_v0 = vadd.f32 %v3481_v54, %v3419_v56  ;;  %v3936_v58 = vadd.f32 %v5561_v33, %v2594_v57  ;;  %v3172_v59 = vpop.f32.mrb[96].mxu0  ;;  %v2596_v60 = vpop.f32.mrb[97].mxu1 }
 0x2d6   :  { %v3174_v61 = vpop.f32.mrb[97].mxu0  ;;  %v2597_v62 = vpop.f32.mrb[98].mxu1 }
 0x2d7   :  { %v3937_v63 = vadd.f32 %v3936_v58, %v3172_v59  ;;  %v3938_v1 = vadd.f32 %v5561_v33, %v2597_v62  ;;  %v3175_v2 = vpop.f32.mrb[98].mxu0  ;;  %v2599_v3 = vpop.f32.mrb[99].mxu1 }
 0x2d8   :  { %v3177_v4 = vpop.f32.mrb[99].mxu0 }
 0x2d9   :  { %3283 = vst [vmem:[%s5650_s3 + $0x180] sm:$0xff] %v3937_v63  ;;  %v3347_v5 = vadd.f32 %v3937_v63, %v3346_v55  ;;  %v3420_v6 = vmul.f32 %v3937_v63, %v3937_v63  ;;  %v3939_v7 = vadd.f32 %v3938_v1, %v3175_v2 }
 0x2db   :  { %v3483_v8 = vadd.f32 %v3482_v0, %v3420_v6  ;;  %3284 = vst [vmem:[%s5650_s3 + $0x188] sm:$0xff] %v3939_v7  ;;  %v3348_v9 = vadd.f32 %v3939_v7, %v3347_v5  ;;  %v3421_v10 = vmul.f32 %v3939_v7, %v3939_v7 }
 0x2dc   :  { %v2602_v11 = vpop.f32.mrb[100].mxu1 }
 0x2dd   :  { %v3484_v12 = vadd.f32 %v3483_v8, %v3421_v10  ;;  %v3940_v13 = vadd.f32 %v5561_v33, %v2602_v11  ;;  %v3180_v14 = vpop.f32.mrb[100].mxu0  ;;  %v2604_v15 = vpop.f32.mrb[101].mxu1 }
 0x2de   :  { %v3182_v16 = vpop.f32.mrb[101].mxu0  ;;  %v2605_v17 = vpop.f32.mrb[102].mxu1 }
 0x2df   :  { %v3941_v18 = vadd.f32 %v3940_v13, %v3180_v14  ;;  %v3942_v19 = vadd.f32 %v5561_v33, %v2605_v17  ;;  %v3183_v20 = vpop.f32.mrb[102].mxu0  ;;  %v2607_v21 = vpop.f32.mrb[103].mxu1 }
 0x2e0   :  { %v3185_v22 = vpop.f32.mrb[103].mxu0 }
 0x2e1   :  { %3285 = vst [vmem:[%s5650_s3 + $0x190] sm:$0xff] %v3941_v18  ;;  %v3349_v23 = vadd.f32 %v3941_v18, %v3348_v9  ;;  %v3422_v24 = vmul.f32 %v3941_v18, %v3941_v18  ;;  %v3943_v25 = vadd.f32 %v3942_v19, %v3183_v20 }
 0x2e3   :  { %v3485_v26 = vadd.f32 %v3484_v12, %v3422_v24  ;;  %3286 = vst [vmem:[%s5650_s3 + $0x198] sm:$0xff] %v3943_v25  ;;  %v3350_v27 = vadd.f32 %v3943_v25, %v3349_v23  ;;  %v3423_v28 = vmul.f32 %v3943_v25, %v3943_v25 }
 0x2e4   :  { %v2610_v29 = vpop.f32.mrb[104].mxu1 }
 0x2e5   :  { %v3486_v30 = vadd.f32 %v3485_v26, %v3423_v28  ;;  %v3944_v31 = vadd.f32 %v5561_v33, %v2610_v29  ;;  %v3188_v32 = vpop.f32.mrb[104].mxu0  ;;  %v2612_v34 = vpop.f32.mrb[105].mxu1 }
 0x2e6   :  { %v3190_v35 = vpop.f32.mrb[105].mxu0  ;;  %v2613_v36 = vpop.f32.mrb[106].mxu1 }
 0x2e7   :  { %v3945_v37 = vadd.f32 %v3944_v31, %v3188_v32  ;;  %v3946_v38 = vadd.f32 %v5561_v33, %v2613_v36  ;;  %v3191_v39 = vpop.f32.mrb[106].mxu0  ;;  %v2615_v40 = vpop.f32.mrb[107].mxu1 }
 0x2e8   :  { %v3193_v41 = vpop.f32.mrb[107].mxu0 }
 0x2e9   :  { %3287 = vst [vmem:[%s5650_s3 + $0x1a0] sm:$0xff] %v3945_v37  ;;  %v3351_v42 = vadd.f32 %v3945_v37, %v3350_v27  ;;  %v3424_v43 = vmul.f32 %v3945_v37, %v3945_v37  ;;  %v3947_v44 = vadd.f32 %v3946_v38, %v3191_v39 }
 0x2eb   :  { %v3487_v45 = vadd.f32 %v3486_v30, %v3424_v43  ;;  %3288 = vst [vmem:[%s5650_s3 + $0x1a8] sm:$0xff] %v3947_v44  ;;  %v3352_v46 = vadd.f32 %v3947_v44, %v3351_v42  ;;  %v3425_v47 = vmul.f32 %v3947_v44, %v3947_v44 }
 0x2ec   :  { %v2618_v48 = vpop.f32.mrb[108].mxu1 }
 0x2ed   :  { %v3488_v49 = vadd.f32 %v3487_v45, %v3425_v47  ;;  %v3948_v50 = vadd.f32 %v5561_v33, %v2618_v48  ;;  %v3196_v51 = vpop.f32.mrb[108].mxu0  ;;  %v2620_v52 = vpop.f32.mrb[109].mxu1 }
 0x2ee   :  { %v3198_v53 = vpop.f32.mrb[109].mxu0  ;;  %v2621_v54 = vpop.f32.mrb[110].mxu1 }
 0x2ef   :  { %v3949_v55 = vadd.f32 %v3948_v50, %v3196_v51  ;;  %v3950_v56 = vadd.f32 %v5561_v33, %v2621_v54  ;;  %v3199_v57 = vpop.f32.mrb[110].mxu0  ;;  %v2623_v0 = vpop.f32.mrb[111].mxu1 }
 0x2f0   :  { %v3201_v58 = vpop.f32.mrb[111].mxu0 }
 0x2f1   :  { %3289 = vst [vmem:[%s5650_s3 + $0x1b0] sm:$0xff] %v3949_v55  ;;  %v3353_v59 = vadd.f32 %v3949_v55, %v3352_v46  ;;  %v3426_v60 = vmul.f32 %v3949_v55, %v3949_v55  ;;  %v3951_v61 = vadd.f32 %v3950_v56, %v3199_v57 }
 0x2f3   :  { %v3489_v62 = vadd.f32 %v3488_v49, %v3426_v60  ;;  %3290 = vst [vmem:[%s5650_s3 + $0x1b8] sm:$0xff] %v3951_v61  ;;  %v3354_v63 = vadd.f32 %v3951_v61, %v3353_v59  ;;  %v3427_v1 = vmul.f32 %v3951_v61, %v3951_v61 }
 0x2f4   :  { %v2626_v2 = vpop.f32.mrb[112].mxu1 }
 0x2f5   :  { %v3490_v3 = vadd.f32 %v3489_v62, %v3427_v1  ;;  %v3952_v4 = vadd.f32 %v5561_v33, %v2626_v2  ;;  %v3204_v5 = vpop.f32.mrb[112].mxu0  ;;  %v2628_v6 = vpop.f32.mrb[113].mxu1 }
 0x2f6   :  { %v3206_v7 = vpop.f32.mrb[113].mxu0  ;;  %v2629_v8 = vpop.f32.mrb[114].mxu1 }
 0x2f7   :  { %v3953_v9 = vadd.f32 %v3952_v4, %v3204_v5  ;;  %v3954_v10 = vadd.f32 %v5561_v33, %v2629_v8  ;;  %v3207_v11 = vpop.f32.mrb[114].mxu0  ;;  %v2631_v12 = vpop.f32.mrb[115].mxu1 }
 0x2f8   :  { %v3209_v13 = vpop.f32.mrb[115].mxu0 }
 0x2f9   :  { %3291 = vst [vmem:[%s5650_s3 + $0x1c0] sm:$0xff] %v3953_v9  ;;  %v3355_v14 = vadd.f32 %v3953_v9, %v3354_v63  ;;  %v3428_v15 = vmul.f32 %v3953_v9, %v3953_v9  ;;  %v3955_v16 = vadd.f32 %v3954_v10, %v3207_v11 }
 0x2fb   :  { %v3491_v17 = vadd.f32 %v3490_v3, %v3428_v15  ;;  %3292 = vst [vmem:[%s5650_s3 + $0x1c8] sm:$0xff] %v3955_v16  ;;  %v3356_v18 = vadd.f32 %v3955_v16, %v3355_v14  ;;  %v3429_v19 = vmul.f32 %v3955_v16, %v3955_v16 }
 0x2fc   :  { %v2634_v20 = vpop.f32.mrb[116].mxu1 }
 0x2fd   :  { %v3492_v21 = vadd.f32 %v3491_v17, %v3429_v19  ;;  %v3956_v22 = vadd.f32 %v5561_v33, %v2634_v20  ;;  %v3212_v23 = vpop.f32.mrb[116].mxu0  ;;  %v2636_v24 = vpop.f32.mrb[117].mxu1  ;;  %v3299_v20 = vld [vmem:[%s5651_s4] sm:$0x1] }
 0x2fe   :  { %v3214_v25 = vpop.f32.mrb[117].mxu0  ;;  %v2637_v26 = vpop.f32.mrb[118].mxu1 }
 0x2ff   :  { %v3957_v27 = vadd.f32 %v3956_v22, %v3212_v23  ;;  %v3958_v28 = vadd.f32 %v5561_v33, %v2637_v26  ;;  %v3215_v29 = vpop.f32.mrb[118].mxu0  ;;  %v2639_v30 = vpop.f32.mrb[119].mxu1  ;;  %v3371_v23 = vld [vmem:[%s5652_s5] sm:$0x1] }
 0x300   :  { %v3217_v31 = vpop.f32.mrb[119].mxu0 }
 0x301   :  { %3293 = vst [vmem:[%s5650_s3 + $0x1d0] sm:$0xff] %v3957_v27  ;;  %v3357_v32 = vadd.f32 %v3957_v27, %v3356_v18  ;;  %v3430_v34 = vmul.f32 %v3957_v27, %v3957_v27  ;;  %v3959_v35 = vadd.f32 %v3958_v28, %v3215_v29 }
 0x303   :  { %v3493_v36 = vadd.f32 %v3492_v21, %v3430_v34  ;;  %3294 = vst [vmem:[%s5650_s3 + $0x1d8] sm:$0xff] %v3959_v35  ;;  %v3358_v37 = vadd.f32 %v3959_v35, %v3357_v32  ;;  %v3431_v38 = vmul.f32 %v3959_v35, %v3959_v35 }
 0x304   :  { %v2642_v39 = vpop.f32.mrb[120].mxu1 }
 0x305   :  { %v3494_v40 = vadd.f32 %v3493_v36, %v3431_v38  ;;  %v3960_v41 = vadd.f32 %v5561_v33, %v2642_v39  ;;  %v3220_v42 = vpop.f32.mrb[120].mxu0  ;;  %v2644_v43 = vpop.f32.mrb[121].mxu1 }
 0x306   :  { %v3222_v44 = vpop.f32.mrb[121].mxu0  ;;  %v2645_v45 = vpop.f32.mrb[122].mxu1 }
 0x307   :  { %v3961_v46 = vadd.f32 %v3960_v41, %v3220_v42  ;;  %v3962_v47 = vadd.f32 %v5561_v33, %v2645_v45  ;;  %v3223_v48 = vpop.f32.mrb[122].mxu0  ;;  %v2647_v49 = vpop.f32.mrb[123].mxu1 }
 0x308   :  { %v3225_v50 = vpop.f32.mrb[123].mxu0 }
 0x309   :  { %3295 = vst [vmem:[%s5650_s3 + $0x1e0] sm:$0xff] %v3961_v46  ;;  %v3359_v51 = vadd.f32 %v3961_v46, %v3358_v37  ;;  %v3432_v52 = vmul.f32 %v3961_v46, %v3961_v46  ;;  %v3963_v53 = vadd.f32 %v3962_v47, %v3223_v48 }
 0x30b   :  { %v3495_v54 = vadd.f32 %v3494_v40, %v3432_v52  ;;  %3296 = vst [vmem:[%s5650_s3 + $0x1e8] sm:$0xff] %v3963_v53  ;;  %v3360_v55 = vadd.f32 %v3963_v53, %v3359_v51  ;;  %v3433_v56 = vmul.f32 %v3963_v53, %v3963_v53 }
 0x30c   :  { %v2650_v57 = vpop.f32.mrb[124].mxu1 }
 0x30d   :  { %v3496_v0 = vadd.f32 %v3495_v54, %v3433_v56  ;;  %v3964_v58 = vadd.f32 %v5561_v33, %v2650_v57  ;;  %v3228_v59 = vpop.f32.mrb[124].mxu0  ;;  %v2652_v60 = vpop.f32.mrb[125].mxu1 }
 0x30e   :  { %v3230_v61 = vpop.f32.mrb[125].mxu0  ;;  %v2653_v62 = vpop.f32.mrb[126].mxu1 }
 0x30f   :  { %v3965_v63 = vadd.f32 %v3964_v58, %v3228_v59  ;;  %v3966_v1 = vadd.f32 %v5561_v33, %v2653_v62  ;;  %v3231_v2 = vpop.f32.mrb[126].mxu0  ;;  %v2655_v3 = vpop.f32.mrb[127].mxu1 }
 0x310   :  { %v3233_v4 = vpop.f32.mrb[127].mxu0 }
 0x311   :  { %3297 = vst [vmem:[%s5650_s3 + $0x1f0] sm:$0xff] %v3965_v63  ;;  %v3361_v5 = vadd.f32 %v3965_v63, %v3360_v55  ;;  %v3434_v6 = vmul.f32 %v3965_v63, %v3965_v63  ;;  %v3967_v7 = vadd.f32 %v3966_v1, %v3231_v2 }
 0x313   :  { %v3497_v8 = vadd.f32 %v3496_v0, %v3434_v6  ;;  %3298 = vst [vmem:[%s5650_s3 + $0x1f8] sm:$0xff] %v3967_v7  ;;  %v3362_v9 = vadd.f32 %v3967_v7, %v3361_v5  ;;  %v3435_v10 = vmul.f32 %v3967_v7, %v3967_v7 }
 0x315   :  { %v3363_v11 = vrot.slane %v3362_v9, 4  ;;  %v3498_v12 = vadd.f32 %v3497_v8, %v3435_v10 }
 0x317   :  { %v3364_v33 = vadd.f32 %v3363_v11, %v3362_v9  ;;  %v3499_v13 = vrot.slane %v3498_v12, 4 }
 0x319   :  { %v3365_v14 = vrot.slane %v3364_v33, 2  ;;  %v3500_v15 = vadd.f32 %v3499_v13, %v3498_v12 }
 0x31b   :  { %v3366_v16 = vadd.f32 %v3365_v14, %v3364_v33  ;;  %v3501_v17 = vrot.slane %v3500_v15, 2 }
 0x31d   :  { %v3367_v18 = vrot.slane %v3366_v16, 1  ;;  %v3502_v19 = vadd.f32 %v3501_v17, %v3500_v15 }
 0x31f   :  { %v3368_v21 = vadd.f32 %v3367_v18, %v3366_v16  ;;  %v3503_v22 = vrot.slane %v3502_v19, 1 }
 0x321   :  { %v3369_v24 = vadd.f32 %v3368_v21, %v3299_v20  ;;  %v3504_v25 = vadd.f32 %v3503_v22, %v3502_v19 }
 0x323   :  { %3370 = vst [vmem:[%s5651_s4] sm:$0x1] %v3369_v24  ;;  %v3505_v26 = vadd.f32 %v3504_v25, %v3371_v23 }
 0x325   :  { %3506 = vst [vmem:[%s5652_s5] sm:$0x1] %v3505_v26 }

// kernel: discriminator_forward.8
= control target key start
LH: loop header
LB: loop body
LE: loop exit
PB: predicated region body
PF: predicated region fallthrough
CT: control target
= control target key end

     0   :  { %s1503_s0 = inlined_call_operand.vmem [shape: f32[512,128], index: 0, kind: input, shape index: {}]   ;;  %s1504_s1 = inlined_call_operand.vmem [shape: f32[1,128], index: 1, kind: input, shape index: {}]   ;;  %s1505_s2 = inlined_call_operand.vmem [shape: f32[1,128], index: 2, kind: input, shape index: {}]   ;;  %s1506_s3 = inlined_call_operand.vmem [shape: bf16[512,128], index: 3, kind: output, shape index: {}]  }
   0x1   :  { %v14_v0 = vld [vmem:[%s1503_s0] sm:$0xff]  ;;  %v15_v1 = vld [vmem:[%s1503_s0 + $0x8] sm:$0xff]  ;;  %v16_v6 = vld [vmem:[%s1503_s0 + $0x10] sm:$0xff] }
   0x2   :  { %v1086_v2 = vld [vmem:[%s1504_s1] ss:$0 sm:$0xff]  ;;  %v17_v7 = vld [vmem:[%s1503_s0 + $0x18] sm:$0xff]  ;;  %v19_v11 = vld [vmem:[%s1503_s0 + $0x28] sm:$0xff] }
   0x3   :  { %v85_v3 = vmul.f32 %v1086_v2, %v14_v0  ;;  %v86_v4 = vmul.f32 %v1086_v2, %v15_v1  ;;  %v1093_v5 = vld [vmem:[%s1505_s2] ss:$0 sm:$0xff]  ;;  %v87_v8 = vmul.f32 %v1086_v2, %v16_v6  ;;  %v88_v9 = vmul.f32 %v1086_v2, %v17_v7  ;;  %v20_v12 = vld [vmem:[%s1503_s0 + $0x30] sm:$0xff]  ;;  %v21_v17 = vld [vmem:[%s1503_s0 + $0x38] sm:$0xff] }
   0x4   :  { %v18_v10 = vld [vmem:[%s1503_s0 + $0x20] sm:$0xff]  ;;  %v90_v16 = vmul.f32 %v1086_v2, %v19_v11  ;;  %v91_v20 = vmul.f32 %v1086_v2, %v20_v12  ;;  %v92_v21 = vmul.f32 %v1086_v2, %v21_v17  ;;  %v23_v35 = vld [vmem:[%s1503_s0 + $0x48] sm:$0xff]  ;;  %v24_v36 = vld [vmem:[%s1503_s0 + $0x50] sm:$0xff] }
   0x5   :  { %v156_v13 = vadd.f32 %v1093_v5, %v85_v3  ;;  %v157_v14 = vadd.f32 %v1093_v5, %v86_v4  ;;  %v89_v15 = vmul.f32 %v1086_v2, %v18_v10  ;;  %v158_v18 = vadd.f32 %v1093_v5, %v87_v8  ;;  %v22_v34 = vld [vmem:[%s1503_s0 + $0x40] sm:$0xff]  ;;  %v25_v42 = vld [vmem:[%s1503_s0 + $0x58] sm:$0xff]  ;;  %v27_v48 = vld [vmem:[%s1503_s0 + $0x68] sm:$0xff] }
   0x6   :  { %v159_v19 = vadd.f32 %v1093_v5, %v88_v9  ;;  %v161_v29 = vadd.f32 %v1093_v5, %v90_v16  ;;  %v162_v33 = vadd.f32 %v1093_v5, %v91_v20  ;;  %v163_v40 = vadd.f32 %v1093_v5, %v92_v21  ;;  %v26_v47 = vld [vmem:[%s1503_s0 + $0x60] sm:$0xff]  ;;  %v28_v60 = vld [vmem:[%s1503_s0 + $0x70] sm:$0xff]  ;;  %v29_v7 = vld [vmem:[%s1503_s0 + $0x78] sm:$0xff] }
   0x7   :  { %vm220_vm0 = vcmp.gt.f32.partialorder %v156_v13, 0.0  ;;  %vm221_vm1 = vcmp.gt.f32.partialorder %v157_v14, 0.0  ;;  %v284_v22 = vmul.f32 0.2, %v156_v13  ;;  %v285_v23 = vmul.f32 0.2, %v157_v14 }
   0x8   :  { %vm222_vm2 = vcmp.gt.f32.partialorder %v158_v18, 0.0  ;;  %vm223_vm3 = vcmp.gt.f32.partialorder %v159_v19, 0.0  ;;  %v286_v24 = vmul.f32 0.2, %v158_v18  ;;  %v287_v25 = vmul.f32 0.2, %v159_v19 }
   0x9   :  { %v348_v26 = vsel %vm220_vm0, %v156_v13, %v284_v22  ;;  %v349_v27 = vsel %vm221_vm1, %v157_v14, %v285_v23  ;;  %v160_v28 = vadd.f32 %v1093_v5, %v89_v15  ;;  %vm225_vm5 = vcmp.gt.f32.partialorder %v161_v29, 0.0  ;;  %v30_v12 = vld [vmem:[%s1503_s0 + $0x80] sm:$0xff]  ;;  %v31_v13 = vld [vmem:[%s1503_s0 + $0x88] sm:$0xff]  ;;  %v32_v20 = vld [vmem:[%s1503_s0 + $0x90] sm:$0xff] }
   0xa   :  { %v869_v30 = vpack.c.bf16 %v349_v27, %v348_v26  ;;  %v350_v31 = vsel %vm222_vm2, %v158_v18, %v286_v24  ;;  %v351_v32 = vsel %vm223_vm3, %v159_v19, %v287_v25  ;;  %v289_v39 = vmul.f32 0.2, %v161_v29  ;;  %v33_v25 = vld [vmem:[%s1503_s0 + $0x98] sm:$0xff] }
   0xb   :  { %v874_v37 = vpack.c.bf16 %v351_v32, %v350_v31  ;;  %vm224_vm4 = vcmp.gt.f32.partialorder %v160_v28, 0.0  ;;  %v288_v38 = vmul.f32 0.2, %v160_v28  ;;  %vm226_vm6 = vcmp.gt.f32.partialorder %v162_v33, 0.0 }
   0xc   :  { %870 = vst [vmem:[%s1506_s3] sm:$0xff] %v869_v30   ;;  %v290_v41 = vmul.f32 0.2, %v162_v33  ;;  %v93_v44 = vmul.f32 %v1086_v2, %v22_v34  ;;  %v94_v45 = vmul.f32 %v1086_v2, %v23_v35  ;;  %v95_v46 = vmul.f32 %v1086_v2, %v24_v36 }
   0xd   :  { %1026 = vst [vmem:[%s1506_s3 + $0x8] sm:$0xff] %v874_v37   ;;  %v352_v43 = vsel %vm224_vm4, %v160_v28, %v288_v38  ;;  %v353_v49 = vsel %vm225_vm5, %v161_v29, %v289_v39  ;;  %vm227_vm7 = vcmp.gt.f32.partialorder %v163_v40, 0.0  ;;  %v291_v50 = vmul.f32 0.2, %v163_v40  ;;  %v35_v37 = vld [vmem:[%s1503_s0 + $0xa8] sm:$0xff] }
   0xe   :  { %v354_v51 = vsel %vm226_vm6, %v162_v33, %v290_v41  ;;  %v879_v52 = vpack.c.bf16 %v353_v49, %v352_v43  ;;  %v164_v53 = vadd.f32 %v1093_v5, %v93_v44  ;;  %v165_v54 = vadd.f32 %v1093_v5, %v94_v45  ;;  %v34_v33 = vld [vmem:[%s1503_s0 + $0xa0] sm:$0xff]  ;;  %v36_v44 = vld [vmem:[%s1503_s0 + $0xb0] sm:$0xff]  ;;  %v37_v49 = vld [vmem:[%s1503_s0 + $0xb8] sm:$0xff] }
   0xf   :  { %v96_v55 = vmul.f32 %v1086_v2, %v25_v42  ;;  %v355_v56 = vsel %vm227_vm7, %v163_v40, %v291_v50  ;;  %v166_v57 = vadd.f32 %v1093_v5, %v95_v46  ;;  %v97_v58 = vmul.f32 %v1086_v2, %v26_v47  ;;  %v38_v50 = vld [vmem:[%s1503_s0 + $0xc0] sm:$0xff] }
  0x10   :  { %v98_v59 = vmul.f32 %v1086_v2, %v27_v48  ;;  %1027 = vst [vmem:[%s1506_s3 + $0x10] sm:$0xff] %v879_v52   ;;  %v884_v61 = vpack.c.bf16 %v355_v56, %v354_v51  ;;  %vm228_vm8 = vcmp.gt.f32.partialorder %v164_v53, 0.0  ;;  %vm229_vm9 = vcmp.gt.f32.partialorder %v165_v54, 0.0  ;;  %v39_v51 = vld [vmem:[%s1503_s0 + $0xc8] sm:$0xff] }
  0x11   :  { %v292_v62 = vmul.f32 0.2, %v164_v53  ;;  %v293_v63 = vmul.f32 0.2, %v165_v54  ;;  %v167_v0 = vadd.f32 %v1093_v5, %v96_v55  ;;  %vm230_vm10 = vcmp.gt.f32.partialorder %v166_v57, 0.0 }
  0x12   :  { %v294_v1 = vmul.f32 0.2, %v166_v57  ;;  %1028 = vst [vmem:[%s1506_s3 + $0x18] sm:$0xff] %v884_v61   ;;  %v168_v4 = vadd.f32 %v1093_v5, %v97_v58  ;;  %v169_v6 = vadd.f32 %v1093_v5, %v98_v59  ;;  %v99_v8 = vmul.f32 %v1086_v2, %v28_v60 }
  0x13   :  { %v356_v3 = vsel %vm228_vm8, %v164_v53, %v292_v62  ;;  %v357_v9 = vsel %vm229_vm9, %v165_v54, %v293_v63  ;;  %vm231_vm11 = vcmp.gt.f32.partialorder %v167_v0, 0.0  ;;  %v295_v10 = vmul.f32 0.2, %v167_v0  ;;  %v40_v62 = vld [vmem:[%s1503_s0 + $0xd0] sm:$0xff] }
  0x14   :  { %v358_v11 = vsel %vm230_vm10, %v166_v57, %v294_v1  ;;  %v889_v14 = vpack.c.bf16 %v357_v9, %v356_v3  ;;  %vm232_vm12 = vcmp.gt.f32.partialorder %v168_v4, 0.0  ;;  %vm233_vm13 = vcmp.gt.f32.partialorder %v169_v6, 0.0 }
  0x15   :  { %v296_v15 = vmul.f32 0.2, %v168_v4  ;;  %v359_v16 = vsel %vm231_vm11, %v167_v0, %v295_v10  ;;  %v297_v17 = vmul.f32 0.2, %v169_v6  ;;  %v100_v18 = vmul.f32 %v1086_v2, %v29_v7  ;;  %v41_v10 = vld [vmem:[%s1503_s0 + $0xd8] sm:$0xff] }
  0x16   :  { %v170_v19 = vadd.f32 %v1093_v5, %v99_v8  ;;  %1029 = vst [vmem:[%s1506_s3 + $0x20] sm:$0xff] %v889_v14   ;;  %v894_v21 = vpack.c.bf16 %v359_v16, %v358_v11  ;;  %v101_v23 = vmul.f32 %v1086_v2, %v30_v12  ;;  %v102_v24 = vmul.f32 %v1086_v2, %v31_v13  ;;  %v42_v14 = vld [vmem:[%s1503_s0 + $0xe0] sm:$0xff] }
  0x17   :  { %v360_v22 = vsel %vm232_vm12, %v168_v4, %v296_v15  ;;  %v361_v26 = vsel %vm233_vm13, %v169_v6, %v297_v17  ;;  %v171_v27 = vadd.f32 %v1093_v5, %v100_v18  ;;  %v103_v32 = vmul.f32 %v1086_v2, %v32_v20  ;;  %v43_v15 = vld [vmem:[%s1503_s0 + $0xe8] sm:$0xff] }
  0x18   :  { %vm234_vm14 = vcmp.gt.f32.partialorder %v170_v19, 0.0  ;;  %v298_v28 = vmul.f32 0.2, %v170_v19  ;;  %1030 = vst [vmem:[%s1506_s3 + $0x28] sm:$0xff] %v894_v21   ;;  %v899_v29 = vpack.c.bf16 %v361_v26, %v360_v22  ;;  %v172_v30 = vadd.f32 %v1093_v5, %v101_v23  ;;  %v44_v26 = vld [vmem:[%s1503_s0 + $0xf0] sm:$0xff] }
  0x19   :  { %v173_v31 = vadd.f32 %v1093_v5, %v102_v24  ;;  %vm235_vm15 = vcmp.gt.f32.partialorder %v171_v27, 0.0  ;;  %v299_v34 = vmul.f32 0.2, %v171_v27  ;;  %v104_v36 = vmul.f32 %v1086_v2, %v33_v25 }
  0x1a   :  { %v362_v35 = vsel %vm234_vm14, %v170_v19, %v298_v28  ;;  %1031 = vst [vmem:[%s1506_s3 + $0x30] sm:$0xff] %v899_v29   ;;  %vm236_vm0 = vcmp.gt.f32.partialorder %v172_v30, 0.0  ;;  %v300_v38 = vmul.f32 0.2, %v172_v30  ;;  %v174_v41 = vadd.f32 %v1093_v5, %v103_v32 }
  0x1b   :  { %vm237_vm1 = vcmp.gt.f32.partialorder %v173_v31, 0.0  ;;  %v301_v39 = vmul.f32 0.2, %v173_v31  ;;  %v363_v40 = vsel %vm235_vm15, %v171_v27, %v299_v34  ;;  %v175_v42 = vadd.f32 %v1093_v5, %v104_v36 }
  0x1c   :  { %v105_v43 = vmul.f32 %v1086_v2, %v34_v33  ;;  %v904_v45 = vpack.c.bf16 %v363_v40, %v362_v35  ;;  %v364_v46 = vsel %vm236_vm0, %v172_v30, %v300_v38  ;;  %v106_v48 = vmul.f32 %v1086_v2, %v35_v37  ;;  %v46_v38 = vld [vmem:[%s1503_s0 + $0x100] sm:$0xff] }
  0x1d   :  { %v365_v47 = vsel %vm237_vm1, %v173_v31, %v301_v39  ;;  %vm238_vm2 = vcmp.gt.f32.partialorder %v174_v41, 0.0  ;;  %vm239_vm3 = vcmp.gt.f32.partialorder %v175_v42, 0.0  ;;  %v302_v53 = vmul.f32 0.2, %v174_v41  ;;  %v45_v31 = vld [vmem:[%s1503_s0 + $0xf8] sm:$0xff] }
  0x1e   :  { %v909_v52 = vpack.c.bf16 %v365_v47, %v364_v46  ;;  %1032 = vst [vmem:[%s1506_s3 + $0x38] sm:$0xff] %v904_v45   ;;  %v303_v54 = vmul.f32 0.2, %v175_v42  ;;  %v176_v55 = vadd.f32 %v1093_v5, %v105_v43  ;;  %v177_v56 = vadd.f32 %v1093_v5, %v106_v48 }
  0x1f   :  { %v107_v57 = vmul.f32 %v1086_v2, %v36_v44  ;;  %v366_v58 = vsel %vm238_vm2, %v174_v41, %v302_v53  ;;  %v108_v59 = vmul.f32 %v1086_v2, %v37_v49  ;;  %v109_v60 = vmul.f32 %v1086_v2, %v38_v50  ;;  %v48_v50 = vld [vmem:[%s1503_s0 + $0x110] sm:$0xff] }
  0x20   :  { %1033 = vst [vmem:[%s1506_s3 + $0x40] sm:$0xff] %v909_v52   ;;  %v110_v61 = vmul.f32 %v1086_v2, %v39_v51  ;;  %v367_v63 = vsel %vm239_vm3, %v175_v42, %v303_v54  ;;  %vm240_vm4 = vcmp.gt.f32.partialorder %v176_v55, 0.0  ;;  %vm241_vm5 = vcmp.gt.f32.partialorder %v177_v56, 0.0  ;;  %v47_v42 = vld [vmem:[%s1503_s0 + $0x108] sm:$0xff]  ;;  %v49_v51 = vld [vmem:[%s1503_s0 + $0x118] sm:$0xff] }
  0x21   :  { %v304_v0 = vmul.f32 0.2, %v176_v55  ;;  %v914_v1 = vpack.c.bf16 %v367_v63, %v366_v58  ;;  %v305_v3 = vmul.f32 0.2, %v177_v56  ;;  %v178_v4 = vadd.f32 %v1093_v5, %v107_v57  ;;  %v51_v63 = vld [vmem:[%s1503_s0 + $0x128] sm:$0xff] }
  0x22   :  { %v179_v6 = vadd.f32 %v1093_v5, %v108_v59  ;;  %v180_v8 = vadd.f32 %v1093_v5, %v109_v60  ;;  %v181_v9 = vadd.f32 %v1093_v5, %v110_v61  ;;  %v111_v11 = vmul.f32 %v1086_v2, %v40_v62 }
  0x23   :  { %v368_v7 = vsel %vm240_vm4, %v176_v55, %v304_v0  ;;  %1034 = vst [vmem:[%s1506_s3 + $0x48] sm:$0xff] %v914_v1   ;;  %v369_v12 = vsel %vm241_vm5, %v177_v56, %v305_v3  ;;  %vm242_vm6 = vcmp.gt.f32.partialorder %v178_v4, 0.0  ;;  %v306_v13 = vmul.f32 0.2, %v178_v4  ;;  %v50_v55 = vld [vmem:[%s1503_s0 + $0x120] sm:$0xff] }
  0x24   :  { %vm243_vm7 = vcmp.gt.f32.partialorder %v179_v6, 0.0  ;;  %v919_v16 = vpack.c.bf16 %v369_v12, %v368_v7  ;;  %v307_v17 = vmul.f32 0.2, %v179_v6  ;;  %vm244_vm8 = vcmp.gt.f32.partialorder %v180_v8, 0.0 }
  0x25   :  { %vm245_vm9 = vcmp.gt.f32.partialorder %v181_v9, 0.0  ;;  %v370_v18 = vsel %vm242_vm6, %v178_v4, %v306_v13  ;;  %v308_v19 = vmul.f32 0.2, %v180_v8  ;;  %v309_v20 = vmul.f32 0.2, %v181_v9  ;;  %v52_v4 = vld [vmem:[%s1503_s0 + $0x130] sm:$0xff] }
  0x26   :  { %v112_v21 = vmul.f32 %v1086_v2, %v41_v10  ;;  %1035 = vst [vmem:[%s1506_s3 + $0x50] sm:$0xff] %v919_v16   ;;  %v371_v22 = vsel %vm243_vm7, %v179_v6, %v307_v17  ;;  %v182_v23 = vadd.f32 %v1093_v5, %v111_v11  ;;  %v113_v24 = vmul.f32 %v1086_v2, %v42_v14  ;;  %v53_v13 = vld [vmem:[%s1503_s0 + $0x138] sm:$0xff] }
  0x27   :  { %v114_v25 = vmul.f32 %v1086_v2, %v43_v15  ;;  %v924_v27 = vpack.c.bf16 %v371_v22, %v370_v18  ;;  %v372_v28 = vsel %vm244_vm8, %v180_v8, %v308_v19  ;;  %v373_v29 = vsel %vm245_vm9, %v181_v9, %v309_v20  ;;  %v54_v20 = vld [vmem:[%s1503_s0 + $0x140] sm:$0xff] }
  0x28   :  { %v183_v30 = vadd.f32 %v1093_v5, %v112_v21  ;;  %v929_v32 = vpack.c.bf16 %v373_v29, %v372_v28  ;;  %vm246_vm10 = vcmp.gt.f32.partialorder %v182_v23, 0.0  ;;  %v310_v33 = vmul.f32 0.2, %v182_v23 }
  0x29   :  { %v184_v34 = vadd.f32 %v1093_v5, %v113_v24  ;;  %1036 = vst [vmem:[%s1506_s3 + $0x58] sm:$0xff] %v924_v27   ;;  %v185_v36 = vadd.f32 %v1093_v5, %v114_v25  ;;  %v115_v37 = vmul.f32 %v1086_v2, %v44_v26  ;;  %v116_v41 = vmul.f32 %v1086_v2, %v45_v31  ;;  %v55_v24 = vld [vmem:[%s1503_s0 + $0x148] sm:$0xff] }
  0x2a   :  { %vm247_vm11 = vcmp.gt.f32.partialorder %v183_v30, 0.0  ;;  %v311_v35 = vmul.f32 0.2, %v183_v30  ;;  %1037 = vst [vmem:[%s1506_s3 + $0x60] sm:$0xff] %v929_v32   ;;  %v374_v39 = vsel %vm246_vm10, %v182_v23, %v310_v33  ;;  %v117_v49 = vmul.f32 %v1086_v2, %v46_v38  ;;  %v56_v32 = vld [vmem:[%s1503_s0 + $0x150] sm:$0xff]  ;;  %v57_v33 = vld [vmem:[%s1503_s0 + $0x158] sm:$0xff] }
  0x2b   :  { %vm248_vm12 = vcmp.gt.f32.partialorder %v184_v34, 0.0  ;;  %v312_v40 = vmul.f32 0.2, %v184_v34  ;;  %vm249_vm13 = vcmp.gt.f32.partialorder %v185_v36, 0.0  ;;  %v313_v44 = vmul.f32 0.2, %v185_v36 }
  0x2c   :  { %v375_v43 = vsel %vm247_vm11, %v183_v30, %v311_v35  ;;  %v186_v45 = vadd.f32 %v1093_v5, %v115_v37  ;;  %v187_v48 = vadd.f32 %v1093_v5, %v116_v41  ;;  %v118_v54 = vmul.f32 %v1086_v2, %v47_v42  ;;  %v58_v37 = vld [vmem:[%s1503_s0 + $0x160] sm:$0xff] }
  0x2d   :  { %v934_v46 = vpack.c.bf16 %v375_v43, %v374_v39  ;;  %v376_v47 = vsel %vm248_vm12, %v184_v34, %v312_v40  ;;  %v377_v52 = vsel %vm249_vm13, %v185_v36, %v313_v44  ;;  %v188_v58 = vadd.f32 %v1093_v5, %v117_v49  ;;  %v60_v49 = vld [vmem:[%s1503_s0 + $0x170] sm:$0xff] }
  0x2e   :  { %vm250_vm14 = vcmp.gt.f32.partialorder %v186_v45, 0.0  ;;  %v314_v53 = vmul.f32 0.2, %v186_v45  ;;  %v939_v56 = vpack.c.bf16 %v377_v52, %v376_v47  ;;  %vm251_vm15 = vcmp.gt.f32.partialorder %v187_v48, 0.0 }
  0x2f   :  { %1038 = vst [vmem:[%s1506_s3 + $0x68] sm:$0xff] %v934_v46   ;;  %v315_v57 = vmul.f32 0.2, %v187_v48  ;;  %v189_v60 = vadd.f32 %v1093_v5, %v118_v54  ;;  %v119_v61 = vmul.f32 %v1086_v2, %v48_v50  ;;  %v120_v62 = vmul.f32 %v1086_v2, %v49_v51 }
  0x30   :  { %v378_v59 = vsel %vm250_vm14, %v186_v45, %v314_v53  ;;  %1039 = vst [vmem:[%s1506_s3 + $0x70] sm:$0xff] %v939_v56   ;;  %vm252_vm0 = vcmp.gt.f32.partialorder %v188_v58, 0.0  ;;  %v316_v1 = vmul.f32 0.2, %v188_v58  ;;  %v121_v3 = vmul.f32 %v1086_v2, %v50_v55  ;;  %v59_v45 = vld [vmem:[%s1503_s0 + $0x168] sm:$0xff] }
  0x31   :  { %v379_v0 = vsel %vm251_vm15, %v187_v48, %v315_v57  ;;  %vm253_vm1 = vcmp.gt.f32.partialorder %v189_v60, 0.0  ;;  %v317_v7 = vmul.f32 0.2, %v189_v60  ;;  %v190_v8 = vadd.f32 %v1093_v5, %v119_v61  ;;  %v61_v57 = vld [vmem:[%s1503_s0 + $0x178] sm:$0xff] }
  0x32   :  { %v944_v6 = vpack.c.bf16 %v379_v0, %v378_v59  ;;  %v380_v9 = vsel %vm252_vm0, %v188_v58, %v316_v1  ;;  %v191_v10 = vadd.f32 %v1093_v5, %v120_v62  ;;  %v122_v11 = vmul.f32 %v1086_v2, %v51_v63  ;;  %v62_v0 = vld [vmem:[%s1503_s0 + $0x180] sm:$0xff] }
  0x33   :  { %v192_v12 = vadd.f32 %v1093_v5, %v121_v3  ;;  %v381_v14 = vsel %vm253_vm1, %v189_v60, %v317_v7  ;;  %vm254_vm2 = vcmp.gt.f32.partialorder %v190_v8, 0.0  ;;  %v318_v15 = vmul.f32 0.2, %v190_v8 }
  0x34   :  { %1040 = vst [vmem:[%s1506_s3 + $0x78] sm:$0xff] %v944_v6   ;;  %v123_v16 = vmul.f32 %v1086_v2, %v52_v4  ;;  %v949_v17 = vpack.c.bf16 %v381_v14, %v380_v9  ;;  %vm255_vm3 = vcmp.gt.f32.partialorder %v191_v10, 0.0  ;;  %v319_v18 = vmul.f32 0.2, %v191_v10  ;;  %v63_v6 = vld [vmem:[%s1503_s0 + $0x188] sm:$0xff]  ;;  %v64_v14 = vld [vmem:[%s1503_s0 + $0x190] sm:$0xff] }
  0x35   :  { %v193_v19 = vadd.f32 %v1093_v5, %v122_v11  ;;  %v382_v21 = vsel %vm254_vm2, %v190_v8, %v318_v15  ;;  %vm256_vm4 = vcmp.gt.f32.partialorder %v192_v12, 0.0  ;;  %v320_v22 = vmul.f32 0.2, %v192_v12  ;;  %v65_v15 = vld [vmem:[%s1503_s0 + $0x198] sm:$0xff] }
  0x36   :  { %v124_v23 = vmul.f32 %v1086_v2, %v53_v13  ;;  %1041 = vst [vmem:[%s1506_s3 + $0x80] sm:$0xff] %v949_v17   ;;  %v383_v25 = vsel %vm255_vm3, %v191_v10, %v319_v18  ;;  %v194_v27 = vadd.f32 %v1093_v5, %v123_v16  ;;  %v125_v31 = vmul.f32 %v1086_v2, %v54_v20 }
  0x37   :  { %vm257_vm5 = vcmp.gt.f32.partialorder %v193_v19, 0.0  ;;  %v321_v26 = vmul.f32 0.2, %v193_v19  ;;  %v954_v28 = vpack.c.bf16 %v383_v25, %v382_v21  ;;  %v384_v29 = vsel %vm256_vm4, %v192_v12, %v320_v22 }
  0x38   :  { %v195_v30 = vadd.f32 %v1093_v5, %v124_v23  ;;  %vm258_vm6 = vcmp.gt.f32.partialorder %v194_v27, 0.0  ;;  %v322_v35 = vmul.f32 0.2, %v194_v27  ;;  %v126_v36 = vmul.f32 %v1086_v2, %v55_v24 }
  0x39   :  { %v385_v34 = vsel %vm257_vm5, %v193_v19, %v321_v26  ;;  %1042 = vst [vmem:[%s1506_s3 + $0x88] sm:$0xff] %v954_v28   ;;  %v196_v40 = vadd.f32 %v1093_v5, %v125_v31  ;;  %v127_v43 = vmul.f32 %v1086_v2, %v56_v32  ;;  %v128_v44 = vmul.f32 %v1086_v2, %v57_v33  ;;  %v66_v19 = vld [vmem:[%s1503_s0 + $0x1a0] sm:$0xff]  ;;  %v68_v31 = vld [vmem:[%s1503_s0 + $0x1b0] sm:$0xff] }
  0x3a   :  { %v959_v38 = vpack.c.bf16 %v385_v34, %v384_v29  ;;  %vm259_vm7 = vcmp.gt.f32.partialorder %v195_v30, 0.0  ;;  %v323_v39 = vmul.f32 0.2, %v195_v30  ;;  %v386_v41 = vsel %vm258_vm6, %v194_v27, %v322_v35  ;;  %v67_v27 = vld [vmem:[%s1503_s0 + $0x1a8] sm:$0xff] }
  0x3b   :  { %v197_v42 = vadd.f32 %v1093_v5, %v126_v36  ;;  %vm260_vm8 = vcmp.gt.f32.partialorder %v196_v40, 0.0  ;;  %v324_v47 = vmul.f32 0.2, %v196_v40  ;;  %v129_v48 = vmul.f32 %v1086_v2, %v58_v37 }
  0x3c   :  { %1043 = vst [vmem:[%s1506_s3 + $0x90] sm:$0xff] %v959_v38   ;;  %v387_v46 = vsel %vm259_vm7, %v195_v30, %v323_v39  ;;  %v198_v52 = vadd.f32 %v1093_v5, %v127_v43  ;;  %v199_v54 = vadd.f32 %v1093_v5, %v128_v44  ;;  %v130_v55 = vmul.f32 %v1086_v2, %v59_v45  ;;  %v69_v39 = vld [vmem:[%s1503_s0 + $0x1b8] sm:$0xff] }
  0x3d   :  { %v964_v50 = vpack.c.bf16 %v387_v46, %v386_v41  ;;  %vm261_vm9 = vcmp.gt.f32.partialorder %v197_v42, 0.0  ;;  %v325_v51 = vmul.f32 0.2, %v197_v42  ;;  %v388_v53 = vsel %vm260_vm8, %v196_v40, %v324_v47  ;;  %v70_v46 = vld [vmem:[%s1503_s0 + $0x1c0] sm:$0xff] }
  0x3e   :  { %v200_v56 = vadd.f32 %v1093_v5, %v129_v48  ;;  %vm262_vm10 = vcmp.gt.f32.partialorder %v198_v52, 0.0  ;;  %v326_v59 = vmul.f32 0.2, %v198_v52  ;;  %v131_v60 = vmul.f32 %v1086_v2, %v60_v49 }
  0x3f   :  { %1044 = vst [vmem:[%s1506_s3 + $0x98] sm:$0xff] %v964_v50   ;;  %v389_v58 = vsel %vm261_vm9, %v197_v42, %v325_v51  ;;  %vm263_vm11 = vcmp.gt.f32.partialorder %v199_v54, 0.0  ;;  %v327_v62 = vmul.f32 0.2, %v199_v54  ;;  %v201_v63 = vadd.f32 %v1093_v5, %v130_v55  ;;  %v71_v50 = vld [vmem:[%s1503_s0 + $0x1c8] sm:$0xff] }
  0x40   :  { %v969_v61 = vpack.c.bf16 %v389_v58, %v388_v53  ;;  %v390_v1 = vsel %vm262_vm10, %v198_v52, %v326_v59  ;;  %vm264_vm12 = vcmp.gt.f32.partialorder %v200_v56, 0.0  ;;  %v328_v3 = vmul.f32 0.2, %v200_v56  ;;  %v72_v58 = vld [vmem:[%s1503_s0 + $0x1d0] sm:$0xff]  ;;  %v73_v59 = vld [vmem:[%s1503_s0 + $0x1d8] sm:$0xff] }
  0x41   :  { %v132_v4 = vmul.f32 %v1086_v2, %v61_v57  ;;  %v391_v7 = vsel %vm263_vm11, %v199_v54, %v327_v62  ;;  %vm265_vm13 = vcmp.gt.f32.partialorder %v201_v63, 0.0  ;;  %v329_v8 = vmul.f32 0.2, %v201_v63 }
  0x42   :  { %1045 = vst [vmem:[%s1506_s3 + $0xa0] sm:$0xff] %v969_v61   ;;  %v202_v9 = vadd.f32 %v1093_v5, %v131_v60  ;;  %v974_v10 = vpack.c.bf16 %v391_v7, %v390_v1  ;;  %v392_v11 = vsel %vm264_vm12, %v200_v56, %v328_v3  ;;  %v133_v13 = vmul.f32 %v1086_v2, %v62_v0 }
  0x43   :  { %v203_v12 = vadd.f32 %v1093_v5, %v132_v4  ;;  %v393_v16 = vsel %vm265_vm13, %v201_v63, %v329_v8  ;;  %v134_v18 = vmul.f32 %v1086_v2, %v63_v6  ;;  %v135_v25 = vmul.f32 %v1086_v2, %v64_v14  ;;  %v74_v63 = vld [vmem:[%s1503_s0 + $0x1e0] sm:$0xff] }
  0x44   :  { %vm266_vm14 = vcmp.gt.f32.partialorder %v202_v9, 0.0  ;;  %v330_v17 = vmul.f32 0.2, %v202_v9  ;;  %1046 = vst [vmem:[%s1506_s3 + $0xa8] sm:$0xff] %v974_v10   ;;  %v979_v20 = vpack.c.bf16 %v393_v16, %v392_v11  ;;  %v204_v22 = vadd.f32 %v1093_v5, %v133_v13  ;;  %v76_v13 = vld [vmem:[%s1503_s0 + $0x1f0] sm:$0xff] }
  0x45   :  { %vm267_vm15 = vcmp.gt.f32.partialorder %v203_v12, 0.0  ;;  %v331_v21 = vmul.f32 0.2, %v203_v12  ;;  %v205_v24 = vadd.f32 %v1093_v5, %v134_v18  ;;  %v136_v26 = vmul.f32 %v1086_v2, %v65_v15 }
  0x46   :  { %v394_v23 = vsel %vm266_vm14, %v202_v9, %v330_v17  ;;  %1047 = vst [vmem:[%s1506_s3 + $0xb0] sm:$0xff] %v979_v20   ;;  %vm268_vm0 = vcmp.gt.f32.partialorder %v204_v22, 0.0  ;;  %v332_v29 = vmul.f32 0.2, %v204_v22  ;;  %v137_v30 = vmul.f32 %v1086_v2, %v66_v19  ;;  %v75_v9 = vld [vmem:[%s1503_s0 + $0x1e8] sm:$0xff] }
  0x47   :  { %v395_v28 = vsel %vm267_vm15, %v203_v12, %v331_v21  ;;  %vm269_vm1 = vcmp.gt.f32.partialorder %v205_v24, 0.0  ;;  %v333_v33 = vmul.f32 0.2, %v205_v24  ;;  %v206_v34 = vadd.f32 %v1093_v5, %v135_v25  ;;  %v77_v21 = vld [vmem:[%s1503_s0 + $0x1f8] sm:$0xff] }
  0x48   :  { %v984_v32 = vpack.c.bf16 %v395_v28, %v394_v23  ;;  %v396_v35 = vsel %vm268_vm0, %v204_v22, %v332_v29  ;;  %v207_v36 = vadd.f32 %v1093_v5, %v136_v26  ;;  %v138_v37 = vmul.f32 %v1086_v2, %v67_v27 }
  0x49   :  { %v208_v38 = vadd.f32 %v1093_v5, %v137_v30  ;;  %v397_v40 = vsel %vm269_vm1, %v205_v24, %v333_v33  ;;  %vm270_vm2 = vcmp.gt.f32.partialorder %v206_v34, 0.0  ;;  %v334_v41 = vmul.f32 0.2, %v206_v34 }
  0x4a   :  { %1048 = vst [vmem:[%s1506_s3 + $0xb8] sm:$0xff] %v984_v32   ;;  %v139_v42 = vmul.f32 %v1086_v2, %v68_v31  ;;  %v989_v43 = vpack.c.bf16 %v397_v40, %v396_v35  ;;  %vm271_vm3 = vcmp.gt.f32.partialorder %v207_v36, 0.0  ;;  %v335_v44 = vmul.f32 0.2, %v207_v36 }
  0x4b   :  { %v209_v45 = vadd.f32 %v1093_v5, %v138_v37  ;;  %v398_v47 = vsel %vm270_vm2, %v206_v34, %v334_v41  ;;  %vm272_vm4 = vcmp.gt.f32.partialorder %v208_v38, 0.0  ;;  %v336_v48 = vmul.f32 0.2, %v208_v38 }
  0x4c   :  { %v140_v49 = vmul.f32 %v1086_v2, %v69_v39  ;;  %1049 = vst [vmem:[%s1506_s3 + $0xc0] sm:$0xff] %v989_v43   ;;  %v399_v51 = vsel %vm271_vm3, %v207_v36, %v335_v44  ;;  %v210_v53 = vadd.f32 %v1093_v5, %v139_v42  ;;  %v141_v57 = vmul.f32 %v1086_v2, %v70_v46 }
  0x4d   :  { %vm273_vm5 = vcmp.gt.f32.partialorder %v209_v45, 0.0  ;;  %v337_v52 = vmul.f32 0.2, %v209_v45  ;;  %v994_v54 = vpack.c.bf16 %v399_v51, %v398_v47  ;;  %v400_v55 = vsel %vm272_vm4, %v208_v38, %v336_v48 }
  0x4e   :  { %v211_v56 = vadd.f32 %v1093_v5, %v140_v49  ;;  %vm274_vm6 = vcmp.gt.f32.partialorder %v210_v53, 0.0  ;;  %v338_v61 = vmul.f32 0.2, %v210_v53  ;;  %v142_v62 = vmul.f32 %v1086_v2, %v71_v50 }
  0x4f   :  { %v401_v60 = vsel %vm273_vm5, %v209_v45, %v337_v52  ;;  %1050 = vst [vmem:[%s1506_s3 + $0xc8] sm:$0xff] %v994_v54   ;;  %v212_v3 = vadd.f32 %v1093_v5, %v141_v57  ;;  %v143_v7 = vmul.f32 %v1086_v2, %v72_v58  ;;  %v144_v8 = vmul.f32 %v1086_v2, %v73_v59 }
  0x50   :  { %v999_v0 = vpack.c.bf16 %v401_v60, %v400_v55  ;;  %vm275_vm7 = vcmp.gt.f32.partialorder %v211_v56, 0.0  ;;  %v339_v1 = vmul.f32 0.2, %v211_v56  ;;  %v402_v4 = vsel %vm274_vm6, %v210_v53, %v338_v61 }
  0x51   :  { %v213_v6 = vadd.f32 %v1093_v5, %v142_v62  ;;  %vm276_vm8 = vcmp.gt.f32.partialorder %v212_v3, 0.0  ;;  %v340_v11 = vmul.f32 0.2, %v212_v3  ;;  %v145_v12 = vmul.f32 %v1086_v2, %v74_v63 }
  0x52   :  { %1051 = vst [vmem:[%s1506_s3 + $0xd0] sm:$0xff] %v999_v0   ;;  %v403_v10 = vsel %vm275_vm7, %v211_v56, %v339_v1  ;;  %v214_v16 = vadd.f32 %v1093_v5, %v143_v7  ;;  %v215_v18 = vadd.f32 %v1093_v5, %v144_v8  ;;  %v146_v19 = vmul.f32 %v1086_v2, %v75_v9 }
  0x53   :  { %v1004_v14 = vpack.c.bf16 %v403_v10, %v402_v4  ;;  %vm277_vm9 = vcmp.gt.f32.partialorder %v213_v6, 0.0  ;;  %v341_v15 = vmul.f32 0.2, %v213_v6  ;;  %v404_v17 = vsel %vm276_vm8, %v212_v3, %v340_v11 }
  0x54   :  { %v216_v20 = vadd.f32 %v1093_v5, %v145_v12  ;;  %vm278_vm10 = vcmp.gt.f32.partialorder %v214_v16, 0.0  ;;  %v342_v23 = vmul.f32 0.2, %v214_v16  ;;  %v147_v24 = vmul.f32 %v1086_v2, %v76_v13 }
  0x55   :  { %1052 = vst [vmem:[%s1506_s3 + $0xd8] sm:$0xff] %v1004_v14   ;;  %v405_v22 = vsel %vm277_vm9, %v213_v6, %v341_v15  ;;  %vm279_vm11 = vcmp.gt.f32.partialorder %v215_v18, 0.0  ;;  %v343_v26 = vmul.f32 0.2, %v215_v18  ;;  %v217_v27 = vadd.f32 %v1093_v5, %v146_v19 }
  0x56   :  { %v1009_v25 = vpack.c.bf16 %v405_v22, %v404_v17  ;;  %v406_v28 = vsel %vm278_vm10, %v214_v16, %v342_v23  ;;  %vm280_vm12 = vcmp.gt.f32.partialorder %v216_v20, 0.0  ;;  %v344_v29 = vmul.f32 0.2, %v216_v20 }
  0x57   :  { %v148_v30 = vmul.f32 %v1086_v2, %v77_v21  ;;  %v407_v31 = vsel %vm279_vm11, %v215_v18, %v343_v26  ;;  %vm281_vm13 = vcmp.gt.f32.partialorder %v217_v27, 0.0  ;;  %v345_v32 = vmul.f32 0.2, %v217_v27 }
  0x58   :  { %1053 = vst [vmem:[%s1506_s3 + $0xe0] sm:$0xff] %v1009_v25   ;;  %v218_v33 = vadd.f32 %v1093_v5, %v147_v24  ;;  %v1014_v34 = vpack.c.bf16 %v407_v31, %v406_v28  ;;  %v408_v35 = vsel %vm280_vm12, %v216_v20, %v344_v29 }
  0x59   :  { %v219_v36 = vadd.f32 %v1093_v5, %v148_v30  ;;  %v409_v37 = vsel %vm281_vm13, %v217_v27, %v345_v32 }
  0x5a   :  { %vm282_vm14 = vcmp.gt.f32.partialorder %v218_v33, 0.0  ;;  %v346_v38 = vmul.f32 0.2, %v218_v33  ;;  %1054 = vst [vmem:[%s1506_s3 + $0xe8] sm:$0xff] %v1014_v34   ;;  %v1019_v2 = vpack.c.bf16 %v409_v37, %v408_v35 }
  0x5b   :  { %vm283_vm15 = vcmp.gt.f32.partialorder %v219_v36, 0.0  ;;  %v347_v39 = vmul.f32 0.2, %v219_v36 }
  0x5c   :  { %v410_v40 = vsel %vm282_vm14, %v218_v33, %v346_v38  ;;  %1055 = vst [vmem:[%s1506_s3 + $0xf0] sm:$0xff] %v1019_v2  }
  0x5d   :  { %v411_v41 = vsel %vm283_vm15, %v219_v36, %v347_v39 }
  0x5e   :  { %v1024_v42 = vpack.c.bf16 %v411_v41, %v410_v40 }
  0x60   :  { %1056 = vst [vmem:[%s1506_s3 + $0xf8] sm:$0xff] %v1024_v42  }

// kernel: discriminator_forward.10
= control target key start
LH: loop header
LB: loop body
LE: loop exit
PB: predicated region body
PF: predicated region fallthrough
CT: control target
= control target key end

     0   :  { %v48_v0 = vlaneseq  ;;  %s621_s1 = inlined_call_operand.vmem [shape: f32[1,256], index: 1, kind: input, shape index: {}]   ;;  %s622_s2 = inlined_call_operand.vmem [shape: f32[1,256], index: 2, kind: input, shape index: {}]   ;;  %s623_s0 = inlined_call_operand.vmem [shape: f32[128,256], index: 0, kind: input, shape index: {}]   ;;  %s624_s3 = inlined_call_operand.vmem [shape: bf16[128,256], index: 3, kind: output, shape index: {}]  }
   0x1   :  { %v46_v2 = vld [vmem:[%s621_s1] sm:$0x3]  ;;  %v15_v5 = vld [vmem:[%s623_s0 + $0x8] sm:$0xff]  ;;  %v16_v8 = vld [vmem:[%s623_s0 + $0x10] sm:$0xff] }
   0x2   :  { %v49_v1 = vshrl.u32 %v48_v0, 7  ;;  %v90_v3 = vld [vmem:[%s622_s2] sm:$0x3]  ;;  %v17_v9 = vld [vmem:[%s623_s0 + $0x18] sm:$0xff]  ;;  %v19_v15 = vld [vmem:[%s623_s0 + $0x28] sm:$0xff] }
   0x3   :  { %v14_v4 = vld [vmem:[%s623_s0] sm:$0xff]  ;;  %v20_v16 = vld [vmem:[%s623_s0 + $0x30] sm:$0xff]  ;;  %v21_v17 = vld [vmem:[%s623_s0 + $0x38] sm:$0xff] }
   0x4   :  { %v50_v6 = vsub.s32 0, %v49_v1  ;;  %v54_v7 = vsub.s32 1, %v49_v1  ;;  %v18_v10 = vld [vmem:[%s623_s0 + $0x20] sm:$0xff]  ;;  %v23_v45 = vld [vmem:[%s623_s0 + $0x48] sm:$0xff]  ;;  %v24_v46 = vld [vmem:[%s623_s0 + $0x50] sm:$0xff] }
   0x5   :  { %v22_v40 = vld [vmem:[%s623_s0 + $0x40] sm:$0xff]  ;;  %v25_v47 = vld [vmem:[%s623_s0 + $0x58] sm:$0xff]  ;;  %v27_v59 = vld [vmem:[%s623_s0 + $0x68] sm:$0xff] }
   0x6   :  { %v419_v11 = vrot.slane %v46_v2, %v50_v6  ;;  %v421_v12 = vrot.slane %v46_v2, %v54_v7  ;;  %v423_v13 = vrot.slane %v90_v3, %v50_v6  ;;  %v425_v14 = vrot.slane %v90_v3, %v54_v7  ;;  %v26_v58 = vld [vmem:[%s623_s0 + $0x60] sm:$0xff]  ;;  %v28_v7 = vld [vmem:[%s623_s0 + $0x70] sm:$0xff] }
   0x8   :  { %v58_v18 = vmul.f32 %v419_v11, %v14_v4  ;;  %v59_v19 = vmul.f32 %v421_v12, %v15_v5  ;;  %v60_v20 = vmul.f32 %v419_v11, %v16_v8  ;;  %v61_v21 = vmul.f32 %v421_v12, %v17_v9  ;;  %v29_v8 = vld [vmem:[%s623_s0 + $0x78] sm:$0xff] }
   0x9   :  { %v62_v22 = vmul.f32 %v419_v11, %v18_v10  ;;  %v63_v23 = vmul.f32 %v421_v12, %v19_v15  ;;  %v64_v24 = vmul.f32 %v419_v11, %v20_v16  ;;  %v65_v25 = vmul.f32 %v421_v12, %v21_v17 }
   0xa   :  { %v102_v26 = vadd.f32 %v423_v13, %v58_v18  ;;  %v103_v27 = vadd.f32 %v425_v14, %v59_v19  ;;  %v104_v28 = vadd.f32 %v423_v13, %v60_v20  ;;  %v105_v29 = vadd.f32 %v425_v14, %v61_v21 }
   0xb   :  { %v106_v30 = vadd.f32 %v423_v13, %v62_v22  ;;  %v107_v31 = vadd.f32 %v425_v14, %v63_v23  ;;  %v108_v32 = vadd.f32 %v423_v13, %v64_v24  ;;  %v109_v33 = vadd.f32 %v425_v14, %v65_v25  ;;  %v30_v22 = vld [vmem:[%s623_s0 + $0x80] sm:$0xff]  ;;  %v31_v23 = vld [vmem:[%s623_s0 + $0x88] sm:$0xff] }
   0xc   :  { %vm134_vm0 = vcmp.gt.f32.partialorder %v102_v26, 0.0  ;;  %vm135_vm1 = vcmp.gt.f32.partialorder %v103_v27, 0.0  ;;  %v166_v34 = vmul.f32 0.2, %v102_v26  ;;  %v167_v35 = vmul.f32 0.2, %v103_v27 }
   0xd   :  { %vm136_vm2 = vcmp.gt.f32.partialorder %v104_v28, 0.0  ;;  %vm137_vm3 = vcmp.gt.f32.partialorder %v105_v29, 0.0  ;;  %v168_v36 = vmul.f32 0.2, %v104_v28  ;;  %v169_v37 = vmul.f32 0.2, %v105_v29 }
   0xe   :  { %v198_v38 = vsel %vm134_vm0, %v102_v26, %v166_v34  ;;  %v199_v39 = vsel %vm135_vm1, %v103_v27, %v167_v35  ;;  %vm138_vm4 = vcmp.gt.f32.partialorder %v106_v30, 0.0  ;;  %vm139_vm5 = vcmp.gt.f32.partialorder %v107_v31, 0.0  ;;  %v32_v27 = vld [vmem:[%s623_s0 + $0x90] sm:$0xff] }
   0xf   :  { %v362_v41 = vpack.c.bf16 %v199_v39, %v198_v38  ;;  %v200_v42 = vsel %vm136_vm2, %v104_v28, %v168_v36  ;;  %v201_v43 = vsel %vm137_vm3, %v105_v29, %v169_v37  ;;  %v170_v44 = vmul.f32 0.2, %v106_v30  ;;  %v33_v28 = vld [vmem:[%s623_s0 + $0x98] sm:$0xff] }
  0x10   :  { %v363_v48 = vpack.c.bf16 %v201_v43, %v200_v42  ;;  %v171_v49 = vmul.f32 0.2, %v107_v31  ;;  %vm140_vm6 = vcmp.gt.f32.partialorder %v108_v32, 0.0  ;;  %vm141_vm7 = vcmp.gt.f32.partialorder %v109_v33, 0.0 }
  0x11   :  { %326 = vst [vmem:[%s624_s3] sm:$0xff] %v362_v41  ;;  %v202_v50 = vsel %vm138_vm4, %v106_v30, %v170_v44  ;;  %v172_v51 = vmul.f32 0.2, %v108_v32  ;;  %v173_v52 = vmul.f32 0.2, %v109_v33  ;;  %v66_v53 = vmul.f32 %v419_v11, %v22_v40  ;;  %v34_v40 = vld [vmem:[%s623_s0 + $0xa0] sm:$0xff]  ;;  %v35_v41 = vld [vmem:[%s623_s0 + $0xa8] sm:$0xff] }
  0x12   :  { %327 = vst [vmem:[%s624_s3 + $0x8] sm:$0xff] %v363_v48  ;;  %v203_v54 = vsel %vm139_vm5, %v107_v31, %v171_v49  ;;  %v67_v55 = vmul.f32 %v421_v12, %v23_v45  ;;  %v68_v56 = vmul.f32 %v419_v11, %v24_v46  ;;  %v69_v57 = vmul.f32 %v421_v12, %v25_v47 }
  0x13   :  { %v364_v60 = vpack.c.bf16 %v203_v54, %v202_v50  ;;  %v204_v61 = vsel %vm140_vm6, %v108_v32, %v172_v51  ;;  %v205_v62 = vsel %vm141_vm7, %v109_v33, %v173_v52  ;;  %v110_v63 = vadd.f32 %v423_v13, %v66_v53  ;;  %v36_v54 = vld [vmem:[%s623_s0 + $0xb0] sm:$0xff] }
  0x14   :  { %v365_v0 = vpack.c.bf16 %v205_v62, %v204_v61  ;;  %v111_v1 = vadd.f32 %v425_v14, %v67_v55  ;;  %v112_v2 = vadd.f32 %v423_v13, %v68_v56  ;;  %v113_v3 = vadd.f32 %v425_v14, %v69_v57  ;;  %v37_v55 = vld [vmem:[%s623_s0 + $0xb8] sm:$0xff] }
  0x15   :  { %328 = vst [vmem:[%s624_s3 + $0x10] sm:$0xff] %v364_v60  ;;  %vm142_vm8 = vcmp.gt.f32.partialorder %v110_v63, 0.0  ;;  %v174_v4 = vmul.f32 0.2, %v110_v63  ;;  %v70_v5 = vmul.f32 %v419_v11, %v26_v58  ;;  %v71_v6 = vmul.f32 %v421_v12, %v27_v59 }
  0x16   :  { %329 = vst [vmem:[%s624_s3 + $0x18] sm:$0xff] %v365_v0  ;;  %vm143_vm9 = vcmp.gt.f32.partialorder %v111_v1, 0.0  ;;  %v175_v9 = vmul.f32 0.2, %v111_v1  ;;  %vm144_vm10 = vcmp.gt.f32.partialorder %v112_v2, 0.0  ;;  %vm145_vm11 = vcmp.gt.f32.partialorder %v113_v3, 0.0 }
  0x17   :  { %v206_v10 = vsel %vm142_vm8, %v110_v63, %v174_v4  ;;  %v176_v15 = vmul.f32 0.2, %v112_v2  ;;  %v177_v16 = vmul.f32 0.2, %v113_v3  ;;  %v114_v17 = vadd.f32 %v423_v13, %v70_v5 }
  0x18   :  { %v207_v18 = vsel %vm143_vm9, %v111_v1, %v175_v9  ;;  %v115_v19 = vadd.f32 %v425_v14, %v71_v6  ;;  %v72_v20 = vmul.f32 %v419_v11, %v28_v7  ;;  %v73_v21 = vmul.f32 %v421_v12, %v29_v8  ;;  %v40_v7 = vld [vmem:[%s623_s0 + $0xd0] sm:$0xff]  ;;  %v41_v8 = vld [vmem:[%s623_s0 + $0xd8] sm:$0xff] }
  0x19   :  { %v366_v24 = vpack.c.bf16 %v207_v18, %v206_v10  ;;  %v208_v25 = vsel %vm144_vm10, %v112_v2, %v176_v15  ;;  %v209_v26 = vsel %vm145_vm11, %v113_v3, %v177_v16  ;;  %vm146_vm12 = vcmp.gt.f32.partialorder %v114_v17, 0.0  ;;  %v38_v2 = vld [vmem:[%s623_s0 + $0xc0] sm:$0xff]  ;;  %v39_v3 = vld [vmem:[%s623_s0 + $0xc8] sm:$0xff] }
  0x1a   :  { %v367_v29 = vpack.c.bf16 %v209_v26, %v208_v25  ;;  %vm147_vm13 = vcmp.gt.f32.partialorder %v115_v19, 0.0  ;;  %v178_v30 = vmul.f32 0.2, %v114_v17  ;;  %v179_v31 = vmul.f32 0.2, %v115_v19  ;;  %v43_v25 = vld [vmem:[%s623_s0 + $0xe8] sm:$0xff] }
  0x1b   :  { %330 = vst [vmem:[%s624_s3 + $0x20] sm:$0xff] %v366_v24  ;;  %v116_v32 = vadd.f32 %v423_v13, %v72_v20  ;;  %v117_v33 = vadd.f32 %v425_v14, %v73_v21  ;;  %v74_v34 = vmul.f32 %v419_v11, %v30_v22  ;;  %v75_v35 = vmul.f32 %v421_v12, %v31_v23  ;;  %v42_v24 = vld [vmem:[%s623_s0 + $0xe0] sm:$0xff] }
  0x1c   :  { %331 = vst [vmem:[%s624_s3 + $0x28] sm:$0xff] %v367_v29  ;;  %v210_v36 = vsel %vm146_vm12, %v114_v17, %v178_v30  ;;  %v211_v37 = vsel %vm147_vm13, %v115_v19, %v179_v31  ;;  %v76_v38 = vmul.f32 %v419_v11, %v32_v27  ;;  %v77_v39 = vmul.f32 %v421_v12, %v33_v28 }
  0x1d   :  { %v368_v42 = vpack.c.bf16 %v211_v37, %v210_v36  ;;  %vm148_vm14 = vcmp.gt.f32.partialorder %v116_v32, 0.0  ;;  %vm149_vm15 = vcmp.gt.f32.partialorder %v117_v33, 0.0  ;;  %v180_v43 = vmul.f32 0.2, %v116_v32 }
  0x1e   :  { %v181_v44 = vmul.f32 0.2, %v117_v33  ;;  %v118_v45 = vadd.f32 %v423_v13, %v74_v34  ;;  %v119_v46 = vadd.f32 %v425_v14, %v75_v35  ;;  %v120_v47 = vadd.f32 %v423_v13, %v76_v38  ;;  %v44_v38 = vld [vmem:[%s623_s0 + $0xf0] sm:$0xff] }
  0x1f   :  { %332 = vst [vmem:[%s624_s3 + $0x30] sm:$0xff] %v368_v42  ;;  %v212_v48 = vsel %vm148_vm14, %v116_v32, %v180_v43  ;;  %v121_v49 = vadd.f32 %v425_v14, %v77_v39  ;;  %v78_v50 = vmul.f32 %v419_v11, %v34_v40  ;;  %v79_v51 = vmul.f32 %v421_v12, %v35_v41  ;;  %v45_v39 = vld [vmem:[%s623_s0 + $0xf8] sm:$0xff] }
  0x20   :  { %v213_v52 = vsel %vm149_vm15, %v117_v33, %v181_v44  ;;  %vm150_vm0 = vcmp.gt.f32.partialorder %v118_v45, 0.0  ;;  %vm151_vm1 = vcmp.gt.f32.partialorder %v119_v46, 0.0  ;;  %v182_v53 = vmul.f32 0.2, %v118_v45 }
  0x21   :  { %v369_v56 = vpack.c.bf16 %v213_v52, %v212_v48  ;;  %v183_v57 = vmul.f32 0.2, %v119_v46  ;;  %vm152_vm2 = vcmp.gt.f32.partialorder %v120_v47, 0.0  ;;  %vm153_vm3 = vcmp.gt.f32.partialorder %v121_v49, 0.0 }
  0x22   :  { %v214_v58 = vsel %vm150_vm0, %v118_v45, %v182_v53  ;;  %v184_v59 = vmul.f32 0.2, %v120_v47  ;;  %v185_v60 = vmul.f32 0.2, %v121_v49  ;;  %v122_v61 = vadd.f32 %v423_v13, %v78_v50 }
  0x23   :  { %333 = vst [vmem:[%s624_s3 + $0x38] sm:$0xff] %v369_v56  ;;  %v215_v62 = vsel %vm151_vm1, %v119_v46, %v183_v57  ;;  %v123_v63 = vadd.f32 %v425_v14, %v79_v51  ;;  %v80_v0 = vmul.f32 %v419_v11, %v36_v54  ;;  %v81_v1 = vmul.f32 %v421_v12, %v37_v55 }
  0x24   :  { %v370_v4 = vpack.c.bf16 %v215_v62, %v214_v58  ;;  %v216_v5 = vsel %vm152_vm2, %v120_v47, %v184_v59  ;;  %v217_v6 = vsel %vm153_vm3, %v121_v49, %v185_v60  ;;  %vm154_vm4 = vcmp.gt.f32.partialorder %v122_v61, 0.0 }
  0x25   :  { %v371_v9 = vpack.c.bf16 %v217_v6, %v216_v5  ;;  %vm155_vm5 = vcmp.gt.f32.partialorder %v123_v63, 0.0  ;;  %v186_v10 = vmul.f32 0.2, %v122_v61  ;;  %v187_v15 = vmul.f32 0.2, %v123_v63 }
  0x26   :  { %334 = vst [vmem:[%s624_s3 + $0x40] sm:$0xff] %v370_v4  ;;  %v124_v16 = vadd.f32 %v423_v13, %v80_v0  ;;  %v125_v17 = vadd.f32 %v425_v14, %v81_v1  ;;  %v82_v18 = vmul.f32 %v419_v11, %v38_v2  ;;  %v83_v19 = vmul.f32 %v421_v12, %v39_v3 }
  0x27   :  { %335 = vst [vmem:[%s624_s3 + $0x48] sm:$0xff] %v371_v9  ;;  %v218_v20 = vsel %vm154_vm4, %v122_v61, %v186_v10  ;;  %v219_v21 = vsel %vm155_vm5, %v123_v63, %v187_v15  ;;  %v84_v22 = vmul.f32 %v419_v11, %v40_v7  ;;  %v85_v23 = vmul.f32 %v421_v12, %v41_v8 }
  0x28   :  { %v372_v26 = vpack.c.bf16 %v219_v21, %v218_v20  ;;  %vm156_vm6 = vcmp.gt.f32.partialorder %v124_v16, 0.0  ;;  %vm157_vm7 = vcmp.gt.f32.partialorder %v125_v17, 0.0  ;;  %v188_v27 = vmul.f32 0.2, %v124_v16 }
  0x29   :  { %v189_v28 = vmul.f32 0.2, %v125_v17  ;;  %v126_v29 = vadd.f32 %v423_v13, %v82_v18  ;;  %v127_v30 = vadd.f32 %v425_v14, %v83_v19  ;;  %v128_v31 = vadd.f32 %v423_v13, %v84_v22 }
  0x2a   :  { %336 = vst [vmem:[%s624_s3 + $0x50] sm:$0xff] %v372_v26  ;;  %v220_v32 = vsel %vm156_vm6, %v124_v16, %v188_v27  ;;  %v129_v33 = vadd.f32 %v425_v14, %v85_v23  ;;  %v86_v34 = vmul.f32 %v419_v11, %v42_v24  ;;  %v87_v35 = vmul.f32 %v421_v12, %v43_v25 }
  0x2b   :  { %v221_v36 = vsel %vm157_vm7, %v125_v17, %v189_v28  ;;  %vm158_vm8 = vcmp.gt.f32.partialorder %v126_v29, 0.0  ;;  %vm159_vm9 = vcmp.gt.f32.partialorder %v127_v30, 0.0  ;;  %v190_v37 = vmul.f32 0.2, %v126_v29 }
  0x2c   :  { %v373_v40 = vpack.c.bf16 %v221_v36, %v220_v32  ;;  %v191_v41 = vmul.f32 0.2, %v127_v30  ;;  %vm160_vm10 = vcmp.gt.f32.partialorder %v128_v31, 0.0  ;;  %vm161_vm11 = vcmp.gt.f32.partialorder %v129_v33, 0.0 }
  0x2d   :  { %v222_v42 = vsel %vm158_vm8, %v126_v29, %v190_v37  ;;  %v192_v43 = vmul.f32 0.2, %v128_v31  ;;  %v193_v44 = vmul.f32 0.2, %v129_v33  ;;  %v130_v45 = vadd.f32 %v423_v13, %v86_v34 }
  0x2e   :  { %337 = vst [vmem:[%s624_s3 + $0x58] sm:$0xff] %v373_v40  ;;  %v223_v46 = vsel %vm159_vm9, %v127_v30, %v191_v41  ;;  %v131_v47 = vadd.f32 %v425_v14, %v87_v35  ;;  %v88_v48 = vmul.f32 %v419_v11, %v44_v38  ;;  %v89_v49 = vmul.f32 %v421_v12, %v45_v39 }
  0x2f   :  { %v374_v50 = vpack.c.bf16 %v223_v46, %v222_v42  ;;  %v224_v51 = vsel %vm160_vm10, %v128_v31, %v192_v43  ;;  %v225_v52 = vsel %vm161_vm11, %v129_v33, %v193_v44  ;;  %vm162_vm12 = vcmp.gt.f32.partialorder %v130_v45, 0.0 }
  0x30   :  { %v375_v53 = vpack.c.bf16 %v225_v52, %v224_v51  ;;  %vm163_vm13 = vcmp.gt.f32.partialorder %v131_v47, 0.0  ;;  %v194_v54 = vmul.f32 0.2, %v130_v45  ;;  %v195_v55 = vmul.f32 0.2, %v131_v47 }
  0x31   :  { %338 = vst [vmem:[%s624_s3 + $0x60] sm:$0xff] %v374_v50  ;;  %v132_v56 = vadd.f32 %v423_v13, %v88_v48  ;;  %v133_v57 = vadd.f32 %v425_v14, %v89_v49 }
  0x32   :  { %339 = vst [vmem:[%s624_s3 + $0x68] sm:$0xff] %v375_v53  ;;  %v226_v11 = vsel %vm162_vm12, %v130_v45, %v194_v54  ;;  %v227_v12 = vsel %vm163_vm13, %v131_v47, %v195_v55 }
  0x33   :  { %v376_v58 = vpack.c.bf16 %v227_v12, %v226_v11  ;;  %vm164_vm14 = vcmp.gt.f32.partialorder %v132_v56, 0.0  ;;  %vm165_vm15 = vcmp.gt.f32.partialorder %v133_v57, 0.0  ;;  %v196_v59 = vmul.f32 0.2, %v132_v56 }
  0x34   :  { %v197_v60 = vmul.f32 0.2, %v133_v57 }
  0x35   :  { %340 = vst [vmem:[%s624_s3 + $0x70] sm:$0xff] %v376_v58  ;;  %v228_v61 = vsel %vm164_vm14, %v132_v56, %v196_v59 }
  0x36   :  { %v229_v62 = vsel %vm165_vm15, %v133_v57, %v197_v60 }
  0x37   :  { %v377_v13 = vpack.c.bf16 %v229_v62, %v228_v61 }
  0x39   :  { %341 = vst [vmem:[%s624_s3 + $0x78] sm:$0xff] %v377_v13 }

// kernel: discriminator_forward.9
= control target key start
LH: loop header
LB: loop body
LE: loop exit
PB: predicated region body
PF: predicated region fallthrough
CT: control target
= control target key end

     0   :  { %s5833_s1 = inlined_call_operand.vmem [shape: bf16[2048,256], index: 1, kind: input, shape index: {}]   ;;  %s5834_s0 = inlined_call_operand.vmem [shape: bf16[128,2048], index: 0, kind: input, shape index: {}]   ;;  %s5835_s4 = inlined_call_operand.vmem [shape: f32[1,256], index: 4, kind: output, shape index: {1}]   ;;  %s5836_s5 = inlined_call_operand.vmem [shape: f32[1,256], index: 5, kind: output, shape index: {2}]   ;;  %s5837_s2 = inlined_call_operand.vmem [shape: f32[1,256], index: 2, kind: input, shape index: {}]   ;;  %s5838_s3 = inlined_call_operand.vmem [shape: f32[128,256], index: 3, kind: output, shape index: {0}]  }
   0x1   :  { %v4095_v0 = vld [vmem:[%s5833_s1 + $0x4] ss:$8 sps:$4 sm:$0xff]   ;;  %v4099_v2 = vld [vmem:[%s5833_s1] ss:$8 sps:$4 sm:$0xff]   ;;  %v4101_v4 = vld [vmem:[%s5833_s1 + $0x14] ss:$8 sps:$4 sm:$0xff]  }
   0x2   :  { %v4097_v1 = vld [vmem:[%s5833_s1 + $0x404] ss:$8 sps:$4 sm:$0xff]   ;;  %2343 = vmatprep.subr.bf16.mxu1 %v4095_v0  ;;  %v4100_v3 = vld [vmem:[%s5833_s1 + $0x400] ss:$8 sps:$4 sm:$0xff]   ;;  %v4103_v5 = vld [vmem:[%s5833_s1 + $0x414] ss:$8 sps:$4 sm:$0xff]  }
   0x3   :  { %2795 = vmatprep.subr.bf16.mxu0 %v4097_v1  ;;  %2344 = vmatpush1.bf16.msra.mxu1 %v4099_v2  ;;  %v4105_v6 = vld [vmem:[%s5833_s1 + $0x10] ss:$8 sps:$4 sm:$0xff]   ;;  %v4107_v8 = vld [vmem:[%s5833_s1 + $0x24] ss:$8 sps:$4 sm:$0xff]   ;;  %v4111_v10 = vld [vmem:[%s5833_s1 + $0x20] ss:$8 sps:$4 sm:$0xff]  }
   0x4   :  { %2796 = vmatpush1.bf16.msra.mxu0 %v4100_v3  ;;  %2345 = vmatprep.subr.bf16.mxu1 %v4101_v4  ;;  %v4106_v7 = vld [vmem:[%s5833_s1 + $0x410] ss:$8 sps:$4 sm:$0xff]   ;;  %v4109_v9 = vld [vmem:[%s5833_s1 + $0x424] ss:$8 sps:$4 sm:$0xff]   ;;  %v4112_v11 = vld [vmem:[%s5833_s1 + $0x420] ss:$8 sps:$4 sm:$0xff]  }
   0x5   :  { %2797 = vmatprep.subr.bf16.mxu0 %v4103_v5  ;;  %v4113_v12 = vld [vmem:[%s5833_s1 + $0x34] ss:$8 sps:$4 sm:$0xff]   ;;  %v4117_v14 = vld [vmem:[%s5833_s1 + $0x30] ss:$8 sps:$4 sm:$0xff]   ;;  %v4119_v16 = vld [vmem:[%s5833_s1 + $0x44] ss:$8 sps:$4 sm:$0xff]  }
   0x6   :  { %v4115_v13 = vld [vmem:[%s5833_s1 + $0x434] ss:$8 sps:$4 sm:$0xff]   ;;  %v4118_v15 = vld [vmem:[%s5833_s1 + $0x430] ss:$8 sps:$4 sm:$0xff]   ;;  %v4121_v17 = vld [vmem:[%s5833_s1 + $0x444] ss:$8 sps:$4 sm:$0xff]  }
   0x7   :  { %2346 = vmatpush1.bf16.msra.mxu1 %v4105_v6  ;;  %v4123_v18 = vld [vmem:[%s5833_s1 + $0x40] ss:$8 sps:$4 sm:$0xff]   ;;  %v4125_v20 = vld [vmem:[%s5833_s1 + $0x54] ss:$8 sps:$4 sm:$0xff]   ;;  %v4129_v22 = vld [vmem:[%s5833_s1 + $0x50] ss:$8 sps:$4 sm:$0xff]  }
   0x8   :  { %2798 = vmatpush1.bf16.msra.mxu0 %v4106_v7  ;;  %2347 = vmatprep.subr.bf16.mxu1 %v4107_v8  ;;  %v4124_v19 = vld [vmem:[%s5833_s1 + $0x440] ss:$8 sps:$4 sm:$0xff]   ;;  %v4127_v21 = vld [vmem:[%s5833_s1 + $0x454] ss:$8 sps:$4 sm:$0xff]   ;;  %v4130_v23 = vld [vmem:[%s5833_s1 + $0x450] ss:$8 sps:$4 sm:$0xff]  }
   0x9   :  { %2799 = vmatprep.subr.bf16.mxu0 %v4109_v9  ;;  %v4131_v24 = vld [vmem:[%s5833_s1 + $0x64] ss:$8 sps:$4 sm:$0xff]   ;;  %v4135_v26 = vld [vmem:[%s5833_s1 + $0x60] ss:$8 sps:$4 sm:$0xff]   ;;  %v4137_v28 = vld [vmem:[%s5833_s1 + $0x74] ss:$8 sps:$4 sm:$0xff]  }
   0xa   :  { %v4133_v25 = vld [vmem:[%s5833_s1 + $0x464] ss:$8 sps:$4 sm:$0xff]   ;;  %v4136_v27 = vld [vmem:[%s5833_s1 + $0x460] ss:$8 sps:$4 sm:$0xff]   ;;  %v4139_v29 = vld [vmem:[%s5833_s1 + $0x474] ss:$8 sps:$4 sm:$0xff]  }
   0xb   :  { %2348 = vmatpush1.bf16.msra.mxu1 %v4111_v10  ;;  %v4141_v30 = vld [vmem:[%s5833_s1 + $0x70] ss:$8 sps:$4 sm:$0xff]   ;;  %v4143_v32 = vld [vmem:[%s5833_s1 + $0x84] ss:$8 sps:$4 sm:$0xff]   ;;  %v4147_v34 = vld [vmem:[%s5833_s1 + $0x80] ss:$8 sps:$4 sm:$0xff]  }
   0xc   :  { %2800 = vmatpush1.bf16.msra.mxu0 %v4112_v11  ;;  %2349 = vmatprep.subr.bf16.mxu1 %v4113_v12  ;;  %v4142_v31 = vld [vmem:[%s5833_s1 + $0x470] ss:$8 sps:$4 sm:$0xff]   ;;  %v4145_v33 = vld [vmem:[%s5833_s1 + $0x484] ss:$8 sps:$4 sm:$0xff]   ;;  %v4148_v35 = vld [vmem:[%s5833_s1 + $0x480] ss:$8 sps:$4 sm:$0xff]  }
   0xd   :  { %2801 = vmatprep.subr.bf16.mxu0 %v4115_v13  ;;  %v4149_v36 = vld [vmem:[%s5833_s1 + $0x94] ss:$8 sps:$4 sm:$0xff]   ;;  %v4153_v38 = vld [vmem:[%s5833_s1 + $0x90] ss:$8 sps:$4 sm:$0xff]   ;;  %v4155_v40 = vld [vmem:[%s5833_s1 + $0xa4] ss:$8 sps:$4 sm:$0xff]  }
   0xe   :  { %v4151_v37 = vld [vmem:[%s5833_s1 + $0x494] ss:$8 sps:$4 sm:$0xff]   ;;  %v4154_v39 = vld [vmem:[%s5833_s1 + $0x490] ss:$8 sps:$4 sm:$0xff]   ;;  %v4157_v41 = vld [vmem:[%s5833_s1 + $0x4a4] ss:$8 sps:$4 sm:$0xff]  }
   0xf   :  { %2350 = vmatpush1.bf16.msra.mxu1 %v4117_v14  ;;  %v4159_v42 = vld [vmem:[%s5833_s1 + $0xa0] ss:$8 sps:$4 sm:$0xff]   ;;  %v4161_v44 = vld [vmem:[%s5833_s1 + $0xb4] ss:$8 sps:$4 sm:$0xff]   ;;  %v4165_v46 = vld [vmem:[%s5833_s1 + $0xb0] ss:$8 sps:$4 sm:$0xff]  }
  0x10   :  { %2802 = vmatpush1.bf16.msra.mxu0 %v4118_v15  ;;  %2351 = vmatprep.subr.bf16.mxu1 %v4119_v16  ;;  %v4160_v43 = vld [vmem:[%s5833_s1 + $0x4a0] ss:$8 sps:$4 sm:$0xff]   ;;  %v4163_v45 = vld [vmem:[%s5833_s1 + $0x4b4] ss:$8 sps:$4 sm:$0xff]   ;;  %v4166_v47 = vld [vmem:[%s5833_s1 + $0x4b0] ss:$8 sps:$4 sm:$0xff]  }
  0x11   :  { %2803 = vmatprep.subr.bf16.mxu0 %v4121_v17  ;;  %v27_v48 = vld [vmem:[%s5834_s0] sm:$0xff]  ;;  %v4173_v58 = vld [vmem:[%s5833_s1 + $0xd4] ss:$8 sps:$4 sm:$0xff]   ;;  %v4177_v60 = vld [vmem:[%s5833_s1 + $0xd0] ss:$8 sps:$4 sm:$0xff]  }
  0x12   :  { %v35_v49 = vld [vmem:[%s5834_s0 + $0x40] sm:$0xff]  ;;  %v4175_v59 = vld [vmem:[%s5833_s1 + $0x4d4] ss:$8 sps:$4 sm:$0xff]   ;;  %v4178_v61 = vld [vmem:[%s5833_s1 + $0x4d0] ss:$8 sps:$4 sm:$0xff]  }
  0x13   :  { %2352 = vmatpush1.bf16.msra.mxu1 %v4123_v18  ;;  %v31_v50 = vld [vmem:[%s5834_s0 + $0x20] sm:$0xff]  ;;  %v3454_v53 = vcombine.high %v27_v48, %v35_v49  ;;  %v4185_v2 = vld [vmem:[%s5833_s1 + $0xf4] ss:$8 sps:$4 sm:$0xff]   ;;  %v4189_v4 = vld [vmem:[%s5833_s1 + $0xf0] ss:$8 sps:$4 sm:$0xff]   ;;  %v3453_v11 = vcombine.low %v27_v48, %v35_v49 }
  0x14   :  { %2804 = vmatpush1.bf16.msra.mxu0 %v4124_v19  ;;  %2353 = vmatprep.subr.bf16.mxu1 %v4125_v20  ;;  %v39_v51 = vld [vmem:[%s5834_s0 + $0x60] sm:$0xff]  ;;  %v4187_v3 = vld [vmem:[%s5833_s1 + $0x4f4] ss:$8 sps:$4 sm:$0xff]   ;;  %v4190_v5 = vld [vmem:[%s5833_s1 + $0x4f0] ss:$8 sps:$4 sm:$0xff]  }
  0x15   :  { %2805 = vmatprep.subr.bf16.mxu0 %v4127_v21  ;;  %v4167_v52 = vld [vmem:[%s5833_s1 + $0xc4] ss:$8 sps:$4 sm:$0xff]   ;;  %v3462_v55 = vcombine.high %v31_v50, %v39_v51  ;;  %2375 = vmatprep.mubr.bf16.mxu1 %v3454_v53  ;;  %v4171_v56 = vld [vmem:[%s5833_s1 + $0xc0] ss:$8 sps:$4 sm:$0xff]   ;;  %v3461_v12 = vcombine.low %v31_v50, %v39_v51  ;;  %v4199_v16 = vld [vmem:[%s5833_s1 + $0x114] ss:$8 sps:$4 sm:$0xff]  }
  0x16   :  { %v4169_v54 = vld [vmem:[%s5833_s1 + $0x4c4] ss:$8 sps:$4 sm:$0xff]   ;;  %v4172_v57 = vld [vmem:[%s5833_s1 + $0x4c0] ss:$8 sps:$4 sm:$0xff]   ;;  %v4202_v17 = vld [vmem:[%s5833_s1 + $0x514] ss:$8 sps:$4 sm:$0xff]  }
  0x17   :  { %2354 = vmatpush1.bf16.msra.mxu1 %v4129_v22  ;;  %2827 = vmatprep.mubr.bf16.mxu0 %v3462_v55  ;;  %v4179_v62 = vld [vmem:[%s5833_s1 + $0xe4] ss:$8 sps:$4 sm:$0xff]   ;;  %v4183_v0 = vld [vmem:[%s5833_s1 + $0xe0] ss:$8 sps:$4 sm:$0xff]   ;;  %v4197_v20 = vld [vmem:[%s5833_s1 + $0x110] ss:$8 sps:$4 sm:$0xff]  }
  0x18   :  { %2806 = vmatpush1.bf16.msra.mxu0 %v4130_v23  ;;  %2355 = vmatprep.subr.bf16.mxu1 %v4131_v24  ;;  %v4181_v63 = vld [vmem:[%s5833_s1 + $0x4e4] ss:$8 sps:$4 sm:$0xff]   ;;  %v4184_v1 = vld [vmem:[%s5833_s1 + $0x4e0] ss:$8 sps:$4 sm:$0xff]   ;;  %v4200_v21 = vld [vmem:[%s5833_s1 + $0x510] ss:$8 sps:$4 sm:$0xff]  }
  0x19   :  { %2807 = vmatprep.subr.bf16.mxu0 %v4133_v25  ;;  %v4193_v6 = vld [vmem:[%s5833_s1 + $0x104] ss:$8 sps:$4 sm:$0xff]   ;;  %v4191_v8 = vld [vmem:[%s5833_s1 + $0x100] ss:$8 sps:$4 sm:$0xff]   ;;  %v4223_v48 = vld [vmem:[%s5833_s1 + $0x154] ss:$8 sps:$4 sm:$0xff]  }
  0x1a   :  { %v4196_v7 = vld [vmem:[%s5833_s1 + $0x504] ss:$8 sps:$4 sm:$0xff]   ;;  %v4194_v9 = vld [vmem:[%s5833_s1 + $0x500] ss:$8 sps:$4 sm:$0xff]   ;;  %v4226_v49 = vld [vmem:[%s5833_s1 + $0x554] ss:$8 sps:$4 sm:$0xff]  }
  0x1b   :  { %2356 = vmatpush1.bf16.msra.mxu1 %v4135_v26  ;;  %v43_v10 = vld [vmem:[%s5834_s0 + $0x80] sm:$0xff]  ;;  %v4224_v53 = vld [vmem:[%s5833_s1 + $0x550] ss:$8 sps:$4 sm:$0xff]  }
  0x1c   :  { %2808 = vmatpush1.bf16.msra.mxu0 %v4136_v27  ;;  %2357 = vmatprep.subr.bf16.mxu1 %v4137_v28  ;;  %v51_v13 = vld [vmem:[%s5834_s0 + $0xc0] sm:$0xff] }
  0x1d   :  { %2809 = vmatprep.subr.bf16.mxu0 %v4139_v29  ;;  %v47_v14 = vld [vmem:[%s5834_s0 + $0xa0] sm:$0xff]  ;;  %v3470_v18 = vcombine.high %v43_v10, %v51_v13  ;;  %v3469_v28 = vcombine.low %v43_v10, %v51_v13 }
  0x1e   :  { %v55_v15 = vld [vmem:[%s5834_s0 + $0xe0] sm:$0xff] }
  0x1f   :  { %2358 = vmatpush1.bf16.msra.mxu1 %v4141_v30  ;;  %v3478_v19 = vcombine.high %v47_v14, %v55_v15  ;;  %v4205_v22 = vld [vmem:[%s5833_s1 + $0x124] ss:$8 sps:$4 sm:$0xff]   ;;  %v4203_v24 = vld [vmem:[%s5833_s1 + $0x120] ss:$8 sps:$4 sm:$0xff]   ;;  %v3477_v29 = vcombine.low %v47_v14, %v55_v15 }
  0x20   :  { %2810 = vmatpush1.bf16.msra.mxu0 %v4142_v31  ;;  %2359 = vmatprep.subr.bf16.mxu1 %v4143_v32  ;;  %v4208_v23 = vld [vmem:[%s5833_s1 + $0x524] ss:$8 sps:$4 sm:$0xff]   ;;  %v4206_v25 = vld [vmem:[%s5833_s1 + $0x520] ss:$8 sps:$4 sm:$0xff]   ;;  %v4211_v32 = vld [vmem:[%s5833_s1 + $0x134] ss:$8 sps:$4 sm:$0xff]  }
  0x21   :  { %2811 = vmatprep.subr.bf16.mxu0 %v4145_v33  ;;  %v59_v26 = vld [vmem:[%s5834_s0 + $0x100] sm:$0xff]  ;;  %v4214_v33 = vld [vmem:[%s5833_s1 + $0x534] ss:$8 sps:$4 sm:$0xff]  }
  0x22   :  { %v67_v27 = vld [vmem:[%s5834_s0 + $0x140] sm:$0xff] }
  0x23   :  { %2360 = vmatpush1.bf16.msra.mxu1 %v4147_v34  ;;  %v63_v30 = vld [vmem:[%s5834_s0 + $0x120] sm:$0xff]  ;;  %v3486_v34 = vcombine.high %v59_v26, %v67_v27 }
  0x24   :  { %2812 = vmatpush1.bf16.msra.mxu0 %v4148_v35  ;;  %2361 = vmatprep.subr.bf16.mxu1 %v4149_v36  ;;  %v71_v31 = vld [vmem:[%s5834_s0 + $0x160] sm:$0xff]  ;;  %v4209_v36 = vld [vmem:[%s5833_s1 + $0x130] ss:$8 sps:$4 sm:$0xff]  }
  0x25   :  { %2813 = vmatprep.subr.bf16.mxu0 %v4151_v37  ;;  %v3494_v35 = vcombine.high %v63_v30, %v71_v31  ;;  %v4212_v37 = vld [vmem:[%s5833_s1 + $0x530] ss:$8 sps:$4 sm:$0xff]   ;;  %v4232_v55 = vld [vmem:[%s5833_s1 + $0x564] ss:$8 sps:$4 sm:$0xff]   ;;  %v4239_v14 = vld [vmem:[%s5833_s1 + $0x180] ss:$8 sps:$4 sm:$0xff]  }
  0x26   :  { %v119_v13 = vld [vmem:[%s5834_s0 + $0x2e0] sm:$0xff] }
  0x27   :  { %2362 = vmatpush1.bf16.msra.mxu1 %v4153_v38  ;;  %v4217_v38 = vld [vmem:[%s5833_s1 + $0x144] ss:$8 sps:$4 sm:$0xff]   ;;  %v4242_v15 = vld [vmem:[%s5833_s1 + $0x580] ss:$8 sps:$4 sm:$0xff]  }
  0x28   :  { %2814 = vmatpush1.bf16.msra.mxu0 %v4154_v39  ;;  %2363 = vmatprep.subr.bf16.mxu1 %v4155_v40  ;;  %v4220_v39 = vld [vmem:[%s5833_s1 + $0x544] ss:$8 sps:$4 sm:$0xff]   ;;  %v4215_v40 = vld [vmem:[%s5833_s1 + $0x140] ss:$8 sps:$4 sm:$0xff]  }
  0x29   :  { %2815 = vmatprep.subr.bf16.mxu0 %v4157_v41  ;;  %v4218_v41 = vld [vmem:[%s5833_s1 + $0x540] ss:$8 sps:$4 sm:$0xff]  }
  0x2b   :  { %2364 = vmatpush1.bf16.msra.mxu1 %v4159_v42  ;;  %v75_v42 = vld [vmem:[%s5834_s0 + $0x180] sm:$0xff] }
  0x2c   :  { %2816 = vmatpush1.bf16.msra.mxu0 %v4160_v43  ;;  %2365 = vmatprep.subr.bf16.mxu1 %v4161_v44  ;;  %v83_v43 = vld [vmem:[%s5834_s0 + $0x1c0] sm:$0xff]  ;;  %v3485_v44 = vcombine.low %v59_v26, %v67_v27 }
  0x2d   :  { %2817 = vmatprep.subr.bf16.mxu0 %v4163_v45  ;;  %v3493_v45 = vcombine.low %v63_v30, %v71_v31  ;;  %v3502_v50 = vcombine.high %v75_v42, %v83_v43  ;;  %v123_v26 = vld [vmem:[%s5834_s0 + $0x300] sm:$0xff] }
  0x2e   :  { %v127_v30 = vld [vmem:[%s5834_s0 + $0x320] sm:$0xff] }
  0x2f   :  { %2366 = vmatpush1.bf16.msra.mxu1 %v4165_v46  ;;  %v79_v46 = vld [vmem:[%s5834_s0 + $0x1a0] sm:$0xff] }
  0x30   :  { %2818 = vmatpush1.bf16.msra.mxu0 %v4166_v47  ;;  %2367 = vmatprep.subr.bf16.mxu1 %v4167_v52  ;;  %v87_v47 = vld [vmem:[%s5834_s0 + $0x1e0] sm:$0xff]  ;;  %v4221_v52 = vld [vmem:[%s5833_s1 + $0x150] ss:$8 sps:$4 sm:$0xff]  }
  0x31   :  { %2819 = vmatprep.subr.bf16.mxu0 %v4169_v54  ;;  %v3510_v51 = vcombine.high %v79_v46, %v87_v47  ;;  %v4229_v54 = vld [vmem:[%s5833_s1 + $0x164] ss:$8 sps:$4 sm:$0xff]  }
  0x32   :  { %v135_v31 = vld [vmem:[%s5834_s0 + $0x360] sm:$0xff] }
  0x33   :  { %2368 = vmatpush1.bf16.msra.mxu1 %v4171_v56  ;;  %v4227_v56 = vld [vmem:[%s5833_s1 + $0x160] ss:$8 sps:$4 sm:$0xff]  }
  0x34   :  { %2820 = vmatpush1.bf16.msra.mxu0 %v4172_v57  ;;  %2369 = vmatprep.subr.bf16.mxu1 %v4173_v58  ;;  %v91_v57 = vld [vmem:[%s5834_s0 + $0x200] sm:$0xff] }
  0x35   :  { %2821 = vmatprep.subr.bf16.mxu0 %v4175_v59  ;;  %v99_v58 = vld [vmem:[%s5834_s0 + $0x240] sm:$0xff]  ;;  %v3501_v59 = vcombine.low %v75_v42, %v83_v43 }
  0x36   :  { %v3517_v10 = vcombine.low %v91_v57, %v99_v58  ;;  %v139_v42 = vld [vmem:[%s5834_s0 + $0x380] sm:$0xff] }
  0x37   :  { %2370 = vmatpush1.bf16.msra.mxu1 %v4177_v60  ;;  %v3509_v60 = vcombine.low %v79_v46, %v87_v47  ;;  %v147_v43 = vld [vmem:[%s5834_s0 + $0x3c0] sm:$0xff] }
  0x38   :  { %2822 = vmatpush1.bf16.msra.mxu0 %v4178_v61  ;;  %2371 = vmatprep.subr.bf16.mxu1 %v4179_v62  ;;  %v95_v61 = vld [vmem:[%s5834_s0 + $0x220] sm:$0xff] }
  0x39   :  { %2823 = vmatprep.subr.bf16.mxu0 %v4181_v63  ;;  %v103_v62 = vld [vmem:[%s5834_s0 + $0x260] sm:$0xff] }
  0x3a   :  { %v4230_v63 = vld [vmem:[%s5833_s1 + $0x560] ss:$8 sps:$4 sm:$0xff]  }
  0x3b   :  { %2372 = vmatpush1.bf16.msra.mxu1 %v4183_v0  ;;  %v4235_v0 = vld [vmem:[%s5833_s1 + $0x174] ss:$8 sps:$4 sm:$0xff]   ;;  %v143_v46 = vld [vmem:[%s5834_s0 + $0x3a0] sm:$0xff] }
  0x3c   :  { %2824 = vmatpush1.bf16.msra.mxu0 %v4184_v1  ;;  %2373 = vmatprep.subr.bf16.mxu1 %v4185_v2  ;;  %v4238_v1 = vld [vmem:[%s5833_s1 + $0x574] ss:$8 sps:$4 sm:$0xff]   ;;  %v3518_v2 = vcombine.high %v91_v57, %v99_v58  ;;  %v151_v47 = vld [vmem:[%s5834_s0 + $0x3e0] sm:$0xff]  ;;  %v28_v58 = vld [vmem:[%s5834_s0 + $0x8] sm:$0xff] }
  0x3d   :  { %2825 = vmatprep.subr.bf16.mxu0 %v4187_v3  ;;  %v3526_v3 = vcombine.high %v95_v61, %v103_v62  ;;  %v4278_v57 = vld [vmem:[%s5833_s1 + $0x5e0] ss:$8 sps:$4 sm:$0xff]  }
  0x3f   :  { %2374 = vmatpush1.bf16.msra.mxu1 %v4189_v4  ;;  %v4233_v4 = vld [vmem:[%s5833_s1 + $0x170] ss:$8 sps:$4 sm:$0xff]  }
  0x40   :  { %2826 = vmatpush1.bf16.msra.mxu0 %v4190_v5  ;;  %2456 = vmatprep.subr.bf16.mxu1 %v4193_v6  ;;  %v4236_v5 = vld [vmem:[%s5833_s1 + $0x570] ss:$8 sps:$4 sm:$0xff]   ;;  %v4241_v6 = vld [vmem:[%s5833_s1 + $0x184] ss:$8 sps:$4 sm:$0xff]  }
  0x41   :  { %2908 = vmatprep.subr.bf16.mxu0 %v4196_v7  ;;  %v4244_v7 = vld [vmem:[%s5833_s1 + $0x584] ss:$8 sps:$4 sm:$0xff]  }
  0x42   :  { %2376 = vmatmul.mubr.bf16.vlgmr.msra.gmra.mrb[0].mxu1 %v3453_v11  ;;  %v3525_v11 = vcombine.low %v95_v61, %v103_v62  ;;  %v3573_v61 = vcombine.low %v143_v46, %v151_v47  ;;  %v32_v62 = vld [vmem:[%s5834_s0 + $0x28] sm:$0xff] }
  0x43   :  { %2828 = vmatmul.mubr.bf16.vlgmr.msra.gmra.mrb[0].mxu0 %v3461_v12  ;;  %2457 = vmatpush1.bf16.msra.mxu1 %v4191_v8  ;;  %v107_v8 = vld [vmem:[%s5834_s0 + $0x280] sm:$0xff] }
  0x44   :  { %2909 = vmatpush1.bf16.msra.mxu0 %v4194_v9  ;;  %2458 = vmatprep.subr.bf16.mxu1 %v4199_v16  ;;  %v115_v9 = vld [vmem:[%s5834_s0 + $0x2c0] sm:$0xff]  ;;  %v4247_v16 = vld [vmem:[%s5833_s1 + $0x194] ss:$8 sps:$4 sm:$0xff]  }
  0x45   :  { %2910 = vmatprep.subr.bf16.mxu0 %v4202_v17  ;;  %2385 = vmatprep.mubr.bf16.mxu1 %v3470_v18  ;;  %v111_v12 = vld [vmem:[%s5834_s0 + $0x2a0] sm:$0xff]  ;;  %v4250_v17 = vld [vmem:[%s5833_s1 + $0x594] ss:$8 sps:$4 sm:$0xff]   ;;  %v3534_v18 = vcombine.high %v107_v8, %v115_v9  ;;  %v3533_v27 = vcombine.low %v107_v8, %v115_v9  ;;  %v44_v9 = vld [vmem:[%s5834_s0 + $0x88] sm:$0xff] }
  0x46   :  { %2837 = vmatprep.mubr.bf16.mxu0 %v3478_v19  ;;  %v3542_v19 = vcombine.high %v111_v12, %v119_v13  ;;  %v4287_v8 = vld [vmem:[%s5833_s1 + $0x200] ss:$8 sps:$4 sm:$0xff]  }
  0x47   :  { %2459 = vmatpush1.bf16.msra.mxu1 %v4197_v20  ;;  %v4245_v20 = vld [vmem:[%s5833_s1 + $0x190] ss:$8 sps:$4 sm:$0xff]  }
  0x48   :  { %2911 = vmatpush1.bf16.msra.mxu0 %v4200_v21  ;;  %2460 = vmatprep.subr.bf16.mxu1 %v4205_v22  ;;  %v4248_v21 = vld [vmem:[%s5833_s1 + $0x590] ss:$8 sps:$4 sm:$0xff]   ;;  %v4253_v22 = vld [vmem:[%s5833_s1 + $0x1a4] ss:$8 sps:$4 sm:$0xff]  }
  0x49   :  { %2912 = vmatprep.subr.bf16.mxu0 %v4208_v23  ;;  %v4256_v23 = vld [vmem:[%s5833_s1 + $0x5a4] ss:$8 sps:$4 sm:$0xff]  }
  0x4a   :  { %2386 = vmatmul.mubr.bf16.gmra.mrb[4].mxu1 %v3469_v28  ;;  %v3541_v28 = vcombine.low %v111_v12, %v119_v13  ;;  %v48_v13 = vld [vmem:[%s5834_s0 + $0xa8] sm:$0xff] }
  0x4b   :  { %2838 = vmatmul.mubr.bf16.gmra.mrb[4].mxu0 %v3477_v29  ;;  %2461 = vmatpush1.bf16.msra.mxu1 %v4203_v24  ;;  %v4251_v24 = vld [vmem:[%s5833_s1 + $0x1a0] ss:$8 sps:$4 sm:$0xff]  }
  0x4c   :  { %2913 = vmatpush1.bf16.msra.mxu0 %v4206_v25  ;;  %2462 = vmatprep.subr.bf16.mxu1 %v4211_v32  ;;  %v4254_v25 = vld [vmem:[%s5833_s1 + $0x5a0] ss:$8 sps:$4 sm:$0xff]   ;;  %v4259_v32 = vld [vmem:[%s5833_s1 + $0x1b4] ss:$8 sps:$4 sm:$0xff]  }
  0x4d   :  { %2914 = vmatprep.subr.bf16.mxu0 %v4214_v33  ;;  %2395 = vmatprep.mubr.bf16.mxu1 %v3486_v34  ;;  %v131_v29 = vld [vmem:[%s5834_s0 + $0x340] sm:$0xff]  ;;  %v4262_v33 = vld [vmem:[%s5833_s1 + $0x5b4] ss:$8 sps:$4 sm:$0xff]  }
  0x4e   :  { %2847 = vmatprep.mubr.bf16.mxu0 %v3494_v35  ;;  %v3550_v34 = vcombine.high %v123_v26, %v131_v29  ;;  %v3558_v35 = vcombine.high %v127_v30, %v135_v31 }
  0x4f   :  { %2463 = vmatpush1.bf16.msra.mxu1 %v4209_v36  ;;  %v4257_v36 = vld [vmem:[%s5833_s1 + $0x1b0] ss:$8 sps:$4 sm:$0xff]  }
  0x50   :  { %2915 = vmatpush1.bf16.msra.mxu0 %v4212_v37  ;;  %2464 = vmatprep.subr.bf16.mxu1 %v4217_v38  ;;  %v4260_v37 = vld [vmem:[%s5833_s1 + $0x5b0] ss:$8 sps:$4 sm:$0xff]   ;;  %v4265_v38 = vld [vmem:[%s5833_s1 + $0x1c4] ss:$8 sps:$4 sm:$0xff]  }
  0x51   :  { %2916 = vmatprep.subr.bf16.mxu0 %v4220_v39  ;;  %v4268_v39 = vld [vmem:[%s5833_s1 + $0x5c4] ss:$8 sps:$4 sm:$0xff]  }
  0x52   :  { %2396 = vmatmul.mubr.bf16.gmra.mrb[8].mxu1 %v3485_v44  ;;  %v3549_v44 = vcombine.low %v123_v26, %v131_v29  ;;  %v72_v29 = vld [vmem:[%s5834_s0 + $0x168] sm:$0xff] }
  0x53   :  { %2848 = vmatmul.mubr.bf16.gmra.mrb[8].mxu0 %v3493_v45  ;;  %2465 = vmatpush1.bf16.msra.mxu1 %v4215_v40  ;;  %v4263_v40 = vld [vmem:[%s5833_s1 + $0x1c0] ss:$8 sps:$4 sm:$0xff]   ;;  %v3557_v45 = vcombine.low %v127_v30, %v135_v31 }
  0x54   :  { %2917 = vmatpush1.bf16.msra.mxu0 %v4218_v41  ;;  %2466 = vmatprep.subr.bf16.mxu1 %v4223_v48  ;;  %v4266_v41 = vld [vmem:[%s5833_s1 + $0x5c0] ss:$8 sps:$4 sm:$0xff]   ;;  %v4271_v48 = vld [vmem:[%s5833_s1 + $0x1d4] ss:$8 sps:$4 sm:$0xff]  }
  0x55   :  { %2918 = vmatprep.subr.bf16.mxu0 %v4226_v49  ;;  %2405 = vmatprep.mubr.bf16.mxu1 %v3502_v50  ;;  %v4274_v49 = vld [vmem:[%s5833_s1 + $0x5d4] ss:$8 sps:$4 sm:$0xff]   ;;  %v3566_v50 = vcombine.high %v139_v42, %v147_v43  ;;  %v4299_v30 = vld [vmem:[%s5833_s1 + $0x220] ss:$8 sps:$4 sm:$0xff]  }
  0x56   :  { %2857 = vmatprep.mubr.bf16.mxu0 %v3510_v51  ;;  %v3574_v51 = vcombine.high %v143_v46, %v151_v47  ;;  %v4302_v31 = vld [vmem:[%s5833_s1 + $0x620] ss:$8 sps:$4 sm:$0xff]  }
  0x57   :  { %2467 = vmatpush1.bf16.msra.mxu1 %v4221_v52  ;;  %v4269_v52 = vld [vmem:[%s5833_s1 + $0x1d0] ss:$8 sps:$4 sm:$0xff]   ;;  %v80_v46 = vld [vmem:[%s5834_s0 + $0x1a8] sm:$0xff] }
  0x58   :  { %2919 = vmatpush1.bf16.msra.mxu0 %v4224_v53  ;;  %2468 = vmatprep.subr.bf16.mxu1 %v4229_v54  ;;  %v4272_v53 = vld [vmem:[%s5833_s1 + $0x5d0] ss:$8 sps:$4 sm:$0xff]   ;;  %v4277_v54 = vld [vmem:[%s5833_s1 + $0x1e4] ss:$8 sps:$4 sm:$0xff]  }
  0x59   :  { %2920 = vmatprep.subr.bf16.mxu0 %v4232_v55  ;;  %v4280_v55 = vld [vmem:[%s5833_s1 + $0x5e4] ss:$8 sps:$4 sm:$0xff]  }
  0x5a   :  { %2406 = vmatmul.mubr.bf16.gmra.mrb[12].mxu1 %v3501_v59  ;;  %v36_v59 = vld [vmem:[%s5834_s0 + $0x48] sm:$0xff] }
  0x5b   :  { %2858 = vmatmul.mubr.bf16.gmra.mrb[12].mxu0 %v3509_v60  ;;  %2469 = vmatpush1.bf16.msra.mxu1 %v4227_v56  ;;  %v4275_v56 = vld [vmem:[%s5833_s1 + $0x1e0] ss:$8 sps:$4 sm:$0xff]   ;;  %v3565_v60 = vcombine.low %v139_v42, %v147_v43 }
  0x5c   :  { %2921 = vmatpush1.bf16.msra.mxu0 %v4230_v63  ;;  %2470 = vmatprep.subr.bf16.mxu1 %v4235_v0  ;;  %v40_v63 = vld [vmem:[%s5834_s0 + $0x68] sm:$0xff]  ;;  %v4283_v0 = vld [vmem:[%s5833_s1 + $0x1f4] ss:$8 sps:$4 sm:$0xff]  }
  0x5d   :  { %2922 = vmatprep.subr.bf16.mxu0 %v4238_v1  ;;  %2415 = vmatprep.mubr.bf16.mxu1 %v3518_v2  ;;  %v4286_v1 = vld [vmem:[%s5833_s1 + $0x5f4] ss:$8 sps:$4 sm:$0xff]   ;;  %v3456_v2 = vcombine.high %v28_v58, %v36_v59  ;;  %v3463_v12 = vcombine.low %v32_v62, %v40_v63  ;;  %v76_v42 = vld [vmem:[%s5834_s0 + $0x188] sm:$0xff] }
  0x5e   :  { %2867 = vmatprep.mubr.bf16.mxu0 %v3526_v3  ;;  %v3464_v3 = vcombine.high %v32_v62, %v40_v63  ;;  %v88_v47 = vld [vmem:[%s5834_s0 + $0x1e8] sm:$0xff] }
  0x5f   :  { %2471 = vmatpush1.bf16.msra.mxu1 %v4233_v4  ;;  %v4281_v4 = vld [vmem:[%s5833_s1 + $0x1f0] ss:$8 sps:$4 sm:$0xff]   ;;  %v96_v62 = vld [vmem:[%s5834_s0 + $0x228] sm:$0xff] }
  0x60   :  { %2923 = vmatpush1.bf16.msra.mxu0 %v4236_v5  ;;  %2472 = vmatprep.subr.bf16.mxu1 %v4241_v6  ;;  %v4284_v5 = vld [vmem:[%s5833_s1 + $0x5f0] ss:$8 sps:$4 sm:$0xff]   ;;  %v4289_v6 = vld [vmem:[%s5833_s1 + $0x204] ss:$8 sps:$4 sm:$0xff]  }
  0x61   :  { %2924 = vmatprep.subr.bf16.mxu0 %v4244_v7  ;;  %v4292_v7 = vld [vmem:[%s5833_s1 + $0x604] ss:$8 sps:$4 sm:$0xff]  }
  0x62   :  { %2416 = vmatmul.mubr.bf16.gmra.mrb[16].mxu1 %v3517_v10  ;;  %v52_v10 = vld [vmem:[%s5834_s0 + $0xc8] sm:$0xff] }
  0x63   :  { %2868 = vmatmul.mubr.bf16.gmra.mrb[16].mxu0 %v3525_v11  ;;  %2473 = vmatpush1.bf16.msra.mxu1 %v4239_v14  ;;  %v3455_v11 = vcombine.low %v28_v58, %v36_v59  ;;  %v56_v14 = vld [vmem:[%s5834_s0 + $0xe8] sm:$0xff]  ;;  %v3471_v26 = vcombine.low %v44_v9, %v52_v10 }
  0x64   :  { %2925 = vmatpush1.bf16.msra.mxu0 %v4242_v15  ;;  %2474 = vmatprep.subr.bf16.mxu1 %v4247_v16  ;;  %v4290_v15 = vld [vmem:[%s5833_s1 + $0x600] ss:$8 sps:$4 sm:$0xff]   ;;  %v4295_v16 = vld [vmem:[%s5833_s1 + $0x214] ss:$8 sps:$4 sm:$0xff]  }
  0x65   :  { %2926 = vmatprep.subr.bf16.mxu0 %v4250_v17  ;;  %2425 = vmatprep.mubr.bf16.mxu1 %v3534_v18  ;;  %v4298_v17 = vld [vmem:[%s5833_s1 + $0x614] ss:$8 sps:$4 sm:$0xff]   ;;  %v3472_v18 = vcombine.high %v44_v9, %v52_v10  ;;  %v92_v58 = vld [vmem:[%s5834_s0 + $0x208] sm:$0xff] }
  0x66   :  { %2877 = vmatprep.mubr.bf16.mxu0 %v3542_v19  ;;  %v3480_v19 = vcombine.high %v48_v13, %v56_v14  ;;  %v100_v59 = vld [vmem:[%s5834_s0 + $0x248] sm:$0xff] }
  0x67   :  { %2475 = vmatpush1.bf16.msra.mxu1 %v4245_v20  ;;  %v4293_v20 = vld [vmem:[%s5833_s1 + $0x210] ss:$8 sps:$4 sm:$0xff]   ;;  %v104_v63 = vld [vmem:[%s5834_s0 + $0x268] sm:$0xff] }
  0x68   :  { %2927 = vmatpush1.bf16.msra.mxu0 %v4248_v21  ;;  %2476 = vmatprep.subr.bf16.mxu1 %v4253_v22  ;;  %v4296_v21 = vld [vmem:[%s5833_s1 + $0x610] ss:$8 sps:$4 sm:$0xff]   ;;  %v4301_v22 = vld [vmem:[%s5833_s1 + $0x224] ss:$8 sps:$4 sm:$0xff]   ;;  %v4338_v9 = vld [vmem:[%s5833_s1 + $0x680] ss:$8 sps:$4 sm:$0xff]  }
  0x69   :  { %2928 = vmatprep.subr.bf16.mxu0 %v4256_v23  ;;  %v4304_v23 = vld [vmem:[%s5833_s1 + $0x624] ss:$8 sps:$4 sm:$0xff]  }
  0x6a   :  { %2426 = vmatmul.mubr.bf16.gmra.mrb[20].mxu1 %v3533_v27  ;;  %v3479_v27 = vcombine.low %v48_v13, %v56_v14  ;;  %v108_v10 = vld [vmem:[%s5834_s0 + $0x288] sm:$0xff]  ;;  %v3527_v13 = vcombine.low %v96_v62, %v104_v63 }
  0x6b   :  { %2878 = vmatmul.mubr.bf16.gmra.mrb[20].mxu0 %v3541_v28  ;;  %2477 = vmatpush1.bf16.msra.mxu1 %v4251_v24  ;;  %v60_v24 = vld [vmem:[%s5834_s0 + $0x108] sm:$0xff] }
  0x6c   :  { %2929 = vmatpush1.bf16.msra.mxu0 %v4254_v25  ;;  %2478 = vmatprep.subr.bf16.mxu1 %v4259_v32  ;;  %v68_v25 = vld [vmem:[%s5834_s0 + $0x148] sm:$0xff]  ;;  %v4307_v32 = vld [vmem:[%s5833_s1 + $0x234] ss:$8 sps:$4 sm:$0xff]  }
  0x6d   :  { %2930 = vmatprep.subr.bf16.mxu0 %v4262_v33  ;;  %2435 = vmatprep.mubr.bf16.mxu1 %v3550_v34  ;;  %v64_v28 = vld [vmem:[%s5834_s0 + $0x128] sm:$0xff]  ;;  %v4310_v33 = vld [vmem:[%s5833_s1 + $0x634] ss:$8 sps:$4 sm:$0xff]   ;;  %v3488_v34 = vcombine.high %v60_v24, %v68_v25  ;;  %v3487_v43 = vcombine.low %v60_v24, %v68_v25 }
  0x6e   :  { %2887 = vmatprep.mubr.bf16.mxu0 %v3558_v35  ;;  %v3496_v35 = vcombine.high %v64_v28, %v72_v29  ;;  %v112_v14 = vld [vmem:[%s5834_s0 + $0x2a8] sm:$0xff] }
  0x6f   :  { %2479 = vmatpush1.bf16.msra.mxu1 %v4257_v36  ;;  %v4305_v36 = vld [vmem:[%s5833_s1 + $0x230] ss:$8 sps:$4 sm:$0xff]   ;;  %v4347_v24 = vld [vmem:[%s5833_s1 + $0x2a0] ss:$8 sps:$4 sm:$0xff]  }
  0x70   :  { %2931 = vmatpush1.bf16.msra.mxu0 %v4260_v37  ;;  %2480 = vmatprep.subr.bf16.mxu1 %v4265_v38  ;;  %v4308_v37 = vld [vmem:[%s5833_s1 + $0x630] ss:$8 sps:$4 sm:$0xff]   ;;  %v4313_v38 = vld [vmem:[%s5833_s1 + $0x244] ss:$8 sps:$4 sm:$0xff]  }
  0x71   :  { %2932 = vmatprep.subr.bf16.mxu0 %v4268_v39  ;;  %v4316_v39 = vld [vmem:[%s5833_s1 + $0x644] ss:$8 sps:$4 sm:$0xff]  }
  0x72   :  { %2436 = vmatmul.mubr.bf16.gmra.mrb[24].mxu1 %v3549_v44  ;;  %v3495_v44 = vcombine.low %v64_v28, %v72_v29  ;;  %v124_v25 = vld [vmem:[%s5834_s0 + $0x308] sm:$0xff] }
  0x73   :  { %2888 = vmatmul.mubr.bf16.gmra.mrb[24].mxu0 %v3557_v45  ;;  %2481 = vmatpush1.bf16.msra.mxu1 %v4263_v40  ;;  %v4311_v40 = vld [vmem:[%s5833_s1 + $0x240] ss:$8 sps:$4 sm:$0xff]  }
  0x74   :  { %2933 = vmatpush1.bf16.msra.mxu0 %v4266_v41  ;;  %2482 = vmatprep.subr.bf16.mxu1 %v4271_v48  ;;  %v4314_v41 = vld [vmem:[%s5833_s1 + $0x640] ss:$8 sps:$4 sm:$0xff]   ;;  %v4319_v48 = vld [vmem:[%s5833_s1 + $0x254] ss:$8 sps:$4 sm:$0xff]  }
  0x75   :  { %2934 = vmatprep.subr.bf16.mxu0 %v4274_v49  ;;  %2445 = vmatprep.mubr.bf16.mxu1 %v3566_v50  ;;  %v84_v45 = vld [vmem:[%s5834_s0 + $0x1c8] sm:$0xff]  ;;  %v4322_v49 = vld [vmem:[%s5833_s1 + $0x654] ss:$8 sps:$4 sm:$0xff]  }
  0x76   :  { %2897 = vmatprep.mubr.bf16.mxu0 %v3574_v51  ;;  %v3504_v50 = vcombine.high %v76_v42, %v84_v45  ;;  %v3512_v51 = vcombine.high %v80_v46, %v88_v47  ;;  %v128_v29 = vld [vmem:[%s5834_s0 + $0x328] sm:$0xff] }
  0x77   :  { %2483 = vmatpush1.bf16.msra.mxu1 %v4269_v52  ;;  %v4317_v52 = vld [vmem:[%s5833_s1 + $0x250] ss:$8 sps:$4 sm:$0xff]  }
  0x78   :  { %2935 = vmatpush1.bf16.msra.mxu0 %v4272_v53  ;;  %2484 = vmatprep.subr.bf16.mxu1 %v4277_v54  ;;  %v4320_v53 = vld [vmem:[%s5833_s1 + $0x650] ss:$8 sps:$4 sm:$0xff]   ;;  %v4325_v54 = vld [vmem:[%s5833_s1 + $0x264] ss:$8 sps:$4 sm:$0xff]  }
  0x79   :  { %2936 = vmatprep.subr.bf16.mxu0 %v4280_v55  ;;  %v4328_v55 = vld [vmem:[%s5833_s1 + $0x664] ss:$8 sps:$4 sm:$0xff]  }
  0x7a   :  { %2446 = vmatmul.mubr.bf16.gmra.mrb[28].mxu1 %v3565_v60  ;;  %v3503_v60 = vcombine.low %v76_v42, %v84_v45  ;;  %v152_v45 = vld [vmem:[%s5834_s0 + $0x3e8] sm:$0xff] }
  0x7b   :  { %2898 = vmatmul.mubr.bf16.gmra.mrb[28].mxu0 %v3573_v61  ;;  %2485 = vmatpush1.bf16.msra.mxu1 %v4275_v56  ;;  %v4323_v56 = vld [vmem:[%s5833_s1 + $0x260] ss:$8 sps:$4 sm:$0xff]   ;;  %v3511_v61 = vcombine.low %v80_v46, %v88_v47 }
  0x7c   :  { %2937 = vmatpush1.bf16.msra.mxu0 %v4278_v57  ;;  %2486 = vmatprep.subr.bf16.mxu1 %v4283_v0  ;;  %v4326_v57 = vld [vmem:[%s5833_s1 + $0x660] ss:$8 sps:$4 sm:$0xff]   ;;  %v4331_v0 = vld [vmem:[%s5833_s1 + $0x274] ss:$8 sps:$4 sm:$0xff]  }
  0x7d   :  { %2938 = vmatprep.subr.bf16.mxu0 %v4286_v1  ;;  %2488 = vmatprep.mubr.bf16.mxu1 %v3456_v2  ;;  %v4334_v1 = vld [vmem:[%s5833_s1 + $0x674] ss:$8 sps:$4 sm:$0xff]   ;;  %v3520_v2 = vcombine.high %v92_v58, %v100_v59  ;;  %v4359_v46 = vld [vmem:[%s5833_s1 + $0x2c0] ss:$8 sps:$4 sm:$0xff]  }
  0x7e   :  { %2940 = vmatprep.mubr.bf16.mxu0 %v3464_v3  ;;  %v3528_v3 = vcombine.high %v96_v62, %v104_v63  ;;  %v4362_v47 = vld [vmem:[%s5833_s1 + $0x6c0] ss:$8 sps:$4 sm:$0xff]   ;;  %v33_v62 = vld [vmem:[%s5834_s0 + $0x30] sm:$0xff] }
  0x7f   :  { %2487 = vmatpush1.bf16.msra.mxu1 %v4281_v4  ;;  %v4329_v4 = vld [vmem:[%s5833_s1 + $0x270] ss:$8 sps:$4 sm:$0xff]  }
  0x80   :  { %2939 = vmatpush1.bf16.msra.mxu0 %v4284_v5  ;;  %2569 = vmatprep.subr.bf16.mxu1 %v4289_v6  ;;  %v4332_v5 = vld [vmem:[%s5833_s1 + $0x670] ss:$8 sps:$4 sm:$0xff]   ;;  %v4337_v6 = vld [vmem:[%s5833_s1 + $0x284] ss:$8 sps:$4 sm:$0xff]  }
  0x81   :  { %3021 = vmatprep.subr.bf16.mxu0 %v4292_v7  ;;  %v4340_v7 = vld [vmem:[%s5833_s1 + $0x684] ss:$8 sps:$4 sm:$0xff]   ;;  %v41_v63 = vld [vmem:[%s5834_s0 + $0x70] sm:$0xff] }
  0x82   :  { %2489 = vmatmul.mubr.bf16.vlgmr.msra.gmra.mrb[0].mxu1 %v3455_v11  ;;  %v116_v11 = vld [vmem:[%s5834_s0 + $0x2c8] sm:$0xff] }
  0x83   :  { %2941 = vmatmul.mubr.bf16.vlgmr.msra.gmra.mrb[0].mxu0 %v3463_v12  ;;  %2570 = vmatpush1.bf16.msra.mxu1 %v4287_v8  ;;  %v4335_v8 = vld [vmem:[%s5833_s1 + $0x280] ss:$8 sps:$4 sm:$0xff]   ;;  %v3519_v12 = vcombine.low %v92_v58, %v100_v59  ;;  %v29_v58 = vld [vmem:[%s5834_s0 + $0x10] sm:$0xff] }
  0x84   :  { %3022 = vmatpush1.bf16.msra.mxu0 %v4290_v15  ;;  %2571 = vmatprep.subr.bf16.mxu1 %v4295_v16  ;;  %v120_v15 = vld [vmem:[%s5834_s0 + $0x2e8] sm:$0xff]  ;;  %v4343_v16 = vld [vmem:[%s5833_s1 + $0x294] ss:$8 sps:$4 sm:$0xff]  }
  0x85   :  { %3023 = vmatprep.subr.bf16.mxu0 %v4298_v17  ;;  %2498 = vmatprep.mubr.bf16.mxu1 %v3472_v18  ;;  %v4346_v17 = vld [vmem:[%s5833_s1 + $0x694] ss:$8 sps:$4 sm:$0xff]   ;;  %v3536_v18 = vcombine.high %v108_v10, %v116_v11  ;;  %v3543_v28 = vcombine.low %v112_v14, %v120_v15 }
  0x86   :  { %2950 = vmatprep.mubr.bf16.mxu0 %v3480_v19  ;;  %v3544_v19 = vcombine.high %v112_v14, %v120_v15  ;;  %v49_v14 = vld [vmem:[%s5834_s0 + $0xb0] sm:$0xff] }
  0x87   :  { %2572 = vmatpush1.bf16.msra.mxu1 %v4293_v20  ;;  %v4341_v20 = vld [vmem:[%s5833_s1 + $0x290] ss:$8 sps:$4 sm:$0xff]  }
  0x88   :  { %3024 = vmatpush1.bf16.msra.mxu0 %v4296_v21  ;;  %2573 = vmatprep.subr.bf16.mxu1 %v4301_v22  ;;  %v4344_v21 = vld [vmem:[%s5833_s1 + $0x690] ss:$8 sps:$4 sm:$0xff]   ;;  %v4349_v22 = vld [vmem:[%s5833_s1 + $0x2a4] ss:$8 sps:$4 sm:$0xff]  }
  0x89   :  { %3025 = vmatprep.subr.bf16.mxu0 %v4304_v23  ;;  %v4352_v23 = vld [vmem:[%s5833_s1 + $0x6a4] ss:$8 sps:$4 sm:$0xff]   ;;  %v57_v15 = vld [vmem:[%s5834_s0 + $0xf0] sm:$0xff] }
  0x8a   :  { %2499 = vmatmul.mubr.bf16.gmra.mrb[4].mxu1 %v3471_v26  ;;  %v132_v26 = vld [vmem:[%s5834_s0 + $0x348] sm:$0xff] }
  0x8b   :  { %2951 = vmatmul.mubr.bf16.gmra.mrb[4].mxu0 %v3479_v27  ;;  %2574 = vmatpush1.bf16.msra.mxu1 %v4299_v30  ;;  %v3535_v27 = vcombine.low %v108_v10, %v116_v11  ;;  %v136_v30 = vld [vmem:[%s5834_s0 + $0x368] sm:$0xff]  ;;  %v3551_v42 = vcombine.low %v124_v25, %v132_v26  ;;  %v45_v10 = vld [vmem:[%s5834_s0 + $0x90] sm:$0xff] }
  0x8c   :  { %3026 = vmatpush1.bf16.msra.mxu0 %v4302_v31  ;;  %2575 = vmatprep.subr.bf16.mxu1 %v4307_v32  ;;  %v4350_v31 = vld [vmem:[%s5833_s1 + $0x6a0] ss:$8 sps:$4 sm:$0xff]   ;;  %v4355_v32 = vld [vmem:[%s5833_s1 + $0x2b4] ss:$8 sps:$4 sm:$0xff]  }
  0x8d   :  { %3027 = vmatprep.subr.bf16.mxu0 %v4310_v33  ;;  %2508 = vmatprep.mubr.bf16.mxu1 %v3488_v34  ;;  %v4358_v33 = vld [vmem:[%s5833_s1 + $0x6b4] ss:$8 sps:$4 sm:$0xff]   ;;  %v3552_v34 = vcombine.high %v124_v25, %v132_v26  ;;  %v4398_v25 = vld [vmem:[%s5833_s1 + $0x720] ss:$8 sps:$4 sm:$0xff]  }
  0x8e   :  { %2960 = vmatprep.mubr.bf16.mxu0 %v3496_v35  ;;  %v3560_v35 = vcombine.high %v128_v29, %v136_v30  ;;  %v53_v11 = vld [vmem:[%s5834_s0 + $0xd0] sm:$0xff] }
  0x8f   :  { %2576 = vmatpush1.bf16.msra.mxu1 %v4305_v36  ;;  %v4353_v36 = vld [vmem:[%s5833_s1 + $0x2b0] ss:$8 sps:$4 sm:$0xff]  }
  0x90   :  { %3028 = vmatpush1.bf16.msra.mxu0 %v4308_v37  ;;  %2577 = vmatprep.subr.bf16.mxu1 %v4313_v38  ;;  %v4356_v37 = vld [vmem:[%s5833_s1 + $0x6b0] ss:$8 sps:$4 sm:$0xff]   ;;  %v4361_v38 = vld [vmem:[%s5833_s1 + $0x2c4] ss:$8 sps:$4 sm:$0xff]  }
  0x91   :  { %3029 = vmatprep.subr.bf16.mxu0 %v4316_v39  ;;  %v4364_v39 = vld [vmem:[%s5833_s1 + $0x6c4] ss:$8 sps:$4 sm:$0xff]   ;;  %v61_v26 = vld [vmem:[%s5834_s0 + $0x110] sm:$0xff] }
  0x92   :  { %2509 = vmatmul.mubr.bf16.gmra.mrb[8].mxu1 %v3487_v43  ;;  %v3559_v43 = vcombine.low %v128_v29, %v136_v30  ;;  %v3481_v29 = vcombine.low %v49_v14, %v57_v15  ;;  %v65_v30 = vld [vmem:[%s5834_s0 + $0x130] sm:$0xff] }
  0x93   :  { %2961 = vmatmul.mubr.bf16.gmra.mrb[8].mxu0 %v3495_v44  ;;  %2578 = vmatpush1.bf16.msra.mxu1 %v4311_v40  ;;  %v140_v40 = vld [vmem:[%s5834_s0 + $0x388] sm:$0xff] }
  0x94   :  { %3030 = vmatpush1.bf16.msra.mxu0 %v4314_v41  ;;  %2579 = vmatprep.subr.bf16.mxu1 %v4319_v48  ;;  %v148_v41 = vld [vmem:[%s5834_s0 + $0x3c8] sm:$0xff]  ;;  %v4367_v48 = vld [vmem:[%s5833_s1 + $0x2d4] ss:$8 sps:$4 sm:$0xff]  }
  0x95   :  { %3031 = vmatprep.subr.bf16.mxu0 %v4322_v49  ;;  %2518 = vmatprep.mubr.bf16.mxu1 %v3504_v50  ;;  %v144_v44 = vld [vmem:[%s5834_s0 + $0x3a8] sm:$0xff]  ;;  %v4370_v49 = vld [vmem:[%s5833_s1 + $0x6d4] ss:$8 sps:$4 sm:$0xff]   ;;  %v3568_v50 = vcombine.high %v140_v40, %v148_v41  ;;  %v3567_v59 = vcombine.low %v140_v40, %v148_v41 }
  0x96   :  { %2970 = vmatprep.mubr.bf16.mxu0 %v3512_v51  ;;  %v3576_v51 = vcombine.high %v144_v44, %v152_v45  ;;  %v77_v40 = vld [vmem:[%s5834_s0 + $0x190] sm:$0xff] }
  0x97   :  { %2580 = vmatpush1.bf16.msra.mxu1 %v4317_v52  ;;  %v4365_v52 = vld [vmem:[%s5833_s1 + $0x2d0] ss:$8 sps:$4 sm:$0xff]  }
  0x98   :  { %3032 = vmatpush1.bf16.msra.mxu0 %v4320_v53  ;;  %2581 = vmatprep.subr.bf16.mxu1 %v4325_v54  ;;  %v4368_v53 = vld [vmem:[%s5833_s1 + $0x6d0] ss:$8 sps:$4 sm:$0xff]   ;;  %v4373_v54 = vld [vmem:[%s5833_s1 + $0x2e4] ss:$8 sps:$4 sm:$0xff]  }
  0x99   :  { %3033 = vmatprep.subr.bf16.mxu0 %v4328_v55  ;;  %v4376_v55 = vld [vmem:[%s5833_s1 + $0x6e4] ss:$8 sps:$4 sm:$0xff]  }
  0x9a   :  { %2519 = vmatmul.mubr.bf16.gmra.mrb[12].mxu1 %v3503_v60  ;;  %v3575_v60 = vcombine.low %v144_v44, %v152_v45  ;;  %v81_v44 = vld [vmem:[%s5834_s0 + $0x1b0] sm:$0xff] }
  0x9b   :  { %2971 = vmatmul.mubr.bf16.gmra.mrb[12].mxu0 %v3511_v61  ;;  %2582 = vmatpush1.bf16.msra.mxu1 %v4323_v56  ;;  %v4371_v56 = vld [vmem:[%s5833_s1 + $0x2e0] ss:$8 sps:$4 sm:$0xff]   ;;  %v37_v61 = vld [vmem:[%s5834_s0 + $0x50] sm:$0xff] }
  0x9c   :  { %3034 = vmatpush1.bf16.msra.mxu0 %v4326_v57  ;;  %2583 = vmatprep.subr.bf16.mxu1 %v4331_v0  ;;  %v4374_v57 = vld [vmem:[%s5833_s1 + $0x6e0] ss:$8 sps:$4 sm:$0xff]   ;;  %v4379_v0 = vld [vmem:[%s5833_s1 + $0x2f4] ss:$8 sps:$4 sm:$0xff]  }
  0x9d   :  { %3035 = vmatprep.subr.bf16.mxu0 %v4334_v1  ;;  %2528 = vmatprep.mubr.bf16.mxu1 %v3520_v2  ;;  %v4382_v1 = vld [vmem:[%s5833_s1 + $0x6f4] ss:$8 sps:$4 sm:$0xff]   ;;  %v3458_v2 = vcombine.high %v29_v58, %v37_v61 }
  0x9e   :  { %2980 = vmatprep.mubr.bf16.mxu0 %v3528_v3  ;;  %v3466_v3 = vcombine.high %v33_v62, %v41_v63  ;;  %v89_v45 = vld [vmem:[%s5834_s0 + $0x1f0] sm:$0xff] }
  0x9f   :  { %2584 = vmatpush1.bf16.msra.mxu1 %v4329_v4  ;;  %v4377_v4 = vld [vmem:[%s5833_s1 + $0x2f0] ss:$8 sps:$4 sm:$0xff]  }
  0xa0   :  { %3036 = vmatpush1.bf16.msra.mxu0 %v4332_v5  ;;  %2585 = vmatprep.subr.bf16.mxu1 %v4337_v6  ;;  %v4380_v5 = vld [vmem:[%s5833_s1 + $0x6f0] ss:$8 sps:$4 sm:$0xff]   ;;  %v4385_v6 = vld [vmem:[%s5833_s1 + $0x304] ss:$8 sps:$4 sm:$0xff]  }
  0xa1   :  { %3037 = vmatprep.subr.bf16.mxu0 %v4340_v7  ;;  %v4388_v7 = vld [vmem:[%s5833_s1 + $0x704] ss:$8 sps:$4 sm:$0xff]  }
  0xa2   :  { %2529 = vmatmul.mubr.bf16.gmra.mrb[16].mxu1 %v3519_v12  ;;  %v3457_v12 = vcombine.low %v29_v58, %v37_v61  ;;  %v3513_v58 = vcombine.low %v81_v44, %v89_v45  ;;  %v105_v61 = vld [vmem:[%s5834_s0 + $0x270] sm:$0xff] }
  0xa3   :  { %2981 = vmatmul.mubr.bf16.gmra.mrb[16].mxu0 %v3527_v13  ;;  %2586 = vmatpush1.bf16.msra.mxu1 %v4335_v8  ;;  %v4383_v8 = vld [vmem:[%s5833_s1 + $0x300] ss:$8 sps:$4 sm:$0xff]   ;;  %v3465_v13 = vcombine.low %v33_v62, %v41_v63 }
  0xa4   :  { %3038 = vmatpush1.bf16.msra.mxu0 %v4338_v9  ;;  %2587 = vmatprep.subr.bf16.mxu1 %v4343_v16  ;;  %v4386_v9 = vld [vmem:[%s5833_s1 + $0x700] ss:$8 sps:$4 sm:$0xff]   ;;  %v4391_v16 = vld [vmem:[%s5833_s1 + $0x314] ss:$8 sps:$4 sm:$0xff]  }
  0xa5   :  { %3039 = vmatprep.subr.bf16.mxu0 %v4346_v17  ;;  %2538 = vmatprep.mubr.bf16.mxu1 %v3536_v18  ;;  %v4394_v17 = vld [vmem:[%s5833_s1 + $0x714] ss:$8 sps:$4 sm:$0xff]   ;;  %v3474_v18 = vcombine.high %v45_v10, %v53_v11  ;;  %v4419_v62 = vld [vmem:[%s5833_s1 + $0x360] ss:$8 sps:$4 sm:$0xff]  }
  0xa6   :  { %2990 = vmatprep.mubr.bf16.mxu0 %v3544_v19  ;;  %v3482_v19 = vcombine.high %v49_v14, %v57_v15  ;;  %v4422_v63 = vld [vmem:[%s5833_s1 + $0x760] ss:$8 sps:$4 sm:$0xff]  }
  0xa7   :  { %2588 = vmatpush1.bf16.msra.mxu1 %v4341_v20  ;;  %v4389_v20 = vld [vmem:[%s5833_s1 + $0x310] ss:$8 sps:$4 sm:$0xff]   ;;  %v4431_v14 = vld [vmem:[%s5833_s1 + $0x380] ss:$8 sps:$4 sm:$0xff]  }
  0xa8   :  { %3040 = vmatpush1.bf16.msra.mxu0 %v4344_v21  ;;  %2589 = vmatprep.subr.bf16.mxu1 %v4349_v22  ;;  %v4392_v21 = vld [vmem:[%s5833_s1 + $0x710] ss:$8 sps:$4 sm:$0xff]   ;;  %v4397_v22 = vld [vmem:[%s5833_s1 + $0x324] ss:$8 sps:$4 sm:$0xff]   ;;  %v4434_v15 = vld [vmem:[%s5833_s1 + $0x780] ss:$8 sps:$4 sm:$0xff]  }
  0xa9   :  { %3041 = vmatprep.subr.bf16.mxu0 %v4352_v23  ;;  %v4400_v23 = vld [vmem:[%s5833_s1 + $0x724] ss:$8 sps:$4 sm:$0xff]  }
  0xaa   :  { %2539 = vmatmul.mubr.bf16.gmra.mrb[20].mxu1 %v3535_v27  ;;  %v69_v27 = vld [vmem:[%s5834_s0 + $0x150] sm:$0xff] }
  0xab   :  { %2991 = vmatmul.mubr.bf16.gmra.mrb[20].mxu0 %v3543_v28  ;;  %2590 = vmatpush1.bf16.msra.mxu1 %v4347_v24  ;;  %v4395_v24 = vld [vmem:[%s5833_s1 + $0x320] ss:$8 sps:$4 sm:$0xff]   ;;  %v3473_v28 = vcombine.low %v45_v10, %v53_v11  ;;  %v3489_v41 = vcombine.low %v61_v26, %v69_v27  ;;  %v117_v11 = vld [vmem:[%s5834_s0 + $0x2d0] sm:$0xff] }
  0xac   :  { %3042 = vmatpush1.bf16.msra.mxu0 %v4350_v31  ;;  %2591 = vmatprep.subr.bf16.mxu1 %v4355_v32  ;;  %v73_v31 = vld [vmem:[%s5834_s0 + $0x170] sm:$0xff] }
  0xad   :  { %3043 = vmatprep.subr.bf16.mxu0 %v4358_v33  ;;  %2548 = vmatprep.mubr.bf16.mxu1 %v3552_v34  ;;  %v4403_v32 = vld [vmem:[%s5833_s1 + $0x334] ss:$8 sps:$4 sm:$0xff]   ;;  %v3490_v34 = vcombine.high %v61_v26, %v69_v27 }
  0xae   :  { %3000 = vmatprep.mubr.bf16.mxu0 %v3560_v35  ;;  %v4406_v33 = vld [vmem:[%s5833_s1 + $0x734] ss:$8 sps:$4 sm:$0xff]   ;;  %v3498_v35 = vcombine.high %v65_v30, %v73_v31 }
  0xaf   :  { %2592 = vmatpush1.bf16.msra.mxu1 %v4353_v36  ;;  %v4401_v36 = vld [vmem:[%s5833_s1 + $0x330] ss:$8 sps:$4 sm:$0xff]  }
  0xb0   :  { %3044 = vmatpush1.bf16.msra.mxu0 %v4356_v37  ;;  %2593 = vmatprep.subr.bf16.mxu1 %v4361_v38  ;;  %v4404_v37 = vld [vmem:[%s5833_s1 + $0x730] ss:$8 sps:$4 sm:$0xff]   ;;  %v4409_v38 = vld [vmem:[%s5833_s1 + $0x344] ss:$8 sps:$4 sm:$0xff]  }
  0xb1   :  { %3045 = vmatprep.subr.bf16.mxu0 %v4364_v39  ;;  %v4412_v39 = vld [vmem:[%s5833_s1 + $0x744] ss:$8 sps:$4 sm:$0xff]   ;;  %v133_v27 = vld [vmem:[%s5834_s0 + $0x350] sm:$0xff] }
  0xb2   :  { %2549 = vmatmul.mubr.bf16.gmra.mrb[24].mxu1 %v3551_v42  ;;  %v3497_v42 = vcombine.low %v65_v30, %v73_v31  ;;  %v4443_v30 = vld [vmem:[%s5833_s1 + $0x3a0] ss:$8 sps:$4 sm:$0xff]  }
  0xb3   :  { %3001 = vmatmul.mubr.bf16.gmra.mrb[24].mxu0 %v3559_v43  ;;  %2594 = vmatpush1.bf16.msra.mxu1 %v4359_v46  ;;  %v85_v43 = vld [vmem:[%s5834_s0 + $0x1d0] sm:$0xff]  ;;  %v4407_v46 = vld [vmem:[%s5833_s1 + $0x340] ss:$8 sps:$4 sm:$0xff]  }
  0xb4   :  { %3046 = vmatpush1.bf16.msra.mxu0 %v4362_v47  ;;  %2595 = vmatprep.subr.bf16.mxu1 %v4367_v48  ;;  %v4410_v47 = vld [vmem:[%s5833_s1 + $0x740] ss:$8 sps:$4 sm:$0xff]   ;;  %v4415_v48 = vld [vmem:[%s5833_s1 + $0x354] ss:$8 sps:$4 sm:$0xff]  }
  0xb5   :  { %3047 = vmatprep.subr.bf16.mxu0 %v4370_v49  ;;  %2558 = vmatprep.mubr.bf16.mxu1 %v3568_v50  ;;  %v4418_v49 = vld [vmem:[%s5833_s1 + $0x754] ss:$8 sps:$4 sm:$0xff]   ;;  %v3506_v50 = vcombine.high %v77_v40, %v85_v43  ;;  %v4446_v31 = vld [vmem:[%s5833_s1 + $0x7a0] ss:$8 sps:$4 sm:$0xff]  }
  0xb6   :  { %3010 = vmatprep.mubr.bf16.mxu0 %v3576_v51  ;;  %v3514_v51 = vcombine.high %v81_v44, %v89_v45  ;;  %v145_v44 = vld [vmem:[%s5834_s0 + $0x3b0] sm:$0xff] }
  0xb7   :  { %2596 = vmatpush1.bf16.msra.mxu1 %v4365_v52  ;;  %v4413_v52 = vld [vmem:[%s5833_s1 + $0x350] ss:$8 sps:$4 sm:$0xff]  }
  0xb8   :  { %3048 = vmatpush1.bf16.msra.mxu0 %v4368_v53  ;;  %2597 = vmatprep.subr.bf16.mxu1 %v4373_v54  ;;  %v4416_v53 = vld [vmem:[%s5833_s1 + $0x750] ss:$8 sps:$4 sm:$0xff]   ;;  %v4421_v54 = vld [vmem:[%s5833_s1 + $0x364] ss:$8 sps:$4 sm:$0xff]  }
  0xb9   :  { %3049 = vmatprep.subr.bf16.mxu0 %v4376_v55  ;;  %v4424_v55 = vld [vmem:[%s5833_s1 + $0x764] ss:$8 sps:$4 sm:$0xff]   ;;  %v153_v45 = vld [vmem:[%s5834_s0 + $0x3f0] sm:$0xff] }
  0xba   :  { %2559 = vmatmul.mubr.bf16.gmra.mrb[28].mxu1 %v3567_v59  ;;  %v101_v59 = vld [vmem:[%s5834_s0 + $0x250] sm:$0xff] }
  0xbb   :  { %3011 = vmatmul.mubr.bf16.gmra.mrb[28].mxu0 %v3575_v60  ;;  %2598 = vmatpush1.bf16.msra.mxu1 %v4371_v56  ;;  %v93_v56 = vld [vmem:[%s5834_s0 + $0x210] sm:$0xff] }
  0xbc   :  { %3050 = vmatpush1.bf16.msra.mxu0 %v4374_v57  ;;  %2599 = vmatprep.subr.bf16.mxu1 %v4379_v0  ;;  %v3505_v57 = vcombine.low %v77_v40, %v85_v43  ;;  %v97_v60 = vld [vmem:[%s5834_s0 + $0x230] sm:$0xff] }
  0xbd   :  { %3051 = vmatprep.subr.bf16.mxu0 %v4382_v1  ;;  %2601 = vmatprep.mubr.bf16.mxu1 %v3458_v2  ;;  %v4427_v0 = vld [vmem:[%s5833_s1 + $0x374] ss:$8 sps:$4 sm:$0xff]   ;;  %v3522_v2 = vcombine.high %v93_v56, %v101_v59  ;;  %v3529_v10 = vcombine.low %v97_v60, %v105_v61 }
  0xbe   :  { %3053 = vmatprep.mubr.bf16.mxu0 %v3466_v3  ;;  %v4430_v1 = vld [vmem:[%s5833_s1 + $0x774] ss:$8 sps:$4 sm:$0xff]   ;;  %v3530_v3 = vcombine.high %v97_v60, %v105_v61 }
  0xbf   :  { %2600 = vmatpush1.bf16.msra.mxu1 %v4377_v4  ;;  %v4425_v4 = vld [vmem:[%s5833_s1 + $0x370] ss:$8 sps:$4 sm:$0xff]  }
  0xc0   :  { %3052 = vmatpush1.bf16.msra.mxu0 %v4380_v5  ;;  %2682 = vmatprep.subr.bf16.mxu1 %v4385_v6  ;;  %v4428_v5 = vld [vmem:[%s5833_s1 + $0x770] ss:$8 sps:$4 sm:$0xff]   ;;  %v4433_v6 = vld [vmem:[%s5833_s1 + $0x384] ss:$8 sps:$4 sm:$0xff]  }
  0xc1   :  { %3134 = vmatprep.subr.bf16.mxu0 %v4388_v7  ;;  %v4436_v7 = vld [vmem:[%s5833_s1 + $0x784] ss:$8 sps:$4 sm:$0xff]   ;;  %v141_v40 = vld [vmem:[%s5834_s0 + $0x390] sm:$0xff]  ;;  %v34_v60 = vld [vmem:[%s5834_s0 + $0x38] sm:$0xff] }
  0xc2   :  { %2602 = vmatmul.mubr.bf16.vlgmr.msra.gmra.mrb[0].mxu1 %v3457_v12  ;;  %v113_v12 = vld [vmem:[%s5834_s0 + $0x2b0] sm:$0xff]  ;;  %v42_v61 = vld [vmem:[%s5834_s0 + $0x78] sm:$0xff] }
  0xc3   :  { %3054 = vmatmul.mubr.bf16.vlgmr.msra.gmra.mrb[0].mxu0 %v3465_v13  ;;  %2683 = vmatpush1.bf16.msra.mxu1 %v4383_v8  ;;  %v109_v8 = vld [vmem:[%s5834_s0 + $0x290] sm:$0xff] }
  0xc4   :  { %3135 = vmatpush1.bf16.msra.mxu0 %v4386_v9  ;;  %2684 = vmatprep.subr.bf16.mxu1 %v4391_v16  ;;  %v3521_v9 = vcombine.low %v93_v56, %v101_v59  ;;  %v121_v13 = vld [vmem:[%s5834_s0 + $0x2f0] sm:$0xff]  ;;  %v30_v56 = vld [vmem:[%s5834_s0 + $0x18] sm:$0xff] }
  0xc5   :  { %3136 = vmatprep.subr.bf16.mxu0 %v4394_v17  ;;  %2611 = vmatprep.mubr.bf16.mxu1 %v3474_v18  ;;  %v4439_v16 = vld [vmem:[%s5833_s1 + $0x394] ss:$8 sps:$4 sm:$0xff]   ;;  %v3538_v18 = vcombine.high %v109_v8, %v117_v11  ;;  %v3545_v26 = vcombine.low %v113_v12, %v121_v13 }
  0xc6   :  { %3063 = vmatprep.mubr.bf16.mxu0 %v3482_v19  ;;  %v4442_v17 = vld [vmem:[%s5833_s1 + $0x794] ss:$8 sps:$4 sm:$0xff]   ;;  %v3546_v19 = vcombine.high %v113_v12, %v121_v13 }
  0xc7   :  { %2685 = vmatpush1.bf16.msra.mxu1 %v4389_v20  ;;  %v4437_v20 = vld [vmem:[%s5833_s1 + $0x390] ss:$8 sps:$4 sm:$0xff]  }
  0xc8   :  { %3137 = vmatpush1.bf16.msra.mxu0 %v4392_v21  ;;  %2686 = vmatprep.subr.bf16.mxu1 %v4397_v22  ;;  %v4440_v21 = vld [vmem:[%s5833_s1 + $0x790] ss:$8 sps:$4 sm:$0xff]   ;;  %v4445_v22 = vld [vmem:[%s5833_s1 + $0x3a4] ss:$8 sps:$4 sm:$0xff]  }
  0xc9   :  { %3138 = vmatprep.subr.bf16.mxu0 %v4400_v23  ;;  %v4448_v23 = vld [vmem:[%s5833_s1 + $0x7a4] ss:$8 sps:$4 sm:$0xff]   ;;  %v149_v43 = vld [vmem:[%s5834_s0 + $0x3d0] sm:$0xff]  ;;  %v38_v59 = vld [vmem:[%s5834_s0 + $0x58] sm:$0xff] }
  0xca   :  { %2612 = vmatmul.mubr.bf16.gmra.mrb[4].mxu1 %v3473_v28  ;;  %v129_v28 = vld [vmem:[%s5834_s0 + $0x330] sm:$0xff] }
  0xcb   :  { %3064 = vmatmul.mubr.bf16.gmra.mrb[4].mxu0 %v3481_v29  ;;  %2687 = vmatpush1.bf16.msra.mxu1 %v4395_v24  ;;  %v125_v24 = vld [vmem:[%s5834_s0 + $0x310] sm:$0xff] }
  0xcc   :  { %3139 = vmatpush1.bf16.msra.mxu0 %v4398_v25  ;;  %2688 = vmatprep.subr.bf16.mxu1 %v4403_v32  ;;  %v3537_v25 = vcombine.low %v109_v8, %v117_v11  ;;  %v137_v29 = vld [vmem:[%s5834_s0 + $0x370] sm:$0xff]  ;;  %v50_v8 = vld [vmem:[%s5834_s0 + $0xb8] sm:$0xff]  ;;  %v3467_v11 = vcombine.low %v34_v60, %v42_v61 }
  0xcd   :  { %3140 = vmatprep.subr.bf16.mxu0 %v4406_v33  ;;  %2621 = vmatprep.mubr.bf16.mxu1 %v3490_v34  ;;  %v4451_v32 = vld [vmem:[%s5833_s1 + $0x3b4] ss:$8 sps:$4 sm:$0xff]   ;;  %v3554_v34 = vcombine.high %v125_v24, %v133_v27 }
  0xce   :  { %3073 = vmatprep.mubr.bf16.mxu0 %v3498_v35  ;;  %v4454_v33 = vld [vmem:[%s5833_s1 + $0x7b4] ss:$8 sps:$4 sm:$0xff]   ;;  %v3562_v35 = vcombine.high %v129_v28, %v137_v29 }
  0xcf   :  { %2689 = vmatpush1.bf16.msra.mxu1 %v4401_v36  ;;  %v4449_v36 = vld [vmem:[%s5833_s1 + $0x3b0] ss:$8 sps:$4 sm:$0xff]  }
  0xd0   :  { %3141 = vmatpush1.bf16.msra.mxu0 %v4404_v37  ;;  %2690 = vmatprep.subr.bf16.mxu1 %v4409_v38  ;;  %v4452_v37 = vld [vmem:[%s5833_s1 + $0x7b0] ss:$8 sps:$4 sm:$0xff]   ;;  %v4457_v38 = vld [vmem:[%s5833_s1 + $0x3c4] ss:$8 sps:$4 sm:$0xff]  }
  0xd1   :  { %3142 = vmatprep.subr.bf16.mxu0 %v4412_v39  ;;  %v4460_v39 = vld [vmem:[%s5833_s1 + $0x7c4] ss:$8 sps:$4 sm:$0xff]  }
  0xd2   :  { %2622 = vmatmul.mubr.bf16.gmra.mrb[8].mxu1 %v3489_v41  ;;  %v3553_v41 = vcombine.low %v125_v24, %v133_v27  ;;  %v82_v24 = vld [vmem:[%s5834_s0 + $0x1b8] sm:$0xff] }
  0xd3   :  { %3074 = vmatmul.mubr.bf16.gmra.mrb[8].mxu0 %v3497_v42  ;;  %2691 = vmatpush1.bf16.msra.mxu1 %v4407_v46  ;;  %v3561_v42 = vcombine.low %v129_v28, %v137_v29  ;;  %v4455_v46 = vld [vmem:[%s5833_s1 + $0x3c0] ss:$8 sps:$4 sm:$0xff]  }
  0xd4   :  { %3143 = vmatpush1.bf16.msra.mxu0 %v4410_v47  ;;  %2692 = vmatprep.subr.bf16.mxu1 %v4415_v48  ;;  %v4458_v47 = vld [vmem:[%s5833_s1 + $0x7c0] ss:$8 sps:$4 sm:$0xff]   ;;  %v4463_v48 = vld [vmem:[%s5833_s1 + $0x3d4] ss:$8 sps:$4 sm:$0xff]  }
  0xd5   :  { %3144 = vmatprep.subr.bf16.mxu0 %v4418_v49  ;;  %2631 = vmatprep.mubr.bf16.mxu1 %v3506_v50  ;;  %v4466_v49 = vld [vmem:[%s5833_s1 + $0x7d4] ss:$8 sps:$4 sm:$0xff]   ;;  %v3570_v50 = vcombine.high %v141_v40, %v149_v43 }
  0xd6   :  { %3083 = vmatprep.mubr.bf16.mxu0 %v3514_v51  ;;  %v3578_v51 = vcombine.high %v145_v44, %v153_v45 }
  0xd7   :  { %2693 = vmatpush1.bf16.msra.mxu1 %v4413_v52  ;;  %v4461_v52 = vld [vmem:[%s5833_s1 + $0x3d0] ss:$8 sps:$4 sm:$0xff]  }
  0xd8   :  { %3145 = vmatpush1.bf16.msra.mxu0 %v4416_v53  ;;  %2694 = vmatprep.subr.bf16.mxu1 %v4421_v54  ;;  %v4464_v53 = vld [vmem:[%s5833_s1 + $0x7d0] ss:$8 sps:$4 sm:$0xff]   ;;  %v4469_v54 = vld [vmem:[%s5833_s1 + $0x3e4] ss:$8 sps:$4 sm:$0xff]  }
  0xd9   :  { %3146 = vmatprep.subr.bf16.mxu0 %v4424_v55  ;;  %v4472_v55 = vld [vmem:[%s5833_s1 + $0x7e4] ss:$8 sps:$4 sm:$0xff]  }
  0xda   :  { %2632 = vmatmul.mubr.bf16.gmra.mrb[12].mxu1 %v3505_v57  ;;  %v3569_v57 = vcombine.low %v141_v40, %v149_v43  ;;  %v114_v40 = vld [vmem:[%s5834_s0 + $0x2b8] sm:$0xff] }
  0xdb   :  { %3084 = vmatmul.mubr.bf16.gmra.mrb[12].mxu0 %v3513_v58  ;;  %2695 = vmatpush1.bf16.msra.mxu1 %v4419_v62  ;;  %v3577_v58 = vcombine.low %v145_v44, %v153_v45  ;;  %v4467_v62 = vld [vmem:[%s5833_s1 + $0x3e0] ss:$8 sps:$4 sm:$0xff]  }
  0xdc   :  { %3147 = vmatpush1.bf16.msra.mxu0 %v4422_v63  ;;  %2696 = vmatprep.subr.bf16.mxu1 %v4427_v0  ;;  %v4470_v63 = vld [vmem:[%s5833_s1 + $0x7e0] ss:$8 sps:$4 sm:$0xff]   ;;  %v4475_v0 = vld [vmem:[%s5833_s1 + $0x3f4] ss:$8 sps:$4 sm:$0xff]  }
  0xdd   :  { %3148 = vmatprep.subr.bf16.mxu0 %v4430_v1  ;;  %2641 = vmatprep.mubr.bf16.mxu1 %v3522_v2  ;;  %v4478_v1 = vld [vmem:[%s5833_s1 + $0x7f4] ss:$8 sps:$4 sm:$0xff]   ;;  %v3460_v2 = vcombine.high %v30_v56, %v38_v59 }
  0xde   :  { %3093 = vmatprep.mubr.bf16.mxu0 %v3530_v3  ;;  %v3468_v3 = vcombine.high %v34_v60, %v42_v61 }
  0xdf   :  { %2697 = vmatpush1.bf16.msra.mxu1 %v4425_v4  ;;  %v4473_v4 = vld [vmem:[%s5833_s1 + $0x3f0] ss:$8 sps:$4 sm:$0xff]  }
  0xe0   :  { %3149 = vmatpush1.bf16.msra.mxu0 %v4428_v5  ;;  %2698 = vmatprep.subr.bf16.mxu1 %v4433_v6  ;;  %v4476_v5 = vld [vmem:[%s5833_s1 + $0x7f0] ss:$8 sps:$4 sm:$0xff]  }
  0xe1   :  { %3150 = vmatprep.subr.bf16.mxu0 %v4436_v7  ;;  %v46_v6 = vld [vmem:[%s5834_s0 + $0x98] sm:$0xff] }
  0xe2   :  { %2642 = vmatmul.mubr.bf16.gmra.mrb[16].mxu1 %v3521_v9  ;;  %v54_v7 = vld [vmem:[%s5834_s0 + $0xd8] sm:$0xff] }
  0xe3   :  { %3094 = vmatmul.mubr.bf16.gmra.mrb[16].mxu0 %v3529_v10  ;;  %2699 = vmatpush1.bf16.msra.mxu1 %v4431_v14  ;;  %v58_v9 = vld [vmem:[%s5834_s0 + $0xf8] sm:$0xff]  ;;  %v3459_v10 = vcombine.low %v30_v56, %v38_v59  ;;  %v3476_v12 = vcombine.high %v46_v6, %v54_v7 }
  0xe4   :  { %3151 = vmatpush1.bf16.msra.mxu0 %v4434_v15  ;;  %2700 = vmatprep.subr.bf16.mxu1 %v4439_v16  ;;  %v3484_v13 = vcombine.high %v50_v8, %v58_v9  ;;  %v62_v14 = vld [vmem:[%s5834_s0 + $0x118] sm:$0xff] }
  0xe5   :  { %3152 = vmatprep.subr.bf16.mxu0 %v4442_v17  ;;  %2651 = vmatprep.mubr.bf16.mxu1 %v3538_v18  ;;  %v70_v15 = vld [vmem:[%s5834_s0 + $0x158] sm:$0xff]  ;;  %v3475_v18 = vcombine.low %v46_v6, %v54_v7 }
  0xe6   :  { %3103 = vmatprep.mubr.bf16.mxu0 %v3546_v19  ;;  %v66_v16 = vld [vmem:[%s5834_s0 + $0x138] sm:$0xff]  ;;  %v3483_v19 = vcombine.low %v50_v8, %v58_v9 }
  0xe7   :  { %2701 = vmatpush1.bf16.msra.mxu1 %v4437_v20  ;;  %v74_v17 = vld [vmem:[%s5834_s0 + $0x178] sm:$0xff]  ;;  %v3492_v20 = vcombine.high %v62_v14, %v70_v15 }
  0xe8   :  { %3153 = vmatpush1.bf16.msra.mxu0 %v4440_v21  ;;  %2702 = vmatprep.subr.bf16.mxu1 %v4445_v22  ;;  %v3500_v21 = vcombine.high %v66_v16, %v74_v17  ;;  %v78_v22 = vld [vmem:[%s5834_s0 + $0x198] sm:$0xff]  ;;  %v3499_v27 = vcombine.low %v66_v16, %v74_v17 }
  0xe9   :  { %3154 = vmatprep.subr.bf16.mxu0 %v4448_v23  ;;  %v86_v23 = vld [vmem:[%s5834_s0 + $0x1d8] sm:$0xff] }
  0xea   :  { %2652 = vmatmul.mubr.bf16.gmra.mrb[20].mxu1 %v3537_v25  ;;  %v90_v25 = vld [vmem:[%s5834_s0 + $0x1f8] sm:$0xff]  ;;  %v3508_v28 = vcombine.high %v78_v22, %v86_v23 }
  0xeb   :  { %3104 = vmatmul.mubr.bf16.gmra.mrb[20].mxu0 %v3545_v26  ;;  %2703 = vmatpush1.bf16.msra.mxu1 %v4443_v30  ;;  %v3491_v26 = vcombine.low %v62_v14, %v70_v15  ;;  %v3516_v29 = vcombine.high %v82_v24, %v90_v25  ;;  %v94_v30 = vld [vmem:[%s5834_s0 + $0x218] sm:$0xff] }
  0xec   :  { %3155 = vmatpush1.bf16.msra.mxu0 %v4446_v31  ;;  %2704 = vmatprep.subr.bf16.mxu1 %v4451_v32  ;;  %v102_v31 = vld [vmem:[%s5834_s0 + $0x258] sm:$0xff] }
  0xed   :  { %3156 = vmatprep.subr.bf16.mxu0 %v4454_v33  ;;  %2661 = vmatprep.mubr.bf16.mxu1 %v3554_v34  ;;  %v98_v32 = vld [vmem:[%s5834_s0 + $0x238] sm:$0xff]  ;;  %v3507_v34 = vcombine.low %v78_v22, %v86_v23 }
  0xee   :  { %3113 = vmatprep.mubr.bf16.mxu0 %v3562_v35  ;;  %v106_v33 = vld [vmem:[%s5834_s0 + $0x278] sm:$0xff]  ;;  %v3515_v35 = vcombine.low %v82_v24, %v90_v25 }
  0xef   :  { %2705 = vmatpush1.bf16.msra.mxu1 %v4449_v36  ;;  %v3524_v36 = vcombine.high %v94_v30, %v102_v31  ;;  %v3531_v43 = vcombine.low %v98_v32, %v106_v33  ;;  %v146_v56 = vld [vmem:[%s5834_s0 + $0x3b8] sm:$0xff] }
  0xf0   :  { %3157 = vmatpush1.bf16.msra.mxu0 %v4452_v37  ;;  %2706 = vmatprep.subr.bf16.mxu1 %v4457_v38  ;;  %v3532_v37 = vcombine.high %v98_v32, %v106_v33  ;;  %v110_v38 = vld [vmem:[%s5834_s0 + $0x298] sm:$0xff] }
  0xf1   :  { %3158 = vmatprep.subr.bf16.mxu0 %v4460_v39  ;;  %v118_v39 = vld [vmem:[%s5834_s0 + $0x2d8] sm:$0xff] }
  0xf2   :  { %2662 = vmatmul.mubr.bf16.gmra.mrb[24].mxu1 %v3553_v41  ;;  %v122_v41 = vld [vmem:[%s5834_s0 + $0x2f8] sm:$0xff]  ;;  %v3540_v44 = vcombine.high %v110_v38, %v118_v39 }
  0xf3   :  { %3114 = vmatmul.mubr.bf16.gmra.mrb[24].mxu0 %v3561_v42  ;;  %2707 = vmatpush1.bf16.msra.mxu1 %v4455_v46  ;;  %v3523_v42 = vcombine.low %v94_v30, %v102_v31  ;;  %v3548_v45 = vcombine.high %v114_v40, %v122_v41  ;;  %v126_v46 = vld [vmem:[%s5834_s0 + $0x318] sm:$0xff] }
  0xf4   :  { %3159 = vmatpush1.bf16.msra.mxu0 %v4458_v47  ;;  %2708 = vmatprep.subr.bf16.mxu1 %v4463_v48  ;;  %v134_v47 = vld [vmem:[%s5834_s0 + $0x358] sm:$0xff] }
  0xf5   :  { %3160 = vmatprep.subr.bf16.mxu0 %v4466_v49  ;;  %2671 = vmatprep.mubr.bf16.mxu1 %v3570_v50  ;;  %v130_v48 = vld [vmem:[%s5834_s0 + $0x338] sm:$0xff]  ;;  %v3539_v50 = vcombine.low %v110_v38, %v118_v39 }
  0xf6   :  { %3123 = vmatprep.mubr.bf16.mxu0 %v3578_v51  ;;  %v138_v49 = vld [vmem:[%s5834_s0 + $0x378] sm:$0xff]  ;;  %v3547_v51 = vcombine.low %v114_v40, %v122_v41 }
  0xf7   :  { %2709 = vmatpush1.bf16.msra.mxu1 %v4461_v52  ;;  %v3556_v52 = vcombine.high %v126_v46, %v134_v47  ;;  %v3563_v59 = vcombine.low %v130_v48, %v138_v49 }
  0xf8   :  { %3161 = vmatpush1.bf16.msra.mxu0 %v4464_v53  ;;  %2710 = vmatprep.subr.bf16.mxu1 %v4469_v54  ;;  %v3564_v53 = vcombine.high %v130_v48, %v138_v49  ;;  %v142_v54 = vld [vmem:[%s5834_s0 + $0x398] sm:$0xff] }
  0xf9   :  { %3162 = vmatprep.subr.bf16.mxu0 %v4472_v55  ;;  %v150_v55 = vld [vmem:[%s5834_s0 + $0x3d8] sm:$0xff] }
  0xfa   :  { %2672 = vmatmul.mubr.bf16.gmra.mrb[28].mxu1 %v3569_v57  ;;  %v154_v57 = vld [vmem:[%s5834_s0 + $0x3f8] sm:$0xff]  ;;  %v3572_v60 = vcombine.high %v142_v54, %v150_v55 }
  0xfb   :  { %3124 = vmatmul.mubr.bf16.gmra.mrb[28].mxu0 %v3577_v58  ;;  %2711 = vmatpush1.bf16.msra.mxu1 %v4467_v62  ;;  %v3555_v58 = vcombine.low %v126_v46, %v134_v47  ;;  %v3580_v61 = vcombine.high %v146_v56, %v154_v57  ;;  %v3571_v62 = vcombine.low %v142_v54, %v150_v55 }
  0xfc   :  { %3163 = vmatpush1.bf16.msra.mxu0 %v4470_v63  ;;  %2712 = vmatprep.subr.bf16.mxu1 %v4475_v0  ;;  %v3579_v63 = vcombine.low %v146_v56, %v154_v57  ;;  %v21_v0 = vlaneseq }
  0xfd   :  { %3164 = vmatprep.subr.bf16.mxu0 %v4478_v1  ;;  %2714 = vmatprep.mubr.bf16.mxu1 %v3460_v2  ;;  %v4479_v2 = vmov 0.0  }
  0xfe   :  { %3166 = vmatprep.mubr.bf16.mxu0 %v3468_v3  ;;  %vm5663_vm0 = vcmp.lt.s32.totalorder %v21_v0, 256  ;;  %v5677_v3 = vshrl.u32 %v21_v0, 7 }
  0xff   :  { %2713 = vmatpush1.bf16.msra.mxu1 %v4473_v4  ;;  %25 = vst.msk [vmem:[%s5835_s4] sm:$0x3] %vm5663_vm0, %v4479_v2  ;;  %26 = vst.msk [vmem:[%s5836_s5] sm:$0x3] %vm5663_vm0, %v4479_v2 }
 0x100   :  { %3165 = vmatpush1.bf16.msra.mxu0 %v4476_v5  ;;  %v415_v4 = vsub.s32 0, %v5677_v3  ;;  %v411_v5 = vld [vmem:[%s5837_s2] sm:$0x3]  ;;  %v419_v6 = vsub.s32 1, %v5677_v3 }
 0x102   :  { %2715 = vmatmul.mubr.bf16.vlgmr.msra.gmra.mrb[0].mxu1 %v3459_v10  ;;  %v5684_v7 = vrot.slane %v411_v5, %v415_v4  ;;  %v5686_v8 = vrot.slane %v411_v5, %v419_v6 }
 0x103   :  { %3167 = vmatmul.mubr.bf16.vlgmr.msra.gmra.mrb[0].mxu0 %v3467_v11  ;;  %2724 = vmatprep.mubr.bf16.mxu1 %v3476_v12 }
 0x104   :  { %3176 = vmatprep.mubr.bf16.mxu0 %v3484_v13 }
 0x10a   :  { %2725 = vmatmul.mubr.bf16.gmra.mrb[4].mxu1 %v3475_v18 }
 0x10b   :  { %3177 = vmatmul.mubr.bf16.gmra.mrb[4].mxu0 %v3483_v19  ;;  %2734 = vmatprep.mubr.bf16.mxu1 %v3492_v20 }
 0x10c   :  { %3186 = vmatprep.mubr.bf16.mxu0 %v3500_v21 }
 0x112   :  { %2735 = vmatmul.mubr.bf16.gmra.mrb[8].mxu1 %v3491_v26 }
 0x113   :  { %3187 = vmatmul.mubr.bf16.gmra.mrb[8].mxu0 %v3499_v27  ;;  %2744 = vmatprep.mubr.bf16.mxu1 %v3508_v28 }
 0x114   :  { %3196 = vmatprep.mubr.bf16.mxu0 %v3516_v29 }
 0x11a   :  { %2745 = vmatmul.mubr.bf16.gmra.mrb[12].mxu1 %v3507_v34 }
 0x11b   :  { %3197 = vmatmul.mubr.bf16.gmra.mrb[12].mxu0 %v3515_v35  ;;  %2754 = vmatprep.mubr.bf16.mxu1 %v3524_v36 }
 0x11c   :  { %3206 = vmatprep.mubr.bf16.mxu0 %v3532_v37 }
 0x122   :  { %2755 = vmatmul.mubr.bf16.gmra.mrb[16].mxu1 %v3523_v42 }
 0x123   :  { %3207 = vmatmul.mubr.bf16.gmra.mrb[16].mxu0 %v3531_v43  ;;  %2764 = vmatprep.mubr.bf16.mxu1 %v3540_v44 }
 0x124   :  { %3216 = vmatprep.mubr.bf16.mxu0 %v3548_v45 }
 0x12a   :  { %2765 = vmatmul.mubr.bf16.gmra.mrb[20].mxu1 %v3539_v50 }
 0x12b   :  { %3217 = vmatmul.mubr.bf16.gmra.mrb[20].mxu0 %v3547_v51  ;;  %2774 = vmatprep.mubr.bf16.mxu1 %v3556_v52 }
 0x12c   :  { %3226 = vmatprep.mubr.bf16.mxu0 %v3564_v53 }
 0x132   :  { %2775 = vmatmul.mubr.bf16.gmra.mrb[24].mxu1 %v3555_v58 }
 0x133   :  { %3227 = vmatmul.mubr.bf16.gmra.mrb[24].mxu0 %v3563_v59  ;;  %2784 = vmatprep.mubr.bf16.mxu1 %v3572_v60 }
 0x134   :  { %3236 = vmatprep.mubr.bf16.mxu0 %v3580_v61 }
 0x13a   :  { %2785 = vmatmul.mubr.bf16.gmra.mrb[28].mxu1 %v3571_v62 }
 0x13b   :  { %3237 = vmatmul.mubr.bf16.gmra.mrb[28].mxu0 %v3579_v63 }
 0x1d5   :  { %v2716_v9 = vpop.f32.mrb[0].mxu1 }
 0x1d6   :  { %v3168_v10 = vpop.f32.mrb[0].mxu0  ;;  %v3837_v11 = vadd.f32 %v2716_v9, %v5684_v7  ;;  %v2718_v12 = vpop.f32.mrb[1].mxu1 }
 0x1d7   :  { %v3170_v13 = vpop.f32.mrb[1].mxu0  ;;  %v3839_v14 = vadd.f32 %v2718_v12, %v5686_v8  ;;  %v2720_v15 = vpop.f32.mrb[2].mxu1 }
 0x1d8   :  { %v3172_v16 = vpop.f32.mrb[2].mxu0  ;;  %v3838_v17 = vadd.f32 %v3837_v11, %v3168_v10  ;;  %v3841_v18 = vadd.f32 %v2720_v15, %v5684_v7  ;;  %v2722_v19 = vpop.f32.mrb[3].mxu1 }
 0x1d9   :  { %v3174_v20 = vpop.f32.mrb[3].mxu0  ;;  %v3840_v21 = vadd.f32 %v3839_v14, %v3170_v13  ;;  %v3843_v22 = vadd.f32 %v2722_v19, %v5686_v8 }
 0x1da   :  { %3247 = vst [vmem:[%s5838_s3] sm:$0xff] %v3838_v17  ;;  %v3842_v23 = vadd.f32 %v3841_v18, %v3172_v16  ;;  %v3347_v25 = vmul.f32 %v3838_v17, %v3838_v17 }
 0x1db   :  { %3248 = vst [vmem:[%s5838_s3 + $0x8] sm:$0xff] %v3840_v21  ;;  %v3844_v24 = vadd.f32 %v3843_v22, %v3174_v20  ;;  %v3348_v28 = vmul.f32 %v3840_v21, %v3840_v21 }
 0x1dc   :  { %3249 = vst [vmem:[%s5838_s3 + $0x10] sm:$0xff] %v3842_v23  ;;  %v3280_v26 = vadd.f32 %v3842_v23, %v3838_v17  ;;  %v3349_v27 = vmul.f32 %v3842_v23, %v3842_v23 }
 0x1dd   :  { %3250 = vst [vmem:[%s5838_s3 + $0x18] sm:$0xff] %v3844_v24  ;;  %v3301_v29 = vadd.f32 %v3844_v24, %v3840_v21  ;;  %v3350_v30 = vmul.f32 %v3844_v24, %v3844_v24  ;;  %v2726_v31 = vpop.f32.mrb[4].mxu1 }
 0x1de   :  { %v3178_v32 = vpop.f32.mrb[4].mxu0  ;;  %v3379_v33 = vadd.f32 %v3349_v27, %v3347_v25  ;;  %v3845_v34 = vadd.f32 %v2726_v31, %v5684_v7  ;;  %v2728_v35 = vpop.f32.mrb[5].mxu1 }
 0x1df   :  { %v3180_v36 = vpop.f32.mrb[5].mxu0  ;;  %v3400_v37 = vadd.f32 %v3350_v30, %v3348_v28  ;;  %v3847_v38 = vadd.f32 %v2728_v35, %v5686_v8  ;;  %v2730_v39 = vpop.f32.mrb[6].mxu1 }
 0x1e0   :  { %v3182_v40 = vpop.f32.mrb[6].mxu0  ;;  %v3846_v41 = vadd.f32 %v3845_v34, %v3178_v32  ;;  %v3849_v42 = vadd.f32 %v2730_v39, %v5684_v7  ;;  %v2732_v43 = vpop.f32.mrb[7].mxu1 }
 0x1e1   :  { %v3184_v44 = vpop.f32.mrb[7].mxu0  ;;  %v3848_v45 = vadd.f32 %v3847_v38, %v3180_v36  ;;  %v3851_v46 = vadd.f32 %v2732_v43, %v5686_v8 }
 0x1e2   :  { %3251 = vst [vmem:[%s5838_s3 + $0x20] sm:$0xff] %v3846_v41  ;;  %v3281_v47 = vadd.f32 %v3846_v41, %v3280_v26  ;;  %v3351_v48 = vmul.f32 %v3846_v41, %v3846_v41  ;;  %v3850_v49 = vadd.f32 %v3849_v42, %v3182_v40 }
 0x1e3   :  { %3252 = vst [vmem:[%s5838_s3 + $0x28] sm:$0xff] %v3848_v45  ;;  %v3302_v50 = vadd.f32 %v3848_v45, %v3301_v29  ;;  %v3352_v51 = vmul.f32 %v3848_v45, %v3848_v45  ;;  %v3852_v52 = vadd.f32 %v3851_v46, %v3184_v44 }
 0x1e4   :  { %v3380_v53 = vadd.f32 %v3379_v33, %v3351_v48  ;;  %3253 = vst [vmem:[%s5838_s3 + $0x30] sm:$0xff] %v3850_v49  ;;  %v3282_v54 = vadd.f32 %v3850_v49, %v3281_v47  ;;  %v3353_v55 = vmul.f32 %v3850_v49, %v3850_v49 }
 0x1e5   :  { %v3401_v56 = vadd.f32 %v3400_v37, %v3352_v51  ;;  %3254 = vst [vmem:[%s5838_s3 + $0x38] sm:$0xff] %v3852_v52  ;;  %v3303_v57 = vadd.f32 %v3852_v52, %v3302_v50  ;;  %v3354_v58 = vmul.f32 %v3852_v52, %v3852_v52  ;;  %v2736_v59 = vpop.f32.mrb[8].mxu1 }
 0x1e6   :  { %v3188_v60 = vpop.f32.mrb[8].mxu0  ;;  %v3381_v61 = vadd.f32 %v3380_v53, %v3353_v55  ;;  %v3853_v62 = vadd.f32 %v2736_v59, %v5684_v7  ;;  %v2738_v63 = vpop.f32.mrb[9].mxu1 }
 0x1e7   :  { %v3190_v0 = vpop.f32.mrb[9].mxu0  ;;  %v3402_v2 = vadd.f32 %v3401_v56, %v3354_v58  ;;  %v3855_v4 = vadd.f32 %v2738_v63, %v5686_v8  ;;  %v2740_v5 = vpop.f32.mrb[10].mxu1 }
 0x1e8   :  { %v3192_v6 = vpop.f32.mrb[10].mxu0  ;;  %v3854_v9 = vadd.f32 %v3853_v62, %v3188_v60  ;;  %v3857_v10 = vadd.f32 %v2740_v5, %v5684_v7  ;;  %v2742_v11 = vpop.f32.mrb[11].mxu1 }
 0x1e9   :  { %v3194_v12 = vpop.f32.mrb[11].mxu0  ;;  %v3856_v13 = vadd.f32 %v3855_v4, %v3190_v0  ;;  %v3859_v14 = vadd.f32 %v2742_v11, %v5686_v8 }
 0x1ea   :  { %3255 = vst [vmem:[%s5838_s3 + $0x40] sm:$0xff] %v3854_v9  ;;  %v3283_v15 = vadd.f32 %v3854_v9, %v3282_v54  ;;  %v3355_v16 = vmul.f32 %v3854_v9, %v3854_v9  ;;  %v3858_v17 = vadd.f32 %v3857_v10, %v3192_v6 }
 0x1eb   :  { %3256 = vst [vmem:[%s5838_s3 + $0x48] sm:$0xff] %v3856_v13  ;;  %v3304_v18 = vadd.f32 %v3856_v13, %v3303_v57  ;;  %v3356_v19 = vmul.f32 %v3856_v13, %v3856_v13  ;;  %v3860_v20 = vadd.f32 %v3859_v14, %v3194_v12 }
 0x1ec   :  { %v3382_v21 = vadd.f32 %v3381_v61, %v3355_v16  ;;  %3257 = vst [vmem:[%s5838_s3 + $0x50] sm:$0xff] %v3858_v17  ;;  %v3284_v22 = vadd.f32 %v3858_v17, %v3283_v15  ;;  %v3357_v23 = vmul.f32 %v3858_v17, %v3858_v17 }
 0x1ed   :  { %v3403_v24 = vadd.f32 %v3402_v2, %v3356_v19  ;;  %3258 = vst [vmem:[%s5838_s3 + $0x58] sm:$0xff] %v3860_v20  ;;  %v3305_v25 = vadd.f32 %v3860_v20, %v3304_v18  ;;  %v3358_v26 = vmul.f32 %v3860_v20, %v3860_v20  ;;  %v2746_v27 = vpop.f32.mrb[12].mxu1 }
 0x1ee   :  { %v3198_v28 = vpop.f32.mrb[12].mxu0  ;;  %v3383_v29 = vadd.f32 %v3382_v21, %v3357_v23  ;;  %v3861_v30 = vadd.f32 %v2746_v27, %v5684_v7  ;;  %v2748_v31 = vpop.f32.mrb[13].mxu1 }
 0x1ef   :  { %v3200_v32 = vpop.f32.mrb[13].mxu0  ;;  %v3404_v33 = vadd.f32 %v3403_v24, %v3358_v26  ;;  %v3863_v34 = vadd.f32 %v2748_v31, %v5686_v8  ;;  %v2750_v35 = vpop.f32.mrb[14].mxu1 }
 0x1f0   :  { %v3202_v36 = vpop.f32.mrb[14].mxu0  ;;  %v3862_v37 = vadd.f32 %v3861_v30, %v3198_v28  ;;  %v3865_v38 = vadd.f32 %v2750_v35, %v5684_v7  ;;  %v2752_v39 = vpop.f32.mrb[15].mxu1 }
 0x1f1   :  { %v3204_v40 = vpop.f32.mrb[15].mxu0  ;;  %v3864_v41 = vadd.f32 %v3863_v34, %v3200_v32  ;;  %v3867_v42 = vadd.f32 %v2752_v39, %v5686_v8 }
 0x1f2   :  { %3259 = vst [vmem:[%s5838_s3 + $0x60] sm:$0xff] %v3862_v37  ;;  %v3285_v43 = vadd.f32 %v3862_v37, %v3284_v22  ;;  %v3359_v44 = vmul.f32 %v3862_v37, %v3862_v37  ;;  %v3866_v45 = vadd.f32 %v3865_v38, %v3202_v36 }
 0x1f3   :  { %3260 = vst [vmem:[%s5838_s3 + $0x68] sm:$0xff] %v3864_v41  ;;  %v3306_v46 = vadd.f32 %v3864_v41, %v3305_v25  ;;  %v3360_v47 = vmul.f32 %v3864_v41, %v3864_v41  ;;  %v3868_v48 = vadd.f32 %v3867_v42, %v3204_v40 }
 0x1f4   :  { %v3384_v49 = vadd.f32 %v3383_v29, %v3359_v44  ;;  %3261 = vst [vmem:[%s5838_s3 + $0x70] sm:$0xff] %v3866_v45  ;;  %v3286_v50 = vadd.f32 %v3866_v45, %v3285_v43  ;;  %v3361_v51 = vmul.f32 %v3866_v45, %v3866_v45 }
 0x1f5   :  { %v3405_v52 = vadd.f32 %v3404_v33, %v3360_v47  ;;  %3262 = vst [vmem:[%s5838_s3 + $0x78] sm:$0xff] %v3868_v48  ;;  %v3307_v53 = vadd.f32 %v3868_v48, %v3306_v46  ;;  %v3362_v54 = vmul.f32 %v3868_v48, %v3868_v48  ;;  %v2756_v55 = vpop.f32.mrb[16].mxu1 }
 0x1f6   :  { %v3208_v56 = vpop.f32.mrb[16].mxu0  ;;  %v3385_v57 = vadd.f32 %v3384_v49, %v3361_v51  ;;  %v3869_v58 = vadd.f32 %v2756_v55, %v5684_v7  ;;  %v2758_v59 = vpop.f32.mrb[17].mxu1 }
 0x1f7   :  { %v3210_v60 = vpop.f32.mrb[17].mxu0  ;;  %v3406_v61 = vadd.f32 %v3405_v52, %v3362_v54  ;;  %v3871_v62 = vadd.f32 %v2758_v59, %v5686_v8  ;;  %v2760_v63 = vpop.f32.mrb[18].mxu1 }
 0x1f8   :  { %v3212_v0 = vpop.f32.mrb[18].mxu0  ;;  %v3870_v2 = vadd.f32 %v3869_v58, %v3208_v56  ;;  %v3873_v4 = vadd.f32 %v2760_v63, %v5684_v7  ;;  %v2762_v5 = vpop.f32.mrb[19].mxu1 }
 0x1f9   :  { %v3214_v6 = vpop.f32.mrb[19].mxu0  ;;  %v3872_v9 = vadd.f32 %v3871_v62, %v3210_v60  ;;  %v3875_v10 = vadd.f32 %v2762_v5, %v5686_v8 }
 0x1fa   :  { %3263 = vst [vmem:[%s5838_s3 + $0x80] sm:$0xff] %v3870_v2  ;;  %v3287_v11 = vadd.f32 %v3870_v2, %v3286_v50  ;;  %v3363_v12 = vmul.f32 %v3870_v2, %v3870_v2  ;;  %v3874_v13 = vadd.f32 %v3873_v4, %v3212_v0 }
 0x1fb   :  { %3264 = vst [vmem:[%s5838_s3 + $0x88] sm:$0xff] %v3872_v9  ;;  %v3308_v14 = vadd.f32 %v3872_v9, %v3307_v53  ;;  %v3364_v15 = vmul.f32 %v3872_v9, %v3872_v9  ;;  %v3876_v16 = vadd.f32 %v3875_v10, %v3214_v6 }
 0x1fc   :  { %v3386_v17 = vadd.f32 %v3385_v57, %v3363_v12  ;;  %3265 = vst [vmem:[%s5838_s3 + $0x90] sm:$0xff] %v3874_v13  ;;  %v3288_v18 = vadd.f32 %v3874_v13, %v3287_v11  ;;  %v3365_v19 = vmul.f32 %v3874_v13, %v3874_v13 }
 0x1fd   :  { %v3407_v20 = vadd.f32 %v3406_v61, %v3364_v15  ;;  %3266 = vst [vmem:[%s5838_s3 + $0x98] sm:$0xff] %v3876_v16  ;;  %v3309_v21 = vadd.f32 %v3876_v16, %v3308_v14  ;;  %v3366_v22 = vmul.f32 %v3876_v16, %v3876_v16  ;;  %v2766_v23 = vpop.f32.mrb[20].mxu1 }
 0x1fe   :  { %v3218_v24 = vpop.f32.mrb[20].mxu0  ;;  %v3387_v25 = vadd.f32 %v3386_v17, %v3365_v19  ;;  %v3877_v26 = vadd.f32 %v2766_v23, %v5684_v7  ;;  %v2768_v27 = vpop.f32.mrb[21].mxu1 }
 0x1ff   :  { %v3220_v28 = vpop.f32.mrb[21].mxu0  ;;  %v3408_v29 = vadd.f32 %v3407_v20, %v3366_v22  ;;  %v3879_v30 = vadd.f32 %v2768_v27, %v5686_v8  ;;  %v2770_v31 = vpop.f32.mrb[22].mxu1 }
 0x200   :  { %v3222_v32 = vpop.f32.mrb[22].mxu0  ;;  %v3878_v33 = vadd.f32 %v3877_v26, %v3218_v24  ;;  %v3881_v34 = vadd.f32 %v2770_v31, %v5684_v7  ;;  %v2772_v35 = vpop.f32.mrb[23].mxu1 }
 0x201   :  { %v3224_v36 = vpop.f32.mrb[23].mxu0  ;;  %v3880_v37 = vadd.f32 %v3879_v30, %v3220_v28  ;;  %v3883_v38 = vadd.f32 %v2772_v35, %v5686_v8 }
 0x202   :  { %3267 = vst [vmem:[%s5838_s3 + $0xa0] sm:$0xff] %v3878_v33  ;;  %v3289_v39 = vadd.f32 %v3878_v33, %v3288_v18  ;;  %v3367_v40 = vmul.f32 %v3878_v33, %v3878_v33  ;;  %v3882_v41 = vadd.f32 %v3881_v34, %v3222_v32 }
 0x203   :  { %3268 = vst [vmem:[%s5838_s3 + $0xa8] sm:$0xff] %v3880_v37  ;;  %v3310_v42 = vadd.f32 %v3880_v37, %v3309_v21  ;;  %v3368_v43 = vmul.f32 %v3880_v37, %v3880_v37  ;;  %v3884_v44 = vadd.f32 %v3883_v38, %v3224_v36 }
 0x204   :  { %v3388_v45 = vadd.f32 %v3387_v25, %v3367_v40  ;;  %3269 = vst [vmem:[%s5838_s3 + $0xb0] sm:$0xff] %v3882_v41  ;;  %v3290_v46 = vadd.f32 %v3882_v41, %v3289_v39  ;;  %v3369_v47 = vmul.f32 %v3882_v41, %v3882_v41 }
 0x205   :  { %v3409_v48 = vadd.f32 %v3408_v29, %v3368_v43  ;;  %3270 = vst [vmem:[%s5838_s3 + $0xb8] sm:$0xff] %v3884_v44  ;;  %v3311_v49 = vadd.f32 %v3884_v44, %v3310_v42  ;;  %v3370_v50 = vmul.f32 %v3884_v44, %v3884_v44  ;;  %v2776_v51 = vpop.f32.mrb[24].mxu1 }
 0x206   :  { %v3228_v52 = vpop.f32.mrb[24].mxu0  ;;  %v3389_v53 = vadd.f32 %v3388_v45, %v3369_v47  ;;  %v3885_v54 = vadd.f32 %v2776_v51, %v5684_v7  ;;  %v2778_v55 = vpop.f32.mrb[25].mxu1 }
 0x207   :  { %v3230_v56 = vpop.f32.mrb[25].mxu0  ;;  %v3410_v57 = vadd.f32 %v3409_v48, %v3370_v50  ;;  %v3887_v58 = vadd.f32 %v2778_v55, %v5686_v8  ;;  %v2780_v59 = vpop.f32.mrb[26].mxu1 }
 0x208   :  { %v3232_v60 = vpop.f32.mrb[26].mxu0  ;;  %v3886_v61 = vadd.f32 %v3885_v54, %v3228_v52  ;;  %v3889_v62 = vadd.f32 %v2780_v59, %v5684_v7  ;;  %v2782_v63 = vpop.f32.mrb[27].mxu1  ;;  %v4480_v52 = vmov 1966171168  }
 0x209   :  { %v3234_v0 = vpop.f32.mrb[27].mxu0  ;;  %v3888_v2 = vadd.f32 %v3887_v58, %v3230_v56  ;;  %v3891_v4 = vadd.f32 %v2782_v63, %v5686_v8 }
 0x20a   :  { %3271 = vst [vmem:[%s5838_s3 + $0xc0] sm:$0xff] %v3886_v61  ;;  %v3291_v5 = vadd.f32 %v3886_v61, %v3290_v46  ;;  %v3371_v6 = vmul.f32 %v3886_v61, %v3886_v61  ;;  %v3890_v9 = vadd.f32 %v3889_v62, %v3232_v60 }
 0x20b   :  { %3272 = vst [vmem:[%s5838_s3 + $0xc8] sm:$0xff] %v3888_v2  ;;  %v3312_v10 = vadd.f32 %v3888_v2, %v3311_v49  ;;  %v3372_v11 = vmul.f32 %v3888_v2, %v3888_v2  ;;  %v3892_v12 = vadd.f32 %v3891_v4, %v3234_v0 }
 0x20c   :  { %v3390_v13 = vadd.f32 %v3389_v53, %v3371_v6  ;;  %3273 = vst [vmem:[%s5838_s3 + $0xd0] sm:$0xff] %v3890_v9  ;;  %v3292_v14 = vadd.f32 %v3890_v9, %v3291_v5  ;;  %v3373_v15 = vmul.f32 %v3890_v9, %v3890_v9  ;;  %v3326_v53 = vunpack.c.l.s4 %v4480_v52 }
 0x20d   :  { %v3411_v16 = vadd.f32 %v3410_v57, %v3372_v11  ;;  %3274 = vst [vmem:[%s5838_s3 + $0xd8] sm:$0xff] %v3892_v12  ;;  %v3313_v17 = vadd.f32 %v3892_v12, %v3312_v10  ;;  %v3374_v18 = vmul.f32 %v3892_v12, %v3892_v12  ;;  %v2786_v19 = vpop.f32.mrb[28].mxu1 }
 0x20e   :  { %v3238_v20 = vpop.f32.mrb[28].mxu0  ;;  %v3391_v21 = vadd.f32 %v3390_v13, %v3373_v15  ;;  %v3893_v22 = vadd.f32 %v2786_v19, %v5684_v7  ;;  %v2788_v23 = vpop.f32.mrb[29].mxu1  ;;  %v3327_v62 = vunpack.c.0.s8 %v3326_v53 }
 0x20f   :  { %v3240_v24 = vpop.f32.mrb[29].mxu0  ;;  %v3412_v25 = vadd.f32 %v3411_v16, %v3374_v18  ;;  %v3895_v26 = vadd.f32 %v2788_v23, %v5686_v8  ;;  %v2790_v27 = vpop.f32.mrb[30].mxu1  ;;  %v3279_v18 = vld [vmem:[%s5835_s4] sm:$0x3] }
 0x210   :  { %v3242_v28 = vpop.f32.mrb[30].mxu0  ;;  %v3894_v29 = vadd.f32 %v3893_v22, %v3238_v20  ;;  %v3897_v30 = vadd.f32 %v2790_v27, %v5684_v7  ;;  %v2792_v31 = vpop.f32.mrb[31].mxu1  ;;  %v3330_v11 = vsub.s32 %v3327_v62, %v5677_v3 }
 0x211   :  { %v3244_v32 = vpop.f32.mrb[31].mxu0  ;;  %v3896_v33 = vadd.f32 %v3895_v26, %v3240_v24  ;;  %v3899_v34 = vadd.f32 %v2792_v31, %v5686_v8 }
 0x212   :  { %3275 = vst [vmem:[%s5838_s3 + $0xe0] sm:$0xff] %v3894_v29  ;;  %v3293_v35 = vadd.f32 %v3894_v29, %v3292_v14  ;;  %v3375_v36 = vmul.f32 %v3894_v29, %v3894_v29  ;;  %v3898_v37 = vadd.f32 %v3897_v30, %v3242_v28 }
 0x213   :  { %3276 = vst [vmem:[%s5838_s3 + $0xe8] sm:$0xff] %v3896_v33  ;;  %v3314_v38 = vadd.f32 %v3896_v33, %v3313_v17  ;;  %v3376_v39 = vmul.f32 %v3896_v33, %v3896_v33  ;;  %v3900_v40 = vadd.f32 %v3899_v34, %v3244_v32 }
 0x214   :  { %v3392_v7 = vadd.f32 %v3391_v21, %v3375_v36  ;;  %3277 = vst [vmem:[%s5838_s3 + $0xf0] sm:$0xff] %v3898_v37  ;;  %v3294_v8 = vadd.f32 %v3898_v37, %v3293_v35  ;;  %v3377_v41 = vmul.f32 %v3898_v37, %v3898_v37  ;;  %v3346_v21 = vld [vmem:[%s5836_s5] sm:$0x3] }
 0x215   :  { %v3413_v42 = vadd.f32 %v3412_v25, %v3376_v39  ;;  %3278 = vst [vmem:[%s5838_s3 + $0xf8] sm:$0xff] %v3900_v40  ;;  %v3315_v43 = vadd.f32 %v3900_v40, %v3314_v38  ;;  %v3378_v44 = vmul.f32 %v3900_v40, %v3900_v40 }
 0x216   :  { %v3295_v45 = vrot.slane %v3294_v8, 4  ;;  %v3393_v46 = vadd.f32 %v3392_v7, %v3377_v41 }
 0x217   :  { %v3316_v47 = vrot.slane %v3315_v43, 4  ;;  %v3414_v48 = vadd.f32 %v3413_v42, %v3378_v44 }
 0x218   :  { %v3296_v49 = vadd.f32 %v3295_v45, %v3294_v8  ;;  %v3394_v50 = vrot.slane %v3393_v46, 4 }
 0x219   :  { %v3317_v51 = vadd.f32 %v3316_v47, %v3315_v43  ;;  %v3415_v54 = vrot.slane %v3414_v48, 4 }
 0x21a   :  { %v3297_v55 = vrot.slane %v3296_v49, 2  ;;  %v3395_v56 = vadd.f32 %v3394_v50, %v3393_v46 }
 0x21b   :  { %v3318_v57 = vrot.slane %v3317_v51, 2  ;;  %v3416_v58 = vadd.f32 %v3415_v54, %v3414_v48 }
 0x21c   :  { %v3298_v59 = vadd.f32 %v3297_v55, %v3296_v49  ;;  %v3396_v60 = vrot.slane %v3395_v56, 2 }
 0x21d   :  { %v3319_v61 = vadd.f32 %v3318_v57, %v3317_v51  ;;  %v3417_v63 = vrot.slane %v3416_v58, 2 }
 0x21e   :  { %v3299_v0 = vrot.slane %v3298_v59, 1  ;;  %v3397_v2 = vadd.f32 %v3396_v60, %v3395_v56 }
 0x21f   :  { %v3320_v4 = vrot.slane %v3319_v61, 1  ;;  %v3418_v5 = vadd.f32 %v3417_v63, %v3416_v58 }
 0x220   :  { %v3300_v6 = vadd.f32 %v3299_v0, %v3298_v59  ;;  %v3398_v9 = vrot.slane %v3397_v2, 1 }
 0x221   :  { %v3321_v10 = vadd.f32 %v3320_v4, %v3319_v61  ;;  %v3419_v12 = vrot.slane %v3418_v5, 1 }
 0x222   :  { %v3399_v13 = vadd.f32 %v3398_v9, %v3397_v2 }
 0x223   :  { %v3324_v14 = vcombine.low %v3300_v6, %v3321_v10  ;;  %v3420_v15 = vadd.f32 %v3419_v12, %v3418_v5 }
 0x225   :  { %v3331_v16 = vrot.slane %v3324_v14, %v3330_v11  ;;  %v3423_v17 = vcombine.low %v3399_v13, %v3420_v15 }
 0x227   :  { %v3338_v19 = vrot.slane %v3331_v16, %v3330_v11  ;;  %v3430_v20 = vrot.slane %v3423_v17, %v3330_v11 }
 0x229   :  { %v3340_v22 = vadd.f32 %v3338_v19, %v3279_v18  ;;  %v3437_v23 = vrot.slane %v3430_v20, %v3330_v11 }
 0x22b   :  { %3345 = vst.msk [vmem:[%s5835_s4] sm:$0x3] %vm5663_vm0, %v3340_v22  ;;  %v3439_v3 = vadd.f32 %v3437_v23, %v3346_v21 }
 0x22d   :  { %3440 = vst.msk [vmem:[%s5836_s5] sm:$0x3] %vm5663_vm0, %v3439_v3 }

// kernel: discriminator_forward.11
= control target key start
LH: loop header
LB: loop body
LE: loop exit
PB: predicated region body
PF: predicated region fallthrough
CT: control target
= control target key end

     0   :  { %v15211_v22 = vmov 1966171168   ;;  %v2106_v24 = vlaneseq  ;;  %s18608_s1 = inlined_call_operand.vmem [shape: bf16[16384,128], index: 1, kind: input, shape index: {}]   ;;  %s18609_s0 = inlined_call_operand.vmem [shape: bf16[2,16384], index: 0, kind: input, shape index: {}]   ;;  %s18610_s2 = inlined_call_operand.vmem [shape: f32[1,128], index: 2, kind: input, shape index: {}]   ;;  %s18611_s3 = inlined_call_operand.vmem [shape: f32[2,128], index: 3, kind: output, shape index: {}]  }
   0x1   :  { %v14167_v0 = vld [vmem:[%s18608_s1 + $0x40] sm:$0xff]   ;;  %v14171_v4 = vld [vmem:[%s18608_s1 + $0x48] sm:$0xff]   ;;  %v14175_v8 = vld [vmem:[%s18608_s1 + $0x50] sm:$0xff]   ;;  %v2104_v23 = vunpack.c.l.s4 %v15211_v22 }
   0x2   :  { %v14168_v1 = vld [vmem:[%s18608_s1 + $0xc0] sm:$0xff]   ;;  %12758 = vmatprep.subr.bf16.mxu0 %v14167_v0  ;;  %v14172_v5 = vld [vmem:[%s18608_s1 + $0xc8] sm:$0xff]   ;;  %v14176_v9 = vld [vmem:[%s18608_s1 + $0xd0] sm:$0xff]   ;;  %v2107_v30 = vshrl.u32 %v2106_v24, 7 }
   0x3   :  { %v14169_v2 = vld [vmem:[%s18608_s1] sm:$0xff]   ;;  %12780 = vmatprep.subr.bf16.mxu1 %v14168_v1  ;;  %v14173_v6 = vld [vmem:[%s18608_s1 + $0x8] sm:$0xff]   ;;  %v14177_v10 = vld [vmem:[%s18608_s1 + $0x10] sm:$0xff]   ;;  %v2105_v29 = vunpack.c.0.s8 %v2104_v23 }
   0x4   :  { %v14170_v3 = vld [vmem:[%s18608_s1 + $0x80] sm:$0xff]   ;;  %12759 = vmatpush3.bf16.msra.mxu0 %v14169_v2  ;;  %v14174_v7 = vld [vmem:[%s18608_s1 + $0x88] sm:$0xff]   ;;  %v14178_v11 = vld [vmem:[%s18608_s1 + $0x90] sm:$0xff]  }
   0x5   :  { %12781 = vmatpush3.bf16.msra.mxu1 %v14170_v3  ;;  %12760 = vmatprep.subr.bf16.mxu0 %v14171_v4  ;;  %v14179_v12 = vld [vmem:[%s18608_s1 + $0x58] sm:$0xff]   ;;  %v14183_v16 = vld [vmem:[%s18608_s1 + $0x60] sm:$0xff]   ;;  %v14187_v20 = vld [vmem:[%s18608_s1 + $0x68] sm:$0xff]   ;;  %v15322_v35 = vsub.s32 %v2105_v29, %v2107_v30 }
   0x6   :  { %12782 = vmatprep.subr.bf16.mxu1 %v14172_v5  ;;  %v14180_v13 = vld [vmem:[%s18608_s1 + $0xd8] sm:$0xff]   ;;  %v14184_v17 = vld [vmem:[%s18608_s1 + $0xe0] sm:$0xff]   ;;  %v14188_v21 = vld [vmem:[%s18608_s1 + $0xe8] sm:$0xff]  }
   0x7   :  { %v14181_v14 = vld [vmem:[%s18608_s1 + $0x18] sm:$0xff]   ;;  %v14185_v18 = vld [vmem:[%s18608_s1 + $0x20] sm:$0xff]   ;;  %v14189_v25 = vld [vmem:[%s18608_s1 + $0x28] sm:$0xff]  }
   0x8   :  { %12761 = vmatpush3.bf16.msra.mxu0 %v14173_v6  ;;  %v14182_v15 = vld [vmem:[%s18608_s1 + $0x98] sm:$0xff]   ;;  %v14186_v19 = vld [vmem:[%s18608_s1 + $0xa0] sm:$0xff]   ;;  %v14190_v26 = vld [vmem:[%s18608_s1 + $0xa8] sm:$0xff]  }
   0x9   :  { %12783 = vmatpush3.bf16.msra.mxu1 %v14174_v7  ;;  %12762 = vmatprep.subr.bf16.mxu0 %v14175_v8  ;;  %v14191_v27 = vld [vmem:[%s18608_s1 + $0x70] sm:$0xff]   ;;  %v14195_v33 = vld [vmem:[%s18608_s1 + $0x78] sm:$0xff]   ;;  %v15_v38 = vld [vmem:[%s18609_s0] sm:$0xff] }
   0xa   :  { %12784 = vmatprep.subr.bf16.mxu1 %v14176_v9  ;;  %v14192_v28 = vld [vmem:[%s18608_s1 + $0xf0] sm:$0xff]   ;;  %v14196_v34 = vld [vmem:[%s18608_s1 + $0xf8] sm:$0xff]   ;;  %v2102_v39 = vcombine.high %v15_v38, %v15_v38  ;;  %v2109_v40 = vrot.slane %v15_v38, %v15322_v35  ;;  %v14200_v41 = vld [vmem:[%s18608_s1 + $0x140] sm:$0xff]  }
   0xb   :  { %v14193_v31 = vld [vmem:[%s18608_s1 + $0x30] sm:$0xff]   ;;  %v14197_v36 = vld [vmem:[%s18608_s1 + $0x38] sm:$0xff]   ;;  %v14201_v42 = vld [vmem:[%s18608_s1 + $0x1c0] sm:$0xff]  }
   0xc   :  { %12763 = vmatpush3.bf16.msra.mxu0 %v14177_v10  ;;  %v14194_v32 = vld [vmem:[%s18608_s1 + $0xb0] sm:$0xff]   ;;  %v14198_v37 = vld [vmem:[%s18608_s1 + $0xb8] sm:$0xff]   ;;  %v2117_v43 = vcombine.high %v2109_v40, %v2109_v40  ;;  %v2125_v44 = vrot.slane %v2109_v40, %v15322_v35  ;;  %v15342_v45 = vrot.slane %v2102_v39, %v15322_v35  ;;  %v14202_v46 = vld [vmem:[%s18608_s1 + $0x100] sm:$0xff]  }
   0xd   :  { %12785 = vmatpush3.bf16.msra.mxu1 %v14178_v11  ;;  %12764 = vmatprep.subr.bf16.mxu0 %v14179_v12  ;;  %v14203_v48 = vld [vmem:[%s18608_s1 + $0x180] sm:$0xff]   ;;  %v14204_v51 = vld [vmem:[%s18608_s1 + $0x148] sm:$0xff]   ;;  %v14208_v58 = vld [vmem:[%s18608_s1 + $0x150] sm:$0xff]  }
   0xe   :  { %12786 = vmatprep.subr.bf16.mxu1 %v14180_v13  ;;  %v2139_v47 = vrot.slane %v2117_v43, %v15322_v35  ;;  %v2118_v49 = vcombine.high %v15342_v45, %v15342_v45  ;;  %v2147_v50 = vcombine.high %v2125_v44, %v2125_v44  ;;  %v14205_v53 = vld [vmem:[%s18608_s1 + $0x1c8] sm:$0xff]   ;;  %v14209_v59 = vld [vmem:[%s18608_s1 + $0x1d0] sm:$0xff]   ;;  %v14212_v62 = vld [vmem:[%s18608_s1 + $0x158] sm:$0xff]  }
   0xf   :  { %v14206_v55 = vld [vmem:[%s18608_s1 + $0x108] sm:$0xff]   ;;  %v14210_v60 = vld [vmem:[%s18608_s1 + $0x110] sm:$0xff]   ;;  %v14213_v63 = vld [vmem:[%s18608_s1 + $0x1d8] sm:$0xff]  }
  0x10   :  { %12765 = vmatpush3.bf16.msra.mxu0 %v14181_v14  ;;  %9190 = vmatprep.mubr.bf16.mxu0 %v2139_v47  ;;  %v2149_v52 = vcombine.high %v2139_v47, %v2139_v47  ;;  %v2146_v54 = vrot.slane %v2118_v49, %v15322_v35  ;;  %v14207_v56 = vld [vmem:[%s18608_s1 + $0x188] sm:$0xff]   ;;  %v14211_v61 = vld [vmem:[%s18608_s1 + $0x190] sm:$0xff]   ;;  %v14214_v0 = vld [vmem:[%s18608_s1 + $0x118] sm:$0xff]  }
  0x11   :  { %12787 = vmatpush3.bf16.msra.mxu1 %v14182_v15  ;;  %12766 = vmatprep.subr.bf16.mxu0 %v14183_v16  ;;  %v14215_v1 = vld [vmem:[%s18608_s1 + $0x198] sm:$0xff]   ;;  %v14216_v2 = vld [vmem:[%s18608_s1 + $0x160] sm:$0xff]   ;;  %v14220_v6 = vld [vmem:[%s18608_s1 + $0x168] sm:$0xff]  }
  0x12   :  { %12788 = vmatprep.subr.bf16.mxu1 %v14184_v17  ;;  %9230 = vmatprep.mubr.bf16.mxu1 %v2149_v52  ;;  %v2150_v57 = vcombine.high %v2146_v54, %v2146_v54  ;;  %v14217_v3 = vld [vmem:[%s18608_s1 + $0x1e0] sm:$0xff]   ;;  %v14221_v7 = vld [vmem:[%s18608_s1 + $0x1e8] sm:$0xff]   ;;  %v14224_v10 = vld [vmem:[%s18608_s1 + $0x170] sm:$0xff]  }
  0x13   :  { %v14218_v4 = vld [vmem:[%s18608_s1 + $0x120] sm:$0xff]   ;;  %v14222_v8 = vld [vmem:[%s18608_s1 + $0x128] sm:$0xff]   ;;  %v14225_v11 = vld [vmem:[%s18608_s1 + $0x1f0] sm:$0xff]  }
  0x14   :  { %12767 = vmatpush3.bf16.msra.mxu0 %v14185_v18  ;;  %v14219_v5 = vld [vmem:[%s18608_s1 + $0x1a0] sm:$0xff]   ;;  %v14223_v9 = vld [vmem:[%s18608_s1 + $0x1a8] sm:$0xff]   ;;  %v14226_v12 = vld [vmem:[%s18608_s1 + $0x130] sm:$0xff]   ;;  %v2132_v18 = vrot.slane %v15342_v45, %v15322_v35 }
  0x15   :  { %12789 = vmatpush3.bf16.msra.mxu1 %v14186_v19  ;;  %12768 = vmatprep.subr.bf16.mxu0 %v14187_v20  ;;  %v14227_v13 = vld [vmem:[%s18608_s1 + $0x1b0] sm:$0xff]   ;;  %v14228_v14 = vld [vmem:[%s18608_s1 + $0x178] sm:$0xff]   ;;  %v14232_v19 = vld [vmem:[%s18608_s1 + $0x240] sm:$0xff]  }
  0x16   :  { %12790 = vmatprep.subr.bf16.mxu1 %v14188_v21  ;;  %v14229_v15 = vld [vmem:[%s18608_s1 + $0x1f8] sm:$0xff]   ;;  %v14233_v20 = vld [vmem:[%s18608_s1 + $0x2c0] sm:$0xff]   ;;  %v2148_v23 = vcombine.high %v2132_v18, %v2132_v18  ;;  %v14236_v24 = vld [vmem:[%s18608_s1 + $0x248] sm:$0xff]  }
  0x17   :  { %v14230_v16 = vld [vmem:[%s18608_s1 + $0x138] sm:$0xff]   ;;  %v14234_v21 = vld [vmem:[%s18608_s1 + $0x200] sm:$0xff]   ;;  %v14241_v29 = vld [vmem:[%s18608_s1 + $0x2d0] sm:$0xff]  }
  0x18   :  { %12769 = vmatpush3.bf16.msra.mxu0 %v14189_v25  ;;  %v14231_v17 = vld [vmem:[%s18608_s1 + $0x1b8] sm:$0xff]   ;;  %v14235_v22 = vld [vmem:[%s18608_s1 + $0x280] sm:$0xff]   ;;  %v14237_v25 = vld [vmem:[%s18608_s1 + $0x2c8] sm:$0xff]  }
  0x19   :  { %12791 = vmatpush3.bf16.msra.mxu1 %v14190_v26  ;;  %12770 = vmatprep.subr.bf16.mxu0 %v14191_v27  ;;  %v14238_v26 = vld [vmem:[%s18608_s1 + $0x208] sm:$0xff]   ;;  %v14242_v30 = vld [vmem:[%s18608_s1 + $0x210] sm:$0xff]   ;;  %v14249_v38 = vld [vmem:[%s18608_s1 + $0x2e0] sm:$0xff]  }
  0x1a   :  { %12792 = vmatprep.subr.bf16.mxu1 %v14192_v28  ;;  %v14239_v27 = vld [vmem:[%s18608_s1 + $0x288] sm:$0xff]   ;;  %v14240_v28 = vld [vmem:[%s18608_s1 + $0x250] sm:$0xff]   ;;  %v14250_v39 = vld [vmem:[%s18608_s1 + $0x220] sm:$0xff]  }
  0x1b   :  { %v14251_v40 = vld [vmem:[%s18608_s1 + $0x2a0] sm:$0xff]   ;;  %v14254_v43 = vld [vmem:[%s18608_s1 + $0x228] sm:$0xff]   ;;  %v14256_v45 = vld [vmem:[%s18608_s1 + $0x270] sm:$0xff]  }
  0x1c   :  { %12771 = vmatpush3.bf16.msra.mxu0 %v14193_v31  ;;  %v14243_v31 = vld [vmem:[%s18608_s1 + $0x290] sm:$0xff]   ;;  %v14260_v49 = vld [vmem:[%s18608_s1 + $0x278] sm:$0xff]   ;;  %v16_v52 = vld [vmem:[%s18609_s0 + $0x8] sm:$0xff] }
  0x1d   :  { %12793 = vmatpush3.bf16.msra.mxu1 %v14194_v32  ;;  %12772 = vmatprep.subr.bf16.mxu0 %v14195_v33  ;;  %v14244_v32 = vld [vmem:[%s18608_s1 + $0x258] sm:$0xff]   ;;  %v14258_v47 = vld [vmem:[%s18608_s1 + $0x230] sm:$0xff]  }
  0x1e   :  { %12794 = vmatprep.subr.bf16.mxu1 %v14196_v34  ;;  %v14245_v33 = vld [vmem:[%s18608_s1 + $0x2d8] sm:$0xff]  }
  0x1f   :  { %v14246_v34 = vld [vmem:[%s18608_s1 + $0x218] sm:$0xff]  }
  0x20   :  { %12773 = vmatpush3.bf16.msra.mxu0 %v14197_v36  ;;  %v14247_v36 = vld [vmem:[%s18608_s1 + $0x298] sm:$0xff]  }
  0x21   :  { %12795 = vmatpush3.bf16.msra.mxu1 %v14198_v37  ;;  %12802 = vmatprep.subr.bf16.mxu0 %v14200_v41  ;;  %v14248_v37 = vld [vmem:[%s18608_s1 + $0x260] sm:$0xff]   ;;  %v14252_v41 = vld [vmem:[%s18608_s1 + $0x268] sm:$0xff]  }
  0x22   :  { %12824 = vmatprep.subr.bf16.mxu1 %v14201_v42  ;;  %v14253_v42 = vld [vmem:[%s18608_s1 + $0x2e8] sm:$0xff]  }
  0x23   :  { %9191 = vmatmul.mubr.bf16.vlgmr.msra.gmra.mrb[0].mxu0 %v2125_v44  ;;  %v14255_v44 = vld [vmem:[%s18608_s1 + $0x2a8] sm:$0xff]  }
  0x24   :  { %12803 = vmatpush3.bf16.msra.mxu0 %v14202_v46  ;;  %9231 = vmatmul.mubr.bf16.vlgmr.msra.gmra.mrb[0].mxu1 %v2147_v50  ;;  %v14257_v46 = vld [vmem:[%s18608_s1 + $0x2f0] sm:$0xff]   ;;  %v14261_v50 = vld [vmem:[%s18608_s1 + $0x2f8] sm:$0xff]  }
  0x25   :  { %12804 = vmatprep.subr.bf16.mxu0 %v14204_v51  ;;  %12825 = vmatpush3.bf16.msra.mxu1 %v14203_v48  ;;  %v14259_v48 = vld [vmem:[%s18608_s1 + $0x2b0] sm:$0xff]   ;;  %v14262_v51 = vld [vmem:[%s18608_s1 + $0x238] sm:$0xff]  }
  0x26   :  { %9270 = vmatprep.mubr.bf16.mxu0 %v2146_v54  ;;  %12826 = vmatprep.subr.bf16.mxu1 %v14205_v53  ;;  %v14263_v53 = vld [vmem:[%s18608_s1 + $0x2b8] sm:$0xff]   ;;  %v2158_v54 = vrot.slane %v16_v52, %v15322_v35 }
  0x27   :  { %9310 = vmatprep.mubr.bf16.mxu1 %v2150_v57 }
  0x28   :  { %12805 = vmatpush3.bf16.msra.mxu0 %v14206_v55  ;;  %v2151_v55 = vcombine.high %v16_v52, %v16_v52  ;;  %v2166_v57 = vcombine.high %v2158_v54, %v2158_v54  ;;  %v14313_v52 = vld [vmem:[%s18608_s1 + $0x460] sm:$0xff]  }
  0x29   :  { %12806 = vmatprep.subr.bf16.mxu0 %v14208_v58  ;;  %12827 = vmatpush3.bf16.msra.mxu1 %v14207_v56  ;;  %v14264_v56 = vld [vmem:[%s18608_s1 + $0x340] sm:$0xff]   ;;  %v2174_v58 = vrot.slane %v2158_v54, %v15322_v35 }
  0x2a   :  { %12828 = vmatprep.subr.bf16.mxu1 %v14209_v59  ;;  %v14265_v59 = vld [vmem:[%s18608_s1 + $0x3c0] sm:$0xff]  }
  0x2b   :  { %v14315_v54 = vld [vmem:[%s18608_s1 + $0x420] sm:$0xff]  }
  0x2c   :  { %12807 = vmatpush3.bf16.msra.mxu0 %v14210_v60  ;;  %v15548_v60 = vrot.slane %v2151_v55, %v15322_v35  ;;  %v14316_v55 = vld [vmem:[%s18608_s1 + $0x4a0] sm:$0xff]  }
  0x2d   :  { %12808 = vmatprep.subr.bf16.mxu0 %v14212_v62  ;;  %12829 = vmatpush3.bf16.msra.mxu1 %v14211_v61  ;;  %v14266_v61 = vld [vmem:[%s18608_s1 + $0x300] sm:$0xff]   ;;  %v2188_v62 = vrot.slane %v2166_v57, %v15322_v35  ;;  %v14318_v57 = vld [vmem:[%s18608_s1 + $0x4e8] sm:$0xff]  }
  0x2e   :  { %12830 = vmatprep.subr.bf16.mxu1 %v14213_v63  ;;  %v14267_v63 = vld [vmem:[%s18608_s1 + $0x380] sm:$0xff]  }
  0x30   :  { %12809 = vmatpush3.bf16.msra.mxu0 %v14214_v0  ;;  %v2167_v0 = vcombine.high %v15548_v60, %v15548_v60 }
  0x31   :  { %12810 = vmatprep.subr.bf16.mxu0 %v14216_v2  ;;  %12831 = vmatpush3.bf16.msra.mxu1 %v14215_v1  ;;  %v2196_v1 = vcombine.high %v2174_v58, %v2174_v58  ;;  %v14268_v2 = vld [vmem:[%s18608_s1 + $0x348] sm:$0xff]  }
  0x32   :  { %12832 = vmatprep.subr.bf16.mxu1 %v14217_v3  ;;  %v2198_v3 = vcombine.high %v2188_v62, %v2188_v62 }
  0x34   :  { %12811 = vmatpush3.bf16.msra.mxu0 %v14218_v4  ;;  %v14269_v4 = vld [vmem:[%s18608_s1 + $0x3c8] sm:$0xff]  }
  0x35   :  { %12812 = vmatprep.subr.bf16.mxu0 %v14220_v6  ;;  %12833 = vmatpush3.bf16.msra.mxu1 %v14219_v5  ;;  %v2195_v5 = vrot.slane %v2167_v0, %v15322_v35  ;;  %v14270_v6 = vld [vmem:[%s18608_s1 + $0x308] sm:$0xff]   ;;  %v14325_v0 = vld [vmem:[%s18608_s1 + $0x478] sm:$0xff]  }
  0x36   :  { %12834 = vmatprep.subr.bf16.mxu1 %v14221_v7  ;;  %v14271_v7 = vld [vmem:[%s18608_s1 + $0x388] sm:$0xff]  }
  0x38   :  { %12813 = vmatpush3.bf16.msra.mxu0 %v14222_v8  ;;  %v2199_v8 = vcombine.high %v2195_v5, %v2195_v5 }
  0x39   :  { %12814 = vmatprep.subr.bf16.mxu0 %v14224_v10  ;;  %12835 = vmatpush3.bf16.msra.mxu1 %v14223_v9  ;;  %v14272_v9 = vld [vmem:[%s18608_s1 + $0x350] sm:$0xff]  }
  0x3a   :  { %12836 = vmatprep.subr.bf16.mxu1 %v14225_v11  ;;  %v14273_v10 = vld [vmem:[%s18608_s1 + $0x3d0] sm:$0xff]  }
  0x3b   :  { %v14274_v11 = vld [vmem:[%s18608_s1 + $0x310] sm:$0xff]  }
  0x3c   :  { %12815 = vmatpush3.bf16.msra.mxu0 %v14226_v12  ;;  %v14275_v12 = vld [vmem:[%s18608_s1 + $0x390] sm:$0xff]  }
  0x3d   :  { %12816 = vmatprep.subr.bf16.mxu0 %v14228_v14  ;;  %12837 = vmatpush3.bf16.msra.mxu1 %v14227_v13  ;;  %v14276_v13 = vld [vmem:[%s18608_s1 + $0x358] sm:$0xff]  }
  0x3e   :  { %12838 = vmatprep.subr.bf16.mxu1 %v14229_v15  ;;  %v14277_v14 = vld [vmem:[%s18608_s1 + $0x3d8] sm:$0xff]  }
  0x3f   :  { %v14278_v15 = vld [vmem:[%s18608_s1 + $0x318] sm:$0xff]  }
  0x40   :  { %12817 = vmatpush3.bf16.msra.mxu0 %v14230_v16  ;;  %v14279_v16 = vld [vmem:[%s18608_s1 + $0x398] sm:$0xff]  }
  0x41   :  { %12846 = vmatprep.subr.bf16.mxu0 %v14232_v19  ;;  %12839 = vmatpush3.bf16.msra.mxu1 %v14231_v17  ;;  %v14280_v17 = vld [vmem:[%s18608_s1 + $0x360] sm:$0xff]  }
  0x42   :  { %12868 = vmatprep.subr.bf16.mxu1 %v14233_v20  ;;  %v14282_v19 = vld [vmem:[%s18608_s1 + $0x320] sm:$0xff]  }
  0x43   :  { %9271 = vmatmul.mubr.bf16.vlgmr.msra.gmra.mrb[4].mxu0 %v2132_v18  ;;  %v14281_v18 = vld [vmem:[%s18608_s1 + $0x3e0] sm:$0xff]  }
  0x44   :  { %12847 = vmatpush3.bf16.msra.mxu0 %v14234_v21  ;;  %9311 = vmatmul.mubr.bf16.vlgmr.msra.gmra.mrb[4].mxu1 %v2148_v23  ;;  %v14283_v20 = vld [vmem:[%s18608_s1 + $0x3a0] sm:$0xff]   ;;  %v14284_v21 = vld [vmem:[%s18608_s1 + $0x368] sm:$0xff]  }
  0x45   :  { %12848 = vmatprep.subr.bf16.mxu0 %v14236_v24  ;;  %12869 = vmatpush3.bf16.msra.mxu1 %v14235_v22  ;;  %v14285_v22 = vld [vmem:[%s18608_s1 + $0x3e8] sm:$0xff]  }
  0x46   :  { %12870 = vmatprep.subr.bf16.mxu1 %v14237_v25  ;;  %9350 = vmatprep.mubr.bf16.mxu0 %v2188_v62  ;;  %v14286_v23 = vld [vmem:[%s18608_s1 + $0x328] sm:$0xff]   ;;  %v14288_v25 = vld [vmem:[%s18608_s1 + $0x370] sm:$0xff]  }
  0x47   :  { %9390 = vmatprep.mubr.bf16.mxu1 %v2198_v3  ;;  %v14287_v24 = vld [vmem:[%s18608_s1 + $0x3a8] sm:$0xff]   ;;  %v14323_v62 = vld [vmem:[%s18608_s1 + $0x430] sm:$0xff]  }
  0x48   :  { %12849 = vmatpush3.bf16.msra.mxu0 %v14238_v26  ;;  %v14289_v26 = vld [vmem:[%s18608_s1 + $0x3f0] sm:$0xff]  }
  0x49   :  { %12850 = vmatprep.subr.bf16.mxu0 %v14240_v28  ;;  %12871 = vmatpush3.bf16.msra.mxu1 %v14239_v27  ;;  %v14290_v27 = vld [vmem:[%s18608_s1 + $0x330] sm:$0xff]  }
  0x4a   :  { %12872 = vmatprep.subr.bf16.mxu1 %v14241_v29  ;;  %v14291_v28 = vld [vmem:[%s18608_s1 + $0x3b0] sm:$0xff]   ;;  %v14292_v29 = vld [vmem:[%s18608_s1 + $0x378] sm:$0xff]  }
  0x4b   :  { %v17_v3 = vld [vmem:[%s18609_s0 + $0x10] sm:$0xff] }
  0x4c   :  { %12851 = vmatpush3.bf16.msra.mxu0 %v14242_v30  ;;  %v14293_v30 = vld [vmem:[%s18608_s1 + $0x3f8] sm:$0xff]  }
  0x4d   :  { %12852 = vmatprep.subr.bf16.mxu0 %v14244_v32  ;;  %12873 = vmatpush3.bf16.msra.mxu1 %v14243_v31  ;;  %v14294_v31 = vld [vmem:[%s18608_s1 + $0x338] sm:$0xff]  }
  0x4e   :  { %12874 = vmatprep.subr.bf16.mxu1 %v14245_v33  ;;  %v14295_v32 = vld [vmem:[%s18608_s1 + $0x3b8] sm:$0xff]   ;;  %v2181_v33 = vrot.slane %v15548_v60, %v15322_v35  ;;  %v14321_v60 = vld [vmem:[%s18608_s1 + $0x470] sm:$0xff]  }
  0x50   :  { %12853 = vmatpush3.bf16.msra.mxu0 %v14246_v34  ;;  %v14297_v34 = vld [vmem:[%s18608_s1 + $0x440] sm:$0xff]  }
  0x51   :  { %12854 = vmatprep.subr.bf16.mxu0 %v14248_v37  ;;  %12875 = vmatpush3.bf16.msra.mxu1 %v14247_v36  ;;  %v14298_v36 = vld [vmem:[%s18608_s1 + $0x4c0] sm:$0xff]  }
  0x52   :  { %12876 = vmatprep.subr.bf16.mxu1 %v14249_v38  ;;  %v14299_v37 = vld [vmem:[%s18608_s1 + $0x400] sm:$0xff]  }
  0x53   :  { %v14300_v38 = vld [vmem:[%s18608_s1 + $0x480] sm:$0xff]  }
  0x54   :  { %12855 = vmatpush3.bf16.msra.mxu0 %v14250_v39  ;;  %v2197_v39 = vcombine.high %v2181_v33, %v2181_v33 }
  0x55   :  { %12856 = vmatprep.subr.bf16.mxu0 %v14252_v41  ;;  %12877 = vmatpush3.bf16.msra.mxu1 %v14251_v40  ;;  %v14301_v40 = vld [vmem:[%s18608_s1 + $0x448] sm:$0xff]  }
  0x56   :  { %12878 = vmatprep.subr.bf16.mxu1 %v14253_v42  ;;  %v14302_v41 = vld [vmem:[%s18608_s1 + $0x4c8] sm:$0xff]  }
  0x57   :  { %v14303_v42 = vld [vmem:[%s18608_s1 + $0x408] sm:$0xff]  }
  0x58   :  { %12857 = vmatpush3.bf16.msra.mxu0 %v14254_v43  ;;  %v14304_v43 = vld [vmem:[%s18608_s1 + $0x488] sm:$0xff]  }
  0x59   :  { %12858 = vmatprep.subr.bf16.mxu0 %v14256_v45  ;;  %12879 = vmatpush3.bf16.msra.mxu1 %v14255_v44  ;;  %v14305_v44 = vld [vmem:[%s18608_s1 + $0x450] sm:$0xff]  }
  0x5a   :  { %12880 = vmatprep.subr.bf16.mxu1 %v14257_v46  ;;  %v14306_v45 = vld [vmem:[%s18608_s1 + $0x4d0] sm:$0xff]  }
  0x5b   :  { %v14307_v46 = vld [vmem:[%s18608_s1 + $0x410] sm:$0xff]  }
  0x5c   :  { %12859 = vmatpush3.bf16.msra.mxu0 %v14258_v47  ;;  %v14308_v47 = vld [vmem:[%s18608_s1 + $0x490] sm:$0xff]  }
  0x5d   :  { %12860 = vmatprep.subr.bf16.mxu0 %v14260_v49  ;;  %12881 = vmatpush3.bf16.msra.mxu1 %v14259_v48  ;;  %v14309_v48 = vld [vmem:[%s18608_s1 + $0x458] sm:$0xff]  }
  0x5e   :  { %12882 = vmatprep.subr.bf16.mxu1 %v14261_v50  ;;  %v14310_v49 = vld [vmem:[%s18608_s1 + $0x4d8] sm:$0xff]  }
  0x5f   :  { %v14311_v50 = vld [vmem:[%s18608_s1 + $0x418] sm:$0xff]  }
  0x60   :  { %12861 = vmatpush3.bf16.msra.mxu0 %v14262_v51  ;;  %v14312_v51 = vld [vmem:[%s18608_s1 + $0x498] sm:$0xff]  }
  0x61   :  { %12890 = vmatprep.subr.bf16.mxu0 %v14264_v56  ;;  %12883 = vmatpush3.bf16.msra.mxu1 %v14263_v53  ;;  %v14314_v53 = vld [vmem:[%s18608_s1 + $0x4e0] sm:$0xff]   ;;  %v14317_v56 = vld [vmem:[%s18608_s1 + $0x468] sm:$0xff]  }
  0x62   :  { %12912 = vmatprep.subr.bf16.mxu1 %v14265_v59  ;;  %v14320_v59 = vld [vmem:[%s18608_s1 + $0x4a8] sm:$0xff]  }
  0x63   :  { %9351 = vmatmul.mubr.bf16.vlgmr.msra.gmra.mrb[8].mxu0 %v2174_v58  ;;  %v14319_v58 = vld [vmem:[%s18608_s1 + $0x428] sm:$0xff]  }
  0x64   :  { %12891 = vmatpush3.bf16.msra.mxu0 %v14266_v61  ;;  %9391 = vmatmul.mubr.bf16.vlgmr.msra.gmra.mrb[8].mxu1 %v2196_v1  ;;  %v14322_v61 = vld [vmem:[%s18608_s1 + $0x4f0] sm:$0xff]   ;;  %v14326_v1 = vld [vmem:[%s18608_s1 + $0x4f8] sm:$0xff]  }
  0x65   :  { %12892 = vmatprep.subr.bf16.mxu0 %v14268_v2  ;;  %12913 = vmatpush3.bf16.msra.mxu1 %v14267_v63  ;;  %v14324_v63 = vld [vmem:[%s18608_s1 + $0x4b0] sm:$0xff]   ;;  %v14327_v2 = vld [vmem:[%s18608_s1 + $0x438] sm:$0xff]  }
  0x66   :  { %9430 = vmatprep.mubr.bf16.mxu0 %v2195_v5  ;;  %12914 = vmatprep.subr.bf16.mxu1 %v14269_v4  ;;  %v14328_v4 = vld [vmem:[%s18608_s1 + $0x4b8] sm:$0xff]   ;;  %v2207_v5 = vrot.slane %v17_v3, %v15322_v35 }
  0x67   :  { %9470 = vmatprep.mubr.bf16.mxu1 %v2199_v8 }
  0x68   :  { %12893 = vmatpush3.bf16.msra.mxu0 %v14270_v6  ;;  %v2200_v6 = vcombine.high %v17_v3, %v17_v3  ;;  %v2215_v8 = vcombine.high %v2207_v5, %v2207_v5  ;;  %v14378_v3 = vld [vmem:[%s18608_s1 + $0x660] sm:$0xff]  }
  0x69   :  { %12894 = vmatprep.subr.bf16.mxu0 %v14272_v9  ;;  %12915 = vmatpush3.bf16.msra.mxu1 %v14271_v7  ;;  %v14329_v7 = vld [vmem:[%s18608_s1 + $0x540] sm:$0xff]   ;;  %v2223_v9 = vrot.slane %v2207_v5, %v15322_v35 }
  0x6a   :  { %12916 = vmatprep.subr.bf16.mxu1 %v14273_v10  ;;  %v14330_v10 = vld [vmem:[%s18608_s1 + $0x5c0] sm:$0xff]  }
  0x6b   :  { %v14380_v5 = vld [vmem:[%s18608_s1 + $0x620] sm:$0xff]  }
  0x6c   :  { %12895 = vmatpush3.bf16.msra.mxu0 %v14274_v11  ;;  %v15754_v11 = vrot.slane %v2200_v6, %v15322_v35  ;;  %v14381_v6 = vld [vmem:[%s18608_s1 + $0x6a0] sm:$0xff]  }
  0x6d   :  { %12896 = vmatprep.subr.bf16.mxu0 %v14276_v13  ;;  %12917 = vmatpush3.bf16.msra.mxu1 %v14275_v12  ;;  %v14331_v12 = vld [vmem:[%s18608_s1 + $0x500] sm:$0xff]   ;;  %v2237_v13 = vrot.slane %v2215_v8, %v15322_v35  ;;  %v14383_v8 = vld [vmem:[%s18608_s1 + $0x6e8] sm:$0xff]  }
  0x6e   :  { %12918 = vmatprep.subr.bf16.mxu1 %v14277_v14  ;;  %v14332_v14 = vld [vmem:[%s18608_s1 + $0x580] sm:$0xff]  }
  0x70   :  { %12897 = vmatpush3.bf16.msra.mxu0 %v14278_v15  ;;  %v2216_v15 = vcombine.high %v15754_v11, %v15754_v11 }
  0x71   :  { %12898 = vmatprep.subr.bf16.mxu0 %v14280_v17  ;;  %12919 = vmatpush3.bf16.msra.mxu1 %v14279_v16  ;;  %v2245_v16 = vcombine.high %v2223_v9, %v2223_v9  ;;  %v14333_v17 = vld [vmem:[%s18608_s1 + $0x548] sm:$0xff]  }
  0x72   :  { %12920 = vmatprep.subr.bf16.mxu1 %v14281_v18  ;;  %v2247_v18 = vcombine.high %v2237_v13, %v2237_v13 }
  0x74   :  { %12899 = vmatpush3.bf16.msra.mxu0 %v14282_v19  ;;  %v14334_v19 = vld [vmem:[%s18608_s1 + $0x5c8] sm:$0xff]  }
  0x75   :  { %12900 = vmatprep.subr.bf16.mxu0 %v14284_v21  ;;  %12921 = vmatpush3.bf16.msra.mxu1 %v14283_v20  ;;  %v2244_v20 = vrot.slane %v2216_v15, %v15322_v35  ;;  %v14335_v21 = vld [vmem:[%s18608_s1 + $0x508] sm:$0xff]   ;;  %v14390_v15 = vld [vmem:[%s18608_s1 + $0x678] sm:$0xff]  }
  0x76   :  { %12922 = vmatprep.subr.bf16.mxu1 %v14285_v22  ;;  %v14336_v22 = vld [vmem:[%s18608_s1 + $0x588] sm:$0xff]  }
  0x78   :  { %12901 = vmatpush3.bf16.msra.mxu0 %v14286_v23  ;;  %v2248_v23 = vcombine.high %v2244_v20, %v2244_v20 }
  0x79   :  { %12902 = vmatprep.subr.bf16.mxu0 %v14288_v25  ;;  %12923 = vmatpush3.bf16.msra.mxu1 %v14287_v24  ;;  %v14337_v24 = vld [vmem:[%s18608_s1 + $0x550] sm:$0xff]  }
  0x7a   :  { %12924 = vmatprep.subr.bf16.mxu1 %v14289_v26  ;;  %v14338_v25 = vld [vmem:[%s18608_s1 + $0x5d0] sm:$0xff]  }
  0x7b   :  { %v14339_v26 = vld [vmem:[%s18608_s1 + $0x510] sm:$0xff]  }
  0x7c   :  { %12903 = vmatpush3.bf16.msra.mxu0 %v14290_v27  ;;  %v14340_v27 = vld [vmem:[%s18608_s1 + $0x590] sm:$0xff]  }
  0x7d   :  { %12904 = vmatprep.subr.bf16.mxu0 %v14292_v29  ;;  %12925 = vmatpush3.bf16.msra.mxu1 %v14291_v28  ;;  %v14341_v28 = vld [vmem:[%s18608_s1 + $0x558] sm:$0xff]  }
  0x7e   :  { %12926 = vmatprep.subr.bf16.mxu1 %v14293_v30  ;;  %v14342_v29 = vld [vmem:[%s18608_s1 + $0x5d8] sm:$0xff]  }
  0x7f   :  { %v14343_v30 = vld [vmem:[%s18608_s1 + $0x518] sm:$0xff]  }
  0x80   :  { %12905 = vmatpush3.bf16.msra.mxu0 %v14294_v31  ;;  %v14344_v31 = vld [vmem:[%s18608_s1 + $0x598] sm:$0xff]  }
  0x81   :  { %12934 = vmatprep.subr.bf16.mxu0 %v14297_v34  ;;  %12927 = vmatpush3.bf16.msra.mxu1 %v14295_v32  ;;  %v14345_v32 = vld [vmem:[%s18608_s1 + $0x560] sm:$0xff]  }
  0x82   :  { %12956 = vmatprep.subr.bf16.mxu1 %v14298_v36  ;;  %v14347_v34 = vld [vmem:[%s18608_s1 + $0x520] sm:$0xff]  }
  0x83   :  { %9431 = vmatmul.mubr.bf16.vlgmr.msra.gmra.mrb[12].mxu0 %v2181_v33  ;;  %v14346_v33 = vld [vmem:[%s18608_s1 + $0x5e0] sm:$0xff]  }
  0x84   :  { %12935 = vmatpush3.bf16.msra.mxu0 %v14299_v37  ;;  %9471 = vmatmul.mubr.bf16.vlgmr.msra.gmra.mrb[12].mxu1 %v2197_v39  ;;  %v14348_v36 = vld [vmem:[%s18608_s1 + $0x5a0] sm:$0xff]   ;;  %v14349_v37 = vld [vmem:[%s18608_s1 + $0x568] sm:$0xff]  }
  0x85   :  { %12936 = vmatprep.subr.bf16.mxu0 %v14301_v40  ;;  %12957 = vmatpush3.bf16.msra.mxu1 %v14300_v38  ;;  %v14350_v38 = vld [vmem:[%s18608_s1 + $0x5e8] sm:$0xff]  }
  0x86   :  { %12958 = vmatprep.subr.bf16.mxu1 %v14302_v41  ;;  %9510 = vmatprep.mubr.bf16.mxu0 %v2237_v13  ;;  %v14351_v39 = vld [vmem:[%s18608_s1 + $0x528] sm:$0xff]   ;;  %v14353_v41 = vld [vmem:[%s18608_s1 + $0x570] sm:$0xff]  }
  0x87   :  { %9550 = vmatprep.mubr.bf16.mxu1 %v2247_v18  ;;  %v14352_v40 = vld [vmem:[%s18608_s1 + $0x5a8] sm:$0xff]   ;;  %v14388_v13 = vld [vmem:[%s18608_s1 + $0x630] sm:$0xff]   ;;  %v18_v18 = vld [vmem:[%s18609_s0 + $0x18] sm:$0xff] }
  0x88   :  { %12937 = vmatpush3.bf16.msra.mxu0 %v14303_v42  ;;  %v14354_v42 = vld [vmem:[%s18608_s1 + $0x5f0] sm:$0xff]  }
  0x89   :  { %12938 = vmatprep.subr.bf16.mxu0 %v14305_v44  ;;  %12959 = vmatpush3.bf16.msra.mxu1 %v14304_v43  ;;  %v14355_v43 = vld [vmem:[%s18608_s1 + $0x530] sm:$0xff]  }
  0x8a   :  { %12960 = vmatprep.subr.bf16.mxu1 %v14306_v45  ;;  %v14356_v44 = vld [vmem:[%s18608_s1 + $0x5b0] sm:$0xff]   ;;  %v14357_v45 = vld [vmem:[%s18608_s1 + $0x578] sm:$0xff]  }
  0x8c   :  { %12939 = vmatpush3.bf16.msra.mxu0 %v14307_v46  ;;  %v14358_v46 = vld [vmem:[%s18608_s1 + $0x5f8] sm:$0xff]  }
  0x8d   :  { %12940 = vmatprep.subr.bf16.mxu0 %v14309_v48  ;;  %12961 = vmatpush3.bf16.msra.mxu1 %v14308_v47  ;;  %v14359_v47 = vld [vmem:[%s18608_s1 + $0x538] sm:$0xff]  }
  0x8e   :  { %12962 = vmatprep.subr.bf16.mxu1 %v14310_v49  ;;  %v14360_v48 = vld [vmem:[%s18608_s1 + $0x5b8] sm:$0xff]   ;;  %v2230_v49 = vrot.slane %v15754_v11, %v15322_v35  ;;  %v14386_v11 = vld [vmem:[%s18608_s1 + $0x670] sm:$0xff]  }
  0x90   :  { %12941 = vmatpush3.bf16.msra.mxu0 %v14311_v50  ;;  %v14362_v50 = vld [vmem:[%s18608_s1 + $0x640] sm:$0xff]  }
  0x91   :  { %12942 = vmatprep.subr.bf16.mxu0 %v14313_v52  ;;  %12963 = vmatpush3.bf16.msra.mxu1 %v14312_v51  ;;  %v14363_v51 = vld [vmem:[%s18608_s1 + $0x6c0] sm:$0xff]  }
  0x92   :  { %12964 = vmatprep.subr.bf16.mxu1 %v14314_v53  ;;  %v14364_v52 = vld [vmem:[%s18608_s1 + $0x600] sm:$0xff]  }
  0x93   :  { %v14365_v53 = vld [vmem:[%s18608_s1 + $0x680] sm:$0xff]  }
  0x94   :  { %12943 = vmatpush3.bf16.msra.mxu0 %v14315_v54  ;;  %v2246_v54 = vcombine.high %v2230_v49, %v2230_v49 }
  0x95   :  { %12944 = vmatprep.subr.bf16.mxu0 %v14317_v56  ;;  %12965 = vmatpush3.bf16.msra.mxu1 %v14316_v55  ;;  %v14366_v55 = vld [vmem:[%s18608_s1 + $0x648] sm:$0xff]  }
  0x96   :  { %12966 = vmatprep.subr.bf16.mxu1 %v14318_v57  ;;  %v14367_v56 = vld [vmem:[%s18608_s1 + $0x6c8] sm:$0xff]  }
  0x97   :  { %v14368_v57 = vld [vmem:[%s18608_s1 + $0x608] sm:$0xff]  }
  0x98   :  { %12945 = vmatpush3.bf16.msra.mxu0 %v14319_v58  ;;  %v14369_v58 = vld [vmem:[%s18608_s1 + $0x688] sm:$0xff]  }
  0x99   :  { %12946 = vmatprep.subr.bf16.mxu0 %v14321_v60  ;;  %12967 = vmatpush3.bf16.msra.mxu1 %v14320_v59  ;;  %v14370_v59 = vld [vmem:[%s18608_s1 + $0x650] sm:$0xff]  }
  0x9a   :  { %12968 = vmatprep.subr.bf16.mxu1 %v14322_v61  ;;  %v14371_v60 = vld [vmem:[%s18608_s1 + $0x6d0] sm:$0xff]  }
  0x9b   :  { %v14372_v61 = vld [vmem:[%s18608_s1 + $0x610] sm:$0xff]  }
  0x9c   :  { %12947 = vmatpush3.bf16.msra.mxu0 %v14323_v62  ;;  %v14373_v62 = vld [vmem:[%s18608_s1 + $0x690] sm:$0xff]  }
  0x9d   :  { %12948 = vmatprep.subr.bf16.mxu0 %v14325_v0  ;;  %12969 = vmatpush3.bf16.msra.mxu1 %v14324_v63  ;;  %v14374_v63 = vld [vmem:[%s18608_s1 + $0x658] sm:$0xff]  }
  0x9e   :  { %12970 = vmatprep.subr.bf16.mxu1 %v14326_v1  ;;  %v14375_v0 = vld [vmem:[%s18608_s1 + $0x6d8] sm:$0xff]  }
  0x9f   :  { %v14376_v1 = vld [vmem:[%s18608_s1 + $0x618] sm:$0xff]  }
  0xa0   :  { %12949 = vmatpush3.bf16.msra.mxu0 %v14327_v2  ;;  %v14377_v2 = vld [vmem:[%s18608_s1 + $0x698] sm:$0xff]  }
  0xa1   :  { %12978 = vmatprep.subr.bf16.mxu0 %v14329_v7  ;;  %12971 = vmatpush3.bf16.msra.mxu1 %v14328_v4  ;;  %v14379_v4 = vld [vmem:[%s18608_s1 + $0x6e0] sm:$0xff]   ;;  %v14382_v7 = vld [vmem:[%s18608_s1 + $0x668] sm:$0xff]  }
  0xa2   :  { %13000 = vmatprep.subr.bf16.mxu1 %v14330_v10  ;;  %v14385_v10 = vld [vmem:[%s18608_s1 + $0x6a8] sm:$0xff]  }
  0xa3   :  { %9511 = vmatmul.mubr.bf16.vlgmr.msra.gmra.mrb[16].mxu0 %v2223_v9  ;;  %v14384_v9 = vld [vmem:[%s18608_s1 + $0x628] sm:$0xff]  }
  0xa4   :  { %12979 = vmatpush3.bf16.msra.mxu0 %v14331_v12  ;;  %9551 = vmatmul.mubr.bf16.vlgmr.msra.gmra.mrb[16].mxu1 %v2245_v16  ;;  %v14387_v12 = vld [vmem:[%s18608_s1 + $0x6f0] sm:$0xff]   ;;  %v14391_v16 = vld [vmem:[%s18608_s1 + $0x6f8] sm:$0xff]  }
  0xa5   :  { %12980 = vmatprep.subr.bf16.mxu0 %v14333_v17  ;;  %13001 = vmatpush3.bf16.msra.mxu1 %v14332_v14  ;;  %v14389_v14 = vld [vmem:[%s18608_s1 + $0x6b0] sm:$0xff]   ;;  %v14392_v17 = vld [vmem:[%s18608_s1 + $0x638] sm:$0xff]  }
  0xa6   :  { %9590 = vmatprep.mubr.bf16.mxu0 %v2244_v20  ;;  %13002 = vmatprep.subr.bf16.mxu1 %v14334_v19  ;;  %v2256_v19 = vrot.slane %v18_v18, %v15322_v35  ;;  %v14394_v20 = vld [vmem:[%s18608_s1 + $0x740] sm:$0xff]  }
  0xa7   :  { %9630 = vmatprep.mubr.bf16.mxu1 %v2248_v23 }
  0xa8   :  { %12981 = vmatpush3.bf16.msra.mxu0 %v14335_v21  ;;  %v2249_v21 = vcombine.high %v18_v18, %v18_v18  ;;  %v2264_v23 = vcombine.high %v2256_v19, %v2256_v19 }
  0xa9   :  { %12982 = vmatprep.subr.bf16.mxu0 %v14337_v24  ;;  %13003 = vmatpush3.bf16.msra.mxu1 %v14336_v22  ;;  %v14393_v22 = vld [vmem:[%s18608_s1 + $0x6b8] sm:$0xff]   ;;  %v2272_v24 = vrot.slane %v2256_v19, %v15322_v35  ;;  %v14431_v19 = vld [vmem:[%s18608_s1 + $0x848] sm:$0xff]  }
  0xaa   :  { %13004 = vmatprep.subr.bf16.mxu1 %v14338_v25  ;;  %v14395_v25 = vld [vmem:[%s18608_s1 + $0x7c0] sm:$0xff]  }
  0xac   :  { %12983 = vmatpush3.bf16.msra.mxu0 %v14339_v26  ;;  %v15960_v26 = vrot.slane %v2249_v21, %v15322_v35  ;;  %v14433_v21 = vld [vmem:[%s18608_s1 + $0x808] sm:$0xff]  }
  0xad   :  { %12984 = vmatprep.subr.bf16.mxu0 %v14341_v28  ;;  %13005 = vmatpush3.bf16.msra.mxu1 %v14340_v27  ;;  %v2286_v27 = vrot.slane %v2264_v23, %v15322_v35  ;;  %v14396_v28 = vld [vmem:[%s18608_s1 + $0x700] sm:$0xff]   ;;  %v14435_v23 = vld [vmem:[%s18608_s1 + $0x850] sm:$0xff]  }
  0xae   :  { %13006 = vmatprep.subr.bf16.mxu1 %v14342_v29  ;;  %v2265_v29 = vcombine.high %v15960_v26, %v15960_v26 }
  0xb0   :  { %12985 = vmatpush3.bf16.msra.mxu0 %v14343_v30  ;;  %v2294_v30 = vcombine.high %v2272_v24, %v2272_v24 }
  0xb1   :  { %12986 = vmatprep.subr.bf16.mxu0 %v14345_v32  ;;  %13007 = vmatpush3.bf16.msra.mxu1 %v14344_v31  ;;  %v14398_v31 = vld [vmem:[%s18608_s1 + $0x748] sm:$0xff]   ;;  %v2296_v32 = vcombine.high %v2286_v27, %v2286_v27 }
  0xb2   :  { %13008 = vmatprep.subr.bf16.mxu1 %v14346_v33  ;;  %v14397_v33 = vld [vmem:[%s18608_s1 + $0x780] sm:$0xff]  }
  0xb4   :  { %12987 = vmatpush3.bf16.msra.mxu0 %v14347_v34  ;;  %v2293_v34 = vrot.slane %v2265_v29, %v15322_v35  ;;  %v14441_v29 = vld [vmem:[%s18608_s1 + $0x818] sm:$0xff]  }
  0xb5   :  { %12988 = vmatprep.subr.bf16.mxu0 %v14349_v37  ;;  %13009 = vmatpush3.bf16.msra.mxu1 %v14348_v36  ;;  %v14399_v36 = vld [vmem:[%s18608_s1 + $0x7c8] sm:$0xff]  }
  0xb6   :  { %13010 = vmatprep.subr.bf16.mxu1 %v14350_v38  ;;  %v14400_v37 = vld [vmem:[%s18608_s1 + $0x708] sm:$0xff]   ;;  %v2297_v38 = vcombine.high %v2293_v34, %v2293_v34 }
  0xb8   :  { %12989 = vmatpush3.bf16.msra.mxu0 %v14351_v39  ;;  %v14402_v39 = vld [vmem:[%s18608_s1 + $0x750] sm:$0xff]  }
  0xb9   :  { %12990 = vmatprep.subr.bf16.mxu0 %v14353_v41  ;;  %13011 = vmatpush3.bf16.msra.mxu1 %v14352_v40  ;;  %v14401_v40 = vld [vmem:[%s18608_s1 + $0x788] sm:$0xff]   ;;  %v14403_v41 = vld [vmem:[%s18608_s1 + $0x7d0] sm:$0xff]  }
  0xba   :  { %13012 = vmatprep.subr.bf16.mxu1 %v14354_v42  ;;  %v14404_v42 = vld [vmem:[%s18608_s1 + $0x710] sm:$0xff]  }
  0xbc   :  { %12991 = vmatpush3.bf16.msra.mxu0 %v14355_v43  ;;  %v14406_v43 = vld [vmem:[%s18608_s1 + $0x758] sm:$0xff]  }
  0xbd   :  { %12992 = vmatprep.subr.bf16.mxu0 %v14357_v45  ;;  %13013 = vmatpush3.bf16.msra.mxu1 %v14356_v44  ;;  %v14405_v44 = vld [vmem:[%s18608_s1 + $0x790] sm:$0xff]   ;;  %v14407_v45 = vld [vmem:[%s18608_s1 + $0x7d8] sm:$0xff]  }
  0xbe   :  { %13014 = vmatprep.subr.bf16.mxu1 %v14358_v46  ;;  %v14408_v46 = vld [vmem:[%s18608_s1 + $0x718] sm:$0xff]  }
  0xc0   :  { %12993 = vmatpush3.bf16.msra.mxu0 %v14359_v47  ;;  %v14410_v47 = vld [vmem:[%s18608_s1 + $0x760] sm:$0xff]  }
  0xc1   :  { %13022 = vmatprep.subr.bf16.mxu0 %v14362_v50  ;;  %13015 = vmatpush3.bf16.msra.mxu1 %v14360_v48  ;;  %v14409_v48 = vld [vmem:[%s18608_s1 + $0x798] sm:$0xff]   ;;  %v14412_v50 = vld [vmem:[%s18608_s1 + $0x720] sm:$0xff]  }
  0xc2   :  { %13044 = vmatprep.subr.bf16.mxu1 %v14363_v51  ;;  %v14414_v51 = vld [vmem:[%s18608_s1 + $0x768] sm:$0xff]  }
  0xc3   :  { %9591 = vmatmul.mubr.bf16.vlgmr.msra.gmra.mrb[20].mxu0 %v2230_v49  ;;  %v14411_v49 = vld [vmem:[%s18608_s1 + $0x7e0] sm:$0xff]  }
  0xc4   :  { %13023 = vmatpush3.bf16.msra.mxu0 %v14364_v52  ;;  %9631 = vmatmul.mubr.bf16.vlgmr.msra.gmra.mrb[20].mxu1 %v2246_v54  ;;  %v14413_v52 = vld [vmem:[%s18608_s1 + $0x7a0] sm:$0xff]  }
  0xc5   :  { %13024 = vmatprep.subr.bf16.mxu0 %v14366_v55  ;;  %13045 = vmatpush3.bf16.msra.mxu1 %v14365_v53  ;;  %v14415_v53 = vld [vmem:[%s18608_s1 + $0x7e8] sm:$0xff]   ;;  %v11733_v54 = vld [vmem:[%s18610_s2] ss:$0 sm:$0xff] }
  0xc6   :  { %13046 = vmatprep.subr.bf16.mxu1 %v14367_v56  ;;  %9670 = vmatprep.mubr.bf16.mxu0 %v2286_v27  ;;  %v14416_v55 = vld [vmem:[%s18608_s1 + $0x728] sm:$0xff]   ;;  %v14439_v27 = vld [vmem:[%s18608_s1 + $0x858] sm:$0xff]  }
  0xc7   :  { %9710 = vmatprep.mubr.bf16.mxu1 %v2296_v32  ;;  %v14444_v32 = vld [vmem:[%s18608_s1 + $0x8e0] sm:$0xff]  }
  0xc8   :  { %13025 = vmatpush3.bf16.msra.mxu0 %v14368_v57  ;;  %v14418_v57 = vld [vmem:[%s18608_s1 + $0x770] sm:$0xff]  }
  0xc9   :  { %13026 = vmatprep.subr.bf16.mxu0 %v14370_v59  ;;  %13047 = vmatpush3.bf16.msra.mxu1 %v14369_v58  ;;  %v14417_v59 = vld [vmem:[%s18608_s1 + $0x7a8] sm:$0xff]  }
  0xca   :  { %13048 = vmatprep.subr.bf16.mxu1 %v14371_v60 }
  0xcc   :  { %13027 = vmatpush3.bf16.msra.mxu0 %v14372_v61 }
  0xcd   :  { %13028 = vmatprep.subr.bf16.mxu0 %v14374_v63  ;;  %13049 = vmatpush3.bf16.msra.mxu1 %v14373_v62  ;;  %v14419_v63 = vld [vmem:[%s18608_s1 + $0x7f0] sm:$0xff]  }
  0xce   :  { %13050 = vmatprep.subr.bf16.mxu1 %v14375_v0  ;;  %v14420_v0 = vld [vmem:[%s18608_s1 + $0x730] sm:$0xff]  }
  0xd0   :  { %13029 = vmatpush3.bf16.msra.mxu0 %v14376_v1 }
  0xd1   :  { %13030 = vmatprep.subr.bf16.mxu0 %v14378_v3  ;;  %13051 = vmatpush3.bf16.msra.mxu1 %v14377_v2  ;;  %v14421_v3 = vld [vmem:[%s18608_s1 + $0x7b0] sm:$0xff]  }
  0xd2   :  { %13052 = vmatprep.subr.bf16.mxu1 %v14379_v4 }
  0xd4   :  { %13031 = vmatpush3.bf16.msra.mxu0 %v14380_v5 }
  0xd5   :  { %13032 = vmatprep.subr.bf16.mxu0 %v14382_v7  ;;  %13053 = vmatpush3.bf16.msra.mxu1 %v14381_v6  ;;  %v14422_v7 = vld [vmem:[%s18608_s1 + $0x778] sm:$0xff]  }
  0xd6   :  { %13054 = vmatprep.subr.bf16.mxu1 %v14383_v8 }
  0xd8   :  { %13033 = vmatpush3.bf16.msra.mxu0 %v14384_v9  ;;  %v14423_v9 = vld [vmem:[%s18608_s1 + $0x7f8] sm:$0xff]  }
  0xd9   :  { %13034 = vmatprep.subr.bf16.mxu0 %v14386_v11  ;;  %13055 = vmatpush3.bf16.msra.mxu1 %v14385_v10  ;;  %v14424_v11 = vld [vmem:[%s18608_s1 + $0x738] sm:$0xff]  }
  0xda   :  { %13056 = vmatprep.subr.bf16.mxu1 %v14387_v12  ;;  %v14425_v12 = vld [vmem:[%s18608_s1 + $0x7b8] sm:$0xff]  }
  0xdc   :  { %13035 = vmatpush3.bf16.msra.mxu0 %v14388_v13  ;;  %v2279_v13 = vrot.slane %v15960_v26, %v15322_v35  ;;  %v14438_v26 = vld [vmem:[%s18608_s1 + $0x890] sm:$0xff]  }
  0xdd   :  { %13036 = vmatprep.subr.bf16.mxu0 %v14390_v15  ;;  %13057 = vmatpush3.bf16.msra.mxu1 %v14389_v14  ;;  %v14427_v14 = vld [vmem:[%s18608_s1 + $0x840] sm:$0xff]  }
  0xde   :  { %13058 = vmatprep.subr.bf16.mxu1 %v14391_v16  ;;  %v14428_v15 = vld [vmem:[%s18608_s1 + $0x8c0] sm:$0xff]   ;;  %v2295_v18 = vcombine.high %v2279_v13, %v2279_v13 }
  0xdf   :  { %v14429_v16 = vld [vmem:[%s18608_s1 + $0x800] sm:$0xff]  }
  0xe0   :  { %13037 = vmatpush3.bf16.msra.mxu0 %v14392_v17  ;;  %v14430_v17 = vld [vmem:[%s18608_s1 + $0x880] sm:$0xff]  }
  0xe1   :  { %13066 = vmatprep.subr.bf16.mxu0 %v14394_v20  ;;  %13059 = vmatpush3.bf16.msra.mxu1 %v14393_v22  ;;  %v14432_v20 = vld [vmem:[%s18608_s1 + $0x8c8] sm:$0xff]  }
  0xe2   :  { %13088 = vmatprep.subr.bf16.mxu1 %v14395_v25  ;;  %v14434_v22 = vld [vmem:[%s18608_s1 + $0x888] sm:$0xff]   ;;  %v14437_v25 = vld [vmem:[%s18608_s1 + $0x810] sm:$0xff]  }
  0xe3   :  { %9671 = vmatmul.mubr.bf16.vlgmr.msra.gmra.mrb[24].mxu0 %v2272_v24  ;;  %v14436_v24 = vld [vmem:[%s18608_s1 + $0x8d0] sm:$0xff]  }
  0xe4   :  { %13067 = vmatpush3.bf16.msra.mxu0 %v14396_v28  ;;  %9711 = vmatmul.mubr.bf16.vlgmr.msra.gmra.mrb[24].mxu1 %v2294_v30  ;;  %v14440_v28 = vld [vmem:[%s18608_s1 + $0x8d8] sm:$0xff]  }
  0xe5   :  { %13068 = vmatprep.subr.bf16.mxu0 %v14398_v31  ;;  %13089 = vmatpush3.bf16.msra.mxu1 %v14397_v33  ;;  %v14442_v30 = vld [vmem:[%s18608_s1 + $0x898] sm:$0xff]   ;;  %v14443_v31 = vld [vmem:[%s18608_s1 + $0x860] sm:$0xff]  }
  0xe6   :  { %9750 = vmatprep.mubr.bf16.mxu0 %v2293_v34  ;;  %13090 = vmatprep.subr.bf16.mxu1 %v14399_v36  ;;  %v14445_v33 = vld [vmem:[%s18608_s1 + $0x820] sm:$0xff]   ;;  %v14447_v36 = vld [vmem:[%s18608_s1 + $0x868] sm:$0xff]  }
  0xe7   :  { %9790 = vmatprep.mubr.bf16.mxu1 %v2297_v38  ;;  %v14446_v34 = vld [vmem:[%s18608_s1 + $0x8a0] sm:$0xff]   ;;  %v14449_v38 = vld [vmem:[%s18608_s1 + $0x828] sm:$0xff]  }
  0xe8   :  { %13069 = vmatpush3.bf16.msra.mxu0 %v14400_v37  ;;  %v14448_v37 = vld [vmem:[%s18608_s1 + $0x8e8] sm:$0xff]  }
  0xe9   :  { %13070 = vmatprep.subr.bf16.mxu0 %v14402_v39  ;;  %13091 = vmatpush3.bf16.msra.mxu1 %v14401_v40  ;;  %v14450_v39 = vld [vmem:[%s18608_s1 + $0x8a8] sm:$0xff]  }
  0xea   :  { %13092 = vmatprep.subr.bf16.mxu1 %v14403_v41  ;;  %v14451_v41 = vld [vmem:[%s18608_s1 + $0x870] sm:$0xff]  }
  0xec   :  { %13071 = vmatpush3.bf16.msra.mxu0 %v14404_v42 }
  0xed   :  { %13072 = vmatprep.subr.bf16.mxu0 %v14406_v43  ;;  %13093 = vmatpush3.bf16.msra.mxu1 %v14405_v44  ;;  %v14452_v43 = vld [vmem:[%s18608_s1 + $0x8f0] sm:$0xff]  }
  0xee   :  { %13094 = vmatprep.subr.bf16.mxu1 %v14407_v45 }
  0xf0   :  { %13073 = vmatpush3.bf16.msra.mxu0 %v14408_v46 }
  0xf1   :  { %13074 = vmatprep.subr.bf16.mxu0 %v14410_v47  ;;  %13095 = vmatpush3.bf16.msra.mxu1 %v14409_v48 }
  0xf2   :  { %13096 = vmatprep.subr.bf16.mxu1 %v14411_v49  ;;  %v14453_v49 = vld [vmem:[%s18608_s1 + $0x830] sm:$0xff]  }
  0xf4   :  { %13075 = vmatpush3.bf16.msra.mxu0 %v14412_v50  ;;  %v14454_v50 = vld [vmem:[%s18608_s1 + $0x8b0] sm:$0xff]  }
  0xf5   :  { %13076 = vmatprep.subr.bf16.mxu0 %v14414_v51  ;;  %13097 = vmatpush3.bf16.msra.mxu1 %v14413_v52 }
  0xf6   :  { %v12774_v56 = vpop.f32.mrb[0].mxu0  ;;  %13098 = vmatprep.subr.bf16.mxu1 %v14415_v53 }
  0xf7   :  { %v12775_v58 = vpop.f32.mrb[1].mxu0  ;;  %v12796_v60 = vpop.f32.mrb[0].mxu1 }
  0xf8   :  { %v12776_v61 = vadd.f32 %v12775_v58, %v12774_v56  ;;  %v12777_v62 = vpop.f32.mrb[2].mxu0  ;;  %v12797_v1 = vpop.f32.mrb[1].mxu1  ;;  %13077 = vmatpush3.bf16.msra.mxu0 %v14416_v55  ;;  %v14456_v56 = vld [vmem:[%s18608_s1 + $0x8f8] sm:$0xff]  }
  0xf9   :  { %v12778_v2 = vpop.f32.mrb[3].mxu0  ;;  %v12798_v5 = vadd.f32 %v12797_v1, %v12796_v60  ;;  %v12799_v6 = vpop.f32.mrb[2].mxu1  ;;  %13078 = vmatprep.subr.bf16.mxu0 %v14418_v57  ;;  %13099 = vmatpush3.bf16.msra.mxu1 %v14417_v59  ;;  %v14457_v58 = vld [vmem:[%s18608_s1 + $0x838] sm:$0xff]   ;;  %v19_v59 = vld [vmem:[%s18609_s0 + $0x20] sm:$0xff] }
  0xfa   :  { %v9193_v4 = vadd.f32 %v12776_v61, %v11733_v54  ;;  %v12800_v8 = vpop.f32.mrb[3].mxu1  ;;  %13100 = vmatprep.subr.bf16.mxu1 %v14419_v63  ;;  %v14455_v54 = vld [vmem:[%s18608_s1 + $0x878] sm:$0xff]   ;;  %v2305_v60 = vrot.slane %v19_v59, %v15322_v35  ;;  %v14459_v61 = vld [vmem:[%s18608_s1 + $0x940] sm:$0xff]   ;;  %v2298_v62 = vcombine.high %v19_v59, %v19_v59  ;;  %v14496_v59 = vld [vmem:[%s18608_s1 + $0xa48] sm:$0xff]  }
  0xfb   :  { %v14458_v63 = vld [vmem:[%s18608_s1 + $0x8b8] sm:$0xff]   ;;  %v14460_v2 = vld [vmem:[%s18608_s1 + $0x9c0] sm:$0xff]  }
  0xfc   :  { %v16053_v10 = vadd.f32 %v12798_v5, %v9193_v4  ;;  %13079 = vmatpush3.bf16.msra.mxu0 %v14420_v0  ;;  %v2313_v0 = vcombine.high %v2305_v60, %v2305_v60  ;;  %v2321_v1 = vrot.slane %v2305_v60, %v15322_v35  ;;  %v14461_v4 = vld [vmem:[%s18608_s1 + $0x900] sm:$0xff]   ;;  %v14497_v60 = vld [vmem:[%s18608_s1 + $0xac8] sm:$0xff]  }
  0xfd   :  { %13080 = vmatprep.subr.bf16.mxu0 %v14422_v7  ;;  %13101 = vmatpush3.bf16.msra.mxu1 %v14421_v3  ;;  %v16174_v3 = vrot.slane %v2298_v62, %v15322_v35  ;;  %v14462_v6 = vld [vmem:[%s18608_s1 + $0x980] sm:$0xff]   ;;  %v14499_v62 = vld [vmem:[%s18608_s1 + $0xa88] sm:$0xff]  }
  0xfe   :  { %13102 = vmatprep.subr.bf16.mxu1 %v14423_v9  ;;  %v2335_v5 = vrot.slane %v2313_v0, %v15322_v35  ;;  %v2343_v8 = vcombine.high %v2321_v1, %v2321_v1  ;;  %v14463_v9 = vld [vmem:[%s18608_s1 + $0x948] sm:$0xff]   ;;  %v14501_v0 = vld [vmem:[%s18608_s1 + $0xad0] sm:$0xff]  }
  0xff   :  { %v2314_v7 = vcombine.high %v16174_v3, %v16174_v3 }
 0x100   :  { %13081 = vmatpush3.bf16.msra.mxu0 %v14424_v11  ;;  %v14464_v11 = vld [vmem:[%s18608_s1 + $0x9c8] sm:$0xff]  }
 0x101   :  { %13110 = vmatprep.subr.bf16.mxu0 %v14427_v14  ;;  %13103 = vmatpush3.bf16.msra.mxu1 %v14425_v12  ;;  %v2342_v12 = vrot.slane %v2314_v7, %v15322_v35  ;;  %v14466_v14 = vld [vmem:[%s18608_s1 + $0x988] sm:$0xff]   ;;  %v14508_v7 = vld [vmem:[%s18608_s1 + $0xa60] sm:$0xff]  }
 0x102   :  { %13132 = vmatprep.subr.bf16.mxu1 %v14428_v15 }
 0x103   :  { %9751 = vmatmul.mubr.bf16.vlgmr.msra.gmra.mrb[28].mxu0 %v2279_v13  ;;  %v14465_v13 = vld [vmem:[%s18608_s1 + $0x908] sm:$0xff]   ;;  %v2346_v15 = vcombine.high %v2342_v12, %v2342_v12 }
 0x104   :  { %13111 = vmatpush3.bf16.msra.mxu0 %v14429_v16  ;;  %9791 = vmatmul.mubr.bf16.vlgmr.msra.gmra.mrb[28].mxu1 %v2295_v18  ;;  %v14467_v16 = vld [vmem:[%s18608_s1 + $0x950] sm:$0xff]  }
 0x105   :  { %13112 = vmatprep.subr.bf16.mxu0 %v14431_v19  ;;  %13133 = vmatpush3.bf16.msra.mxu1 %v14430_v17  ;;  %v14468_v17 = vld [vmem:[%s18608_s1 + $0x9d0] sm:$0xff]  }
 0x106   :  { %13134 = vmatprep.subr.bf16.mxu1 %v14432_v20  ;;  %9830 = vmatprep.mubr.bf16.mxu0 %v2335_v5  ;;  %v14469_v18 = vld [vmem:[%s18608_s1 + $0x910] sm:$0xff]   ;;  %v14471_v20 = vld [vmem:[%s18608_s1 + $0x958] sm:$0xff]  }
 0x107   :  { %v14470_v19 = vld [vmem:[%s18608_s1 + $0x990] sm:$0xff]  }
 0x108   :  { %13113 = vmatpush3.bf16.msra.mxu0 %v14433_v21  ;;  %v14472_v21 = vld [vmem:[%s18608_s1 + $0x9d8] sm:$0xff]  }
 0x109   :  { %13114 = vmatprep.subr.bf16.mxu0 %v14435_v23  ;;  %13135 = vmatpush3.bf16.msra.mxu1 %v14434_v22  ;;  %v14473_v22 = vld [vmem:[%s18608_s1 + $0x918] sm:$0xff]  }
 0x10a   :  { %13136 = vmatprep.subr.bf16.mxu1 %v14436_v24  ;;  %v14474_v23 = vld [vmem:[%s18608_s1 + $0x998] sm:$0xff]   ;;  %v14475_v24 = vld [vmem:[%s18608_s1 + $0x960] sm:$0xff]  }
 0x10c   :  { %13115 = vmatpush3.bf16.msra.mxu0 %v14437_v25  ;;  %v14476_v25 = vld [vmem:[%s18608_s1 + $0x9e0] sm:$0xff]  }
 0x10d   :  { %13116 = vmatprep.subr.bf16.mxu0 %v14439_v27  ;;  %13137 = vmatpush3.bf16.msra.mxu1 %v14438_v26  ;;  %v14477_v26 = vld [vmem:[%s18608_s1 + $0x920] sm:$0xff]  }
 0x10e   :  { %13138 = vmatprep.subr.bf16.mxu1 %v14440_v28  ;;  %v14478_v27 = vld [vmem:[%s18608_s1 + $0x9a0] sm:$0xff]   ;;  %v14479_v28 = vld [vmem:[%s18608_s1 + $0x968] sm:$0xff]  }
 0x110   :  { %13117 = vmatpush3.bf16.msra.mxu0 %v14441_v29  ;;  %v14480_v29 = vld [vmem:[%s18608_s1 + $0x9e8] sm:$0xff]  }
 0x111   :  { %13118 = vmatprep.subr.bf16.mxu0 %v14443_v31  ;;  %13139 = vmatpush3.bf16.msra.mxu1 %v14442_v30  ;;  %v14481_v30 = vld [vmem:[%s18608_s1 + $0x928] sm:$0xff]  }
 0x112   :  { %13140 = vmatprep.subr.bf16.mxu1 %v14444_v32  ;;  %v14482_v32 = vld [vmem:[%s18608_s1 + $0x9a8] sm:$0xff]  }
 0x114   :  { %13119 = vmatpush3.bf16.msra.mxu0 %v14445_v33 }
 0x115   :  { %13120 = vmatprep.subr.bf16.mxu0 %v14447_v36  ;;  %13141 = vmatpush3.bf16.msra.mxu1 %v14446_v34  ;;  %v14483_v34 = vld [vmem:[%s18608_s1 + $0x970] sm:$0xff]  }
 0x116   :  { %v12818_v40 = vpop.f32.mrb[4].mxu0  ;;  %13142 = vmatprep.subr.bf16.mxu1 %v14448_v37 }
 0x117   :  { %v12819_v42 = vpop.f32.mrb[5].mxu0  ;;  %v12840_v44 = vpop.f32.mrb[4].mxu1 }
 0x118   :  { %v12820_v45 = vadd.f32 %v12819_v42, %v12818_v40  ;;  %v12821_v46 = vpop.f32.mrb[6].mxu0  ;;  %v12841_v47 = vpop.f32.mrb[5].mxu1  ;;  %13121 = vmatpush3.bf16.msra.mxu0 %v14449_v38  ;;  %v14485_v40 = vld [vmem:[%s18608_s1 + $0x930] sm:$0xff]  }
 0x119   :  { %v12822_v48 = vpop.f32.mrb[7].mxu0  ;;  %v12842_v52 = vadd.f32 %v12841_v47, %v12840_v44  ;;  %v12843_v53 = vpop.f32.mrb[6].mxu1  ;;  %13122 = vmatprep.subr.bf16.mxu0 %v14451_v41  ;;  %13143 = vmatpush3.bf16.msra.mxu1 %v14450_v39  ;;  %v14484_v39 = vld [vmem:[%s18608_s1 + $0x9f0] sm:$0xff]  }
 0x11a   :  { %v9273_v51 = vadd.f32 %v12820_v45, %v16053_v10  ;;  %v12844_v55 = vpop.f32.mrb[7].mxu1  ;;  %13144 = vmatprep.subr.bf16.mxu1 %v14452_v43  ;;  %v2345_v10 = vcombine.high %v2335_v5, %v2335_v5  ;;  %v14486_v46 = vld [vmem:[%s18608_s1 + $0x9b0] sm:$0xff]   ;;  %v14487_v48 = vld [vmem:[%s18608_s1 + $0x978] sm:$0xff]   ;;  %v2328_v53 = vrot.slane %v16174_v3, %v15322_v35 }
 0x11b   :  { %v14493_v55 = vld [vmem:[%s18608_s1 + $0xac0] sm:$0xff]   ;;  %v14504_v3 = vld [vmem:[%s18608_s1 + $0xa58] sm:$0xff]  }
 0x11c   :  { %v16154_v57 = vadd.f32 %v12842_v52, %v9273_v51  ;;  %13123 = vmatpush3.bf16.msra.mxu0 %v14453_v49  ;;  %9870 = vmatprep.mubr.bf16.mxu1 %v2345_v10  ;;  %v14489_v51 = vld [vmem:[%s18608_s1 + $0x938] sm:$0xff]   ;;  %v14511_v10 = vld [vmem:[%s18608_s1 + $0xaa0] sm:$0xff]  }
 0x11d   :  { %13124 = vmatprep.subr.bf16.mxu0 %v14455_v54  ;;  %13145 = vmatpush3.bf16.msra.mxu1 %v14454_v50  ;;  %v14488_v50 = vld [vmem:[%s18608_s1 + $0x9f8] sm:$0xff]   ;;  %v14492_v54 = vld [vmem:[%s18608_s1 + $0xa40] sm:$0xff]  }
 0x11e   :  { %13146 = vmatprep.subr.bf16.mxu1 %v14456_v56  ;;  %v14490_v52 = vld [vmem:[%s18608_s1 + $0x9b8] sm:$0xff]   ;;  %v14494_v56 = vld [vmem:[%s18608_s1 + $0xa00] sm:$0xff]  }
 0x11f   :  { %v14506_v5 = vld [vmem:[%s18608_s1 + $0xa18] sm:$0xff]  }
 0x120   :  { %13125 = vmatpush3.bf16.msra.mxu0 %v14457_v58  ;;  %v2344_v58 = vcombine.high %v2328_v53, %v2328_v53 }
 0x121   :  { %13154 = vmatprep.subr.bf16.mxu0 %v14459_v61  ;;  %13147 = vmatpush3.bf16.msra.mxu1 %v14458_v63  ;;  %v14498_v61 = vld [vmem:[%s18608_s1 + $0xa08] sm:$0xff]   ;;  %v14500_v63 = vld [vmem:[%s18608_s1 + $0xa50] sm:$0xff]  }
 0x122   :  { %13176 = vmatprep.subr.bf16.mxu1 %v14460_v2  ;;  %v14503_v2 = vld [vmem:[%s18608_s1 + $0xa90] sm:$0xff]  }
 0x123   :  { %9831 = vmatmul.mubr.bf16.vlgmr.msra.gmra.mrb[32].mxu0 %v2321_v1  ;;  %v14502_v1 = vld [vmem:[%s18608_s1 + $0xa10] sm:$0xff]  }
 0x124   :  { %13155 = vmatpush3.bf16.msra.mxu0 %v14461_v4  ;;  %9871 = vmatmul.mubr.bf16.vlgmr.msra.gmra.mrb[32].mxu1 %v2343_v8  ;;  %v14505_v4 = vld [vmem:[%s18608_s1 + $0xad8] sm:$0xff]   ;;  %v14509_v8 = vld [vmem:[%s18608_s1 + $0xae0] sm:$0xff]  }
 0x125   :  { %13156 = vmatprep.subr.bf16.mxu0 %v14463_v9  ;;  %13177 = vmatpush3.bf16.msra.mxu1 %v14462_v6  ;;  %v14507_v6 = vld [vmem:[%s18608_s1 + $0xa98] sm:$0xff]   ;;  %v14510_v9 = vld [vmem:[%s18608_s1 + $0xa20] sm:$0xff]  }
 0x126   :  { %9910 = vmatprep.mubr.bf16.mxu0 %v2342_v12  ;;  %13178 = vmatprep.subr.bf16.mxu1 %v14464_v11  ;;  %v14512_v11 = vld [vmem:[%s18608_s1 + $0xa68] sm:$0xff]  }
 0x127   :  { %9950 = vmatprep.mubr.bf16.mxu1 %v2346_v15  ;;  %v14513_v12 = vld [vmem:[%s18608_s1 + $0xae8] sm:$0xff]  }
 0x128   :  { %13157 = vmatpush3.bf16.msra.mxu0 %v14465_v13  ;;  %v14514_v13 = vld [vmem:[%s18608_s1 + $0xa28] sm:$0xff]  }
 0x129   :  { %13158 = vmatprep.subr.bf16.mxu0 %v14467_v16  ;;  %13179 = vmatpush3.bf16.msra.mxu1 %v14466_v14  ;;  %v14515_v15 = vld [vmem:[%s18608_s1 + $0xaa8] sm:$0xff]  }
 0x12a   :  { %13180 = vmatprep.subr.bf16.mxu1 %v14468_v17  ;;  %v14516_v17 = vld [vmem:[%s18608_s1 + $0xa70] sm:$0xff]  }
 0x12c   :  { %13159 = vmatpush3.bf16.msra.mxu0 %v14469_v18 }
 0x12d   :  { %13160 = vmatprep.subr.bf16.mxu0 %v14471_v20  ;;  %13181 = vmatpush3.bf16.msra.mxu1 %v14470_v19 }
 0x12e   :  { %13182 = vmatprep.subr.bf16.mxu1 %v14472_v21 }
 0x130   :  { %13161 = vmatpush3.bf16.msra.mxu0 %v14473_v22 }
 0x131   :  { %13162 = vmatprep.subr.bf16.mxu0 %v14475_v24  ;;  %13183 = vmatpush3.bf16.msra.mxu1 %v14474_v23  ;;  %v14517_v23 = vld [vmem:[%s18608_s1 + $0xaf0] sm:$0xff]  }
 0x132   :  { %13184 = vmatprep.subr.bf16.mxu1 %v14476_v25  ;;  %v14518_v24 = vld [vmem:[%s18608_s1 + $0xa30] sm:$0xff]  }
 0x134   :  { %13163 = vmatpush3.bf16.msra.mxu0 %v14477_v26 }
 0x135   :  { %13164 = vmatprep.subr.bf16.mxu0 %v14479_v28  ;;  %13185 = vmatpush3.bf16.msra.mxu1 %v14478_v27  ;;  %v14519_v28 = vld [vmem:[%s18608_s1 + $0xab0] sm:$0xff]  }
 0x136   :  { %v12862_v31 = vpop.f32.mrb[8].mxu0  ;;  %13186 = vmatprep.subr.bf16.mxu1 %v14480_v29 }
 0x137   :  { %v12863_v33 = vpop.f32.mrb[9].mxu0  ;;  %v12884_v36 = vpop.f32.mrb[8].mxu1 }
 0x138   :  { %v12864_v37 = vadd.f32 %v12863_v33, %v12862_v31  ;;  %v12865_v38 = vpop.f32.mrb[10].mxu0  ;;  %v12885_v41 = vpop.f32.mrb[9].mxu1  ;;  %13165 = vmatpush3.bf16.msra.mxu0 %v14481_v30  ;;  %v14520_v30 = vld [vmem:[%s18608_s1 + $0xa78] sm:$0xff]  }
 0x139   :  { %v12866_v42 = vpop.f32.mrb[11].mxu0  ;;  %v12886_v44 = vadd.f32 %v12885_v41, %v12884_v36  ;;  %v12887_v45 = vpop.f32.mrb[10].mxu1  ;;  %13166 = vmatprep.subr.bf16.mxu0 %v14483_v34  ;;  %13187 = vmatpush3.bf16.msra.mxu1 %v14482_v32  ;;  %v14521_v32 = vld [vmem:[%s18608_s1 + $0xaf8] sm:$0xff]   ;;  %v20_v34 = vld [vmem:[%s18609_s0 + $0x28] sm:$0xff] }
 0x13a   :  { %v9353_v43 = vadd.f32 %v12864_v37, %v16154_v57  ;;  %v12888_v47 = vpop.f32.mrb[11].mxu1  ;;  %13188 = vmatprep.subr.bf16.mxu1 %v14484_v39  ;;  %v14495_v57 = vld [vmem:[%s18608_s1 + $0xa80] sm:$0xff]   ;;  %v14522_v33 = vld [vmem:[%s18608_s1 + $0xa38] sm:$0xff]   ;;  %v2354_v36 = vrot.slane %v20_v34, %v15322_v35  ;;  %v2347_v38 = vcombine.high %v20_v34, %v20_v34  ;;  %v14561_v34 = vld [vmem:[%s18608_s1 + $0xc48] sm:$0xff]  }
 0x13b   :  { %v14524_v37 = vld [vmem:[%s18608_s1 + $0xb40] sm:$0xff]   ;;  %v14523_v39 = vld [vmem:[%s18608_s1 + $0xab8] sm:$0xff]  }
 0x13c   :  { %v16262_v49 = vadd.f32 %v12886_v44, %v9353_v43  ;;  %13167 = vmatpush3.bf16.msra.mxu0 %v14485_v40  ;;  %v2362_v40 = vcombine.high %v2354_v36, %v2354_v36  ;;  %v2370_v41 = vrot.slane %v2354_v36, %v15322_v35  ;;  %v14525_v42 = vld [vmem:[%s18608_s1 + $0xbc0] sm:$0xff]   ;;  %v16386_v43 = vrot.slane %v2347_v38, %v15322_v35  ;;  %v14562_v36 = vld [vmem:[%s18608_s1 + $0xcc8] sm:$0xff]  }
 0x13d   :  { %13168 = vmatprep.subr.bf16.mxu0 %v14487_v48  ;;  %13189 = vmatpush3.bf16.msra.mxu1 %v14486_v46  ;;  %v14526_v44 = vld [vmem:[%s18608_s1 + $0xb00] sm:$0xff]   ;;  %v14564_v38 = vld [vmem:[%s18608_s1 + $0xc88] sm:$0xff]  }
 0x13e   :  { %13190 = vmatprep.subr.bf16.mxu1 %v14488_v50  ;;  %v2384_v45 = vrot.slane %v2362_v40, %v15322_v35  ;;  %v14527_v46 = vld [vmem:[%s18608_s1 + $0xb80] sm:$0xff]   ;;  %v2363_v47 = vcombine.high %v16386_v43, %v16386_v43  ;;  %v2392_v48 = vcombine.high %v2370_v41, %v2370_v41  ;;  %v14566_v40 = vld [vmem:[%s18608_s1 + $0xcd0] sm:$0xff]  }
 0x140   :  { %13169 = vmatpush3.bf16.msra.mxu0 %v14489_v51  ;;  %v2394_v50 = vcombine.high %v2384_v45, %v2384_v45  ;;  %v14529_v51 = vld [vmem:[%s18608_s1 + $0xbc8] sm:$0xff]  }
 0x141   :  { %13198 = vmatprep.subr.bf16.mxu0 %v14492_v54  ;;  %13191 = vmatpush3.bf16.msra.mxu1 %v14490_v52  ;;  %v2391_v52 = vrot.slane %v2363_v47, %v15322_v35  ;;  %v14531_v54 = vld [vmem:[%s18608_s1 + $0xb88] sm:$0xff]   ;;  %v14573_v47 = vld [vmem:[%s18608_s1 + $0xc60] sm:$0xff]  }
 0x142   :  { %13220 = vmatprep.subr.bf16.mxu1 %v14493_v55 }
 0x143   :  { %9911 = vmatmul.mubr.bf16.vlgmr.msra.gmra.mrb[36].mxu0 %v2328_v53  ;;  %v14530_v53 = vld [vmem:[%s18608_s1 + $0xb08] sm:$0xff]   ;;  %v2395_v55 = vcombine.high %v2391_v52, %v2391_v52 }
 0x144   :  { %13199 = vmatpush3.bf16.msra.mxu0 %v14494_v56  ;;  %9951 = vmatmul.mubr.bf16.vlgmr.msra.gmra.mrb[36].mxu1 %v2344_v58  ;;  %v14532_v56 = vld [vmem:[%s18608_s1 + $0xb50] sm:$0xff]  }
 0x145   :  { %13200 = vmatprep.subr.bf16.mxu0 %v14496_v59  ;;  %13221 = vmatpush3.bf16.msra.mxu1 %v14495_v57  ;;  %v14533_v57 = vld [vmem:[%s18608_s1 + $0xbd0] sm:$0xff]  }
 0x146   :  { %13222 = vmatprep.subr.bf16.mxu1 %v14497_v60  ;;  %9990 = vmatprep.mubr.bf16.mxu0 %v2384_v45  ;;  %v14534_v58 = vld [vmem:[%s18608_s1 + $0xb10] sm:$0xff]   ;;  %v14536_v60 = vld [vmem:[%s18608_s1 + $0xb58] sm:$0xff]  }
 0x147   :  { %10030 = vmatprep.mubr.bf16.mxu1 %v2394_v50  ;;  %v14535_v59 = vld [vmem:[%s18608_s1 + $0xb90] sm:$0xff]   ;;  %v14571_v45 = vld [vmem:[%s18608_s1 + $0xc18] sm:$0xff]   ;;  %v14576_v50 = vld [vmem:[%s18608_s1 + $0xca0] sm:$0xff]  }
 0x148   :  { %13201 = vmatpush3.bf16.msra.mxu0 %v14498_v61  ;;  %v14537_v61 = vld [vmem:[%s18608_s1 + $0xbd8] sm:$0xff]  }
 0x149   :  { %13202 = vmatprep.subr.bf16.mxu0 %v14500_v63  ;;  %13223 = vmatpush3.bf16.msra.mxu1 %v14499_v62  ;;  %v14538_v62 = vld [vmem:[%s18608_s1 + $0xb18] sm:$0xff]  }
 0x14a   :  { %13224 = vmatprep.subr.bf16.mxu1 %v14501_v0  ;;  %v14539_v63 = vld [vmem:[%s18608_s1 + $0xb98] sm:$0xff]   ;;  %v14540_v0 = vld [vmem:[%s18608_s1 + $0xb60] sm:$0xff]  }
 0x14c   :  { %13203 = vmatpush3.bf16.msra.mxu0 %v14502_v1  ;;  %v14541_v1 = vld [vmem:[%s18608_s1 + $0xbe0] sm:$0xff]  }
 0x14d   :  { %13204 = vmatprep.subr.bf16.mxu0 %v14504_v3  ;;  %13225 = vmatpush3.bf16.msra.mxu1 %v14503_v2  ;;  %v14542_v2 = vld [vmem:[%s18608_s1 + $0xb20] sm:$0xff]  }
 0x14e   :  { %13226 = vmatprep.subr.bf16.mxu1 %v14505_v4  ;;  %v14543_v3 = vld [vmem:[%s18608_s1 + $0xba0] sm:$0xff]   ;;  %v14544_v4 = vld [vmem:[%s18608_s1 + $0xb68] sm:$0xff]  }
 0x150   :  { %13205 = vmatpush3.bf16.msra.mxu0 %v14506_v5  ;;  %v14545_v5 = vld [vmem:[%s18608_s1 + $0xbe8] sm:$0xff]  }
 0x151   :  { %13206 = vmatprep.subr.bf16.mxu0 %v14508_v7  ;;  %13227 = vmatpush3.bf16.msra.mxu1 %v14507_v6  ;;  %v14546_v7 = vld [vmem:[%s18608_s1 + $0xb28] sm:$0xff]  }
 0x152   :  { %13228 = vmatprep.subr.bf16.mxu1 %v14509_v8 }
 0x154   :  { %13207 = vmatpush3.bf16.msra.mxu0 %v14510_v9  ;;  %v14547_v9 = vld [vmem:[%s18608_s1 + $0xba8] sm:$0xff]  }
 0x155   :  { %13208 = vmatprep.subr.bf16.mxu0 %v14512_v11  ;;  %13229 = vmatpush3.bf16.msra.mxu1 %v14511_v10 }
 0x156   :  { %v12906_v14 = vpop.f32.mrb[12].mxu0  ;;  %13230 = vmatprep.subr.bf16.mxu1 %v14513_v12 }
 0x157   :  { %v12907_v16 = vpop.f32.mrb[13].mxu0  ;;  %v12928_v18 = vpop.f32.mrb[12].mxu1 }
 0x158   :  { %v12908_v19 = vadd.f32 %v12907_v16, %v12906_v14  ;;  %v12909_v20 = vpop.f32.mrb[14].mxu0  ;;  %v12929_v21 = vpop.f32.mrb[13].mxu1  ;;  %13209 = vmatpush3.bf16.msra.mxu0 %v14514_v13  ;;  %v14548_v13 = vld [vmem:[%s18608_s1 + $0xb70] sm:$0xff]  }
 0x159   :  { %v12910_v22 = vpop.f32.mrb[15].mxu0  ;;  %v12930_v26 = vadd.f32 %v12929_v21, %v12928_v18  ;;  %v12931_v27 = vpop.f32.mrb[14].mxu1  ;;  %13210 = vmatprep.subr.bf16.mxu0 %v14516_v17  ;;  %13231 = vmatpush3.bf16.msra.mxu1 %v14515_v15  ;;  %v14549_v14 = vld [vmem:[%s18608_s1 + $0xbf0] sm:$0xff]  }
 0x15a   :  { %v9433_v25 = vadd.f32 %v12908_v19, %v16262_v49  ;;  %v12932_v29 = vpop.f32.mrb[15].mxu1  ;;  %13232 = vmatprep.subr.bf16.mxu1 %v14517_v23  ;;  %v14528_v49 = vld [vmem:[%s18608_s1 + $0xb48] sm:$0xff]   ;;  %v14550_v20 = vld [vmem:[%s18608_s1 + $0xb30] sm:$0xff]   ;;  %v14555_v27 = vld [vmem:[%s18608_s1 + $0xbb8] sm:$0xff]  }
 0x15b   :  { %v14551_v22 = vld [vmem:[%s18608_s1 + $0xbb0] sm:$0xff]   ;;  %v14557_v29 = vld [vmem:[%s18608_s1 + $0xc40] sm:$0xff]  }
 0x15c   :  { %v16363_v31 = vadd.f32 %v12930_v26, %v9433_v25  ;;  %13211 = vmatpush3.bf16.msra.mxu0 %v14518_v24  ;;  %v14552_v24 = vld [vmem:[%s18608_s1 + $0xb78] sm:$0xff]  }
 0x15d   :  { %13212 = vmatprep.subr.bf16.mxu0 %v14520_v30  ;;  %13233 = vmatpush3.bf16.msra.mxu1 %v14519_v28  ;;  %v14553_v25 = vld [vmem:[%s18608_s1 + $0xbf8] sm:$0xff]   ;;  %v2377_v28 = vrot.slane %v16386_v43, %v15322_v35  ;;  %v14558_v30 = vld [vmem:[%s18608_s1 + $0xcc0] sm:$0xff]  }
 0x15e   :  { %13234 = vmatprep.subr.bf16.mxu1 %v14521_v32  ;;  %v14554_v26 = vld [vmem:[%s18608_s1 + $0xb38] sm:$0xff]   ;;  %v14560_v32 = vld [vmem:[%s18608_s1 + $0xc80] sm:$0xff]  }
 0x15f   :  { %v14569_v43 = vld [vmem:[%s18608_s1 + $0xc58] sm:$0xff]  }
 0x160   :  { %13213 = vmatpush3.bf16.msra.mxu0 %v14522_v33  ;;  %v2393_v33 = vcombine.high %v2377_v28, %v2377_v28 }
 0x161   :  { %13242 = vmatprep.subr.bf16.mxu0 %v14524_v37  ;;  %13235 = vmatpush3.bf16.msra.mxu1 %v14523_v39  ;;  %v14563_v37 = vld [vmem:[%s18608_s1 + $0xc08] sm:$0xff]   ;;  %v14565_v39 = vld [vmem:[%s18608_s1 + $0xc50] sm:$0xff]  }
 0x162   :  { %13264 = vmatprep.subr.bf16.mxu1 %v14525_v42  ;;  %v14568_v42 = vld [vmem:[%s18608_s1 + $0xc90] sm:$0xff]  }
 0x163   :  { %9991 = vmatmul.mubr.bf16.vlgmr.msra.gmra.mrb[40].mxu0 %v2370_v41  ;;  %v14567_v41 = vld [vmem:[%s18608_s1 + $0xc10] sm:$0xff]  }
 0x164   :  { %13243 = vmatpush3.bf16.msra.mxu0 %v14526_v44  ;;  %10031 = vmatmul.mubr.bf16.vlgmr.msra.gmra.mrb[40].mxu1 %v2392_v48  ;;  %v14570_v44 = vld [vmem:[%s18608_s1 + $0xcd8] sm:$0xff]   ;;  %v14574_v48 = vld [vmem:[%s18608_s1 + $0xce0] sm:$0xff]  }
 0x165   :  { %13244 = vmatprep.subr.bf16.mxu0 %v14528_v49  ;;  %13265 = vmatpush3.bf16.msra.mxu1 %v14527_v46  ;;  %v14572_v46 = vld [vmem:[%s18608_s1 + $0xc98] sm:$0xff]   ;;  %v14575_v49 = vld [vmem:[%s18608_s1 + $0xc20] sm:$0xff]  }
 0x166   :  { %10070 = vmatprep.mubr.bf16.mxu0 %v2391_v52  ;;  %13266 = vmatprep.subr.bf16.mxu1 %v14529_v51  ;;  %v14577_v51 = vld [vmem:[%s18608_s1 + $0xc68] sm:$0xff]  }
 0x167   :  { %10110 = vmatprep.mubr.bf16.mxu1 %v2395_v55  ;;  %v14578_v52 = vld [vmem:[%s18608_s1 + $0xce8] sm:$0xff]  }
 0x168   :  { %13245 = vmatpush3.bf16.msra.mxu0 %v14530_v53 }
 0x169   :  { %13246 = vmatprep.subr.bf16.mxu0 %v14532_v56  ;;  %13267 = vmatpush3.bf16.msra.mxu1 %v14531_v54  ;;  %v14579_v54 = vld [vmem:[%s18608_s1 + $0xc28] sm:$0xff]   ;;  %v14581_v56 = vld [vmem:[%s18608_s1 + $0xc70] sm:$0xff]  }
 0x16a   :  { %13268 = vmatprep.subr.bf16.mxu1 %v14533_v57 }
 0x16c   :  { %13247 = vmatpush3.bf16.msra.mxu0 %v14534_v58 }
 0x16d   :  { %13248 = vmatprep.subr.bf16.mxu0 %v14536_v60  ;;  %13269 = vmatpush3.bf16.msra.mxu1 %v14535_v59 }
 0x16e   :  { %13270 = vmatprep.subr.bf16.mxu1 %v14537_v61  ;;  %v14580_v61 = vld [vmem:[%s18608_s1 + $0xca8] sm:$0xff]  }
 0x170   :  { %13249 = vmatpush3.bf16.msra.mxu0 %v14538_v62 }
 0x171   :  { %13250 = vmatprep.subr.bf16.mxu0 %v14540_v0  ;;  %13271 = vmatpush3.bf16.msra.mxu1 %v14539_v63  ;;  %v14582_v63 = vld [vmem:[%s18608_s1 + $0xcf0] sm:$0xff]  }
 0x172   :  { %13272 = vmatprep.subr.bf16.mxu1 %v14541_v1 }
 0x174   :  { %13251 = vmatpush3.bf16.msra.mxu0 %v14542_v2 }
 0x175   :  { %13252 = vmatprep.subr.bf16.mxu0 %v14544_v4  ;;  %13273 = vmatpush3.bf16.msra.mxu1 %v14543_v3  ;;  %v14583_v3 = vld [vmem:[%s18608_s1 + $0xc30] sm:$0xff]  }
 0x176   :  { %v12950_v6 = vpop.f32.mrb[16].mxu0  ;;  %13274 = vmatprep.subr.bf16.mxu1 %v14545_v5  ;;  %v14585_v5 = vld [vmem:[%s18608_s1 + $0xc78] sm:$0xff]  }
 0x177   :  { %v12951_v8 = vpop.f32.mrb[17].mxu0  ;;  %v12972_v10 = vpop.f32.mrb[16].mxu1 }
 0x178   :  { %v12952_v11 = vadd.f32 %v12951_v8, %v12950_v6  ;;  %v12953_v12 = vpop.f32.mrb[18].mxu0  ;;  %v12973_v15 = vpop.f32.mrb[17].mxu1  ;;  %13253 = vmatpush3.bf16.msra.mxu0 %v14546_v7  ;;  %v14584_v7 = vld [vmem:[%s18608_s1 + $0xcb0] sm:$0xff]   ;;  %v14586_v8 = vld [vmem:[%s18608_s1 + $0xcf8] sm:$0xff]  }
 0x179   :  { %v12954_v16 = vpop.f32.mrb[19].mxu0  ;;  %v12974_v18 = vadd.f32 %v12973_v15, %v12972_v10  ;;  %v12975_v19 = vpop.f32.mrb[18].mxu1  ;;  %13254 = vmatprep.subr.bf16.mxu0 %v14548_v13  ;;  %13275 = vmatpush3.bf16.msra.mxu1 %v14547_v9  ;;  %v14587_v9 = vld [vmem:[%s18608_s1 + $0xc38] sm:$0xff]   ;;  %v21_v10 = vld [vmem:[%s18609_s0 + $0x30] sm:$0xff]  ;;  %v14589_v12 = vld [vmem:[%s18608_s1 + $0xd40] sm:$0xff]  }
 0x17a   :  { %v9513_v17 = vadd.f32 %v12952_v11, %v16363_v31  ;;  %v12976_v21 = vpop.f32.mrb[19].mxu1  ;;  %13276 = vmatprep.subr.bf16.mxu1 %v14549_v14  ;;  %v14559_v31 = vld [vmem:[%s18608_s1 + $0xc00] sm:$0xff]   ;;  %v2403_v11 = vrot.slane %v21_v10, %v15322_v35  ;;  %v2396_v13 = vcombine.high %v21_v10, %v21_v10  ;;  %v14588_v14 = vld [vmem:[%s18608_s1 + $0xcb8] sm:$0xff]   ;;  %v14626_v10 = vld [vmem:[%s18608_s1 + $0xe48] sm:$0xff]  }
 0x17b   :  { %v14591_v19 = vld [vmem:[%s18608_s1 + $0xd00] sm:$0xff]  }
 0x17c   :  { %v16471_v23 = vadd.f32 %v12974_v18, %v9513_v17  ;;  %13255 = vmatpush3.bf16.msra.mxu0 %v14550_v20  ;;  %v2411_v15 = vcombine.high %v2403_v11, %v2403_v11  ;;  %v2419_v16 = vrot.slane %v2403_v11, %v15322_v35  ;;  %v14590_v17 = vld [vmem:[%s18608_s1 + $0xdc0] sm:$0xff]   ;;  %v16598_v18 = vrot.slane %v2396_v13, %v15322_v35  ;;  %v14627_v11 = vld [vmem:[%s18608_s1 + $0xec8] sm:$0xff]  }
 0x17d   :  { %13256 = vmatprep.subr.bf16.mxu0 %v14552_v24  ;;  %13277 = vmatpush3.bf16.msra.mxu1 %v14551_v22  ;;  %v14592_v21 = vld [vmem:[%s18608_s1 + $0xd80] sm:$0xff]   ;;  %v14593_v24 = vld [vmem:[%s18608_s1 + $0xd48] sm:$0xff]  }
 0x17e   :  { %13278 = vmatprep.subr.bf16.mxu1 %v14553_v25  ;;  %v2433_v20 = vrot.slane %v2411_v15, %v15322_v35  ;;  %v2412_v22 = vcombine.high %v16598_v18, %v16598_v18  ;;  %v14629_v13 = vld [vmem:[%s18608_s1 + $0xe88] sm:$0xff]   ;;  %v14631_v15 = vld [vmem:[%s18608_s1 + $0xed0] sm:$0xff]  }
 0x180   :  { %13257 = vmatpush3.bf16.msra.mxu0 %v14554_v26  ;;  %v2443_v25 = vcombine.high %v2433_v20, %v2433_v20  ;;  %v14594_v26 = vld [vmem:[%s18608_s1 + $0xdc8] sm:$0xff]  }
 0x181   :  { %13286 = vmatprep.subr.bf16.mxu0 %v14557_v29  ;;  %13279 = vmatpush3.bf16.msra.mxu1 %v14555_v27  ;;  %v2440_v27 = vrot.slane %v2412_v22, %v15322_v35  ;;  %v14596_v29 = vld [vmem:[%s18608_s1 + $0xd88] sm:$0xff]   ;;  %v14638_v22 = vld [vmem:[%s18608_s1 + $0xe60] sm:$0xff]  }
 0x182   :  { %13308 = vmatprep.subr.bf16.mxu1 %v14558_v30 }
 0x183   :  { %10071 = vmatmul.mubr.bf16.vlgmr.msra.gmra.mrb[44].mxu0 %v2377_v28  ;;  %v14595_v28 = vld [vmem:[%s18608_s1 + $0xd08] sm:$0xff]   ;;  %v2444_v30 = vcombine.high %v2440_v27, %v2440_v27 }
 0x184   :  { %13287 = vmatpush3.bf16.msra.mxu0 %v14559_v31  ;;  %10111 = vmatmul.mubr.bf16.vlgmr.msra.gmra.mrb[44].mxu1 %v2393_v33  ;;  %v14597_v31 = vld [vmem:[%s18608_s1 + $0xd50] sm:$0xff]  }
 0x185   :  { %13288 = vmatprep.subr.bf16.mxu0 %v14561_v34  ;;  %13309 = vmatpush3.bf16.msra.mxu1 %v14560_v32  ;;  %v14598_v32 = vld [vmem:[%s18608_s1 + $0xdd0] sm:$0xff]  }
 0x186   :  { %13310 = vmatprep.subr.bf16.mxu1 %v14562_v36  ;;  %10150 = vmatprep.mubr.bf16.mxu0 %v2433_v20  ;;  %v14599_v33 = vld [vmem:[%s18608_s1 + $0xd10] sm:$0xff]   ;;  %v14601_v36 = vld [vmem:[%s18608_s1 + $0xd58] sm:$0xff]  }
 0x187   :  { %10190 = vmatprep.mubr.bf16.mxu1 %v2443_v25  ;;  %v14600_v34 = vld [vmem:[%s18608_s1 + $0xd90] sm:$0xff]   ;;  %v14636_v20 = vld [vmem:[%s18608_s1 + $0xe18] sm:$0xff]   ;;  %v14641_v25 = vld [vmem:[%s18608_s1 + $0xea0] sm:$0xff]  }
 0x188   :  { %13289 = vmatpush3.bf16.msra.mxu0 %v14563_v37  ;;  %v14602_v37 = vld [vmem:[%s18608_s1 + $0xdd8] sm:$0xff]  }
 0x189   :  { %13290 = vmatprep.subr.bf16.mxu0 %v14565_v39  ;;  %13311 = vmatpush3.bf16.msra.mxu1 %v14564_v38  ;;  %v14603_v38 = vld [vmem:[%s18608_s1 + $0xd18] sm:$0xff]  }
 0x18a   :  { %13312 = vmatprep.subr.bf16.mxu1 %v14566_v40  ;;  %v14604_v39 = vld [vmem:[%s18608_s1 + $0xd98] sm:$0xff]   ;;  %v14605_v40 = vld [vmem:[%s18608_s1 + $0xd60] sm:$0xff]  }
 0x18c   :  { %13291 = vmatpush3.bf16.msra.mxu0 %v14567_v41  ;;  %v14606_v41 = vld [vmem:[%s18608_s1 + $0xde0] sm:$0xff]  }
 0x18d   :  { %13292 = vmatprep.subr.bf16.mxu0 %v14569_v43  ;;  %13313 = vmatpush3.bf16.msra.mxu1 %v14568_v42  ;;  %v14607_v42 = vld [vmem:[%s18608_s1 + $0xd20] sm:$0xff]  }
 0x18e   :  { %13314 = vmatprep.subr.bf16.mxu1 %v14570_v44  ;;  %v14608_v43 = vld [vmem:[%s18608_s1 + $0xda0] sm:$0xff]   ;;  %v14609_v44 = vld [vmem:[%s18608_s1 + $0xd68] sm:$0xff]  }
 0x190   :  { %13293 = vmatpush3.bf16.msra.mxu0 %v14571_v45  ;;  %v14610_v45 = vld [vmem:[%s18608_s1 + $0xde8] sm:$0xff]  }
 0x191   :  { %13294 = vmatprep.subr.bf16.mxu0 %v14573_v47  ;;  %13315 = vmatpush3.bf16.msra.mxu1 %v14572_v46  ;;  %v14611_v47 = vld [vmem:[%s18608_s1 + $0xd28] sm:$0xff]  }
 0x192   :  { %13316 = vmatprep.subr.bf16.mxu1 %v14574_v48 }
 0x194   :  { %13295 = vmatpush3.bf16.msra.mxu0 %v14575_v49  ;;  %v14612_v49 = vld [vmem:[%s18608_s1 + $0xda8] sm:$0xff]  }
 0x195   :  { %13296 = vmatprep.subr.bf16.mxu0 %v14577_v51  ;;  %13317 = vmatpush3.bf16.msra.mxu1 %v14576_v50 }
 0x196   :  { %v12994_v53 = vpop.f32.mrb[20].mxu0  ;;  %13318 = vmatprep.subr.bf16.mxu1 %v14578_v52 }
 0x197   :  { %v12995_v55 = vpop.f32.mrb[21].mxu0  ;;  %v13016_v57 = vpop.f32.mrb[20].mxu1 }
 0x198   :  { %v12996_v58 = vadd.f32 %v12995_v55, %v12994_v53  ;;  %v12997_v59 = vpop.f32.mrb[22].mxu0  ;;  %v13017_v60 = vpop.f32.mrb[21].mxu1  ;;  %13297 = vmatpush3.bf16.msra.mxu0 %v14579_v54  ;;  %v14613_v53 = vld [vmem:[%s18608_s1 + $0xd70] sm:$0xff]  }
 0x199   :  { %v12998_v62 = vpop.f32.mrb[23].mxu0  ;;  %v13018_v1 = vadd.f32 %v13017_v60, %v13016_v57  ;;  %v13019_v2 = vpop.f32.mrb[22].mxu1  ;;  %13298 = vmatprep.subr.bf16.mxu0 %v14581_v56  ;;  %13319 = vmatpush3.bf16.msra.mxu1 %v14580_v61  ;;  %v14614_v54 = vld [vmem:[%s18608_s1 + $0xdf0] sm:$0xff]  }
 0x19a   :  { %v9593_v0 = vadd.f32 %v12996_v58, %v16471_v23  ;;  %v13020_v4 = vpop.f32.mrb[23].mxu1  ;;  %13320 = vmatprep.subr.bf16.mxu1 %v14582_v63  ;;  %v2441_v23 = vcombine.high %v2419_v16, %v2419_v16  ;;  %v14615_v60 = vld [vmem:[%s18608_s1 + $0xd30] sm:$0xff]   ;;  %v14619_v2 = vld [vmem:[%s18608_s1 + $0xd38] sm:$0xff]  }
 0x19b   :  { %v14616_v62 = vld [vmem:[%s18608_s1 + $0xdb0] sm:$0xff]   ;;  %v2426_v4 = vrot.slane %v16598_v18, %v15322_v35  ;;  %v14634_v18 = vld [vmem:[%s18608_s1 + $0xe58] sm:$0xff]  }
 0x19c   :  { %v16572_v6 = vadd.f32 %v13018_v1, %v9593_v0  ;;  %13299 = vmatpush3.bf16.msra.mxu0 %v14583_v3  ;;  %v14617_v0 = vld [vmem:[%s18608_s1 + $0xd78] sm:$0xff]  }
 0x19d   :  { %13300 = vmatprep.subr.bf16.mxu0 %v14585_v5  ;;  %13321 = vmatpush3.bf16.msra.mxu1 %v14584_v7  ;;  %v14618_v1 = vld [vmem:[%s18608_s1 + $0xdf8] sm:$0xff]   ;;  %v14622_v5 = vld [vmem:[%s18608_s1 + $0xe40] sm:$0xff]  }
 0x19e   :  { %13322 = vmatprep.subr.bf16.mxu1 %v14586_v8  ;;  %v14620_v3 = vld [vmem:[%s18608_s1 + $0xdb8] sm:$0xff]   ;;  %v14624_v7 = vld [vmem:[%s18608_s1 + $0xe00] sm:$0xff]  }
 0x19f   :  { %v14625_v8 = vld [vmem:[%s18608_s1 + $0xe80] sm:$0xff]  }
 0x1a0   :  { %13301 = vmatpush3.bf16.msra.mxu0 %v14587_v9  ;;  %v2442_v9 = vcombine.high %v2426_v4, %v2426_v4 }
 0x1a1   :  { %13330 = vmatprep.subr.bf16.mxu0 %v14589_v12  ;;  %13323 = vmatpush3.bf16.msra.mxu1 %v14588_v14  ;;  %v14628_v12 = vld [vmem:[%s18608_s1 + $0xe08] sm:$0xff]   ;;  %v14630_v14 = vld [vmem:[%s18608_s1 + $0xe50] sm:$0xff]  }
 0x1a2   :  { %13352 = vmatprep.subr.bf16.mxu1 %v14590_v17  ;;  %v14633_v17 = vld [vmem:[%s18608_s1 + $0xe90] sm:$0xff]  }
 0x1a3   :  { %10151 = vmatmul.mubr.bf16.vlgmr.msra.gmra.mrb[48].mxu0 %v2419_v16  ;;  %v14632_v16 = vld [vmem:[%s18608_s1 + $0xe10] sm:$0xff]  }
 0x1a4   :  { %13331 = vmatpush3.bf16.msra.mxu0 %v14591_v19  ;;  %10191 = vmatmul.mubr.bf16.vlgmr.msra.gmra.mrb[48].mxu1 %v2441_v23  ;;  %v14635_v19 = vld [vmem:[%s18608_s1 + $0xed8] sm:$0xff]   ;;  %v14639_v23 = vld [vmem:[%s18608_s1 + $0xee0] sm:$0xff]  }
 0x1a5   :  { %13332 = vmatprep.subr.bf16.mxu0 %v14593_v24  ;;  %13353 = vmatpush3.bf16.msra.mxu1 %v14592_v21  ;;  %v14637_v21 = vld [vmem:[%s18608_s1 + $0xe98] sm:$0xff]   ;;  %v14640_v24 = vld [vmem:[%s18608_s1 + $0xe20] sm:$0xff]  }
 0x1a6   :  { %10230 = vmatprep.mubr.bf16.mxu0 %v2440_v27  ;;  %13354 = vmatprep.subr.bf16.mxu1 %v14594_v26  ;;  %v14642_v26 = vld [vmem:[%s18608_s1 + $0xe68] sm:$0xff]  }
 0x1a7   :  { %10270 = vmatprep.mubr.bf16.mxu1 %v2444_v30  ;;  %v14643_v27 = vld [vmem:[%s18608_s1 + $0xee8] sm:$0xff]  }
 0x1a8   :  { %13333 = vmatpush3.bf16.msra.mxu0 %v14595_v28 }
 0x1a9   :  { %13334 = vmatprep.subr.bf16.mxu0 %v14597_v31  ;;  %13355 = vmatpush3.bf16.msra.mxu1 %v14596_v29  ;;  %v14644_v29 = vld [vmem:[%s18608_s1 + $0xe28] sm:$0xff]   ;;  %v14646_v31 = vld [vmem:[%s18608_s1 + $0xe70] sm:$0xff]  }
 0x1aa   :  { %13356 = vmatprep.subr.bf16.mxu1 %v14598_v32 }
 0x1ac   :  { %13335 = vmatpush3.bf16.msra.mxu0 %v14599_v33 }
 0x1ad   :  { %13336 = vmatprep.subr.bf16.mxu0 %v14601_v36  ;;  %13357 = vmatpush3.bf16.msra.mxu1 %v14600_v34 }
 0x1ae   :  { %13358 = vmatprep.subr.bf16.mxu1 %v14602_v37  ;;  %v14645_v37 = vld [vmem:[%s18608_s1 + $0xea8] sm:$0xff]  }
 0x1b0   :  { %13337 = vmatpush3.bf16.msra.mxu0 %v14603_v38 }
 0x1b1   :  { %13338 = vmatprep.subr.bf16.mxu0 %v14605_v40  ;;  %13359 = vmatpush3.bf16.msra.mxu1 %v14604_v39  ;;  %v14647_v39 = vld [vmem:[%s18608_s1 + $0xef0] sm:$0xff]  }
 0x1b2   :  { %13360 = vmatprep.subr.bf16.mxu1 %v14606_v41 }
 0x1b4   :  { %13339 = vmatpush3.bf16.msra.mxu0 %v14607_v42 }
 0x1b5   :  { %13340 = vmatprep.subr.bf16.mxu0 %v14609_v44  ;;  %13361 = vmatpush3.bf16.msra.mxu1 %v14608_v43  ;;  %v14648_v43 = vld [vmem:[%s18608_s1 + $0xe30] sm:$0xff]  }
 0x1b6   :  { %v13038_v46 = vpop.f32.mrb[24].mxu0  ;;  %13362 = vmatprep.subr.bf16.mxu1 %v14610_v45  ;;  %v14650_v45 = vld [vmem:[%s18608_s1 + $0xe78] sm:$0xff]  }
 0x1b7   :  { %v13039_v48 = vpop.f32.mrb[25].mxu0  ;;  %v13060_v50 = vpop.f32.mrb[24].mxu1 }
 0x1b8   :  { %v13040_v51 = vadd.f32 %v13039_v48, %v13038_v46  ;;  %v13041_v52 = vpop.f32.mrb[26].mxu0  ;;  %v13061_v55 = vpop.f32.mrb[25].mxu1  ;;  %13341 = vmatpush3.bf16.msra.mxu0 %v14611_v47  ;;  %v14649_v47 = vld [vmem:[%s18608_s1 + $0xeb0] sm:$0xff]   ;;  %v14651_v48 = vld [vmem:[%s18608_s1 + $0xef8] sm:$0xff]  }
 0x1b9   :  { %v13042_v56 = vpop.f32.mrb[27].mxu0  ;;  %v13062_v58 = vadd.f32 %v13061_v55, %v13060_v50  ;;  %v13063_v59 = vpop.f32.mrb[26].mxu1  ;;  %13342 = vmatprep.subr.bf16.mxu0 %v14613_v53  ;;  %13363 = vmatpush3.bf16.msra.mxu1 %v14612_v49  ;;  %v14652_v49 = vld [vmem:[%s18608_s1 + $0xe38] sm:$0xff]   ;;  %v14654_v52 = vld [vmem:[%s18608_s1 + $0xf40] sm:$0xff]  }
 0x1ba   :  { %v9673_v57 = vadd.f32 %v13040_v51, %v16572_v6  ;;  %v13064_v61 = vpop.f32.mrb[27].mxu1  ;;  %13364 = vmatprep.subr.bf16.mxu1 %v14614_v54  ;;  %v14623_v6 = vld [vmem:[%s18608_s1 + $0xec0] sm:$0xff]   ;;  %v22_v50 = vld [vmem:[%s18609_s0 + $0x38] sm:$0xff] }
 0x1bb   :  { %v2452_v51 = vrot.slane %v22_v50, %v15322_v35  ;;  %v2445_v53 = vcombine.high %v22_v50, %v22_v50  ;;  %v14653_v54 = vld [vmem:[%s18608_s1 + $0xeb8] sm:$0xff]   ;;  %v14656_v59 = vld [vmem:[%s18608_s1 + $0xf00] sm:$0xff]   ;;  %v14691_v50 = vld [vmem:[%s18608_s1 + $0x1048] sm:$0xff]  }
 0x1bc   :  { %v16683_v63 = vadd.f32 %v13062_v58, %v9673_v57  ;;  %13343 = vmatpush3.bf16.msra.mxu0 %v14615_v60  ;;  %v14655_v57 = vld [vmem:[%s18608_s1 + $0xfc0] sm:$0xff]  }
 0x1bd   :  { %13344 = vmatprep.subr.bf16.mxu0 %v14617_v0  ;;  %13365 = vmatpush3.bf16.msra.mxu1 %v14616_v62  ;;  %v2460_v55 = vcombine.high %v2452_v51, %v2452_v51  ;;  %v2468_v56 = vrot.slane %v2452_v51, %v15322_v35  ;;  %v16810_v58 = vrot.slane %v2445_v53, %v15322_v35  ;;  %v14657_v61 = vld [vmem:[%s18608_s1 + $0xf80] sm:$0xff]   ;;  %v14658_v0 = vld [vmem:[%s18608_s1 + $0xf48] sm:$0xff]  }
 0x1be   :  { %13366 = vmatprep.subr.bf16.mxu1 %v14618_v1  ;;  %v14692_v51 = vld [vmem:[%s18608_s1 + $0x10c8] sm:$0xff]  }
 0x1bf   :  { %v2482_v60 = vrot.slane %v2460_v55, %v15322_v35  ;;  %v2461_v62 = vcombine.high %v16810_v58, %v16810_v58  ;;  %v14694_v53 = vld [vmem:[%s18608_s1 + $0x1088] sm:$0xff]   ;;  %v14696_v55 = vld [vmem:[%s18608_s1 + $0x10d0] sm:$0xff]  }
 0x1c0   :  { %13345 = vmatpush3.bf16.msra.mxu0 %v14619_v2  ;;  %v14659_v2 = vld [vmem:[%s18608_s1 + $0xfc8] sm:$0xff]  }
 0x1c1   :  { %13374 = vmatprep.subr.bf16.mxu0 %v14622_v5  ;;  %13367 = vmatpush3.bf16.msra.mxu1 %v14620_v3  ;;  %v2492_v1 = vcombine.high %v2482_v60, %v2482_v60  ;;  %v2489_v3 = vrot.slane %v2461_v62, %v15322_v35  ;;  %v14661_v5 = vld [vmem:[%s18608_s1 + $0xf88] sm:$0xff]   ;;  %v14703_v62 = vld [vmem:[%s18608_s1 + $0x1060] sm:$0xff]  }
 0x1c2   :  { %13396 = vmatprep.subr.bf16.mxu1 %v14623_v6 }
 0x1c3   :  { %10231 = vmatmul.mubr.bf16.vlgmr.msra.gmra.mrb[52].mxu0 %v2426_v4  ;;  %v14660_v4 = vld [vmem:[%s18608_s1 + $0xf08] sm:$0xff]   ;;  %v2493_v6 = vcombine.high %v2489_v3, %v2489_v3 }
 0x1c4   :  { %13375 = vmatpush3.bf16.msra.mxu0 %v14624_v7  ;;  %10271 = vmatmul.mubr.bf16.vlgmr.msra.gmra.mrb[52].mxu1 %v2442_v9  ;;  %v14662_v7 = vld [vmem:[%s18608_s1 + $0xf50] sm:$0xff]  }
 0x1c5   :  { %13376 = vmatprep.subr.bf16.mxu0 %v14626_v10  ;;  %13397 = vmatpush3.bf16.msra.mxu1 %v14625_v8  ;;  %v14663_v8 = vld [vmem:[%s18608_s1 + $0xfd0] sm:$0xff]  }
 0x1c6   :  { %13398 = vmatprep.subr.bf16.mxu1 %v14627_v11  ;;  %10310 = vmatprep.mubr.bf16.mxu0 %v2482_v60  ;;  %v14664_v9 = vld [vmem:[%s18608_s1 + $0xf10] sm:$0xff]   ;;  %v14666_v11 = vld [vmem:[%s18608_s1 + $0xf58] sm:$0xff]  }
 0x1c7   :  { %10350 = vmatprep.mubr.bf16.mxu1 %v2492_v1  ;;  %v14665_v10 = vld [vmem:[%s18608_s1 + $0xf90] sm:$0xff]   ;;  %v14701_v60 = vld [vmem:[%s18608_s1 + $0x1018] sm:$0xff]   ;;  %v14706_v1 = vld [vmem:[%s18608_s1 + $0x10a0] sm:$0xff]  }
 0x1c8   :  { %13377 = vmatpush3.bf16.msra.mxu0 %v14628_v12  ;;  %v14667_v12 = vld [vmem:[%s18608_s1 + $0xfd8] sm:$0xff]  }
 0x1c9   :  { %13378 = vmatprep.subr.bf16.mxu0 %v14630_v14  ;;  %13399 = vmatpush3.bf16.msra.mxu1 %v14629_v13  ;;  %v14668_v13 = vld [vmem:[%s18608_s1 + $0xf18] sm:$0xff]  }
 0x1ca   :  { %13400 = vmatprep.subr.bf16.mxu1 %v14631_v15  ;;  %v14669_v14 = vld [vmem:[%s18608_s1 + $0xf98] sm:$0xff]   ;;  %v14670_v15 = vld [vmem:[%s18608_s1 + $0xf60] sm:$0xff]  }
 0x1cc   :  { %13379 = vmatpush3.bf16.msra.mxu0 %v14632_v16  ;;  %v14671_v16 = vld [vmem:[%s18608_s1 + $0xfe0] sm:$0xff]  }
 0x1cd   :  { %13380 = vmatprep.subr.bf16.mxu0 %v14634_v18  ;;  %13401 = vmatpush3.bf16.msra.mxu1 %v14633_v17  ;;  %v14672_v17 = vld [vmem:[%s18608_s1 + $0xf20] sm:$0xff]  }
 0x1ce   :  { %13402 = vmatprep.subr.bf16.mxu1 %v14635_v19  ;;  %v14673_v18 = vld [vmem:[%s18608_s1 + $0xfa0] sm:$0xff]   ;;  %v14674_v19 = vld [vmem:[%s18608_s1 + $0xf68] sm:$0xff]  }
 0x1d0   :  { %13381 = vmatpush3.bf16.msra.mxu0 %v14636_v20  ;;  %v14675_v20 = vld [vmem:[%s18608_s1 + $0xfe8] sm:$0xff]  }
 0x1d1   :  { %13382 = vmatprep.subr.bf16.mxu0 %v14638_v22  ;;  %13403 = vmatpush3.bf16.msra.mxu1 %v14637_v21  ;;  %v14676_v22 = vld [vmem:[%s18608_s1 + $0xf28] sm:$0xff]  }
 0x1d2   :  { %13404 = vmatprep.subr.bf16.mxu1 %v14639_v23 }
 0x1d4   :  { %13383 = vmatpush3.bf16.msra.mxu0 %v14640_v24  ;;  %v14677_v24 = vld [vmem:[%s18608_s1 + $0xfa8] sm:$0xff]  }
 0x1d5   :  { %13384 = vmatprep.subr.bf16.mxu0 %v14642_v26  ;;  %13405 = vmatpush3.bf16.msra.mxu1 %v14641_v25 }
 0x1d6   :  { %v13082_v28 = vpop.f32.mrb[28].mxu0  ;;  %13406 = vmatprep.subr.bf16.mxu1 %v14643_v27 }
 0x1d7   :  { %v13083_v30 = vpop.f32.mrb[29].mxu0  ;;  %v13104_v32 = vpop.f32.mrb[28].mxu1 }
 0x1d8   :  { %v13084_v33 = vadd.f32 %v13083_v30, %v13082_v28  ;;  %v13085_v34 = vpop.f32.mrb[30].mxu0  ;;  %v13105_v36 = vpop.f32.mrb[29].mxu1  ;;  %13385 = vmatpush3.bf16.msra.mxu0 %v14644_v29  ;;  %v14678_v28 = vld [vmem:[%s18608_s1 + $0xf70] sm:$0xff]  }
 0x1d9   :  { %v13086_v38 = vpop.f32.mrb[31].mxu0  ;;  %v13106_v41 = vadd.f32 %v13105_v36, %v13104_v32  ;;  %v13107_v42 = vpop.f32.mrb[30].mxu1  ;;  %13386 = vmatprep.subr.bf16.mxu0 %v14646_v31  ;;  %13407 = vmatpush3.bf16.msra.mxu1 %v14645_v37  ;;  %v14679_v29 = vld [vmem:[%s18608_s1 + $0xff0] sm:$0xff]  }
 0x1da   :  { %v9753_v40 = vadd.f32 %v13084_v33, %v16683_v63  ;;  %v13108_v44 = vpop.f32.mrb[31].mxu1  ;;  %13408 = vmatprep.subr.bf16.mxu1 %v14647_v39  ;;  %v2490_v63 = vcombine.high %v2468_v56, %v2468_v56  ;;  %v14680_v36 = vld [vmem:[%s18608_s1 + $0xf30] sm:$0xff]   ;;  %v14684_v42 = vld [vmem:[%s18608_s1 + $0xf38] sm:$0xff]  }
 0x1db   :  { %v14681_v38 = vld [vmem:[%s18608_s1 + $0xfb0] sm:$0xff]   ;;  %v2475_v44 = vrot.slane %v16810_v58, %v15322_v35  ;;  %v14699_v58 = vld [vmem:[%s18608_s1 + $0x1058] sm:$0xff]  }
 0x1dc   :  { %v16784_v46 = vadd.f32 %v13106_v41, %v9753_v40  ;;  %13387 = vmatpush3.bf16.msra.mxu0 %v14648_v43  ;;  %v14682_v40 = vld [vmem:[%s18608_s1 + $0xf78] sm:$0xff]  }
 0x1dd   :  { %13388 = vmatprep.subr.bf16.mxu0 %v14650_v45  ;;  %13409 = vmatpush3.bf16.msra.mxu1 %v14649_v47  ;;  %v14683_v41 = vld [vmem:[%s18608_s1 + $0xff8] sm:$0xff]   ;;  %v14687_v45 = vld [vmem:[%s18608_s1 + $0x1040] sm:$0xff]  }
 0x1de   :  { %13410 = vmatprep.subr.bf16.mxu1 %v14651_v48  ;;  %v14685_v43 = vld [vmem:[%s18608_s1 + $0xfb8] sm:$0xff]   ;;  %v14689_v47 = vld [vmem:[%s18608_s1 + $0x1000] sm:$0xff]  }
 0x1df   :  { %v14690_v48 = vld [vmem:[%s18608_s1 + $0x1080] sm:$0xff]  }
 0x1e0   :  { %13389 = vmatpush3.bf16.msra.mxu0 %v14652_v49  ;;  %v2491_v49 = vcombine.high %v2475_v44, %v2475_v44 }
 0x1e1   :  { %13418 = vmatprep.subr.bf16.mxu0 %v14654_v52  ;;  %13411 = vmatpush3.bf16.msra.mxu1 %v14653_v54  ;;  %v14693_v52 = vld [vmem:[%s18608_s1 + $0x1008] sm:$0xff]   ;;  %v14695_v54 = vld [vmem:[%s18608_s1 + $0x1050] sm:$0xff]  }
 0x1e2   :  { %13440 = vmatprep.subr.bf16.mxu1 %v14655_v57  ;;  %v14698_v57 = vld [vmem:[%s18608_s1 + $0x1090] sm:$0xff]  }
 0x1e3   :  { %10311 = vmatmul.mubr.bf16.vlgmr.msra.gmra.mrb[56].mxu0 %v2468_v56  ;;  %v14697_v56 = vld [vmem:[%s18608_s1 + $0x1010] sm:$0xff]  }
 0x1e4   :  { %13419 = vmatpush3.bf16.msra.mxu0 %v14656_v59  ;;  %10351 = vmatmul.mubr.bf16.vlgmr.msra.gmra.mrb[56].mxu1 %v2490_v63  ;;  %v14700_v59 = vld [vmem:[%s18608_s1 + $0x10d8] sm:$0xff]   ;;  %v14704_v63 = vld [vmem:[%s18608_s1 + $0x10e0] sm:$0xff]  }
 0x1e5   :  { %13420 = vmatprep.subr.bf16.mxu0 %v14658_v0  ;;  %13441 = vmatpush3.bf16.msra.mxu1 %v14657_v61  ;;  %v14702_v61 = vld [vmem:[%s18608_s1 + $0x1098] sm:$0xff]   ;;  %v14705_v0 = vld [vmem:[%s18608_s1 + $0x1020] sm:$0xff]  }
 0x1e6   :  { %10390 = vmatprep.mubr.bf16.mxu0 %v2489_v3  ;;  %13442 = vmatprep.subr.bf16.mxu1 %v14659_v2  ;;  %v14707_v2 = vld [vmem:[%s18608_s1 + $0x1068] sm:$0xff]  }
 0x1e7   :  { %10430 = vmatprep.mubr.bf16.mxu1 %v2493_v6  ;;  %v14708_v3 = vld [vmem:[%s18608_s1 + $0x10e8] sm:$0xff]  }
 0x1e8   :  { %13421 = vmatpush3.bf16.msra.mxu0 %v14660_v4 }
 0x1e9   :  { %13422 = vmatprep.subr.bf16.mxu0 %v14662_v7  ;;  %13443 = vmatpush3.bf16.msra.mxu1 %v14661_v5  ;;  %v14709_v5 = vld [vmem:[%s18608_s1 + $0x1028] sm:$0xff]   ;;  %v14711_v7 = vld [vmem:[%s18608_s1 + $0x1070] sm:$0xff]  }
 0x1ea   :  { %13444 = vmatprep.subr.bf16.mxu1 %v14663_v8 }
 0x1ec   :  { %13423 = vmatpush3.bf16.msra.mxu0 %v14664_v9 }
 0x1ed   :  { %13424 = vmatprep.subr.bf16.mxu0 %v14666_v11  ;;  %13445 = vmatpush3.bf16.msra.mxu1 %v14665_v10 }
 0x1ee   :  { %13446 = vmatprep.subr.bf16.mxu1 %v14667_v12  ;;  %v14710_v12 = vld [vmem:[%s18608_s1 + $0x10a8] sm:$0xff]  }
 0x1f0   :  { %13425 = vmatpush3.bf16.msra.mxu0 %v14668_v13 }
 0x1f1   :  { %13426 = vmatprep.subr.bf16.mxu0 %v14670_v15  ;;  %13447 = vmatpush3.bf16.msra.mxu1 %v14669_v14  ;;  %v14712_v14 = vld [vmem:[%s18608_s1 + $0x10f0] sm:$0xff]  }
 0x1f2   :  { %13448 = vmatprep.subr.bf16.mxu1 %v14671_v16 }
 0x1f4   :  { %13427 = vmatpush3.bf16.msra.mxu0 %v14672_v17 }
 0x1f5   :  { %13428 = vmatprep.subr.bf16.mxu0 %v14674_v19  ;;  %13449 = vmatpush3.bf16.msra.mxu1 %v14673_v18  ;;  %v14713_v18 = vld [vmem:[%s18608_s1 + $0x1030] sm:$0xff]  }
 0x1f6   :  { %v13126_v21 = vpop.f32.mrb[32].mxu0  ;;  %13450 = vmatprep.subr.bf16.mxu1 %v14675_v20  ;;  %v14715_v20 = vld [vmem:[%s18608_s1 + $0x1078] sm:$0xff]  }
 0x1f7   :  { %v13127_v23 = vpop.f32.mrb[33].mxu0  ;;  %v13148_v25 = vpop.f32.mrb[32].mxu1 }
 0x1f8   :  { %v13128_v26 = vadd.f32 %v13127_v23, %v13126_v21  ;;  %v13129_v27 = vpop.f32.mrb[34].mxu0  ;;  %v13149_v30 = vpop.f32.mrb[33].mxu1  ;;  %13429 = vmatpush3.bf16.msra.mxu0 %v14676_v22  ;;  %v14714_v22 = vld [vmem:[%s18608_s1 + $0x10b0] sm:$0xff]   ;;  %v14716_v23 = vld [vmem:[%s18608_s1 + $0x10f8] sm:$0xff]  }
 0x1f9   :  { %v13130_v31 = vpop.f32.mrb[35].mxu0  ;;  %v13150_v33 = vadd.f32 %v13149_v30, %v13148_v25  ;;  %v13151_v34 = vpop.f32.mrb[34].mxu1  ;;  %13430 = vmatprep.subr.bf16.mxu0 %v14678_v28  ;;  %13451 = vmatpush3.bf16.msra.mxu1 %v14677_v24  ;;  %v14717_v24 = vld [vmem:[%s18608_s1 + $0x1038] sm:$0xff]   ;;  %v23_v25 = vld [vmem:[%s18609_s0 + $0x40] sm:$0xff] }
 0x1fa   :  { %v9833_v32 = vadd.f32 %v13128_v26, %v16784_v46  ;;  %v13152_v37 = vpop.f32.mrb[35].mxu1  ;;  %13452 = vmatprep.subr.bf16.mxu1 %v14679_v29  ;;  %v14688_v46 = vld [vmem:[%s18608_s1 + $0x10c0] sm:$0xff]   ;;  %v2501_v26 = vrot.slane %v23_v25, %v15322_v35  ;;  %v2494_v28 = vcombine.high %v23_v25, %v23_v25  ;;  %v14718_v29 = vld [vmem:[%s18608_s1 + $0x10b8] sm:$0xff]   ;;  %v14756_v25 = vld [vmem:[%s18608_s1 + $0x1248] sm:$0xff]  }
 0x1fb   :  { %v14719_v27 = vld [vmem:[%s18608_s1 + $0x1140] sm:$0xff]  }
 0x1fc   :  { %v16895_v39 = vadd.f32 %v13150_v33, %v9833_v32  ;;  %13431 = vmatpush3.bf16.msra.mxu0 %v14680_v36  ;;  %v2509_v30 = vcombine.high %v2501_v26, %v2501_v26  ;;  %v2517_v31 = vrot.slane %v2501_v26, %v15322_v35  ;;  %v14720_v32 = vld [vmem:[%s18608_s1 + $0x11c0] sm:$0xff]   ;;  %v17022_v33 = vrot.slane %v2494_v28, %v15322_v35  ;;  %v14757_v26 = vld [vmem:[%s18608_s1 + $0x12c8] sm:$0xff]  }
 0x1fd   :  { %13432 = vmatprep.subr.bf16.mxu0 %v14682_v40  ;;  %13453 = vmatpush3.bf16.msra.mxu1 %v14681_v38  ;;  %v14721_v34 = vld [vmem:[%s18608_s1 + $0x1100] sm:$0xff]   ;;  %v14723_v40 = vld [vmem:[%s18608_s1 + $0x1148] sm:$0xff]  }
 0x1fe   :  { %13454 = vmatprep.subr.bf16.mxu1 %v14683_v41  ;;  %v2531_v36 = vrot.slane %v2509_v30, %v15322_v35  ;;  %v14722_v37 = vld [vmem:[%s18608_s1 + $0x1180] sm:$0xff]   ;;  %v2510_v38 = vcombine.high %v17022_v33, %v17022_v33  ;;  %v14759_v28 = vld [vmem:[%s18608_s1 + $0x1288] sm:$0xff]   ;;  %v14761_v30 = vld [vmem:[%s18608_s1 + $0x12d0] sm:$0xff]  }
 0x200   :  { %13433 = vmatpush3.bf16.msra.mxu0 %v14684_v42  ;;  %v2541_v41 = vcombine.high %v2531_v36, %v2531_v36  ;;  %v14724_v42 = vld [vmem:[%s18608_s1 + $0x11c8] sm:$0xff]  }
 0x201   :  { %13462 = vmatprep.subr.bf16.mxu0 %v14687_v45  ;;  %13455 = vmatpush3.bf16.msra.mxu1 %v14685_v43  ;;  %v2538_v43 = vrot.slane %v2510_v38, %v15322_v35  ;;  %v14726_v45 = vld [vmem:[%s18608_s1 + $0x1188] sm:$0xff]   ;;  %v14768_v38 = vld [vmem:[%s18608_s1 + $0x1260] sm:$0xff]  }
 0x202   :  { %13484 = vmatprep.subr.bf16.mxu1 %v14688_v46 }
 0x203   :  { %10391 = vmatmul.mubr.bf16.vlgmr.msra.gmra.mrb[60].mxu0 %v2475_v44  ;;  %v14725_v44 = vld [vmem:[%s18608_s1 + $0x1108] sm:$0xff]   ;;  %v2542_v46 = vcombine.high %v2538_v43, %v2538_v43 }
 0x204   :  { %13463 = vmatpush3.bf16.msra.mxu0 %v14689_v47  ;;  %10431 = vmatmul.mubr.bf16.vlgmr.msra.gmra.mrb[60].mxu1 %v2491_v49  ;;  %v14727_v47 = vld [vmem:[%s18608_s1 + $0x1150] sm:$0xff]  }
 0x205   :  { %13464 = vmatprep.subr.bf16.mxu0 %v14691_v50  ;;  %13485 = vmatpush3.bf16.msra.mxu1 %v14690_v48  ;;  %v14728_v48 = vld [vmem:[%s18608_s1 + $0x11d0] sm:$0xff]  }
 0x206   :  { %13486 = vmatprep.subr.bf16.mxu1 %v14692_v51  ;;  %10470 = vmatprep.mubr.bf16.mxu0 %v2531_v36  ;;  %v14729_v49 = vld [vmem:[%s18608_s1 + $0x1110] sm:$0xff]   ;;  %v14731_v51 = vld [vmem:[%s18608_s1 + $0x1158] sm:$0xff]  }
 0x207   :  { %10510 = vmatprep.mubr.bf16.mxu1 %v2541_v41  ;;  %v14730_v50 = vld [vmem:[%s18608_s1 + $0x1190] sm:$0xff]   ;;  %v14766_v36 = vld [vmem:[%s18608_s1 + $0x1218] sm:$0xff]   ;;  %v14771_v41 = vld [vmem:[%s18608_s1 + $0x12a0] sm:$0xff]  }
 0x208   :  { %13465 = vmatpush3.bf16.msra.mxu0 %v14693_v52  ;;  %v14732_v52 = vld [vmem:[%s18608_s1 + $0x11d8] sm:$0xff]  }
 0x209   :  { %13466 = vmatprep.subr.bf16.mxu0 %v14695_v54  ;;  %13487 = vmatpush3.bf16.msra.mxu1 %v14694_v53  ;;  %v14733_v53 = vld [vmem:[%s18608_s1 + $0x1118] sm:$0xff]  }
 0x20a   :  { %13488 = vmatprep.subr.bf16.mxu1 %v14696_v55  ;;  %v14734_v54 = vld [vmem:[%s18608_s1 + $0x1198] sm:$0xff]   ;;  %v14735_v55 = vld [vmem:[%s18608_s1 + $0x1160] sm:$0xff]  }
 0x20c   :  { %13467 = vmatpush3.bf16.msra.mxu0 %v14697_v56  ;;  %v14736_v56 = vld [vmem:[%s18608_s1 + $0x11e0] sm:$0xff]  }
 0x20d   :  { %13468 = vmatprep.subr.bf16.mxu0 %v14699_v58  ;;  %13489 = vmatpush3.bf16.msra.mxu1 %v14698_v57  ;;  %v14737_v57 = vld [vmem:[%s18608_s1 + $0x1120] sm:$0xff]  }
 0x20e   :  { %13490 = vmatprep.subr.bf16.mxu1 %v14700_v59  ;;  %v14738_v58 = vld [vmem:[%s18608_s1 + $0x11a0] sm:$0xff]   ;;  %v14739_v59 = vld [vmem:[%s18608_s1 + $0x1168] sm:$0xff]  }
 0x210   :  { %13469 = vmatpush3.bf16.msra.mxu0 %v14701_v60  ;;  %v14740_v60 = vld [vmem:[%s18608_s1 + $0x11e8] sm:$0xff]  }
 0x211   :  { %13470 = vmatprep.subr.bf16.mxu0 %v14703_v62  ;;  %13491 = vmatpush3.bf16.msra.mxu1 %v14702_v61  ;;  %v14741_v62 = vld [vmem:[%s18608_s1 + $0x1128] sm:$0xff]  }
 0x212   :  { %13492 = vmatprep.subr.bf16.mxu1 %v14704_v63 }
 0x214   :  { %13471 = vmatpush3.bf16.msra.mxu0 %v14705_v0  ;;  %v14742_v0 = vld [vmem:[%s18608_s1 + $0x11a8] sm:$0xff]  }
 0x215   :  { %13472 = vmatprep.subr.bf16.mxu0 %v14707_v2  ;;  %13493 = vmatpush3.bf16.msra.mxu1 %v14706_v1 }
 0x216   :  { %v13170_v4 = vpop.f32.mrb[36].mxu0  ;;  %13494 = vmatprep.subr.bf16.mxu1 %v14708_v3 }
 0x217   :  { %v13171_v6 = vpop.f32.mrb[37].mxu0  ;;  %v13192_v8 = vpop.f32.mrb[36].mxu1 }
 0x218   :  { %v13172_v9 = vadd.f32 %v13171_v6, %v13170_v4  ;;  %v13173_v10 = vpop.f32.mrb[38].mxu0  ;;  %v13193_v11 = vpop.f32.mrb[37].mxu1  ;;  %13473 = vmatpush3.bf16.msra.mxu0 %v14709_v5  ;;  %v14743_v4 = vld [vmem:[%s18608_s1 + $0x1170] sm:$0xff]  }
 0x219   :  { %v13174_v13 = vpop.f32.mrb[39].mxu0  ;;  %v13194_v16 = vadd.f32 %v13193_v11, %v13192_v8  ;;  %v13195_v17 = vpop.f32.mrb[38].mxu1  ;;  %13474 = vmatprep.subr.bf16.mxu0 %v14711_v7  ;;  %13495 = vmatpush3.bf16.msra.mxu1 %v14710_v12  ;;  %v14744_v5 = vld [vmem:[%s18608_s1 + $0x11f0] sm:$0xff]  }
 0x21a   :  { %v9913_v15 = vadd.f32 %v13172_v9, %v16895_v39  ;;  %v13196_v19 = vpop.f32.mrb[39].mxu1  ;;  %13496 = vmatprep.subr.bf16.mxu1 %v14712_v14  ;;  %v2539_v39 = vcombine.high %v2517_v31, %v2517_v31  ;;  %v14745_v11 = vld [vmem:[%s18608_s1 + $0x1130] sm:$0xff]   ;;  %v14749_v17 = vld [vmem:[%s18608_s1 + $0x1138] sm:$0xff]  }
 0x21b   :  { %v14746_v13 = vld [vmem:[%s18608_s1 + $0x11b0] sm:$0xff]   ;;  %v2524_v19 = vrot.slane %v17022_v33, %v15322_v35  ;;  %v14764_v33 = vld [vmem:[%s18608_s1 + $0x1258] sm:$0xff]  }
 0x21c   :  { %v16996_v21 = vadd.f32 %v13194_v16, %v9913_v15  ;;  %13475 = vmatpush3.bf16.msra.mxu0 %v14713_v18  ;;  %v14747_v15 = vld [vmem:[%s18608_s1 + $0x1178] sm:$0xff]  }
 0x21d   :  { %13476 = vmatprep.subr.bf16.mxu0 %v14715_v20  ;;  %13497 = vmatpush3.bf16.msra.mxu1 %v14714_v22  ;;  %v14748_v16 = vld [vmem:[%s18608_s1 + $0x11f8] sm:$0xff]   ;;  %v14752_v20 = vld [vmem:[%s18608_s1 + $0x1240] sm:$0xff]  }
 0x21e   :  { %13498 = vmatprep.subr.bf16.mxu1 %v14716_v23  ;;  %v14750_v18 = vld [vmem:[%s18608_s1 + $0x11b8] sm:$0xff]   ;;  %v14754_v22 = vld [vmem:[%s18608_s1 + $0x1200] sm:$0xff]  }
 0x21f   :  { %v14755_v23 = vld [vmem:[%s18608_s1 + $0x1280] sm:$0xff]  }
 0x220   :  { %13477 = vmatpush3.bf16.msra.mxu0 %v14717_v24  ;;  %v2540_v24 = vcombine.high %v2524_v19, %v2524_v19 }
 0x221   :  { %13506 = vmatprep.subr.bf16.mxu0 %v14719_v27  ;;  %13499 = vmatpush3.bf16.msra.mxu1 %v14718_v29  ;;  %v14758_v27 = vld [vmem:[%s18608_s1 + $0x1208] sm:$0xff]   ;;  %v14760_v29 = vld [vmem:[%s18608_s1 + $0x1250] sm:$0xff]  }
 0x222   :  { %13528 = vmatprep.subr.bf16.mxu1 %v14720_v32  ;;  %v14763_v32 = vld [vmem:[%s18608_s1 + $0x1290] sm:$0xff]  }
 0x223   :  { %10471 = vmatmul.mubr.bf16.vlgmr.msra.gmra.mrb[64].mxu0 %v2517_v31  ;;  %v14762_v31 = vld [vmem:[%s18608_s1 + $0x1210] sm:$0xff]  }
 0x224   :  { %13507 = vmatpush3.bf16.msra.mxu0 %v14721_v34  ;;  %10511 = vmatmul.mubr.bf16.vlgmr.msra.gmra.mrb[64].mxu1 %v2539_v39  ;;  %v14765_v34 = vld [vmem:[%s18608_s1 + $0x12d8] sm:$0xff]   ;;  %v14769_v39 = vld [vmem:[%s18608_s1 + $0x12e0] sm:$0xff]  }
 0x225   :  { %13508 = vmatprep.subr.bf16.mxu0 %v14723_v40  ;;  %13529 = vmatpush3.bf16.msra.mxu1 %v14722_v37  ;;  %v14767_v37 = vld [vmem:[%s18608_s1 + $0x1298] sm:$0xff]   ;;  %v14770_v40 = vld [vmem:[%s18608_s1 + $0x1220] sm:$0xff]  }
 0x226   :  { %10550 = vmatprep.mubr.bf16.mxu0 %v2538_v43  ;;  %13530 = vmatprep.subr.bf16.mxu1 %v14724_v42  ;;  %v14772_v42 = vld [vmem:[%s18608_s1 + $0x1268] sm:$0xff]  }
 0x227   :  { %10590 = vmatprep.mubr.bf16.mxu1 %v2542_v46  ;;  %v14773_v43 = vld [vmem:[%s18608_s1 + $0x12e8] sm:$0xff]  }
 0x228   :  { %13509 = vmatpush3.bf16.msra.mxu0 %v14725_v44 }
 0x229   :  { %13510 = vmatprep.subr.bf16.mxu0 %v14727_v47  ;;  %13531 = vmatpush3.bf16.msra.mxu1 %v14726_v45  ;;  %v14774_v45 = vld [vmem:[%s18608_s1 + $0x1228] sm:$0xff]   ;;  %v14776_v47 = vld [vmem:[%s18608_s1 + $0x1270] sm:$0xff]  }
 0x22a   :  { %13532 = vmatprep.subr.bf16.mxu1 %v14728_v48 }
 0x22c   :  { %13511 = vmatpush3.bf16.msra.mxu0 %v14729_v49 }
 0x22d   :  { %13512 = vmatprep.subr.bf16.mxu0 %v14731_v51  ;;  %13533 = vmatpush3.bf16.msra.mxu1 %v14730_v50 }
 0x22e   :  { %13534 = vmatprep.subr.bf16.mxu1 %v14732_v52  ;;  %v14775_v52 = vld [vmem:[%s18608_s1 + $0x12a8] sm:$0xff]  }
 0x230   :  { %13513 = vmatpush3.bf16.msra.mxu0 %v14733_v53 }
 0x231   :  { %13514 = vmatprep.subr.bf16.mxu0 %v14735_v55  ;;  %13535 = vmatpush3.bf16.msra.mxu1 %v14734_v54  ;;  %v14777_v54 = vld [vmem:[%s18608_s1 + $0x12f0] sm:$0xff]  }
 0x232   :  { %13536 = vmatprep.subr.bf16.mxu1 %v14736_v56 }
 0x234   :  { %13515 = vmatpush3.bf16.msra.mxu0 %v14737_v57 }
 0x235   :  { %13516 = vmatprep.subr.bf16.mxu0 %v14739_v59  ;;  %13537 = vmatpush3.bf16.msra.mxu1 %v14738_v58  ;;  %v14778_v58 = vld [vmem:[%s18608_s1 + $0x1230] sm:$0xff]  }
 0x236   :  { %v13214_v61 = vpop.f32.mrb[40].mxu0  ;;  %13538 = vmatprep.subr.bf16.mxu1 %v14740_v60  ;;  %v14780_v60 = vld [vmem:[%s18608_s1 + $0x1278] sm:$0xff]  }
 0x237   :  { %v13215_v63 = vpop.f32.mrb[41].mxu0  ;;  %v13236_v1 = vpop.f32.mrb[40].mxu1 }
 0x238   :  { %v13216_v2 = vadd.f32 %v13215_v63, %v13214_v61  ;;  %v13217_v3 = vpop.f32.mrb[42].mxu0  ;;  %v13237_v6 = vpop.f32.mrb[41].mxu1  ;;  %13517 = vmatpush3.bf16.msra.mxu0 %v14741_v62  ;;  %v14779_v62 = vld [vmem:[%s18608_s1 + $0x12b0] sm:$0xff]   ;;  %v14781_v63 = vld [vmem:[%s18608_s1 + $0x12f8] sm:$0xff]  }
 0x239   :  { %v13218_v7 = vpop.f32.mrb[43].mxu0  ;;  %v13238_v9 = vadd.f32 %v13237_v6, %v13236_v1  ;;  %v13239_v10 = vpop.f32.mrb[42].mxu1  ;;  %13518 = vmatprep.subr.bf16.mxu0 %v14743_v4  ;;  %13539 = vmatpush3.bf16.msra.mxu1 %v14742_v0  ;;  %v14782_v0 = vld [vmem:[%s18608_s1 + $0x1238] sm:$0xff]   ;;  %v24_v1 = vld [vmem:[%s18609_s0 + $0x48] sm:$0xff]  ;;  %v14784_v3 = vld [vmem:[%s18608_s1 + $0x1340] sm:$0xff]  }
 0x23a   :  { %v9993_v8 = vadd.f32 %v13216_v2, %v16996_v21  ;;  %v13240_v12 = vpop.f32.mrb[43].mxu1  ;;  %13540 = vmatprep.subr.bf16.mxu1 %v14744_v5  ;;  %v14753_v21 = vld [vmem:[%s18608_s1 + $0x12c0] sm:$0xff]   ;;  %v2550_v2 = vrot.slane %v24_v1, %v15322_v35  ;;  %v2543_v4 = vcombine.high %v24_v1, %v24_v1  ;;  %v14783_v5 = vld [vmem:[%s18608_s1 + $0x12b8] sm:$0xff]   ;;  %v14821_v1 = vld [vmem:[%s18608_s1 + $0x1448] sm:$0xff]  }
 0x23b   :  { %v14786_v10 = vld [vmem:[%s18608_s1 + $0x1300] sm:$0xff]  }
 0x23c   :  { %v17107_v14 = vadd.f32 %v13238_v9, %v9993_v8  ;;  %13519 = vmatpush3.bf16.msra.mxu0 %v14745_v11  ;;  %v2558_v6 = vcombine.high %v2550_v2, %v2550_v2  ;;  %v2566_v7 = vrot.slane %v2550_v2, %v15322_v35  ;;  %v14785_v8 = vld [vmem:[%s18608_s1 + $0x13c0] sm:$0xff]   ;;  %v17234_v9 = vrot.slane %v2543_v4, %v15322_v35  ;;  %v14822_v2 = vld [vmem:[%s18608_s1 + $0x14c8] sm:$0xff]  }
 0x23d   :  { %13520 = vmatprep.subr.bf16.mxu0 %v14747_v15  ;;  %13541 = vmatpush3.bf16.msra.mxu1 %v14746_v13  ;;  %v14787_v12 = vld [vmem:[%s18608_s1 + $0x1380] sm:$0xff]   ;;  %v14788_v15 = vld [vmem:[%s18608_s1 + $0x1348] sm:$0xff]  }
 0x23e   :  { %13542 = vmatprep.subr.bf16.mxu1 %v14748_v16  ;;  %v2580_v11 = vrot.slane %v2558_v6, %v15322_v35  ;;  %v2559_v13 = vcombine.high %v17234_v9, %v17234_v9  ;;  %v14824_v4 = vld [vmem:[%s18608_s1 + $0x1488] sm:$0xff]   ;;  %v14826_v6 = vld [vmem:[%s18608_s1 + $0x14d0] sm:$0xff]  }
 0x240   :  { %13521 = vmatpush3.bf16.msra.mxu0 %v14749_v17  ;;  %v2590_v16 = vcombine.high %v2580_v11, %v2580_v11  ;;  %v14789_v17 = vld [vmem:[%s18608_s1 + $0x13c8] sm:$0xff]  }
 0x241   :  { %13550 = vmatprep.subr.bf16.mxu0 %v14752_v20  ;;  %13543 = vmatpush3.bf16.msra.mxu1 %v14750_v18  ;;  %v2587_v18 = vrot.slane %v2559_v13, %v15322_v35  ;;  %v14791_v20 = vld [vmem:[%s18608_s1 + $0x1388] sm:$0xff]   ;;  %v14833_v13 = vld [vmem:[%s18608_s1 + $0x1460] sm:$0xff]  }
 0x242   :  { %13572 = vmatprep.subr.bf16.mxu1 %v14753_v21 }
 0x243   :  { %10551 = vmatmul.mubr.bf16.vlgmr.msra.gmra.mrb[68].mxu0 %v2524_v19  ;;  %v14790_v19 = vld [vmem:[%s18608_s1 + $0x1308] sm:$0xff]   ;;  %v2591_v21 = vcombine.high %v2587_v18, %v2587_v18 }
 0x244   :  { %13551 = vmatpush3.bf16.msra.mxu0 %v14754_v22  ;;  %10591 = vmatmul.mubr.bf16.vlgmr.msra.gmra.mrb[68].mxu1 %v2540_v24  ;;  %v14792_v22 = vld [vmem:[%s18608_s1 + $0x1350] sm:$0xff]  }
 0x245   :  { %13552 = vmatprep.subr.bf16.mxu0 %v14756_v25  ;;  %13573 = vmatpush3.bf16.msra.mxu1 %v14755_v23  ;;  %v14793_v23 = vld [vmem:[%s18608_s1 + $0x13d0] sm:$0xff]  }
 0x246   :  { %13574 = vmatprep.subr.bf16.mxu1 %v14757_v26  ;;  %10630 = vmatprep.mubr.bf16.mxu0 %v2580_v11  ;;  %v14794_v24 = vld [vmem:[%s18608_s1 + $0x1310] sm:$0xff]   ;;  %v14796_v26 = vld [vmem:[%s18608_s1 + $0x1358] sm:$0xff]  }
 0x247   :  { %10670 = vmatprep.mubr.bf16.mxu1 %v2590_v16  ;;  %v14795_v25 = vld [vmem:[%s18608_s1 + $0x1390] sm:$0xff]   ;;  %v14831_v11 = vld [vmem:[%s18608_s1 + $0x1418] sm:$0xff]   ;;  %v14836_v16 = vld [vmem:[%s18608_s1 + $0x14a0] sm:$0xff]  }
 0x248   :  { %13553 = vmatpush3.bf16.msra.mxu0 %v14758_v27  ;;  %v14797_v27 = vld [vmem:[%s18608_s1 + $0x13d8] sm:$0xff]  }
 0x249   :  { %13554 = vmatprep.subr.bf16.mxu0 %v14760_v29  ;;  %13575 = vmatpush3.bf16.msra.mxu1 %v14759_v28  ;;  %v14798_v28 = vld [vmem:[%s18608_s1 + $0x1318] sm:$0xff]  }
 0x24a   :  { %13576 = vmatprep.subr.bf16.mxu1 %v14761_v30  ;;  %v14799_v29 = vld [vmem:[%s18608_s1 + $0x1398] sm:$0xff]   ;;  %v14800_v30 = vld [vmem:[%s18608_s1 + $0x1360] sm:$0xff]  }
 0x24c   :  { %13555 = vmatpush3.bf16.msra.mxu0 %v14762_v31  ;;  %v14801_v31 = vld [vmem:[%s18608_s1 + $0x13e0] sm:$0xff]  }
 0x24d   :  { %13556 = vmatprep.subr.bf16.mxu0 %v14764_v33  ;;  %13577 = vmatpush3.bf16.msra.mxu1 %v14763_v32  ;;  %v14802_v32 = vld [vmem:[%s18608_s1 + $0x1320] sm:$0xff]  }
 0x24e   :  { %13578 = vmatprep.subr.bf16.mxu1 %v14765_v34  ;;  %v14803_v33 = vld [vmem:[%s18608_s1 + $0x13a0] sm:$0xff]   ;;  %v14804_v34 = vld [vmem:[%s18608_s1 + $0x1368] sm:$0xff]  }
 0x250   :  { %13557 = vmatpush3.bf16.msra.mxu0 %v14766_v36  ;;  %v14805_v36 = vld [vmem:[%s18608_s1 + $0x13e8] sm:$0xff]  }
 0x251   :  { %13558 = vmatprep.subr.bf16.mxu0 %v14768_v38  ;;  %13579 = vmatpush3.bf16.msra.mxu1 %v14767_v37  ;;  %v14806_v38 = vld [vmem:[%s18608_s1 + $0x1328] sm:$0xff]  }
 0x252   :  { %13580 = vmatprep.subr.bf16.mxu1 %v14769_v39 }
 0x254   :  { %13559 = vmatpush3.bf16.msra.mxu0 %v14770_v40  ;;  %v14807_v40 = vld [vmem:[%s18608_s1 + $0x13a8] sm:$0xff]  }
 0x255   :  { %13560 = vmatprep.subr.bf16.mxu0 %v14772_v42  ;;  %13581 = vmatpush3.bf16.msra.mxu1 %v14771_v41 }
 0x256   :  { %v13258_v44 = vpop.f32.mrb[44].mxu0  ;;  %13582 = vmatprep.subr.bf16.mxu1 %v14773_v43 }
 0x257   :  { %v13259_v46 = vpop.f32.mrb[45].mxu0  ;;  %v13280_v48 = vpop.f32.mrb[44].mxu1 }
 0x258   :  { %v13260_v49 = vadd.f32 %v13259_v46, %v13258_v44  ;;  %v13261_v50 = vpop.f32.mrb[46].mxu0  ;;  %v13281_v51 = vpop.f32.mrb[45].mxu1  ;;  %13561 = vmatpush3.bf16.msra.mxu0 %v14774_v45  ;;  %v14808_v44 = vld [vmem:[%s18608_s1 + $0x1370] sm:$0xff]  }
 0x259   :  { %v13262_v53 = vpop.f32.mrb[47].mxu0  ;;  %v13282_v56 = vadd.f32 %v13281_v51, %v13280_v48  ;;  %v13283_v57 = vpop.f32.mrb[46].mxu1  ;;  %13562 = vmatprep.subr.bf16.mxu0 %v14776_v47  ;;  %13583 = vmatpush3.bf16.msra.mxu1 %v14775_v52  ;;  %v14809_v45 = vld [vmem:[%s18608_s1 + $0x13f0] sm:$0xff]  }
 0x25a   :  { %v10073_v55 = vadd.f32 %v13260_v49, %v17107_v14  ;;  %v13284_v59 = vpop.f32.mrb[47].mxu1  ;;  %13584 = vmatprep.subr.bf16.mxu1 %v14777_v54  ;;  %v2588_v14 = vcombine.high %v2566_v7, %v2566_v7  ;;  %v14810_v51 = vld [vmem:[%s18608_s1 + $0x1330] sm:$0xff]   ;;  %v14814_v57 = vld [vmem:[%s18608_s1 + $0x1338] sm:$0xff]  }
 0x25b   :  { %v14811_v53 = vld [vmem:[%s18608_s1 + $0x13b0] sm:$0xff]   ;;  %v2573_v59 = vrot.slane %v17234_v9, %v15322_v35  ;;  %v14829_v9 = vld [vmem:[%s18608_s1 + $0x1458] sm:$0xff]  }
 0x25c   :  { %v17208_v61 = vadd.f32 %v13282_v56, %v10073_v55  ;;  %13563 = vmatpush3.bf16.msra.mxu0 %v14778_v58  ;;  %v14812_v55 = vld [vmem:[%s18608_s1 + $0x1378] sm:$0xff]  }
 0x25d   :  { %13564 = vmatprep.subr.bf16.mxu0 %v14780_v60  ;;  %13585 = vmatpush3.bf16.msra.mxu1 %v14779_v62  ;;  %v14813_v56 = vld [vmem:[%s18608_s1 + $0x13f8] sm:$0xff]   ;;  %v14817_v60 = vld [vmem:[%s18608_s1 + $0x1440] sm:$0xff]  }
 0x25e   :  { %13586 = vmatprep.subr.bf16.mxu1 %v14781_v63  ;;  %v14815_v58 = vld [vmem:[%s18608_s1 + $0x13b8] sm:$0xff]   ;;  %v14819_v62 = vld [vmem:[%s18608_s1 + $0x1400] sm:$0xff]  }
 0x25f   :  { %v14820_v63 = vld [vmem:[%s18608_s1 + $0x1480] sm:$0xff]  }
 0x260   :  { %13565 = vmatpush3.bf16.msra.mxu0 %v14782_v0  ;;  %v2589_v0 = vcombine.high %v2573_v59, %v2573_v59 }
 0x261   :  { %13594 = vmatprep.subr.bf16.mxu0 %v14784_v3  ;;  %13587 = vmatpush3.bf16.msra.mxu1 %v14783_v5  ;;  %v14823_v3 = vld [vmem:[%s18608_s1 + $0x1408] sm:$0xff]   ;;  %v14825_v5 = vld [vmem:[%s18608_s1 + $0x1450] sm:$0xff]  }
 0x262   :  { %13616 = vmatprep.subr.bf16.mxu1 %v14785_v8  ;;  %v14828_v8 = vld [vmem:[%s18608_s1 + $0x1490] sm:$0xff]  }
 0x263   :  { %10631 = vmatmul.mubr.bf16.vlgmr.msra.gmra.mrb[72].mxu0 %v2566_v7  ;;  %v14827_v7 = vld [vmem:[%s18608_s1 + $0x1410] sm:$0xff]  }
 0x264   :  { %13595 = vmatpush3.bf16.msra.mxu0 %v14786_v10  ;;  %10671 = vmatmul.mubr.bf16.vlgmr.msra.gmra.mrb[72].mxu1 %v2588_v14  ;;  %v14830_v10 = vld [vmem:[%s18608_s1 + $0x14d8] sm:$0xff]   ;;  %v14834_v14 = vld [vmem:[%s18608_s1 + $0x14e0] sm:$0xff]  }
 0x265   :  { %13596 = vmatprep.subr.bf16.mxu0 %v14788_v15  ;;  %13617 = vmatpush3.bf16.msra.mxu1 %v14787_v12  ;;  %v14832_v12 = vld [vmem:[%s18608_s1 + $0x1498] sm:$0xff]   ;;  %v14835_v15 = vld [vmem:[%s18608_s1 + $0x1420] sm:$0xff]  }
 0x266   :  { %10710 = vmatprep.mubr.bf16.mxu0 %v2587_v18  ;;  %13618 = vmatprep.subr.bf16.mxu1 %v14789_v17  ;;  %v14837_v17 = vld [vmem:[%s18608_s1 + $0x1468] sm:$0xff]  }
 0x267   :  { %10750 = vmatprep.mubr.bf16.mxu1 %v2591_v21  ;;  %v14838_v18 = vld [vmem:[%s18608_s1 + $0x14e8] sm:$0xff]  }
 0x268   :  { %13597 = vmatpush3.bf16.msra.mxu0 %v14790_v19 }
 0x269   :  { %13598 = vmatprep.subr.bf16.mxu0 %v14792_v22  ;;  %13619 = vmatpush3.bf16.msra.mxu1 %v14791_v20  ;;  %v14839_v20 = vld [vmem:[%s18608_s1 + $0x1428] sm:$0xff]   ;;  %v14841_v22 = vld [vmem:[%s18608_s1 + $0x1470] sm:$0xff]  }
 0x26a   :  { %13620 = vmatprep.subr.bf16.mxu1 %v14793_v23 }
 0x26c   :  { %13599 = vmatpush3.bf16.msra.mxu0 %v14794_v24 }
 0x26d   :  { %13600 = vmatprep.subr.bf16.mxu0 %v14796_v26  ;;  %13621 = vmatpush3.bf16.msra.mxu1 %v14795_v25 }
 0x26e   :  { %13622 = vmatprep.subr.bf16.mxu1 %v14797_v27  ;;  %v14840_v27 = vld [vmem:[%s18608_s1 + $0x14a8] sm:$0xff]  }
 0x270   :  { %13601 = vmatpush3.bf16.msra.mxu0 %v14798_v28 }
 0x271   :  { %13602 = vmatprep.subr.bf16.mxu0 %v14800_v30  ;;  %13623 = vmatpush3.bf16.msra.mxu1 %v14799_v29  ;;  %v14842_v29 = vld [vmem:[%s18608_s1 + $0x14f0] sm:$0xff]  }
 0x272   :  { %13624 = vmatprep.subr.bf16.mxu1 %v14801_v31 }
 0x274   :  { %13603 = vmatpush3.bf16.msra.mxu0 %v14802_v32 }
 0x275   :  { %13604 = vmatprep.subr.bf16.mxu0 %v14804_v34  ;;  %13625 = vmatpush3.bf16.msra.mxu1 %v14803_v33  ;;  %v14843_v33 = vld [vmem:[%s18608_s1 + $0x1430] sm:$0xff]  }
 0x276   :  { %v13302_v37 = vpop.f32.mrb[48].mxu0  ;;  %13626 = vmatprep.subr.bf16.mxu1 %v14805_v36  ;;  %v14845_v36 = vld [vmem:[%s18608_s1 + $0x1478] sm:$0xff]  }
 0x277   :  { %v13303_v39 = vpop.f32.mrb[49].mxu0  ;;  %v13324_v41 = vpop.f32.mrb[48].mxu1 }
 0x278   :  { %v13304_v42 = vadd.f32 %v13303_v39, %v13302_v37  ;;  %v13305_v43 = vpop.f32.mrb[50].mxu0  ;;  %v13325_v46 = vpop.f32.mrb[49].mxu1  ;;  %13605 = vmatpush3.bf16.msra.mxu0 %v14806_v38  ;;  %v14844_v38 = vld [vmem:[%s18608_s1 + $0x14b0] sm:$0xff]   ;;  %v14846_v39 = vld [vmem:[%s18608_s1 + $0x14f8] sm:$0xff]  }
 0x279   :  { %v13306_v47 = vpop.f32.mrb[51].mxu0  ;;  %v13326_v49 = vadd.f32 %v13325_v46, %v13324_v41  ;;  %v13327_v50 = vpop.f32.mrb[50].mxu1  ;;  %13606 = vmatprep.subr.bf16.mxu0 %v14808_v44  ;;  %13627 = vmatpush3.bf16.msra.mxu1 %v14807_v40  ;;  %v14847_v40 = vld [vmem:[%s18608_s1 + $0x1438] sm:$0xff]   ;;  %v25_v41 = vld [vmem:[%s18609_s0 + $0x50] sm:$0xff]  ;;  %v14849_v43 = vld [vmem:[%s18608_s1 + $0x1540] sm:$0xff]  }
 0x27a   :  { %v10153_v48 = vadd.f32 %v13304_v42, %v17208_v61  ;;  %v13328_v52 = vpop.f32.mrb[51].mxu1  ;;  %13628 = vmatprep.subr.bf16.mxu1 %v14809_v45  ;;  %v14818_v61 = vld [vmem:[%s18608_s1 + $0x14c0] sm:$0xff]   ;;  %v2599_v42 = vrot.slane %v25_v41, %v15322_v35  ;;  %v2592_v44 = vcombine.high %v25_v41, %v25_v41  ;;  %v14848_v45 = vld [vmem:[%s18608_s1 + $0x14b8] sm:$0xff]   ;;  %v14886_v41 = vld [vmem:[%s18608_s1 + $0x1648] sm:$0xff]  }
 0x27b   :  { %v14851_v50 = vld [vmem:[%s18608_s1 + $0x1500] sm:$0xff]  }
 0x27c   :  { %v17319_v54 = vadd.f32 %v13326_v49, %v10153_v48  ;;  %13607 = vmatpush3.bf16.msra.mxu0 %v14810_v51  ;;  %v2607_v46 = vcombine.high %v2599_v42, %v2599_v42  ;;  %v2615_v47 = vrot.slane %v2599_v42, %v15322_v35  ;;  %v14850_v48 = vld [vmem:[%s18608_s1 + $0x15c0] sm:$0xff]   ;;  %v17446_v49 = vrot.slane %v2592_v44, %v15322_v35  ;;  %v14887_v42 = vld [vmem:[%s18608_s1 + $0x16c8] sm:$0xff]  }
 0x27d   :  { %13608 = vmatprep.subr.bf16.mxu0 %v14812_v55  ;;  %13629 = vmatpush3.bf16.msra.mxu1 %v14811_v53  ;;  %v14852_v52 = vld [vmem:[%s18608_s1 + $0x1580] sm:$0xff]   ;;  %v14853_v55 = vld [vmem:[%s18608_s1 + $0x1548] sm:$0xff]  }
 0x27e   :  { %13630 = vmatprep.subr.bf16.mxu1 %v14813_v56  ;;  %v2629_v51 = vrot.slane %v2607_v46, %v15322_v35  ;;  %v2608_v53 = vcombine.high %v17446_v49, %v17446_v49  ;;  %v14889_v44 = vld [vmem:[%s18608_s1 + $0x1688] sm:$0xff]   ;;  %v14891_v46 = vld [vmem:[%s18608_s1 + $0x16d0] sm:$0xff]  }
 0x280   :  { %13609 = vmatpush3.bf16.msra.mxu0 %v14814_v57  ;;  %v2639_v56 = vcombine.high %v2629_v51, %v2629_v51  ;;  %v14854_v57 = vld [vmem:[%s18608_s1 + $0x15c8] sm:$0xff]  }
 0x281   :  { %13638 = vmatprep.subr.bf16.mxu0 %v14817_v60  ;;  %13631 = vmatpush3.bf16.msra.mxu1 %v14815_v58  ;;  %v2636_v58 = vrot.slane %v2608_v53, %v15322_v35  ;;  %v14856_v60 = vld [vmem:[%s18608_s1 + $0x1588] sm:$0xff]   ;;  %v14898_v53 = vld [vmem:[%s18608_s1 + $0x1660] sm:$0xff]  }
 0x282   :  { %13660 = vmatprep.subr.bf16.mxu1 %v14818_v61 }
 0x283   :  { %10711 = vmatmul.mubr.bf16.vlgmr.msra.gmra.mrb[76].mxu0 %v2573_v59  ;;  %v14855_v59 = vld [vmem:[%s18608_s1 + $0x1508] sm:$0xff]   ;;  %v2640_v61 = vcombine.high %v2636_v58, %v2636_v58 }
 0x284   :  { %13639 = vmatpush3.bf16.msra.mxu0 %v14819_v62  ;;  %10751 = vmatmul.mubr.bf16.vlgmr.msra.gmra.mrb[76].mxu1 %v2589_v0  ;;  %v14857_v62 = vld [vmem:[%s18608_s1 + $0x1550] sm:$0xff]  }
 0x285   :  { %13640 = vmatprep.subr.bf16.mxu0 %v14821_v1  ;;  %13661 = vmatpush3.bf16.msra.mxu1 %v14820_v63  ;;  %v14858_v63 = vld [vmem:[%s18608_s1 + $0x15d0] sm:$0xff]  }
 0x286   :  { %13662 = vmatprep.subr.bf16.mxu1 %v14822_v2  ;;  %10790 = vmatprep.mubr.bf16.mxu0 %v2629_v51  ;;  %v14859_v0 = vld [vmem:[%s18608_s1 + $0x1510] sm:$0xff]   ;;  %v14861_v2 = vld [vmem:[%s18608_s1 + $0x1558] sm:$0xff]  }
 0x287   :  { %10830 = vmatprep.mubr.bf16.mxu1 %v2639_v56  ;;  %v14860_v1 = vld [vmem:[%s18608_s1 + $0x1590] sm:$0xff]   ;;  %v14896_v51 = vld [vmem:[%s18608_s1 + $0x1618] sm:$0xff]   ;;  %v14901_v56 = vld [vmem:[%s18608_s1 + $0x16a0] sm:$0xff]  }
 0x288   :  { %13641 = vmatpush3.bf16.msra.mxu0 %v14823_v3  ;;  %v14862_v3 = vld [vmem:[%s18608_s1 + $0x15d8] sm:$0xff]  }
 0x289   :  { %13642 = vmatprep.subr.bf16.mxu0 %v14825_v5  ;;  %13663 = vmatpush3.bf16.msra.mxu1 %v14824_v4  ;;  %v14863_v4 = vld [vmem:[%s18608_s1 + $0x1518] sm:$0xff]  }
 0x28a   :  { %13664 = vmatprep.subr.bf16.mxu1 %v14826_v6  ;;  %v14864_v5 = vld [vmem:[%s18608_s1 + $0x1598] sm:$0xff]   ;;  %v14865_v6 = vld [vmem:[%s18608_s1 + $0x1560] sm:$0xff]  }
 0x28c   :  { %13643 = vmatpush3.bf16.msra.mxu0 %v14827_v7  ;;  %v14866_v7 = vld [vmem:[%s18608_s1 + $0x15e0] sm:$0xff]  }
 0x28d   :  { %13644 = vmatprep.subr.bf16.mxu0 %v14829_v9  ;;  %13665 = vmatpush3.bf16.msra.mxu1 %v14828_v8  ;;  %v14867_v8 = vld [vmem:[%s18608_s1 + $0x1520] sm:$0xff]  }
 0x28e   :  { %13666 = vmatprep.subr.bf16.mxu1 %v14830_v10  ;;  %v14868_v9 = vld [vmem:[%s18608_s1 + $0x15a0] sm:$0xff]   ;;  %v14869_v10 = vld [vmem:[%s18608_s1 + $0x1568] sm:$0xff]  }
 0x290   :  { %13645 = vmatpush3.bf16.msra.mxu0 %v14831_v11  ;;  %v14870_v11 = vld [vmem:[%s18608_s1 + $0x15e8] sm:$0xff]  }
 0x291   :  { %13646 = vmatprep.subr.bf16.mxu0 %v14833_v13  ;;  %13667 = vmatpush3.bf16.msra.mxu1 %v14832_v12  ;;  %v14871_v13 = vld [vmem:[%s18608_s1 + $0x1528] sm:$0xff]  }
 0x292   :  { %13668 = vmatprep.subr.bf16.mxu1 %v14834_v14 }
 0x294   :  { %13647 = vmatpush3.bf16.msra.mxu0 %v14835_v15  ;;  %v14872_v15 = vld [vmem:[%s18608_s1 + $0x15a8] sm:$0xff]  }
 0x295   :  { %13648 = vmatprep.subr.bf16.mxu0 %v14837_v17  ;;  %13669 = vmatpush3.bf16.msra.mxu1 %v14836_v16 }
 0x296   :  { %v13346_v19 = vpop.f32.mrb[52].mxu0  ;;  %13670 = vmatprep.subr.bf16.mxu1 %v14838_v18 }
 0x297   :  { %v13347_v21 = vpop.f32.mrb[53].mxu0  ;;  %v13368_v23 = vpop.f32.mrb[52].mxu1 }
 0x298   :  { %v13348_v24 = vadd.f32 %v13347_v21, %v13346_v19  ;;  %v13349_v25 = vpop.f32.mrb[54].mxu0  ;;  %v13369_v26 = vpop.f32.mrb[53].mxu1  ;;  %13649 = vmatpush3.bf16.msra.mxu0 %v14839_v20  ;;  %v14873_v19 = vld [vmem:[%s18608_s1 + $0x1570] sm:$0xff]  }
 0x299   :  { %v13350_v28 = vpop.f32.mrb[55].mxu0  ;;  %v13370_v31 = vadd.f32 %v13369_v26, %v13368_v23  ;;  %v13371_v32 = vpop.f32.mrb[54].mxu1  ;;  %13650 = vmatprep.subr.bf16.mxu0 %v14841_v22  ;;  %13671 = vmatpush3.bf16.msra.mxu1 %v14840_v27  ;;  %v14874_v20 = vld [vmem:[%s18608_s1 + $0x15f0] sm:$0xff]  }
 0x29a   :  { %v10233_v30 = vadd.f32 %v13348_v24, %v17319_v54  ;;  %v13372_v34 = vpop.f32.mrb[55].mxu1  ;;  %13672 = vmatprep.subr.bf16.mxu1 %v14842_v29  ;;  %v2637_v54 = vcombine.high %v2615_v47, %v2615_v47  ;;  %v14875_v26 = vld [vmem:[%s18608_s1 + $0x1530] sm:$0xff]   ;;  %v14879_v32 = vld [vmem:[%s18608_s1 + $0x1538] sm:$0xff]  }
 0x29b   :  { %v14876_v28 = vld [vmem:[%s18608_s1 + $0x15b0] sm:$0xff]   ;;  %v2622_v34 = vrot.slane %v17446_v49, %v15322_v35  ;;  %v14894_v49 = vld [vmem:[%s18608_s1 + $0x1658] sm:$0xff]  }
 0x29c   :  { %v17420_v37 = vadd.f32 %v13370_v31, %v10233_v30  ;;  %13651 = vmatpush3.bf16.msra.mxu0 %v14843_v33  ;;  %v14877_v30 = vld [vmem:[%s18608_s1 + $0x1578] sm:$0xff]  }
 0x29d   :  { %13652 = vmatprep.subr.bf16.mxu0 %v14845_v36  ;;  %13673 = vmatpush3.bf16.msra.mxu1 %v14844_v38  ;;  %v14878_v31 = vld [vmem:[%s18608_s1 + $0x15f8] sm:$0xff]   ;;  %v14882_v36 = vld [vmem:[%s18608_s1 + $0x1640] sm:$0xff]  }
 0x29e   :  { %13674 = vmatprep.subr.bf16.mxu1 %v14846_v39  ;;  %v14880_v33 = vld [vmem:[%s18608_s1 + $0x15b8] sm:$0xff]   ;;  %v14884_v38 = vld [vmem:[%s18608_s1 + $0x1600] sm:$0xff]  }
 0x29f   :  { %v14885_v39 = vld [vmem:[%s18608_s1 + $0x1680] sm:$0xff]  }
 0x2a0   :  { %13653 = vmatpush3.bf16.msra.mxu0 %v14847_v40  ;;  %v2638_v40 = vcombine.high %v2622_v34, %v2622_v34 }
 0x2a1   :  { %13682 = vmatprep.subr.bf16.mxu0 %v14849_v43  ;;  %13675 = vmatpush3.bf16.msra.mxu1 %v14848_v45  ;;  %v14888_v43 = vld [vmem:[%s18608_s1 + $0x1608] sm:$0xff]   ;;  %v14890_v45 = vld [vmem:[%s18608_s1 + $0x1650] sm:$0xff]  }
 0x2a2   :  { %13704 = vmatprep.subr.bf16.mxu1 %v14850_v48  ;;  %v14893_v48 = vld [vmem:[%s18608_s1 + $0x1690] sm:$0xff]  }
 0x2a3   :  { %10791 = vmatmul.mubr.bf16.vlgmr.msra.gmra.mrb[80].mxu0 %v2615_v47  ;;  %v14892_v47 = vld [vmem:[%s18608_s1 + $0x1610] sm:$0xff]  }
 0x2a4   :  { %13683 = vmatpush3.bf16.msra.mxu0 %v14851_v50  ;;  %10831 = vmatmul.mubr.bf16.vlgmr.msra.gmra.mrb[80].mxu1 %v2637_v54  ;;  %v14895_v50 = vld [vmem:[%s18608_s1 + $0x16d8] sm:$0xff]   ;;  %v14899_v54 = vld [vmem:[%s18608_s1 + $0x16e0] sm:$0xff]  }
 0x2a5   :  { %13684 = vmatprep.subr.bf16.mxu0 %v14853_v55  ;;  %13705 = vmatpush3.bf16.msra.mxu1 %v14852_v52  ;;  %v14897_v52 = vld [vmem:[%s18608_s1 + $0x1698] sm:$0xff]   ;;  %v14900_v55 = vld [vmem:[%s18608_s1 + $0x1620] sm:$0xff]  }
 0x2a6   :  { %10870 = vmatprep.mubr.bf16.mxu0 %v2636_v58  ;;  %13706 = vmatprep.subr.bf16.mxu1 %v14854_v57  ;;  %v14902_v57 = vld [vmem:[%s18608_s1 + $0x1668] sm:$0xff]  }
 0x2a7   :  { %10910 = vmatprep.mubr.bf16.mxu1 %v2640_v61  ;;  %v14903_v58 = vld [vmem:[%s18608_s1 + $0x16e8] sm:$0xff]  }
 0x2a8   :  { %13685 = vmatpush3.bf16.msra.mxu0 %v14855_v59 }
 0x2a9   :  { %13686 = vmatprep.subr.bf16.mxu0 %v14857_v62  ;;  %13707 = vmatpush3.bf16.msra.mxu1 %v14856_v60  ;;  %v14904_v60 = vld [vmem:[%s18608_s1 + $0x1628] sm:$0xff]   ;;  %v14906_v62 = vld [vmem:[%s18608_s1 + $0x1670] sm:$0xff]  }
 0x2aa   :  { %13708 = vmatprep.subr.bf16.mxu1 %v14858_v63 }
 0x2ac   :  { %13687 = vmatpush3.bf16.msra.mxu0 %v14859_v0 }
 0x2ad   :  { %13688 = vmatprep.subr.bf16.mxu0 %v14861_v2  ;;  %13709 = vmatpush3.bf16.msra.mxu1 %v14860_v1 }
 0x2ae   :  { %13710 = vmatprep.subr.bf16.mxu1 %v14862_v3  ;;  %v14905_v3 = vld [vmem:[%s18608_s1 + $0x16a8] sm:$0xff]  }
 0x2b0   :  { %13689 = vmatpush3.bf16.msra.mxu0 %v14863_v4 }
 0x2b1   :  { %13690 = vmatprep.subr.bf16.mxu0 %v14865_v6  ;;  %13711 = vmatpush3.bf16.msra.mxu1 %v14864_v5  ;;  %v14907_v5 = vld [vmem:[%s18608_s1 + $0x16f0] sm:$0xff]  }
 0x2b2   :  { %13712 = vmatprep.subr.bf16.mxu1 %v14866_v7 }
 0x2b4   :  { %13691 = vmatpush3.bf16.msra.mxu0 %v14867_v8 }
 0x2b5   :  { %13692 = vmatprep.subr.bf16.mxu0 %v14869_v10  ;;  %13713 = vmatpush3.bf16.msra.mxu1 %v14868_v9  ;;  %v14908_v9 = vld [vmem:[%s18608_s1 + $0x1630] sm:$0xff]  }
 0x2b6   :  { %v13390_v12 = vpop.f32.mrb[56].mxu0  ;;  %13714 = vmatprep.subr.bf16.mxu1 %v14870_v11  ;;  %v14910_v11 = vld [vmem:[%s18608_s1 + $0x1678] sm:$0xff]  }
 0x2b7   :  { %v13391_v14 = vpop.f32.mrb[57].mxu0  ;;  %v13412_v16 = vpop.f32.mrb[56].mxu1 }
 0x2b8   :  { %v13392_v17 = vadd.f32 %v13391_v14, %v13390_v12  ;;  %v13393_v18 = vpop.f32.mrb[58].mxu0  ;;  %v13413_v21 = vpop.f32.mrb[57].mxu1  ;;  %13693 = vmatpush3.bf16.msra.mxu0 %v14871_v13  ;;  %v14909_v13 = vld [vmem:[%s18608_s1 + $0x16b0] sm:$0xff]   ;;  %v14911_v14 = vld [vmem:[%s18608_s1 + $0x16f8] sm:$0xff]  }
 0x2b9   :  { %v13394_v22 = vpop.f32.mrb[59].mxu0  ;;  %v13414_v24 = vadd.f32 %v13413_v21, %v13412_v16  ;;  %v13415_v25 = vpop.f32.mrb[58].mxu1  ;;  %13694 = vmatprep.subr.bf16.mxu0 %v14873_v19  ;;  %13715 = vmatpush3.bf16.msra.mxu1 %v14872_v15  ;;  %v14912_v15 = vld [vmem:[%s18608_s1 + $0x1638] sm:$0xff]   ;;  %v14914_v18 = vld [vmem:[%s18608_s1 + $0x1740] sm:$0xff]  }
 0x2ba   :  { %v10313_v23 = vadd.f32 %v13392_v17, %v17420_v37  ;;  %v13416_v27 = vpop.f32.mrb[59].mxu1  ;;  %13716 = vmatprep.subr.bf16.mxu1 %v14874_v20  ;;  %v14883_v37 = vld [vmem:[%s18608_s1 + $0x16c0] sm:$0xff]   ;;  %v26_v16 = vld [vmem:[%s18609_s0 + $0x58] sm:$0xff] }
 0x2bb   :  { %v2648_v17 = vrot.slane %v26_v16, %v15322_v35  ;;  %v2641_v19 = vcombine.high %v26_v16, %v26_v16  ;;  %v14913_v20 = vld [vmem:[%s18608_s1 + $0x16b8] sm:$0xff]   ;;  %v14916_v25 = vld [vmem:[%s18608_s1 + $0x1700] sm:$0xff]   ;;  %v14951_v16 = vld [vmem:[%s18608_s1 + $0x1848] sm:$0xff]  }
 0x2bc   :  { %v17531_v29 = vadd.f32 %v13414_v24, %v10313_v23  ;;  %13695 = vmatpush3.bf16.msra.mxu0 %v14875_v26  ;;  %v14915_v23 = vld [vmem:[%s18608_s1 + $0x17c0] sm:$0xff]  }
 0x2bd   :  { %13696 = vmatprep.subr.bf16.mxu0 %v14877_v30  ;;  %13717 = vmatpush3.bf16.msra.mxu1 %v14876_v28  ;;  %v2656_v21 = vcombine.high %v2648_v17, %v2648_v17  ;;  %v2664_v22 = vrot.slane %v2648_v17, %v15322_v35  ;;  %v17658_v24 = vrot.slane %v2641_v19, %v15322_v35  ;;  %v14917_v27 = vld [vmem:[%s18608_s1 + $0x1780] sm:$0xff]   ;;  %v14918_v30 = vld [vmem:[%s18608_s1 + $0x1748] sm:$0xff]  }
 0x2be   :  { %13718 = vmatprep.subr.bf16.mxu1 %v14878_v31  ;;  %v14952_v17 = vld [vmem:[%s18608_s1 + $0x18c8] sm:$0xff]  }
 0x2bf   :  { %v2678_v26 = vrot.slane %v2656_v21, %v15322_v35  ;;  %v2657_v28 = vcombine.high %v17658_v24, %v17658_v24  ;;  %v14954_v19 = vld [vmem:[%s18608_s1 + $0x1888] sm:$0xff]   ;;  %v14956_v21 = vld [vmem:[%s18608_s1 + $0x18d0] sm:$0xff]  }
 0x2c0   :  { %13697 = vmatpush3.bf16.msra.mxu0 %v14879_v32  ;;  %v14919_v32 = vld [vmem:[%s18608_s1 + $0x17c8] sm:$0xff]  }
 0x2c1   :  { %13726 = vmatprep.subr.bf16.mxu0 %v14882_v36  ;;  %13719 = vmatpush3.bf16.msra.mxu1 %v14880_v33  ;;  %v2688_v31 = vcombine.high %v2678_v26, %v2678_v26  ;;  %v2685_v33 = vrot.slane %v2657_v28, %v15322_v35  ;;  %v14921_v36 = vld [vmem:[%s18608_s1 + $0x1788] sm:$0xff]   ;;  %v14963_v28 = vld [vmem:[%s18608_s1 + $0x1860] sm:$0xff]  }
 0x2c2   :  { %13748 = vmatprep.subr.bf16.mxu1 %v14883_v37 }
 0x2c3   :  { %10871 = vmatmul.mubr.bf16.vlgmr.msra.gmra.mrb[84].mxu0 %v2622_v34  ;;  %v14920_v34 = vld [vmem:[%s18608_s1 + $0x1708] sm:$0xff]   ;;  %v2689_v37 = vcombine.high %v2685_v33, %v2685_v33 }
 0x2c4   :  { %13727 = vmatpush3.bf16.msra.mxu0 %v14884_v38  ;;  %10911 = vmatmul.mubr.bf16.vlgmr.msra.gmra.mrb[84].mxu1 %v2638_v40  ;;  %v14922_v38 = vld [vmem:[%s18608_s1 + $0x1750] sm:$0xff]  }
 0x2c5   :  { %13728 = vmatprep.subr.bf16.mxu0 %v14886_v41  ;;  %13749 = vmatpush3.bf16.msra.mxu1 %v14885_v39  ;;  %v14923_v39 = vld [vmem:[%s18608_s1 + $0x17d0] sm:$0xff]  }
 0x2c6   :  { %13750 = vmatprep.subr.bf16.mxu1 %v14887_v42  ;;  %10950 = vmatprep.mubr.bf16.mxu0 %v2678_v26  ;;  %v14924_v40 = vld [vmem:[%s18608_s1 + $0x1710] sm:$0xff]   ;;  %v14926_v42 = vld [vmem:[%s18608_s1 + $0x1758] sm:$0xff]  }
 0x2c7   :  { %10990 = vmatprep.mubr.bf16.mxu1 %v2688_v31  ;;  %v14925_v41 = vld [vmem:[%s18608_s1 + $0x1790] sm:$0xff]   ;;  %v14961_v26 = vld [vmem:[%s18608_s1 + $0x1818] sm:$0xff]   ;;  %v14966_v31 = vld [vmem:[%s18608_s1 + $0x18a0] sm:$0xff]  }
 0x2c8   :  { %13729 = vmatpush3.bf16.msra.mxu0 %v14888_v43  ;;  %v14927_v43 = vld [vmem:[%s18608_s1 + $0x17d8] sm:$0xff]  }
 0x2c9   :  { %13730 = vmatprep.subr.bf16.mxu0 %v14890_v45  ;;  %13751 = vmatpush3.bf16.msra.mxu1 %v14889_v44  ;;  %v14928_v44 = vld [vmem:[%s18608_s1 + $0x1718] sm:$0xff]  }
 0x2ca   :  { %13752 = vmatprep.subr.bf16.mxu1 %v14891_v46  ;;  %v14929_v45 = vld [vmem:[%s18608_s1 + $0x1798] sm:$0xff]   ;;  %v14930_v46 = vld [vmem:[%s18608_s1 + $0x1760] sm:$0xff]  }
 0x2cc   :  { %13731 = vmatpush3.bf16.msra.mxu0 %v14892_v47  ;;  %v14931_v47 = vld [vmem:[%s18608_s1 + $0x17e0] sm:$0xff]  }
 0x2cd   :  { %13732 = vmatprep.subr.bf16.mxu0 %v14894_v49  ;;  %13753 = vmatpush3.bf16.msra.mxu1 %v14893_v48  ;;  %v14932_v48 = vld [vmem:[%s18608_s1 + $0x1720] sm:$0xff]  }
 0x2ce   :  { %13754 = vmatprep.subr.bf16.mxu1 %v14895_v50  ;;  %v14933_v49 = vld [vmem:[%s18608_s1 + $0x17a0] sm:$0xff]   ;;  %v14934_v50 = vld [vmem:[%s18608_s1 + $0x1768] sm:$0xff]  }
 0x2d0   :  { %13733 = vmatpush3.bf16.msra.mxu0 %v14896_v51  ;;  %v14935_v51 = vld [vmem:[%s18608_s1 + $0x17e8] sm:$0xff]  }
 0x2d1   :  { %13734 = vmatprep.subr.bf16.mxu0 %v14898_v53  ;;  %13755 = vmatpush3.bf16.msra.mxu1 %v14897_v52  ;;  %v14936_v53 = vld [vmem:[%s18608_s1 + $0x1728] sm:$0xff]  }
 0x2d2   :  { %13756 = vmatprep.subr.bf16.mxu1 %v14899_v54 }
 0x2d4   :  { %13735 = vmatpush3.bf16.msra.mxu0 %v14900_v55  ;;  %v14937_v55 = vld [vmem:[%s18608_s1 + $0x17a8] sm:$0xff]  }
 0x2d5   :  { %13736 = vmatprep.subr.bf16.mxu0 %v14902_v57  ;;  %13757 = vmatpush3.bf16.msra.mxu1 %v14901_v56 }
 0x2d6   :  { %v13434_v59 = vpop.f32.mrb[60].mxu0  ;;  %13758 = vmatprep.subr.bf16.mxu1 %v14903_v58 }
 0x2d7   :  { %v13435_v61 = vpop.f32.mrb[61].mxu0  ;;  %v13456_v63 = vpop.f32.mrb[60].mxu1 }
 0x2d8   :  { %v13436_v0 = vadd.f32 %v13435_v61, %v13434_v59  ;;  %v13437_v1 = vpop.f32.mrb[62].mxu0  ;;  %v13457_v2 = vpop.f32.mrb[61].mxu1  ;;  %13737 = vmatpush3.bf16.msra.mxu0 %v14904_v60  ;;  %v14938_v59 = vld [vmem:[%s18608_s1 + $0x1770] sm:$0xff]  }
 0x2d9   :  { %v13438_v4 = vpop.f32.mrb[63].mxu0  ;;  %v13458_v7 = vadd.f32 %v13457_v2, %v13456_v63  ;;  %v13459_v8 = vpop.f32.mrb[62].mxu1  ;;  %13738 = vmatprep.subr.bf16.mxu0 %v14906_v62  ;;  %13759 = vmatpush3.bf16.msra.mxu1 %v14905_v3  ;;  %v14939_v60 = vld [vmem:[%s18608_s1 + $0x17f0] sm:$0xff]  }
 0x2da   :  { %v10393_v6 = vadd.f32 %v13436_v0, %v17531_v29  ;;  %v13460_v10 = vpop.f32.mrb[63].mxu1  ;;  %13760 = vmatprep.subr.bf16.mxu1 %v14907_v5  ;;  %v2686_v29 = vcombine.high %v2664_v22, %v2664_v22  ;;  %v14940_v2 = vld [vmem:[%s18608_s1 + $0x1730] sm:$0xff]   ;;  %v14944_v8 = vld [vmem:[%s18608_s1 + $0x1738] sm:$0xff]  }
 0x2db   :  { %v14941_v4 = vld [vmem:[%s18608_s1 + $0x17b0] sm:$0xff]   ;;  %v2671_v10 = vrot.slane %v17658_v24, %v15322_v35  ;;  %v14959_v24 = vld [vmem:[%s18608_s1 + $0x1858] sm:$0xff]  }
 0x2dc   :  { %v17632_v12 = vadd.f32 %v13458_v7, %v10393_v6  ;;  %13739 = vmatpush3.bf16.msra.mxu0 %v14908_v9  ;;  %v14942_v6 = vld [vmem:[%s18608_s1 + $0x1778] sm:$0xff]  }
 0x2dd   :  { %13740 = vmatprep.subr.bf16.mxu0 %v14910_v11  ;;  %13761 = vmatpush3.bf16.msra.mxu1 %v14909_v13  ;;  %v14943_v7 = vld [vmem:[%s18608_s1 + $0x17f8] sm:$0xff]   ;;  %v14947_v11 = vld [vmem:[%s18608_s1 + $0x1840] sm:$0xff]  }
 0x2de   :  { %13762 = vmatprep.subr.bf16.mxu1 %v14911_v14  ;;  %v14945_v9 = vld [vmem:[%s18608_s1 + $0x17b8] sm:$0xff]   ;;  %v14949_v13 = vld [vmem:[%s18608_s1 + $0x1800] sm:$0xff]  }
 0x2df   :  { %v14950_v14 = vld [vmem:[%s18608_s1 + $0x1880] sm:$0xff]  }
 0x2e0   :  { %13741 = vmatpush3.bf16.msra.mxu0 %v14912_v15  ;;  %v2687_v15 = vcombine.high %v2671_v10, %v2671_v10 }
 0x2e1   :  { %13770 = vmatprep.subr.bf16.mxu0 %v14914_v18  ;;  %13763 = vmatpush3.bf16.msra.mxu1 %v14913_v20  ;;  %v14953_v18 = vld [vmem:[%s18608_s1 + $0x1808] sm:$0xff]   ;;  %v14955_v20 = vld [vmem:[%s18608_s1 + $0x1850] sm:$0xff]  }
 0x2e2   :  { %13792 = vmatprep.subr.bf16.mxu1 %v14915_v23  ;;  %v14958_v23 = vld [vmem:[%s18608_s1 + $0x1890] sm:$0xff]  }
 0x2e3   :  { %10951 = vmatmul.mubr.bf16.vlgmr.msra.gmra.mrb[88].mxu0 %v2664_v22  ;;  %v14957_v22 = vld [vmem:[%s18608_s1 + $0x1810] sm:$0xff]  }
 0x2e4   :  { %13771 = vmatpush3.bf16.msra.mxu0 %v14916_v25  ;;  %10991 = vmatmul.mubr.bf16.vlgmr.msra.gmra.mrb[88].mxu1 %v2686_v29  ;;  %v14960_v25 = vld [vmem:[%s18608_s1 + $0x18d8] sm:$0xff]   ;;  %v14964_v29 = vld [vmem:[%s18608_s1 + $0x18e0] sm:$0xff]  }
 0x2e5   :  { %13772 = vmatprep.subr.bf16.mxu0 %v14918_v30  ;;  %13793 = vmatpush3.bf16.msra.mxu1 %v14917_v27  ;;  %v14962_v27 = vld [vmem:[%s18608_s1 + $0x1898] sm:$0xff]   ;;  %v14965_v30 = vld [vmem:[%s18608_s1 + $0x1820] sm:$0xff]  }
 0x2e6   :  { %11030 = vmatprep.mubr.bf16.mxu0 %v2685_v33  ;;  %13794 = vmatprep.subr.bf16.mxu1 %v14919_v32  ;;  %v14967_v32 = vld [vmem:[%s18608_s1 + $0x1868] sm:$0xff]  }
 0x2e7   :  { %11070 = vmatprep.mubr.bf16.mxu1 %v2689_v37  ;;  %v14968_v33 = vld [vmem:[%s18608_s1 + $0x18e8] sm:$0xff]  }
 0x2e8   :  { %13773 = vmatpush3.bf16.msra.mxu0 %v14920_v34 }
 0x2e9   :  { %13774 = vmatprep.subr.bf16.mxu0 %v14922_v38  ;;  %13795 = vmatpush3.bf16.msra.mxu1 %v14921_v36  ;;  %v14969_v36 = vld [vmem:[%s18608_s1 + $0x1828] sm:$0xff]   ;;  %v14971_v38 = vld [vmem:[%s18608_s1 + $0x1870] sm:$0xff]  }
 0x2ea   :  { %13796 = vmatprep.subr.bf16.mxu1 %v14923_v39 }
 0x2ec   :  { %13775 = vmatpush3.bf16.msra.mxu0 %v14924_v40 }
 0x2ed   :  { %13776 = vmatprep.subr.bf16.mxu0 %v14926_v42  ;;  %13797 = vmatpush3.bf16.msra.mxu1 %v14925_v41 }
 0x2ee   :  { %13798 = vmatprep.subr.bf16.mxu1 %v14927_v43  ;;  %v14970_v43 = vld [vmem:[%s18608_s1 + $0x18a8] sm:$0xff]  }
 0x2f0   :  { %13777 = vmatpush3.bf16.msra.mxu0 %v14928_v44 }
 0x2f1   :  { %13778 = vmatprep.subr.bf16.mxu0 %v14930_v46  ;;  %13799 = vmatpush3.bf16.msra.mxu1 %v14929_v45  ;;  %v14972_v45 = vld [vmem:[%s18608_s1 + $0x18f0] sm:$0xff]  }
 0x2f2   :  { %13800 = vmatprep.subr.bf16.mxu1 %v14931_v47 }
 0x2f4   :  { %13779 = vmatpush3.bf16.msra.mxu0 %v14932_v48 }
 0x2f5   :  { %13780 = vmatprep.subr.bf16.mxu0 %v14934_v50  ;;  %13801 = vmatpush3.bf16.msra.mxu1 %v14933_v49  ;;  %v14973_v49 = vld [vmem:[%s18608_s1 + $0x1830] sm:$0xff]  }
 0x2f6   :  { %v13478_v52 = vpop.f32.mrb[64].mxu0  ;;  %13802 = vmatprep.subr.bf16.mxu1 %v14935_v51  ;;  %v14975_v51 = vld [vmem:[%s18608_s1 + $0x1878] sm:$0xff]  }
 0x2f7   :  { %v13479_v54 = vpop.f32.mrb[65].mxu0  ;;  %v13500_v56 = vpop.f32.mrb[64].mxu1 }
 0x2f8   :  { %v13480_v57 = vadd.f32 %v13479_v54, %v13478_v52  ;;  %v13481_v58 = vpop.f32.mrb[66].mxu0  ;;  %v13501_v61 = vpop.f32.mrb[65].mxu1  ;;  %13781 = vmatpush3.bf16.msra.mxu0 %v14936_v53  ;;  %v14974_v53 = vld [vmem:[%s18608_s1 + $0x18b0] sm:$0xff]   ;;  %v14976_v54 = vld [vmem:[%s18608_s1 + $0x18f8] sm:$0xff]  }
 0x2f9   :  { %v13482_v62 = vpop.f32.mrb[67].mxu0  ;;  %v13502_v0 = vadd.f32 %v13501_v61, %v13500_v56  ;;  %v13503_v1 = vpop.f32.mrb[66].mxu1  ;;  %13782 = vmatprep.subr.bf16.mxu0 %v14938_v59  ;;  %13803 = vmatpush3.bf16.msra.mxu1 %v14937_v55  ;;  %v14977_v55 = vld [vmem:[%s18608_s1 + $0x1838] sm:$0xff]   ;;  %v27_v56 = vld [vmem:[%s18609_s0 + $0x60] sm:$0xff] }
 0x2fa   :  { %v10473_v63 = vadd.f32 %v13480_v57, %v17632_v12  ;;  %v13504_v3 = vpop.f32.mrb[67].mxu1  ;;  %13804 = vmatprep.subr.bf16.mxu1 %v14939_v60  ;;  %v14948_v12 = vld [vmem:[%s18608_s1 + $0x18c0] sm:$0xff]   ;;  %v2697_v57 = vrot.slane %v27_v56, %v15322_v35  ;;  %v2690_v59 = vcombine.high %v27_v56, %v27_v56  ;;  %v14978_v60 = vld [vmem:[%s18608_s1 + $0x18b8] sm:$0xff]   ;;  %v15016_v56 = vld [vmem:[%s18608_s1 + $0x1a48] sm:$0xff]  }
 0x2fb   :  { %v14979_v58 = vld [vmem:[%s18608_s1 + $0x1940] sm:$0xff]  }
 0x2fc   :  { %v17743_v5 = vadd.f32 %v13502_v0, %v10473_v63  ;;  %13783 = vmatpush3.bf16.msra.mxu0 %v14940_v2  ;;  %v2705_v61 = vcombine.high %v2697_v57, %v2697_v57  ;;  %v2713_v62 = vrot.slane %v2697_v57, %v15322_v35  ;;  %v14980_v63 = vld [vmem:[%s18608_s1 + $0x19c0] sm:$0xff]   ;;  %v17870_v0 = vrot.slane %v2690_v59, %v15322_v35  ;;  %v15017_v57 = vld [vmem:[%s18608_s1 + $0x1ac8] sm:$0xff]  }
 0x2fd   :  { %13784 = vmatprep.subr.bf16.mxu0 %v14942_v6  ;;  %13805 = vmatpush3.bf16.msra.mxu1 %v14941_v4  ;;  %v14981_v1 = vld [vmem:[%s18608_s1 + $0x1900] sm:$0xff]   ;;  %v14983_v6 = vld [vmem:[%s18608_s1 + $0x1948] sm:$0xff]  }
 0x2fe   :  { %13806 = vmatprep.subr.bf16.mxu1 %v14943_v7  ;;  %v2727_v2 = vrot.slane %v2705_v61, %v15322_v35  ;;  %v14982_v3 = vld [vmem:[%s18608_s1 + $0x1980] sm:$0xff]   ;;  %v2706_v4 = vcombine.high %v17870_v0, %v17870_v0  ;;  %v15019_v59 = vld [vmem:[%s18608_s1 + $0x1a88] sm:$0xff]   ;;  %v15021_v61 = vld [vmem:[%s18608_s1 + $0x1ad0] sm:$0xff]  }
 0x300   :  { %13785 = vmatpush3.bf16.msra.mxu0 %v14944_v8  ;;  %v2737_v7 = vcombine.high %v2727_v2, %v2727_v2  ;;  %v14984_v8 = vld [vmem:[%s18608_s1 + $0x19c8] sm:$0xff]  }
 0x301   :  { %13814 = vmatprep.subr.bf16.mxu0 %v14947_v11  ;;  %13807 = vmatpush3.bf16.msra.mxu1 %v14945_v9  ;;  %v2734_v9 = vrot.slane %v2706_v4, %v15322_v35  ;;  %v14986_v11 = vld [vmem:[%s18608_s1 + $0x1988] sm:$0xff]   ;;  %v15028_v4 = vld [vmem:[%s18608_s1 + $0x1a60] sm:$0xff]  }
 0x302   :  { %13836 = vmatprep.subr.bf16.mxu1 %v14948_v12 }
 0x303   :  { %11031 = vmatmul.mubr.bf16.vlgmr.msra.gmra.mrb[92].mxu0 %v2671_v10  ;;  %v14985_v10 = vld [vmem:[%s18608_s1 + $0x1908] sm:$0xff]   ;;  %v2738_v12 = vcombine.high %v2734_v9, %v2734_v9 }
 0x304   :  { %13815 = vmatpush3.bf16.msra.mxu0 %v14949_v13  ;;  %11071 = vmatmul.mubr.bf16.vlgmr.msra.gmra.mrb[92].mxu1 %v2687_v15  ;;  %v14987_v13 = vld [vmem:[%s18608_s1 + $0x1950] sm:$0xff]  }
 0x305   :  { %13816 = vmatprep.subr.bf16.mxu0 %v14951_v16  ;;  %13837 = vmatpush3.bf16.msra.mxu1 %v14950_v14  ;;  %v14988_v14 = vld [vmem:[%s18608_s1 + $0x19d0] sm:$0xff]  }
 0x306   :  { %13838 = vmatprep.subr.bf16.mxu1 %v14952_v17  ;;  %11110 = vmatprep.mubr.bf16.mxu0 %v2727_v2  ;;  %v14989_v15 = vld [vmem:[%s18608_s1 + $0x1910] sm:$0xff]   ;;  %v14991_v17 = vld [vmem:[%s18608_s1 + $0x1958] sm:$0xff]  }
 0x307   :  { %11150 = vmatprep.mubr.bf16.mxu1 %v2737_v7  ;;  %v14990_v16 = vld [vmem:[%s18608_s1 + $0x1990] sm:$0xff]   ;;  %v15026_v2 = vld [vmem:[%s18608_s1 + $0x1a18] sm:$0xff]   ;;  %v15031_v7 = vld [vmem:[%s18608_s1 + $0x1aa0] sm:$0xff]  }
 0x308   :  { %13817 = vmatpush3.bf16.msra.mxu0 %v14953_v18  ;;  %v14992_v18 = vld [vmem:[%s18608_s1 + $0x19d8] sm:$0xff]  }
 0x309   :  { %13818 = vmatprep.subr.bf16.mxu0 %v14955_v20  ;;  %13839 = vmatpush3.bf16.msra.mxu1 %v14954_v19  ;;  %v14993_v19 = vld [vmem:[%s18608_s1 + $0x1918] sm:$0xff]  }
 0x30a   :  { %13840 = vmatprep.subr.bf16.mxu1 %v14956_v21  ;;  %v14994_v20 = vld [vmem:[%s18608_s1 + $0x1998] sm:$0xff]   ;;  %v14995_v21 = vld [vmem:[%s18608_s1 + $0x1960] sm:$0xff]  }
 0x30c   :  { %13819 = vmatpush3.bf16.msra.mxu0 %v14957_v22  ;;  %v14996_v22 = vld [vmem:[%s18608_s1 + $0x19e0] sm:$0xff]  }
 0x30d   :  { %13820 = vmatprep.subr.bf16.mxu0 %v14959_v24  ;;  %13841 = vmatpush3.bf16.msra.mxu1 %v14958_v23  ;;  %v14997_v23 = vld [vmem:[%s18608_s1 + $0x1920] sm:$0xff]  }
 0x30e   :  { %13842 = vmatprep.subr.bf16.mxu1 %v14960_v25  ;;  %v14998_v24 = vld [vmem:[%s18608_s1 + $0x19a0] sm:$0xff]   ;;  %v14999_v25 = vld [vmem:[%s18608_s1 + $0x1968] sm:$0xff]  }
 0x310   :  { %13821 = vmatpush3.bf16.msra.mxu0 %v14961_v26  ;;  %v15000_v26 = vld [vmem:[%s18608_s1 + $0x19e8] sm:$0xff]  }
 0x311   :  { %13822 = vmatprep.subr.bf16.mxu0 %v14963_v28  ;;  %13843 = vmatpush3.bf16.msra.mxu1 %v14962_v27  ;;  %v15001_v28 = vld [vmem:[%s18608_s1 + $0x1928] sm:$0xff]  }
 0x312   :  { %13844 = vmatprep.subr.bf16.mxu1 %v14964_v29 }
 0x314   :  { %13823 = vmatpush3.bf16.msra.mxu0 %v14965_v30  ;;  %v15002_v30 = vld [vmem:[%s18608_s1 + $0x19a8] sm:$0xff]  }
 0x315   :  { %13824 = vmatprep.subr.bf16.mxu0 %v14967_v32  ;;  %13845 = vmatpush3.bf16.msra.mxu1 %v14966_v31 }
 0x316   :  { %v13522_v34 = vpop.f32.mrb[68].mxu0  ;;  %13846 = vmatprep.subr.bf16.mxu1 %v14968_v33 }
 0x317   :  { %v13523_v37 = vpop.f32.mrb[69].mxu0  ;;  %v13544_v39 = vpop.f32.mrb[68].mxu1 }
 0x318   :  { %v13524_v40 = vadd.f32 %v13523_v37, %v13522_v34  ;;  %v13525_v41 = vpop.f32.mrb[70].mxu0  ;;  %v13545_v42 = vpop.f32.mrb[69].mxu1  ;;  %13825 = vmatpush3.bf16.msra.mxu0 %v14969_v36  ;;  %v15003_v34 = vld [vmem:[%s18608_s1 + $0x1970] sm:$0xff]  }
 0x319   :  { %v13526_v44 = vpop.f32.mrb[71].mxu0  ;;  %v13546_v47 = vadd.f32 %v13545_v42, %v13544_v39  ;;  %v13547_v48 = vpop.f32.mrb[70].mxu1  ;;  %13826 = vmatprep.subr.bf16.mxu0 %v14971_v38  ;;  %13847 = vmatpush3.bf16.msra.mxu1 %v14970_v43  ;;  %v15004_v36 = vld [vmem:[%s18608_s1 + $0x19f0] sm:$0xff]  }
 0x31a   :  { %v10553_v46 = vadd.f32 %v13524_v40, %v17743_v5  ;;  %v13548_v50 = vpop.f32.mrb[71].mxu1  ;;  %13848 = vmatprep.subr.bf16.mxu1 %v14972_v45  ;;  %v2735_v5 = vcombine.high %v2713_v62, %v2713_v62  ;;  %v15005_v42 = vld [vmem:[%s18608_s1 + $0x1930] sm:$0xff]   ;;  %v15009_v48 = vld [vmem:[%s18608_s1 + $0x1938] sm:$0xff]  }
 0x31b   :  { %v15006_v44 = vld [vmem:[%s18608_s1 + $0x19b0] sm:$0xff]   ;;  %v2720_v50 = vrot.slane %v17870_v0, %v15322_v35  ;;  %v15024_v0 = vld [vmem:[%s18608_s1 + $0x1a58] sm:$0xff]  }
 0x31c   :  { %v17844_v52 = vadd.f32 %v13546_v47, %v10553_v46  ;;  %13827 = vmatpush3.bf16.msra.mxu0 %v14973_v49  ;;  %v15007_v46 = vld [vmem:[%s18608_s1 + $0x1978] sm:$0xff]  }
 0x31d   :  { %13828 = vmatprep.subr.bf16.mxu0 %v14975_v51  ;;  %13849 = vmatpush3.bf16.msra.mxu1 %v14974_v53  ;;  %v15008_v47 = vld [vmem:[%s18608_s1 + $0x19f8] sm:$0xff]   ;;  %v15012_v51 = vld [vmem:[%s18608_s1 + $0x1a40] sm:$0xff]  }
 0x31e   :  { %13850 = vmatprep.subr.bf16.mxu1 %v14976_v54  ;;  %v15010_v49 = vld [vmem:[%s18608_s1 + $0x19b8] sm:$0xff]   ;;  %v15014_v53 = vld [vmem:[%s18608_s1 + $0x1a00] sm:$0xff]  }
 0x31f   :  { %v15015_v54 = vld [vmem:[%s18608_s1 + $0x1a80] sm:$0xff]  }
 0x320   :  { %13829 = vmatpush3.bf16.msra.mxu0 %v14977_v55  ;;  %v2736_v55 = vcombine.high %v2720_v50, %v2720_v50 }
 0x321   :  { %13858 = vmatprep.subr.bf16.mxu0 %v14979_v58  ;;  %13851 = vmatpush3.bf16.msra.mxu1 %v14978_v60  ;;  %v15018_v58 = vld [vmem:[%s18608_s1 + $0x1a08] sm:$0xff]   ;;  %v15020_v60 = vld [vmem:[%s18608_s1 + $0x1a50] sm:$0xff]  }
 0x322   :  { %13880 = vmatprep.subr.bf16.mxu1 %v14980_v63  ;;  %v15023_v63 = vld [vmem:[%s18608_s1 + $0x1a90] sm:$0xff]  }
 0x323   :  { %11111 = vmatmul.mubr.bf16.vlgmr.msra.gmra.mrb[96].mxu0 %v2713_v62  ;;  %v15022_v62 = vld [vmem:[%s18608_s1 + $0x1a10] sm:$0xff]  }
 0x324   :  { %13859 = vmatpush3.bf16.msra.mxu0 %v14981_v1  ;;  %11151 = vmatmul.mubr.bf16.vlgmr.msra.gmra.mrb[96].mxu1 %v2735_v5  ;;  %v15025_v1 = vld [vmem:[%s18608_s1 + $0x1ad8] sm:$0xff]   ;;  %v15029_v5 = vld [vmem:[%s18608_s1 + $0x1ae0] sm:$0xff]  }
 0x325   :  { %13860 = vmatprep.subr.bf16.mxu0 %v14983_v6  ;;  %13881 = vmatpush3.bf16.msra.mxu1 %v14982_v3  ;;  %v15027_v3 = vld [vmem:[%s18608_s1 + $0x1a98] sm:$0xff]   ;;  %v15030_v6 = vld [vmem:[%s18608_s1 + $0x1a20] sm:$0xff]  }
 0x326   :  { %11190 = vmatprep.mubr.bf16.mxu0 %v2734_v9  ;;  %13882 = vmatprep.subr.bf16.mxu1 %v14984_v8  ;;  %v15032_v8 = vld [vmem:[%s18608_s1 + $0x1a68] sm:$0xff]  }
 0x327   :  { %11230 = vmatprep.mubr.bf16.mxu1 %v2738_v12  ;;  %v15033_v9 = vld [vmem:[%s18608_s1 + $0x1ae8] sm:$0xff]  }
 0x328   :  { %13861 = vmatpush3.bf16.msra.mxu0 %v14985_v10 }
 0x329   :  { %13862 = vmatprep.subr.bf16.mxu0 %v14987_v13  ;;  %13883 = vmatpush3.bf16.msra.mxu1 %v14986_v11  ;;  %v15034_v11 = vld [vmem:[%s18608_s1 + $0x1a28] sm:$0xff]   ;;  %v15036_v13 = vld [vmem:[%s18608_s1 + $0x1a70] sm:$0xff]  }
 0x32a   :  { %13884 = vmatprep.subr.bf16.mxu1 %v14988_v14 }
 0x32c   :  { %13863 = vmatpush3.bf16.msra.mxu0 %v14989_v15 }
 0x32d   :  { %13864 = vmatprep.subr.bf16.mxu0 %v14991_v17  ;;  %13885 = vmatpush3.bf16.msra.mxu1 %v14990_v16 }
 0x32e   :  { %13886 = vmatprep.subr.bf16.mxu1 %v14992_v18  ;;  %v15035_v18 = vld [vmem:[%s18608_s1 + $0x1aa8] sm:$0xff]  }
 0x330   :  { %13865 = vmatpush3.bf16.msra.mxu0 %v14993_v19 }
 0x331   :  { %13866 = vmatprep.subr.bf16.mxu0 %v14995_v21  ;;  %13887 = vmatpush3.bf16.msra.mxu1 %v14994_v20  ;;  %v15037_v20 = vld [vmem:[%s18608_s1 + $0x1af0] sm:$0xff]  }
 0x332   :  { %13888 = vmatprep.subr.bf16.mxu1 %v14996_v22 }
 0x334   :  { %13867 = vmatpush3.bf16.msra.mxu0 %v14997_v23 }
 0x335   :  { %13868 = vmatprep.subr.bf16.mxu0 %v14999_v25  ;;  %13889 = vmatpush3.bf16.msra.mxu1 %v14998_v24  ;;  %v15038_v24 = vld [vmem:[%s18608_s1 + $0x1a30] sm:$0xff]  }
 0x336   :  { %v13566_v27 = vpop.f32.mrb[72].mxu0  ;;  %13890 = vmatprep.subr.bf16.mxu1 %v15000_v26  ;;  %v15040_v26 = vld [vmem:[%s18608_s1 + $0x1a78] sm:$0xff]  }
 0x337   :  { %v13567_v29 = vpop.f32.mrb[73].mxu0  ;;  %v13588_v31 = vpop.f32.mrb[72].mxu1 }
 0x338   :  { %v13568_v32 = vadd.f32 %v13567_v29, %v13566_v27  ;;  %v13569_v33 = vpop.f32.mrb[74].mxu0  ;;  %v13589_v37 = vpop.f32.mrb[73].mxu1  ;;  %13869 = vmatpush3.bf16.msra.mxu0 %v15001_v28  ;;  %v15039_v28 = vld [vmem:[%s18608_s1 + $0x1ab0] sm:$0xff]   ;;  %v15041_v29 = vld [vmem:[%s18608_s1 + $0x1af8] sm:$0xff]  }
 0x339   :  { %v13570_v38 = vpop.f32.mrb[75].mxu0  ;;  %v13590_v40 = vadd.f32 %v13589_v37, %v13588_v31  ;;  %v13591_v41 = vpop.f32.mrb[74].mxu1  ;;  %13870 = vmatprep.subr.bf16.mxu0 %v15003_v34  ;;  %13891 = vmatpush3.bf16.msra.mxu1 %v15002_v30  ;;  %v15042_v30 = vld [vmem:[%s18608_s1 + $0x1a38] sm:$0xff]   ;;  %v28_v31 = vld [vmem:[%s18609_s0 + $0x68] sm:$0xff]  ;;  %v15044_v33 = vld [vmem:[%s18608_s1 + $0x1b40] sm:$0xff]  }
 0x33a   :  { %v10633_v39 = vadd.f32 %v13568_v32, %v17844_v52  ;;  %v13592_v43 = vpop.f32.mrb[75].mxu1  ;;  %13892 = vmatprep.subr.bf16.mxu1 %v15004_v36  ;;  %v15013_v52 = vld [vmem:[%s18608_s1 + $0x1ac0] sm:$0xff]   ;;  %v2746_v32 = vrot.slane %v28_v31, %v15322_v35  ;;  %v2739_v34 = vcombine.high %v28_v31, %v28_v31  ;;  %v15043_v36 = vld [vmem:[%s18608_s1 + $0x1ab8] sm:$0xff]   ;;  %v15081_v31 = vld [vmem:[%s18608_s1 + $0x1c48] sm:$0xff]  }
 0x33b   :  { %v15046_v41 = vld [vmem:[%s18608_s1 + $0x1b00] sm:$0xff]  }
 0x33c   :  { %v17955_v45 = vadd.f32 %v13590_v40, %v10633_v39  ;;  %13871 = vmatpush3.bf16.msra.mxu0 %v15005_v42  ;;  %v2754_v37 = vcombine.high %v2746_v32, %v2746_v32  ;;  %v2762_v38 = vrot.slane %v2746_v32, %v15322_v35  ;;  %v15045_v39 = vld [vmem:[%s18608_s1 + $0x1bc0] sm:$0xff]   ;;  %v18082_v40 = vrot.slane %v2739_v34, %v15322_v35  ;;  %v15082_v32 = vld [vmem:[%s18608_s1 + $0x1cc8] sm:$0xff]  }
 0x33d   :  { %13872 = vmatprep.subr.bf16.mxu0 %v15007_v46  ;;  %13893 = vmatpush3.bf16.msra.mxu1 %v15006_v44  ;;  %v15047_v43 = vld [vmem:[%s18608_s1 + $0x1b80] sm:$0xff]   ;;  %v15048_v46 = vld [vmem:[%s18608_s1 + $0x1b48] sm:$0xff]  }
 0x33e   :  { %13894 = vmatprep.subr.bf16.mxu1 %v15008_v47  ;;  %v2776_v42 = vrot.slane %v2754_v37, %v15322_v35  ;;  %v2755_v44 = vcombine.high %v18082_v40, %v18082_v40  ;;  %v15084_v34 = vld [vmem:[%s18608_s1 + $0x1c88] sm:$0xff]   ;;  %v15086_v37 = vld [vmem:[%s18608_s1 + $0x1cd0] sm:$0xff]  }
 0x340   :  { %13873 = vmatpush3.bf16.msra.mxu0 %v15009_v48  ;;  %v2786_v47 = vcombine.high %v2776_v42, %v2776_v42  ;;  %v15049_v48 = vld [vmem:[%s18608_s1 + $0x1bc8] sm:$0xff]  }
 0x341   :  { %13902 = vmatprep.subr.bf16.mxu0 %v15012_v51  ;;  %13895 = vmatpush3.bf16.msra.mxu1 %v15010_v49  ;;  %v2783_v49 = vrot.slane %v2755_v44, %v15322_v35  ;;  %v15051_v51 = vld [vmem:[%s18608_s1 + $0x1b88] sm:$0xff]   ;;  %v15093_v44 = vld [vmem:[%s18608_s1 + $0x1c60] sm:$0xff]  }
 0x342   :  { %13924 = vmatprep.subr.bf16.mxu1 %v15013_v52 }
 0x343   :  { %11191 = vmatmul.mubr.bf16.vlgmr.msra.gmra.mrb[100].mxu0 %v2720_v50  ;;  %v15050_v50 = vld [vmem:[%s18608_s1 + $0x1b08] sm:$0xff]   ;;  %v2787_v52 = vcombine.high %v2783_v49, %v2783_v49 }
 0x344   :  { %13903 = vmatpush3.bf16.msra.mxu0 %v15014_v53  ;;  %11231 = vmatmul.mubr.bf16.vlgmr.msra.gmra.mrb[100].mxu1 %v2736_v55  ;;  %v15052_v53 = vld [vmem:[%s18608_s1 + $0x1b50] sm:$0xff]  }
 0x345   :  { %13904 = vmatprep.subr.bf16.mxu0 %v15016_v56  ;;  %13925 = vmatpush3.bf16.msra.mxu1 %v15015_v54  ;;  %v15053_v54 = vld [vmem:[%s18608_s1 + $0x1bd0] sm:$0xff]  }
 0x346   :  { %13926 = vmatprep.subr.bf16.mxu1 %v15017_v57  ;;  %11270 = vmatprep.mubr.bf16.mxu0 %v2776_v42  ;;  %v15054_v55 = vld [vmem:[%s18608_s1 + $0x1b10] sm:$0xff]   ;;  %v15056_v57 = vld [vmem:[%s18608_s1 + $0x1b58] sm:$0xff]  }
 0x347   :  { %11310 = vmatprep.mubr.bf16.mxu1 %v2786_v47  ;;  %v15055_v56 = vld [vmem:[%s18608_s1 + $0x1b90] sm:$0xff]   ;;  %v15091_v42 = vld [vmem:[%s18608_s1 + $0x1c18] sm:$0xff]   ;;  %v15096_v47 = vld [vmem:[%s18608_s1 + $0x1ca0] sm:$0xff]  }
 0x348   :  { %13905 = vmatpush3.bf16.msra.mxu0 %v15018_v58  ;;  %v15057_v58 = vld [vmem:[%s18608_s1 + $0x1bd8] sm:$0xff]  }
 0x349   :  { %13906 = vmatprep.subr.bf16.mxu0 %v15020_v60  ;;  %13927 = vmatpush3.bf16.msra.mxu1 %v15019_v59  ;;  %v15058_v59 = vld [vmem:[%s18608_s1 + $0x1b18] sm:$0xff]  }
 0x34a   :  { %13928 = vmatprep.subr.bf16.mxu1 %v15021_v61  ;;  %v15059_v60 = vld [vmem:[%s18608_s1 + $0x1b98] sm:$0xff]   ;;  %v15060_v61 = vld [vmem:[%s18608_s1 + $0x1b60] sm:$0xff]  }
 0x34c   :  { %13907 = vmatpush3.bf16.msra.mxu0 %v15022_v62  ;;  %v15061_v62 = vld [vmem:[%s18608_s1 + $0x1be0] sm:$0xff]  }
 0x34d   :  { %13908 = vmatprep.subr.bf16.mxu0 %v15024_v0  ;;  %13929 = vmatpush3.bf16.msra.mxu1 %v15023_v63  ;;  %v15062_v63 = vld [vmem:[%s18608_s1 + $0x1b20] sm:$0xff]  }
 0x34e   :  { %13930 = vmatprep.subr.bf16.mxu1 %v15025_v1  ;;  %v15063_v0 = vld [vmem:[%s18608_s1 + $0x1ba0] sm:$0xff]   ;;  %v15064_v1 = vld [vmem:[%s18608_s1 + $0x1b68] sm:$0xff]  }
 0x350   :  { %13909 = vmatpush3.bf16.msra.mxu0 %v15026_v2  ;;  %v15065_v2 = vld [vmem:[%s18608_s1 + $0x1be8] sm:$0xff]  }
 0x351   :  { %13910 = vmatprep.subr.bf16.mxu0 %v15028_v4  ;;  %13931 = vmatpush3.bf16.msra.mxu1 %v15027_v3  ;;  %v15066_v4 = vld [vmem:[%s18608_s1 + $0x1b28] sm:$0xff]  }
 0x352   :  { %13932 = vmatprep.subr.bf16.mxu1 %v15029_v5 }
 0x354   :  { %13911 = vmatpush3.bf16.msra.mxu0 %v15030_v6  ;;  %v15067_v6 = vld [vmem:[%s18608_s1 + $0x1ba8] sm:$0xff]  }
 0x355   :  { %13912 = vmatprep.subr.bf16.mxu0 %v15032_v8  ;;  %13933 = vmatpush3.bf16.msra.mxu1 %v15031_v7 }
 0x356   :  { %v13610_v10 = vpop.f32.mrb[76].mxu0  ;;  %13934 = vmatprep.subr.bf16.mxu1 %v15033_v9 }
 0x357   :  { %v13611_v12 = vpop.f32.mrb[77].mxu0  ;;  %v13632_v14 = vpop.f32.mrb[76].mxu1 }
 0x358   :  { %v13612_v15 = vadd.f32 %v13611_v12, %v13610_v10  ;;  %v13613_v16 = vpop.f32.mrb[78].mxu0  ;;  %v13633_v17 = vpop.f32.mrb[77].mxu1  ;;  %13913 = vmatpush3.bf16.msra.mxu0 %v15034_v11  ;;  %v15068_v10 = vld [vmem:[%s18608_s1 + $0x1b70] sm:$0xff]  }
 0x359   :  { %v13614_v19 = vpop.f32.mrb[79].mxu0  ;;  %v13634_v22 = vadd.f32 %v13633_v17, %v13632_v14  ;;  %v13635_v23 = vpop.f32.mrb[78].mxu1  ;;  %13914 = vmatprep.subr.bf16.mxu0 %v15036_v13  ;;  %13935 = vmatpush3.bf16.msra.mxu1 %v15035_v18  ;;  %v15069_v11 = vld [vmem:[%s18608_s1 + $0x1bf0] sm:$0xff]  }
 0x35a   :  { %v10713_v21 = vadd.f32 %v13612_v15, %v17955_v45  ;;  %v13636_v25 = vpop.f32.mrb[79].mxu1  ;;  %13936 = vmatprep.subr.bf16.mxu1 %v15037_v20  ;;  %v2784_v45 = vcombine.high %v2762_v38, %v2762_v38  ;;  %v15070_v17 = vld [vmem:[%s18608_s1 + $0x1b30] sm:$0xff]   ;;  %v15074_v23 = vld [vmem:[%s18608_s1 + $0x1b38] sm:$0xff]  }
 0x35b   :  { %v15071_v19 = vld [vmem:[%s18608_s1 + $0x1bb0] sm:$0xff]   ;;  %v2769_v25 = vrot.slane %v18082_v40, %v15322_v35  ;;  %v15089_v40 = vld [vmem:[%s18608_s1 + $0x1c58] sm:$0xff]  }
 0x35c   :  { %v18056_v27 = vadd.f32 %v13634_v22, %v10713_v21  ;;  %13915 = vmatpush3.bf16.msra.mxu0 %v15038_v24  ;;  %v15072_v21 = vld [vmem:[%s18608_s1 + $0x1b78] sm:$0xff]  }
 0x35d   :  { %13916 = vmatprep.subr.bf16.mxu0 %v15040_v26  ;;  %13937 = vmatpush3.bf16.msra.mxu1 %v15039_v28  ;;  %v15073_v22 = vld [vmem:[%s18608_s1 + $0x1bf8] sm:$0xff]   ;;  %v15077_v26 = vld [vmem:[%s18608_s1 + $0x1c40] sm:$0xff]  }
 0x35e   :  { %13938 = vmatprep.subr.bf16.mxu1 %v15041_v29  ;;  %v15075_v24 = vld [vmem:[%s18608_s1 + $0x1bb8] sm:$0xff]   ;;  %v15079_v28 = vld [vmem:[%s18608_s1 + $0x1c00] sm:$0xff]  }
 0x35f   :  { %v15080_v29 = vld [vmem:[%s18608_s1 + $0x1c80] sm:$0xff]  }
 0x360   :  { %13917 = vmatpush3.bf16.msra.mxu0 %v15042_v30  ;;  %v2785_v30 = vcombine.high %v2769_v25, %v2769_v25 }
 0x361   :  { %13946 = vmatprep.subr.bf16.mxu0 %v15044_v33  ;;  %13939 = vmatpush3.bf16.msra.mxu1 %v15043_v36  ;;  %v15083_v33 = vld [vmem:[%s18608_s1 + $0x1c08] sm:$0xff]   ;;  %v15085_v36 = vld [vmem:[%s18608_s1 + $0x1c50] sm:$0xff]  }
 0x362   :  { %13968 = vmatprep.subr.bf16.mxu1 %v15045_v39  ;;  %v15088_v39 = vld [vmem:[%s18608_s1 + $0x1c90] sm:$0xff]  }
 0x363   :  { %11271 = vmatmul.mubr.bf16.vlgmr.msra.gmra.mrb[104].mxu0 %v2762_v38  ;;  %v15087_v38 = vld [vmem:[%s18608_s1 + $0x1c10] sm:$0xff]  }
 0x364   :  { %13947 = vmatpush3.bf16.msra.mxu0 %v15046_v41  ;;  %11311 = vmatmul.mubr.bf16.vlgmr.msra.gmra.mrb[104].mxu1 %v2784_v45  ;;  %v15090_v41 = vld [vmem:[%s18608_s1 + $0x1cd8] sm:$0xff]   ;;  %v15094_v45 = vld [vmem:[%s18608_s1 + $0x1ce0] sm:$0xff]  }
 0x365   :  { %13948 = vmatprep.subr.bf16.mxu0 %v15048_v46  ;;  %13969 = vmatpush3.bf16.msra.mxu1 %v15047_v43  ;;  %v15092_v43 = vld [vmem:[%s18608_s1 + $0x1c98] sm:$0xff]   ;;  %v15095_v46 = vld [vmem:[%s18608_s1 + $0x1c20] sm:$0xff]  }
 0x366   :  { %11350 = vmatprep.mubr.bf16.mxu0 %v2783_v49  ;;  %13970 = vmatprep.subr.bf16.mxu1 %v15049_v48  ;;  %v15097_v48 = vld [vmem:[%s18608_s1 + $0x1c68] sm:$0xff]  }
 0x367   :  { %11390 = vmatprep.mubr.bf16.mxu1 %v2787_v52  ;;  %v15098_v49 = vld [vmem:[%s18608_s1 + $0x1ce8] sm:$0xff]  }
 0x368   :  { %13949 = vmatpush3.bf16.msra.mxu0 %v15050_v50 }
 0x369   :  { %13950 = vmatprep.subr.bf16.mxu0 %v15052_v53  ;;  %13971 = vmatpush3.bf16.msra.mxu1 %v15051_v51  ;;  %v15099_v51 = vld [vmem:[%s18608_s1 + $0x1c28] sm:$0xff]   ;;  %v15101_v53 = vld [vmem:[%s18608_s1 + $0x1c70] sm:$0xff]  }
 0x36a   :  { %13972 = vmatprep.subr.bf16.mxu1 %v15053_v54 }
 0x36c   :  { %13951 = vmatpush3.bf16.msra.mxu0 %v15054_v55 }
 0x36d   :  { %13952 = vmatprep.subr.bf16.mxu0 %v15056_v57  ;;  %13973 = vmatpush3.bf16.msra.mxu1 %v15055_v56 }
 0x36e   :  { %13974 = vmatprep.subr.bf16.mxu1 %v15057_v58  ;;  %v15100_v58 = vld [vmem:[%s18608_s1 + $0x1ca8] sm:$0xff]  }
 0x370   :  { %13953 = vmatpush3.bf16.msra.mxu0 %v15058_v59 }
 0x371   :  { %13954 = vmatprep.subr.bf16.mxu0 %v15060_v61  ;;  %13975 = vmatpush3.bf16.msra.mxu1 %v15059_v60  ;;  %v15102_v60 = vld [vmem:[%s18608_s1 + $0x1cf0] sm:$0xff]  }
 0x372   :  { %13976 = vmatprep.subr.bf16.mxu1 %v15061_v62 }
 0x374   :  { %13955 = vmatpush3.bf16.msra.mxu0 %v15062_v63 }
 0x375   :  { %13956 = vmatprep.subr.bf16.mxu0 %v15064_v1  ;;  %13977 = vmatpush3.bf16.msra.mxu1 %v15063_v0  ;;  %v15103_v0 = vld [vmem:[%s18608_s1 + $0x1c30] sm:$0xff]  }
 0x376   :  { %v13654_v3 = vpop.f32.mrb[80].mxu0  ;;  %13978 = vmatprep.subr.bf16.mxu1 %v15065_v2  ;;  %v15105_v2 = vld [vmem:[%s18608_s1 + $0x1c78] sm:$0xff]  }
 0x377   :  { %v13655_v5 = vpop.f32.mrb[81].mxu0  ;;  %v13676_v7 = vpop.f32.mrb[80].mxu1 }
 0x378   :  { %v13656_v8 = vadd.f32 %v13655_v5, %v13654_v3  ;;  %v13657_v9 = vpop.f32.mrb[82].mxu0  ;;  %v13677_v12 = vpop.f32.mrb[81].mxu1  ;;  %13957 = vmatpush3.bf16.msra.mxu0 %v15066_v4  ;;  %v15104_v4 = vld [vmem:[%s18608_s1 + $0x1cb0] sm:$0xff]   ;;  %v15106_v5 = vld [vmem:[%s18608_s1 + $0x1cf8] sm:$0xff]  }
 0x379   :  { %v13658_v13 = vpop.f32.mrb[83].mxu0  ;;  %v13678_v15 = vadd.f32 %v13677_v12, %v13676_v7  ;;  %v13679_v16 = vpop.f32.mrb[82].mxu1  ;;  %13958 = vmatprep.subr.bf16.mxu0 %v15068_v10  ;;  %13979 = vmatpush3.bf16.msra.mxu1 %v15067_v6  ;;  %v15107_v6 = vld [vmem:[%s18608_s1 + $0x1c38] sm:$0xff]   ;;  %v29_v7 = vld [vmem:[%s18609_s0 + $0x70] sm:$0xff]  ;;  %v15109_v9 = vld [vmem:[%s18608_s1 + $0x1d40] sm:$0xff]  }
 0x37a   :  { %v10793_v14 = vadd.f32 %v13656_v8, %v18056_v27  ;;  %v13680_v18 = vpop.f32.mrb[83].mxu1  ;;  %13980 = vmatprep.subr.bf16.mxu1 %v15069_v11  ;;  %v15078_v27 = vld [vmem:[%s18608_s1 + $0x1cc0] sm:$0xff]   ;;  %v2795_v8 = vrot.slane %v29_v7, %v15322_v35  ;;  %v2788_v10 = vcombine.high %v29_v7, %v29_v7  ;;  %v15108_v11 = vld [vmem:[%s18608_s1 + $0x1cb8] sm:$0xff]   ;;  %v15146_v7 = vld [vmem:[%s18608_s1 + $0x1e48] sm:$0xff]  }
 0x37b   :  { %v15111_v16 = vld [vmem:[%s18608_s1 + $0x1d00] sm:$0xff]  }
 0x37c   :  { %v18167_v20 = vadd.f32 %v13678_v15, %v10793_v14  ;;  %13959 = vmatpush3.bf16.msra.mxu0 %v15070_v17  ;;  %v2803_v12 = vcombine.high %v2795_v8, %v2795_v8  ;;  %v2811_v13 = vrot.slane %v2795_v8, %v15322_v35  ;;  %v15110_v14 = vld [vmem:[%s18608_s1 + $0x1dc0] sm:$0xff]   ;;  %v18294_v15 = vrot.slane %v2788_v10, %v15322_v35  ;;  %v15147_v8 = vld [vmem:[%s18608_s1 + $0x1ec8] sm:$0xff]  }
 0x37d   :  { %13960 = vmatprep.subr.bf16.mxu0 %v15072_v21  ;;  %13981 = vmatpush3.bf16.msra.mxu1 %v15071_v19  ;;  %v15112_v18 = vld [vmem:[%s18608_s1 + $0x1d80] sm:$0xff]   ;;  %v15113_v21 = vld [vmem:[%s18608_s1 + $0x1d48] sm:$0xff]  }
 0x37e   :  { %13982 = vmatprep.subr.bf16.mxu1 %v15073_v22  ;;  %v2825_v17 = vrot.slane %v2803_v12, %v15322_v35  ;;  %v2804_v19 = vcombine.high %v18294_v15, %v18294_v15  ;;  %v15149_v10 = vld [vmem:[%s18608_s1 + $0x1e88] sm:$0xff]   ;;  %v15151_v12 = vld [vmem:[%s18608_s1 + $0x1ed0] sm:$0xff]  }
 0x380   :  { %13961 = vmatpush3.bf16.msra.mxu0 %v15074_v23  ;;  %v2835_v22 = vcombine.high %v2825_v17, %v2825_v17  ;;  %v15114_v23 = vld [vmem:[%s18608_s1 + $0x1dc8] sm:$0xff]  }
 0x381   :  { %13990 = vmatprep.subr.bf16.mxu0 %v15077_v26  ;;  %13983 = vmatpush3.bf16.msra.mxu1 %v15075_v24  ;;  %v2832_v24 = vrot.slane %v2804_v19, %v15322_v35  ;;  %v15116_v26 = vld [vmem:[%s18608_s1 + $0x1d88] sm:$0xff]   ;;  %v15158_v19 = vld [vmem:[%s18608_s1 + $0x1e60] sm:$0xff]  }
 0x382   :  { %14012 = vmatprep.subr.bf16.mxu1 %v15078_v27 }
 0x383   :  { %11351 = vmatmul.mubr.bf16.vlgmr.msra.gmra.mrb[108].mxu0 %v2769_v25  ;;  %v15115_v25 = vld [vmem:[%s18608_s1 + $0x1d08] sm:$0xff]   ;;  %v2836_v27 = vcombine.high %v2832_v24, %v2832_v24 }
 0x384   :  { %13991 = vmatpush3.bf16.msra.mxu0 %v15079_v28  ;;  %11391 = vmatmul.mubr.bf16.vlgmr.msra.gmra.mrb[108].mxu1 %v2785_v30  ;;  %v15117_v28 = vld [vmem:[%s18608_s1 + $0x1d50] sm:$0xff]  }
 0x385   :  { %13992 = vmatprep.subr.bf16.mxu0 %v15081_v31  ;;  %14013 = vmatpush3.bf16.msra.mxu1 %v15080_v29  ;;  %v15118_v29 = vld [vmem:[%s18608_s1 + $0x1dd0] sm:$0xff]  }
 0x386   :  { %14014 = vmatprep.subr.bf16.mxu1 %v15082_v32  ;;  %11430 = vmatprep.mubr.bf16.mxu0 %v2825_v17  ;;  %v15119_v30 = vld [vmem:[%s18608_s1 + $0x1d10] sm:$0xff]   ;;  %v15121_v32 = vld [vmem:[%s18608_s1 + $0x1d58] sm:$0xff]  }
 0x387   :  { %11470 = vmatprep.mubr.bf16.mxu1 %v2835_v22  ;;  %v15120_v31 = vld [vmem:[%s18608_s1 + $0x1d90] sm:$0xff]   ;;  %v15156_v17 = vld [vmem:[%s18608_s1 + $0x1e18] sm:$0xff]   ;;  %v15161_v22 = vld [vmem:[%s18608_s1 + $0x1ea0] sm:$0xff]  }
 0x388   :  { %13993 = vmatpush3.bf16.msra.mxu0 %v15083_v33  ;;  %v15122_v33 = vld [vmem:[%s18608_s1 + $0x1dd8] sm:$0xff]  }
 0x389   :  { %13994 = vmatprep.subr.bf16.mxu0 %v15085_v36  ;;  %14015 = vmatpush3.bf16.msra.mxu1 %v15084_v34  ;;  %v15123_v34 = vld [vmem:[%s18608_s1 + $0x1d18] sm:$0xff]  }
 0x38a   :  { %14016 = vmatprep.subr.bf16.mxu1 %v15086_v37  ;;  %v15124_v36 = vld [vmem:[%s18608_s1 + $0x1d98] sm:$0xff]   ;;  %v15125_v37 = vld [vmem:[%s18608_s1 + $0x1d60] sm:$0xff]  }
 0x38c   :  { %13995 = vmatpush3.bf16.msra.mxu0 %v15087_v38  ;;  %v15126_v38 = vld [vmem:[%s18608_s1 + $0x1de0] sm:$0xff]  }
 0x38d   :  { %13996 = vmatprep.subr.bf16.mxu0 %v15089_v40  ;;  %14017 = vmatpush3.bf16.msra.mxu1 %v15088_v39  ;;  %v15127_v39 = vld [vmem:[%s18608_s1 + $0x1d20] sm:$0xff]  }
 0x38e   :  { %14018 = vmatprep.subr.bf16.mxu1 %v15090_v41  ;;  %v15128_v40 = vld [vmem:[%s18608_s1 + $0x1da0] sm:$0xff]   ;;  %v15129_v41 = vld [vmem:[%s18608_s1 + $0x1d68] sm:$0xff]  }
 0x390   :  { %13997 = vmatpush3.bf16.msra.mxu0 %v15091_v42  ;;  %v15130_v42 = vld [vmem:[%s18608_s1 + $0x1de8] sm:$0xff]  }
 0x391   :  { %13998 = vmatprep.subr.bf16.mxu0 %v15093_v44  ;;  %14019 = vmatpush3.bf16.msra.mxu1 %v15092_v43  ;;  %v15131_v44 = vld [vmem:[%s18608_s1 + $0x1d28] sm:$0xff]  }
 0x392   :  { %14020 = vmatprep.subr.bf16.mxu1 %v15094_v45 }
 0x394   :  { %13999 = vmatpush3.bf16.msra.mxu0 %v15095_v46  ;;  %v15132_v46 = vld [vmem:[%s18608_s1 + $0x1da8] sm:$0xff]  }
 0x395   :  { %14000 = vmatprep.subr.bf16.mxu0 %v15097_v48  ;;  %14021 = vmatpush3.bf16.msra.mxu1 %v15096_v47 }
 0x396   :  { %v13698_v50 = vpop.f32.mrb[84].mxu0  ;;  %14022 = vmatprep.subr.bf16.mxu1 %v15098_v49 }
 0x397   :  { %v13699_v52 = vpop.f32.mrb[85].mxu0  ;;  %v13720_v54 = vpop.f32.mrb[84].mxu1 }
 0x398   :  { %v13700_v55 = vadd.f32 %v13699_v52, %v13698_v50  ;;  %v13701_v56 = vpop.f32.mrb[86].mxu0  ;;  %v13721_v57 = vpop.f32.mrb[85].mxu1  ;;  %14001 = vmatpush3.bf16.msra.mxu0 %v15099_v51  ;;  %v15133_v50 = vld [vmem:[%s18608_s1 + $0x1d70] sm:$0xff]  }
 0x399   :  { %v13702_v59 = vpop.f32.mrb[87].mxu0  ;;  %v13722_v62 = vadd.f32 %v13721_v57, %v13720_v54  ;;  %v13723_v63 = vpop.f32.mrb[86].mxu1  ;;  %14002 = vmatprep.subr.bf16.mxu0 %v15101_v53  ;;  %14023 = vmatpush3.bf16.msra.mxu1 %v15100_v58  ;;  %v15134_v51 = vld [vmem:[%s18608_s1 + $0x1df0] sm:$0xff]  }
 0x39a   :  { %v10873_v61 = vadd.f32 %v13700_v55, %v18167_v20  ;;  %v13724_v1 = vpop.f32.mrb[87].mxu1  ;;  %14024 = vmatprep.subr.bf16.mxu1 %v15102_v60  ;;  %v2833_v20 = vcombine.high %v2811_v13, %v2811_v13  ;;  %v15135_v57 = vld [vmem:[%s18608_s1 + $0x1d30] sm:$0xff]   ;;  %v15139_v63 = vld [vmem:[%s18608_s1 + $0x1d38] sm:$0xff]  }
 0x39b   :  { %v15136_v59 = vld [vmem:[%s18608_s1 + $0x1db0] sm:$0xff]   ;;  %v2818_v1 = vrot.slane %v18294_v15, %v15322_v35  ;;  %v15154_v15 = vld [vmem:[%s18608_s1 + $0x1e58] sm:$0xff]  }
 0x39c   :  { %v18268_v3 = vadd.f32 %v13722_v62, %v10873_v61  ;;  %14003 = vmatpush3.bf16.msra.mxu0 %v15103_v0  ;;  %v15137_v61 = vld [vmem:[%s18608_s1 + $0x1d78] sm:$0xff]  }
 0x39d   :  { %14004 = vmatprep.subr.bf16.mxu0 %v15105_v2  ;;  %14025 = vmatpush3.bf16.msra.mxu1 %v15104_v4  ;;  %v15138_v62 = vld [vmem:[%s18608_s1 + $0x1df8] sm:$0xff]   ;;  %v15142_v2 = vld [vmem:[%s18608_s1 + $0x1e40] sm:$0xff]  }
 0x39e   :  { %14026 = vmatprep.subr.bf16.mxu1 %v15106_v5  ;;  %v15140_v0 = vld [vmem:[%s18608_s1 + $0x1db8] sm:$0xff]   ;;  %v15144_v4 = vld [vmem:[%s18608_s1 + $0x1e00] sm:$0xff]  }
 0x39f   :  { %v15145_v5 = vld [vmem:[%s18608_s1 + $0x1e80] sm:$0xff]  }
 0x3a0   :  { %14005 = vmatpush3.bf16.msra.mxu0 %v15107_v6  ;;  %v2834_v6 = vcombine.high %v2818_v1, %v2818_v1 }
 0x3a1   :  { %14034 = vmatprep.subr.bf16.mxu0 %v15109_v9  ;;  %14027 = vmatpush3.bf16.msra.mxu1 %v15108_v11  ;;  %v15148_v9 = vld [vmem:[%s18608_s1 + $0x1e08] sm:$0xff]   ;;  %v15150_v11 = vld [vmem:[%s18608_s1 + $0x1e50] sm:$0xff]  }
 0x3a2   :  { %14056 = vmatprep.subr.bf16.mxu1 %v15110_v14  ;;  %v15153_v14 = vld [vmem:[%s18608_s1 + $0x1e90] sm:$0xff]  }
 0x3a3   :  { %11431 = vmatmul.mubr.bf16.vlgmr.msra.gmra.mrb[112].mxu0 %v2811_v13  ;;  %v15152_v13 = vld [vmem:[%s18608_s1 + $0x1e10] sm:$0xff]  }
 0x3a4   :  { %14035 = vmatpush3.bf16.msra.mxu0 %v15111_v16  ;;  %11471 = vmatmul.mubr.bf16.vlgmr.msra.gmra.mrb[112].mxu1 %v2833_v20  ;;  %v15155_v16 = vld [vmem:[%s18608_s1 + $0x1ed8] sm:$0xff]   ;;  %v15159_v20 = vld [vmem:[%s18608_s1 + $0x1ee0] sm:$0xff]  }
 0x3a5   :  { %14036 = vmatprep.subr.bf16.mxu0 %v15113_v21  ;;  %14057 = vmatpush3.bf16.msra.mxu1 %v15112_v18  ;;  %v15157_v18 = vld [vmem:[%s18608_s1 + $0x1e98] sm:$0xff]   ;;  %v15160_v21 = vld [vmem:[%s18608_s1 + $0x1e20] sm:$0xff]  }
 0x3a6   :  { %11510 = vmatprep.mubr.bf16.mxu0 %v2832_v24  ;;  %14058 = vmatprep.subr.bf16.mxu1 %v15114_v23  ;;  %v15162_v23 = vld [vmem:[%s18608_s1 + $0x1e68] sm:$0xff]  }
 0x3a7   :  { %11550 = vmatprep.mubr.bf16.mxu1 %v2836_v27  ;;  %v15163_v24 = vld [vmem:[%s18608_s1 + $0x1ee8] sm:$0xff]  }
 0x3a8   :  { %14037 = vmatpush3.bf16.msra.mxu0 %v15115_v25 }
 0x3a9   :  { %14038 = vmatprep.subr.bf16.mxu0 %v15117_v28  ;;  %14059 = vmatpush3.bf16.msra.mxu1 %v15116_v26  ;;  %v15164_v26 = vld [vmem:[%s18608_s1 + $0x1e28] sm:$0xff]   ;;  %v15166_v28 = vld [vmem:[%s18608_s1 + $0x1e70] sm:$0xff]  }
 0x3aa   :  { %14060 = vmatprep.subr.bf16.mxu1 %v15118_v29 }
 0x3ac   :  { %14039 = vmatpush3.bf16.msra.mxu0 %v15119_v30 }
 0x3ad   :  { %14040 = vmatprep.subr.bf16.mxu0 %v15121_v32  ;;  %14061 = vmatpush3.bf16.msra.mxu1 %v15120_v31 }
 0x3ae   :  { %14062 = vmatprep.subr.bf16.mxu1 %v15122_v33  ;;  %v15165_v33 = vld [vmem:[%s18608_s1 + $0x1ea8] sm:$0xff]  }
 0x3b0   :  { %14041 = vmatpush3.bf16.msra.mxu0 %v15123_v34 }
 0x3b1   :  { %14042 = vmatprep.subr.bf16.mxu0 %v15125_v37  ;;  %14063 = vmatpush3.bf16.msra.mxu1 %v15124_v36  ;;  %v15167_v36 = vld [vmem:[%s18608_s1 + $0x1ef0] sm:$0xff]  }
 0x3b2   :  { %14064 = vmatprep.subr.bf16.mxu1 %v15126_v38 }
 0x3b4   :  { %14043 = vmatpush3.bf16.msra.mxu0 %v15127_v39 }
 0x3b5   :  { %14044 = vmatprep.subr.bf16.mxu0 %v15129_v41  ;;  %14065 = vmatpush3.bf16.msra.mxu1 %v15128_v40  ;;  %v15168_v40 = vld [vmem:[%s18608_s1 + $0x1e30] sm:$0xff]  }
 0x3b6   :  { %v13742_v43 = vpop.f32.mrb[88].mxu0  ;;  %14066 = vmatprep.subr.bf16.mxu1 %v15130_v42  ;;  %v15170_v42 = vld [vmem:[%s18608_s1 + $0x1e78] sm:$0xff]  }
 0x3b7   :  { %v13743_v45 = vpop.f32.mrb[89].mxu0  ;;  %v13764_v47 = vpop.f32.mrb[88].mxu1 }
 0x3b8   :  { %v13744_v48 = vadd.f32 %v13743_v45, %v13742_v43  ;;  %v13745_v49 = vpop.f32.mrb[90].mxu0  ;;  %v13765_v52 = vpop.f32.mrb[89].mxu1  ;;  %14045 = vmatpush3.bf16.msra.mxu0 %v15131_v44  ;;  %v15169_v44 = vld [vmem:[%s18608_s1 + $0x1eb0] sm:$0xff]   ;;  %v15171_v45 = vld [vmem:[%s18608_s1 + $0x1ef8] sm:$0xff]  }
 0x3b9   :  { %v13746_v53 = vpop.f32.mrb[91].mxu0  ;;  %v13766_v55 = vadd.f32 %v13765_v52, %v13764_v47  ;;  %v13767_v56 = vpop.f32.mrb[90].mxu1  ;;  %14046 = vmatprep.subr.bf16.mxu0 %v15133_v50  ;;  %14067 = vmatpush3.bf16.msra.mxu1 %v15132_v46  ;;  %v15172_v46 = vld [vmem:[%s18608_s1 + $0x1e38] sm:$0xff]   ;;  %v15174_v49 = vld [vmem:[%s18608_s1 + $0x1f40] sm:$0xff]  }
 0x3ba   :  { %v10953_v54 = vadd.f32 %v13744_v48, %v18268_v3  ;;  %v13768_v58 = vpop.f32.mrb[91].mxu1  ;;  %14068 = vmatprep.subr.bf16.mxu1 %v15134_v51  ;;  %v15143_v3 = vld [vmem:[%s18608_s1 + $0x1ec0] sm:$0xff]   ;;  %v30_v47 = vld [vmem:[%s18609_s0 + $0x78] sm:$0xff] }
 0x3bb   :  { %v2844_v48 = vrot.slane %v30_v47, %v15322_v35  ;;  %v2837_v50 = vcombine.high %v30_v47, %v30_v47  ;;  %v15173_v51 = vld [vmem:[%s18608_s1 + $0x1eb8] sm:$0xff]  }
 0x3bc   :  { %v18379_v60 = vadd.f32 %v13766_v55, %v10953_v54  ;;  %14047 = vmatpush3.bf16.msra.mxu0 %v15135_v57  ;;  %v15175_v54 = vld [vmem:[%s18608_s1 + $0x1fc0] sm:$0xff]  }
 0x3bd   :  { %14048 = vmatprep.subr.bf16.mxu0 %v15137_v61  ;;  %14069 = vmatpush3.bf16.msra.mxu1 %v15136_v59  ;;  %v2852_v52 = vcombine.high %v2844_v48, %v2844_v48  ;;  %v2860_v53 = vrot.slane %v2844_v48, %v15322_v35  ;;  %v18506_v55 = vrot.slane %v2837_v50, %v15322_v35  ;;  %v15176_v57 = vld [vmem:[%s18608_s1 + $0x1f00] sm:$0xff]  }
 0x3be   :  { %14070 = vmatprep.subr.bf16.mxu1 %v15138_v62  ;;  %v15177_v62 = vld [vmem:[%s18608_s1 + $0x1f80] sm:$0xff]  }
 0x3bf   :  { %v2874_v56 = vrot.slane %v2852_v52, %v15322_v35  ;;  %v2853_v58 = vcombine.high %v18506_v55, %v18506_v55  ;;  %v2882_v59 = vcombine.high %v2860_v53, %v2860_v53 }
 0x3c0   :  { %14049 = vmatpush3.bf16.msra.mxu0 %v15139_v63 }
 0x3c1   :  { %14078 = vmatprep.subr.bf16.mxu0 %v15142_v2  ;;  %14071 = vmatpush3.bf16.msra.mxu1 %v15140_v0  ;;  %v2884_v61 = vcombine.high %v2874_v56, %v2874_v56  ;;  %v2881_v63 = vrot.slane %v2853_v58, %v15322_v35  ;;  %v15179_v0 = vld [vmem:[%s18608_s1 + $0x1fc8] sm:$0xff]  }
 0x3c2   :  { %14100 = vmatprep.subr.bf16.mxu1 %v15143_v3  ;;  %v15182_v3 = vld [vmem:[%s18608_s1 + $0x1f50] sm:$0xff]  }
 0x3c3   :  { %11511 = vmatmul.mubr.bf16.vlgmr.msra.gmra.mrb[116].mxu0 %v2818_v1  ;;  %v15180_v1 = vld [vmem:[%s18608_s1 + $0x1f08] sm:$0xff]   ;;  %v2885_v2 = vcombine.high %v2881_v63, %v2881_v63 }
 0x3c4   :  { %14079 = vmatpush3.bf16.msra.mxu0 %v15144_v4  ;;  %11551 = vmatmul.mubr.bf16.vlgmr.msra.gmra.mrb[116].mxu1 %v2834_v6  ;;  %v15181_v4 = vld [vmem:[%s18608_s1 + $0x1f88] sm:$0xff]   ;;  %v15184_v6 = vld [vmem:[%s18608_s1 + $0x1f10] sm:$0xff]  }
 0x3c5   :  { %14080 = vmatprep.subr.bf16.mxu0 %v15146_v7  ;;  %14101 = vmatpush3.bf16.msra.mxu1 %v15145_v5  ;;  %v15183_v5 = vld [vmem:[%s18608_s1 + $0x1fd0] sm:$0xff]   ;;  %v15186_v7 = vld [vmem:[%s18608_s1 + $0x1f58] sm:$0xff]  }
 0x3c6   :  { %14102 = vmatprep.subr.bf16.mxu1 %v15147_v8  ;;  %11590 = vmatprep.mubr.bf16.mxu0 %v2874_v56  ;;  %v15185_v8 = vld [vmem:[%s18608_s1 + $0x1f90] sm:$0xff]  }
 0x3c7   :  { %11630 = vmatprep.mubr.bf16.mxu1 %v2884_v61 }
 0x3c8   :  { %14081 = vmatpush3.bf16.msra.mxu0 %v15148_v9  ;;  %v15187_v9 = vld [vmem:[%s18608_s1 + $0x1fd8] sm:$0xff]  }
 0x3c9   :  { %14082 = vmatprep.subr.bf16.mxu0 %v15150_v11  ;;  %14103 = vmatpush3.bf16.msra.mxu1 %v15149_v10  ;;  %v15188_v10 = vld [vmem:[%s18608_s1 + $0x1f18] sm:$0xff]   ;;  %v15190_v11 = vld [vmem:[%s18608_s1 + $0x1f60] sm:$0xff]  }
 0x3ca   :  { %14104 = vmatprep.subr.bf16.mxu1 %v15151_v12  ;;  %v15189_v12 = vld [vmem:[%s18608_s1 + $0x1f98] sm:$0xff]  }
 0x3cc   :  { %14083 = vmatpush3.bf16.msra.mxu0 %v15152_v13  ;;  %v15191_v13 = vld [vmem:[%s18608_s1 + $0x1fe0] sm:$0xff]  }
 0x3cd   :  { %14084 = vmatprep.subr.bf16.mxu0 %v15154_v15  ;;  %14105 = vmatpush3.bf16.msra.mxu1 %v15153_v14  ;;  %v15192_v14 = vld [vmem:[%s18608_s1 + $0x1f20] sm:$0xff]   ;;  %v15194_v15 = vld [vmem:[%s18608_s1 + $0x1f68] sm:$0xff]  }
 0x3ce   :  { %14106 = vmatprep.subr.bf16.mxu1 %v15155_v16  ;;  %v15193_v16 = vld [vmem:[%s18608_s1 + $0x1fa0] sm:$0xff]  }
 0x3d0   :  { %14085 = vmatpush3.bf16.msra.mxu0 %v15156_v17 }
 0x3d1   :  { %14086 = vmatprep.subr.bf16.mxu0 %v15158_v19  ;;  %14107 = vmatpush3.bf16.msra.mxu1 %v15157_v18  ;;  %v15195_v18 = vld [vmem:[%s18608_s1 + $0x1fe8] sm:$0xff]  }
 0x3d2   :  { %14108 = vmatprep.subr.bf16.mxu1 %v15159_v20  ;;  %v15196_v20 = vld [vmem:[%s18608_s1 + $0x1f28] sm:$0xff]  }
 0x3d4   :  { %14087 = vmatpush3.bf16.msra.mxu0 %v15160_v21 }
 0x3d5   :  { %14088 = vmatprep.subr.bf16.mxu0 %v15162_v23  ;;  %14109 = vmatpush3.bf16.msra.mxu1 %v15161_v22 }
 0x3d6   :  { %v13786_v25 = vpop.f32.mrb[92].mxu0  ;;  %14110 = vmatprep.subr.bf16.mxu1 %v15163_v24  ;;  %v15197_v24 = vld [vmem:[%s18608_s1 + $0x1fa8] sm:$0xff]  }
 0x3d7   :  { %v13787_v27 = vpop.f32.mrb[93].mxu0  ;;  %v13808_v29 = vpop.f32.mrb[92].mxu1 }
 0x3d8   :  { %v13788_v30 = vadd.f32 %v13787_v27, %v13786_v25  ;;  %v13789_v31 = vpop.f32.mrb[94].mxu0  ;;  %v13809_v32 = vpop.f32.mrb[93].mxu1  ;;  %14089 = vmatpush3.bf16.msra.mxu0 %v15164_v26  ;;  %v15198_v25 = vld [vmem:[%s18608_s1 + $0x1f70] sm:$0xff]  }
 0x3d9   :  { %v13790_v34 = vpop.f32.mrb[95].mxu0  ;;  %v13810_v38 = vadd.f32 %v13809_v32, %v13808_v29  ;;  %v13811_v39 = vpop.f32.mrb[94].mxu1  ;;  %14090 = vmatprep.subr.bf16.mxu0 %v15166_v28  ;;  %14111 = vmatpush3.bf16.msra.mxu1 %v15165_v33  ;;  %v15199_v31 = vld [vmem:[%s18608_s1 + $0x1ff0] sm:$0xff]  }
 0x3da   :  { %v11033_v37 = vadd.f32 %v13788_v30, %v18379_v60  ;;  %v13812_v41 = vpop.f32.mrb[95].mxu1  ;;  %14112 = vmatprep.subr.bf16.mxu1 %v15167_v36  ;;  %v15178_v60 = vld [vmem:[%s18608_s1 + $0x1f48] sm:$0xff]   ;;  %v15200_v33 = vld [vmem:[%s18608_s1 + $0x1f30] sm:$0xff]   ;;  %v15202_v36 = vld [vmem:[%s18608_s1 + $0x1f78] sm:$0xff]  }
 0x3db   :  { %v15204_v39 = vld [vmem:[%s18608_s1 + $0x1f38] sm:$0xff]  }
 0x3dc   :  { %v18480_v43 = vadd.f32 %v13810_v38, %v11033_v37  ;;  %14091 = vmatpush3.bf16.msra.mxu0 %v15168_v40  ;;  %v15201_v37 = vld [vmem:[%s18608_s1 + $0x1fb0] sm:$0xff]   ;;  %v15203_v38 = vld [vmem:[%s18608_s1 + $0x1ff8] sm:$0xff]   ;;  %v2867_v40 = vrot.slane %v18506_v55, %v15322_v35 }
 0x3dd   :  { %14092 = vmatprep.subr.bf16.mxu0 %v15170_v42  ;;  %14113 = vmatpush3.bf16.msra.mxu1 %v15169_v44  ;;  %v15205_v41 = vld [vmem:[%s18608_s1 + $0x1fb8] sm:$0xff]  }
 0x3de   :  { %14114 = vmatprep.subr.bf16.mxu1 %v15171_v45  ;;  %v2883_v42 = vcombine.high %v2867_v40, %v2867_v40 }
 0x3e0   :  { %14093 = vmatpush3.bf16.msra.mxu0 %v15172_v46 }
 0x3e1   :  { %14122 = vmatprep.subr.bf16.mxu0 %v15174_v49  ;;  %14115 = vmatpush3.bf16.msra.mxu1 %v15173_v51 }
 0x3e2   :  { %14144 = vmatprep.subr.bf16.mxu1 %v15175_v54 }
 0x3e3   :  { %11591 = vmatmul.mubr.bf16.vlgmr.msra.gmra.mrb[120].mxu0 %v2860_v53 }
 0x3e4   :  { %14123 = vmatpush3.bf16.msra.mxu0 %v15176_v57  ;;  %11631 = vmatmul.mubr.bf16.vlgmr.msra.gmra.mrb[120].mxu1 %v2882_v59 }
 0x3e5   :  { %14124 = vmatprep.subr.bf16.mxu0 %v15178_v60  ;;  %14145 = vmatpush3.bf16.msra.mxu1 %v15177_v62 }
 0x3e6   :  { %11670 = vmatprep.mubr.bf16.mxu0 %v2881_v63  ;;  %14146 = vmatprep.subr.bf16.mxu1 %v15179_v0 }
 0x3e7   :  { %11710 = vmatprep.mubr.bf16.mxu1 %v2885_v2 }
 0x3e8   :  { %14125 = vmatpush3.bf16.msra.mxu0 %v15180_v1 }
 0x3e9   :  { %14126 = vmatprep.subr.bf16.mxu0 %v15182_v3  ;;  %14147 = vmatpush3.bf16.msra.mxu1 %v15181_v4 }
 0x3ea   :  { %14148 = vmatprep.subr.bf16.mxu1 %v15183_v5 }
 0x3ec   :  { %14127 = vmatpush3.bf16.msra.mxu0 %v15184_v6 }
 0x3ed   :  { %14128 = vmatprep.subr.bf16.mxu0 %v15186_v7  ;;  %14149 = vmatpush3.bf16.msra.mxu1 %v15185_v8 }
 0x3ee   :  { %14150 = vmatprep.subr.bf16.mxu1 %v15187_v9 }
 0x3f0   :  { %14129 = vmatpush3.bf16.msra.mxu0 %v15188_v10 }
 0x3f1   :  { %14130 = vmatprep.subr.bf16.mxu0 %v15190_v11  ;;  %14151 = vmatpush3.bf16.msra.mxu1 %v15189_v12 }
 0x3f2   :  { %14152 = vmatprep.subr.bf16.mxu1 %v15191_v13 }
 0x3f4   :  { %14131 = vmatpush3.bf16.msra.mxu0 %v15192_v14 }
 0x3f5   :  { %14132 = vmatprep.subr.bf16.mxu0 %v15194_v15  ;;  %14153 = vmatpush3.bf16.msra.mxu1 %v15193_v16 }
 0x3f6   :  { %v13830_v17 = vpop.f32.mrb[96].mxu0  ;;  %14154 = vmatprep.subr.bf16.mxu1 %v15195_v18 }
 0x3f7   :  { %v13831_v19 = vpop.f32.mrb[97].mxu0  ;;  %v13852_v21 = vpop.f32.mrb[96].mxu1 }
 0x3f8   :  { %v13832_v22 = vadd.f32 %v13831_v19, %v13830_v17  ;;  %v13833_v23 = vpop.f32.mrb[98].mxu0  ;;  %v13853_v26 = vpop.f32.mrb[97].mxu1  ;;  %14133 = vmatpush3.bf16.msra.mxu0 %v15196_v20 }
 0x3f9   :  { %v13834_v27 = vpop.f32.mrb[99].mxu0  ;;  %v13854_v29 = vadd.f32 %v13853_v26, %v13852_v21  ;;  %v13855_v30 = vpop.f32.mrb[98].mxu1  ;;  %14134 = vmatprep.subr.bf16.mxu0 %v15198_v25  ;;  %14155 = vmatpush3.bf16.msra.mxu1 %v15197_v24 }
 0x3fa   :  { %v11113_v28 = vadd.f32 %v13832_v22, %v18480_v43  ;;  %v13856_v32 = vpop.f32.mrb[99].mxu1  ;;  %14156 = vmatprep.subr.bf16.mxu1 %v15199_v31 }
 0x3fc   :  { %v11153_v34 = vadd.f32 %v13854_v29, %v11113_v28  ;;  %14135 = vmatpush3.bf16.msra.mxu0 %v15200_v33 }
 0x3fd   :  { %14136 = vmatprep.subr.bf16.mxu0 %v15202_v36  ;;  %14157 = vmatpush3.bf16.msra.mxu1 %v15201_v37 }
 0x3fe   :  { %14158 = vmatprep.subr.bf16.mxu1 %v15203_v38 }
 0x400   :  { %14137 = vmatpush3.bf16.msra.mxu0 %v15204_v39 }
 0x401   :  { %14159 = vmatpush3.bf16.msra.mxu1 %v15205_v41 }
 0x403   :  { %11671 = vmatmul.mubr.bf16.vlgmr.msra.gmra.mrb[124].mxu0 %v2867_v40 }
 0x404   :  { %11711 = vmatmul.mubr.bf16.vlgmr.msra.gmra.mrb[124].mxu1 %v2883_v42 }
 0x416   :  { %v13874_v43 = vpop.f32.mrb[100].mxu0 }
 0x417   :  { %v13875_v44 = vpop.f32.mrb[101].mxu0  ;;  %v13896_v45 = vpop.f32.mrb[100].mxu1 }
 0x418   :  { %v13876_v46 = vadd.f32 %v13875_v44, %v13874_v43  ;;  %v13877_v47 = vpop.f32.mrb[102].mxu0  ;;  %v13897_v48 = vpop.f32.mrb[101].mxu1 }
 0x419   :  { %v13878_v49 = vpop.f32.mrb[103].mxu0  ;;  %v13898_v35 = vadd.f32 %v13897_v48, %v13896_v45  ;;  %v13899_v51 = vpop.f32.mrb[102].mxu1 }
 0x41a   :  { %v11193_v50 = vadd.f32 %v13876_v46, %v11153_v34  ;;  %v13900_v52 = vpop.f32.mrb[103].mxu1 }
 0x41c   :  { %v11233_v53 = vadd.f32 %v13898_v35, %v11193_v50 }
 0x436   :  { %v13918_v54 = vpop.f32.mrb[104].mxu0 }
 0x437   :  { %v13919_v55 = vpop.f32.mrb[105].mxu0  ;;  %v13940_v56 = vpop.f32.mrb[104].mxu1 }
 0x438   :  { %v13920_v57 = vadd.f32 %v13919_v55, %v13918_v54  ;;  %v13921_v58 = vpop.f32.mrb[106].mxu0  ;;  %v13941_v59 = vpop.f32.mrb[105].mxu1 }
 0x439   :  { %v13922_v60 = vpop.f32.mrb[107].mxu0  ;;  %v13942_v62 = vadd.f32 %v13941_v59, %v13940_v56  ;;  %v13943_v63 = vpop.f32.mrb[106].mxu1 }
 0x43a   :  { %v11273_v61 = vadd.f32 %v13920_v57, %v11233_v53  ;;  %v13944_v0 = vpop.f32.mrb[107].mxu1 }
 0x43c   :  { %v11313_v1 = vadd.f32 %v13942_v62, %v11273_v61 }
 0x456   :  { %v13962_v2 = vpop.f32.mrb[108].mxu0 }
 0x457   :  { %v13963_v3 = vpop.f32.mrb[109].mxu0  ;;  %v13984_v4 = vpop.f32.mrb[108].mxu1 }
 0x458   :  { %v13964_v5 = vadd.f32 %v13963_v3, %v13962_v2  ;;  %v13965_v6 = vpop.f32.mrb[110].mxu0  ;;  %v13985_v7 = vpop.f32.mrb[109].mxu1 }
 0x459   :  { %v13966_v8 = vpop.f32.mrb[111].mxu0  ;;  %v13986_v10 = vadd.f32 %v13985_v7, %v13984_v4  ;;  %v13987_v11 = vpop.f32.mrb[110].mxu1 }
 0x45a   :  { %v11353_v9 = vadd.f32 %v13964_v5, %v11313_v1  ;;  %v13988_v12 = vpop.f32.mrb[111].mxu1 }
 0x45c   :  { %v11393_v13 = vadd.f32 %v13986_v10, %v11353_v9 }
 0x476   :  { %v14006_v14 = vpop.f32.mrb[112].mxu0 }
 0x477   :  { %v14007_v15 = vpop.f32.mrb[113].mxu0  ;;  %v14028_v16 = vpop.f32.mrb[112].mxu1 }
 0x478   :  { %v14008_v17 = vadd.f32 %v14007_v15, %v14006_v14  ;;  %v14009_v18 = vpop.f32.mrb[114].mxu0  ;;  %v14029_v19 = vpop.f32.mrb[113].mxu1 }
 0x479   :  { %v14010_v20 = vpop.f32.mrb[115].mxu0  ;;  %v14030_v22 = vadd.f32 %v14029_v19, %v14028_v16  ;;  %v14031_v23 = vpop.f32.mrb[114].mxu1 }
 0x47a   :  { %v11433_v21 = vadd.f32 %v14008_v17, %v11393_v13  ;;  %v14032_v24 = vpop.f32.mrb[115].mxu1 }
 0x47c   :  { %v11473_v25 = vadd.f32 %v14030_v22, %v11433_v21 }
 0x496   :  { %v14050_v26 = vpop.f32.mrb[116].mxu0 }
 0x497   :  { %v14051_v27 = vpop.f32.mrb[117].mxu0  ;;  %v14072_v28 = vpop.f32.mrb[116].mxu1 }
 0x498   :  { %v14052_v29 = vadd.f32 %v14051_v27, %v14050_v26  ;;  %v14053_v30 = vpop.f32.mrb[118].mxu0  ;;  %v14073_v31 = vpop.f32.mrb[117].mxu1 }
 0x499   :  { %v14054_v32 = vpop.f32.mrb[119].mxu0  ;;  %v14074_v34 = vadd.f32 %v14073_v31, %v14072_v28  ;;  %v14075_v36 = vpop.f32.mrb[118].mxu1 }
 0x49a   :  { %v11513_v33 = vadd.f32 %v14052_v29, %v11473_v25  ;;  %v14076_v37 = vpop.f32.mrb[119].mxu1 }
 0x49c   :  { %v11553_v38 = vadd.f32 %v14074_v34, %v11513_v33 }
 0x4b6   :  { %v14094_v39 = vpop.f32.mrb[120].mxu0 }
 0x4b7   :  { %v14095_v40 = vpop.f32.mrb[121].mxu0  ;;  %v14116_v41 = vpop.f32.mrb[120].mxu1 }
 0x4b8   :  { %v14096_v42 = vadd.f32 %v14095_v40, %v14094_v39  ;;  %v14097_v43 = vpop.f32.mrb[122].mxu0  ;;  %v14117_v44 = vpop.f32.mrb[121].mxu1 }
 0x4b9   :  { %v14098_v45 = vpop.f32.mrb[123].mxu0  ;;  %v14118_v47 = vadd.f32 %v14117_v44, %v14116_v41  ;;  %v14119_v48 = vpop.f32.mrb[122].mxu1 }
 0x4ba   :  { %v11593_v46 = vadd.f32 %v14096_v42, %v11553_v38  ;;  %v14120_v49 = vpop.f32.mrb[123].mxu1 }
 0x4bc   :  { %v11633_v50 = vadd.f32 %v14118_v47, %v11593_v46 }
 0x4d6   :  { %v14138_v35 = vpop.f32.mrb[124].mxu0 }
 0x4d7   :  { %v14139_v51 = vpop.f32.mrb[125].mxu0  ;;  %v14160_v52 = vpop.f32.mrb[124].mxu1 }
 0x4d8   :  { %v14140_v53 = vadd.f32 %v14139_v51, %v14138_v35  ;;  %v14141_v54 = vpop.f32.mrb[126].mxu0  ;;  %v14161_v55 = vpop.f32.mrb[125].mxu1 }
 0x4d9   :  { %v14142_v56 = vpop.f32.mrb[127].mxu0  ;;  %v14162_v58 = vadd.f32 %v14161_v55, %v14160_v52  ;;  %v14163_v59 = vpop.f32.mrb[126].mxu1 }
 0x4da   :  { %v11673_v57 = vadd.f32 %v14140_v53, %v11633_v50  ;;  %v14164_v60 = vpop.f32.mrb[127].mxu1 }
 0x4dc   :  { %v11713_v61 = vadd.f32 %v14162_v58, %v11673_v57 }
 0x4de   :  { %v11718_v62 = vand.u32 2147483647, %v11713_v61  ;;  %vm11722_vm0 = vcmp.ge.f32.partialorder %v11713_v61, 0.0 }
 0x4e0   :  { %v11719_v63 = vsub.f32 0.0, %v11718_v62 }
 0x4e2   :  { %v11720_v0 = vmul.f32 1.442695, %v11719_v63 }
 0x4e4   :  { %15207 = vpow2.f32 %v11720_v0 }
 0x4ee   :  { %v15208_v1 = vpop.eup %15207 }
 0x4ef   :  { %v11723_v2 = vadd.f32 1.0, %v15208_v1 }
 0x4f1   :  { %15209 = vrcp.f32 %v11723_v2 }
 0x4fb   :  { %v15210_v3 = vpop.eup %15209 }
 0x4fc   :  { %v11726_v4 = vmul.f32 %v15210_v3, %v15208_v1 }
 0x4fe   :  { %v11727_v5 = vsel %vm11722_vm0, %v15210_v3, %v11726_v4 }
 0x4ff   :  { %11728 = vst [vmem:[%s18611_s3] sm:$0x3] %v11727_v5 }

</bundles_post_ra>
